<compile_context>
chip_gen: v7x
topology: tpu7x:2x2x1
jax: 0.10.0
libtpu: 0.0.40
codegen_flags: <defaults>
</compile_context>

<pallas_src>
import functools
import math

import jax
import jax.numpy as jnp
from jax.experimental import pallas as pl
from jax.experimental.pallas import tpu as pltpu


# -----------------------------------------------------------------------------
# In-kernel helpers (operate on traced VMEM values).
# -----------------------------------------------------------------------------
def _split_heads(x, num_heads):
    """(B, N, dv) -> (H*B, N, dh); mirrors torch.cat(x.split(dh, 2), 0)."""
    dh = x.shape[-1] // num_heads
    return jnp.concatenate(
        [x[..., h * dh:(h + 1) * dh] for h in range(num_heads)], axis=0)


def _merge_heads(x, num_heads):
    """(H*B, N, dh) -> (B, N, dv); mirrors torch.cat(x.split(B, 0), 2)."""
    b = x.shape[0] // num_heads
    return jnp.concatenate(
        [x[h * b:(h + 1) * b] for h in range(num_heads)], axis=-1)


def _attention(qp, kp_scaled, vp, num_heads):
    """Multi-head attention with residual Q_ + A V_ (head-batched: one logits
    matmul + one A@V matmul + one softmax for all heads).  kp_scaled already
    carries the 1/sqrt(dim_V) factor."""
    bt = kp_scaled.shape[0]
    if qp.shape[0] != bt:                      # batch-constant (inducing/seed) queries
        qp = jnp.broadcast_to(qp, (bt,) + qp.shape[1:])
    q = _split_heads(qp, num_heads)            # (H*Bt, Nq, dh)
    k = _split_heads(kp_scaled, num_heads)     # (H*Bt, Nk, dh)
    v = _split_heads(vp, num_heads)            # (H*Bt, Nk, dh)

    logits = jnp.einsum('zqd,zkd->zqk', q, k,
                        preferred_element_type=jnp.float32)
    m = jnp.max(logits, axis=-1, keepdims=True)
    e = jnp.exp(logits - m)
    s = jnp.sum(e, axis=-1, keepdims=True)
    r = pl.reciprocal(s, approx=True)          # EUP slot
    r = r * (2.0 - s * r)                      # one Newton step -> ~f32-exact
    out = q + jnp.einsum('zqk,zkd->zqd', e * r, v,
                         preferred_element_type=jnp.float32)
    return _merge_heads(out, num_heads)        # (Bt, Nq, dv)


def _proj_kv(kin, wkv, bkv, dv):
    """Project (Bt, Nk, d) -> scaled Kp, Vp, each (Bt, Nk, dv), via one wide matmul."""
    bt, nk, d = kin.shape
    kv = jnp.dot(kin.reshape(bt * nk, d), wkv,
                 preferred_element_type=jnp.float32) + bkv
    kv = kv.reshape(bt, nk, 2 * dv)
    return kv[..., :dv], kv[..., dv:]


def _mab_out(o, wo, bo):
    """O + relu(fc_o(O)) done on the folded (Bt*Nq, dv) matrix."""
    bt, nq, dv = o.shape
    h = jnp.dot(o.reshape(bt * nq, dv), wo,
                preferred_element_type=jnp.float32) + bo
    return o + jnp.maximum(h, 0.0).reshape(bt, nq, dv)


# -----------------------------------------------------------------------------
# Fused whole-network kernel: one batch tile per grid step.
# -----------------------------------------------------------------------------
def _fused_kernel(xp_ref, w_ref, b_ref, qc_ref, o_ref, *,
                  num_heads, dv, ni0, ni1, n_out, d_pad, col):
    bt, n, _ = xp_ref.shape

    def wseg(name, width):
        c = col[name]                           # static, 128-aligned column offset
        return w_ref[:, c:c + width], b_ref[:, c:c + width]

    xp = xp_ref[...]                            # (Bt, N, 3*dv): [K0*scale | V0 | Q1p]
    K0s, V0, Q1p = xp[..., :dv], xp[..., dv:2 * dv], xp[..., 2 * dv:]

    qc = qc_ref[...]                            # (1, ni0+ni1+n_out, dv)
    QI0 = qc[:, :ni0, :]
    QI1 = qc[:, ni0:ni0 + ni1, :]
    QS = qc[:, ni0 + ni1:ni0 + ni1 + n_out, :]

    # ---- ISAB0.mab0: H0 = MAB(I0, X); X's K/V pre-projected (K pre-scaled).
    wo, bo = wseg("wo0a", dv)
    H0 = _mab_out(_attention(QI0, K0s, V0, num_heads), wo, bo)      # (Bt, ni0, dv)

    # ---- ISAB0.mab1: X1 = MAB(X, H0); X's Q pre-projected.
    wkv, bkv = wseg("wkv0b", 2 * dv)
    Kp, Vp = _proj_kv(H0, wkv, bkv, dv)
    wo, bo = wseg("wo0b", dv)
    X1 = _mab_out(_attention(Q1p, Kp, Vp, num_heads), wo, bo)       # (Bt, N, dv)

    # ---- ISAB1: single fused projection of X1 -> [K1a*scale | V1a | Q1b].
    wkq, bkq = wseg("wkvq1a", 3 * dv)
    kvq = (jnp.dot(X1.reshape(bt * n, dv), wkq,
                   preferred_element_type=jnp.float32) + bkq).reshape(bt, n, 3 * dv)
    K1a, V1a, Q1b = kvq[..., :dv], kvq[..., dv:2 * dv], kvq[..., 2 * dv:]

    # ---- ISAB1.mab0: H1 = MAB(I1, X1)
    wo, bo = wseg("wo1a", dv)
    H1 = _mab_out(_attention(QI1, K1a, V1a, num_heads), wo, bo)     # (Bt, ni1, dv)

    # ---- ISAB1.mab1: X2 = MAB(X1, H1)
    wkv, bkv = wseg("wkv1b", 2 * dv)
    Kp, Vp = _proj_kv(H1, wkv, bkv, dv)
    wo, bo = wseg("wo1b", dv)
    X2 = _mab_out(_attention(Q1b, Kp, Vp, num_heads), wo, bo)       # (Bt, N, dv)

    # ---- PMA: P = MAB(S, X2)   (Dropout = identity at inference)
    wkv, bkv = wseg("wkvp", 2 * dv)
    Kp, Vp = _proj_kv(X2, wkv, bkv, dv)
    wo, bo = wseg("wop", dv)
    P = _mab_out(_attention(QS, Kp, Vp, num_heads), wo, bo)         # (Bt, n_out, dv)

    # ---- Final Linear, fused; 2-D lane-dense store.
    wd, bd = wseg("wdec", d_pad)
    out = jnp.dot(P.reshape(bt * n_out, dv), wd,
                  preferred_element_type=jnp.float32) + bd
    o_ref[...] = out.astype(o_ref.dtype)


# -----------------------------------------------------------------------------
# Generation-aware tiling helpers.
# -----------------------------------------------------------------------------
def _tpu_cores_and_vmem():
    """(#TensorCores addressable per device, per-kernel VMEM budget in bytes)."""
    try:
        kind = jax.devices()[0].device_kind.lower()
    except Exception:
        kind = ""
    if "v7" in kind:
        return 2, 48 << 20       # v7x: 64 MiB physical VMEM per TC -> leave headroom
    if "v4" in kind:
        return 2, 96 << 20       # v4 megacore: 2 TCs, 128 MiB VMEM
    return 1, 96 << 20           # v5e / v6e: 1 TC, 128 MiB VMEM


def _pick_batch_tile(B, n_out, n_cores, bt_cap):
    """Largest batch tile that (a) divides B, (b) fits the VMEM cap, (c) keeps the
    2-D output block either full-array or 8-sublane aligned, preferring exactly
    `n_cores` grid steps (1 step on v5e/v6e, 2 on v7x)."""
    bt_cap = max(1, bt_cap)
    best_key, best_bt = (-1, -1, -1), 1
    for bt in range(1, B + 1):
        if B % bt or bt > bt_cap:
            continue
        grid = B // bt
        block_ok = 1 if (grid == 1 or (bt * n_out) % 8 == 0) else 0
        key = (block_ok, 1 if grid == n_cores else 0, bt)
        if key > best_key:
            best_key, best_bt = key, bt
    return best_bt


# -----------------------------------------------------------------------------
# Wrapper: weight prep (XLA) + single pallas_call.
# -----------------------------------------------------------------------------
def set_transformer_forward(X, params, num_heads, batch_tile=None):
    B, N, _ = X.shape
    p0a = params["isab0"]["mab0"]; p0b = params["isab0"]["mab1"]
    p1a = params["isab1"]["mab0"]; p1b = params["isab1"]["mab1"]
    pp = params["pma"]["mab"]
    dv = p0a["wq"].shape[1]
    scale = 1.0 / math.sqrt(dv)   # reference scales by sqrt(dim_V); folded into K side.

    # --- XLA-side pre-projections: tiny dim_input contraction dim and
    #     batch-constant inducing/seed queries; kernel never sees dk=2.
    wxp = jnp.concatenate([p0a["wk"] * scale, p0a["wv"], p0b["wq"]], axis=1)  # (din, 3dv)
    bxp = jnp.concatenate([p0a["bk"] * scale, p0a["bv"], p0b["bq"]], axis=1)  # (1, 3dv)
    XP = jnp.einsum('bnd,de->bne', X, wxp) + bxp                              # (B, N, 3dv)

    QI0 = params["isab0"]["I"] @ p0a["wq"] + p0a["bq"]     # (1, ni0, dv)
    QI1 = params["isab1"]["I"] @ p1a["wq"] + p1a["bq"]     # (1, ni1, dv)
    QS = params["pma"]["S"] @ pp["wq"] + pp["bq"]          # (1, n_out, dv)
    ni0, ni1, n_out = QI0.shape[1], QI1.shape[1], QS.shape[1]
    Q_slab = jnp.concatenate([QI0, QI1, QS], axis=1)       # (1, ni0+ni1+n_out, dv)

    # --- Decoder padded to a lane-dense width (sliced back after the kernel).
    d_out = params["dec_w"].shape[1]
    d_pad = max(128, 128 * pl.cdiv(d_out, 128))
    wdec = jnp.zeros((dv, d_pad), jnp.float32).at[:, :d_out].set(params["dec_w"])
    bdec = jnp.zeros((1, d_pad), jnp.float32).at[:, :d_out].set(params["dec_b"])

    # --- Consolidate every constant weight/bias into one (dv, W) / (1, W) slab.
    def kvw(p):
        return (jnp.concatenate([p["wk"] * scale, p["wv"]], axis=1),
                jnp.concatenate([p["bk"] * scale, p["bv"]], axis=1))

    wkv0b, bkv0b = kvw(p0b)
    wkvq1a = jnp.concatenate([p1a["wk"] * scale, p1a["wv"], p1b["wq"]], axis=1)
    bkvq1a = jnp.concatenate([p1a["bk"] * scale, p1a["bv"], p1b["bq"]], axis=1)
    wkv1b, bkv1b = kvw(p1b)
    wkvp, bkvp = kvw(pp)

    segs = [("wkv0b", wkv0b, bkv0b),
            ("wkvq1a", wkvq1a, bkvq1a),
            ("wkv1b", wkv1b, bkv1b),
            ("wkvp", wkvp, bkvp),
            ("wo0a", p0a["wo"], p0a["bo"]),
            ("wo0b", p0b["wo"], p0b["bo"]),
            ("wo1a", p1a["wo"], p1a["bo"]),
            ("wo1b", p1b["wo"], p1b["bo"]),
            ("wop", pp["wo"], pp["bo"]),
            ("wdec", wdec, bdec)]
    col, off = {}, 0
    for name, wmat, _ in segs:
        col[name] = off
        off += wmat.shape[1]
    W_slab = jnp.concatenate([w for _, w, _ in segs], axis=1)     # (dv, 1920)
    B_slab = jnp.concatenate([b for _, _, b in segs], axis=1)     # (1, 1920)

    # --- Generation-aware, VMEM-budget-driven batch tile.
    n_cores, vmem_budget = _tpu_cores_and_vmem()
    itemsize = 4
    const_bytes = 2 * itemsize * (W_slab.size + B_slab.size + Q_slab.size)
    per_elem = itemsize * (2 * N * 3 * dv                           # double-buffered XP
                           + 24 * (N + max(ni0, ni1)) * dv          # live activations
                           + 4 * num_heads * max(N, ni0, ni1) ** 2)  # softmax temporaries
    bt_cap = max(1, int((vmem_budget - const_bytes) // per_elem))
    Bt = (_pick_batch_tile(B, n_out, n_cores, bt_cap)
          if batch_tile is None else batch_tile)
    assert B % Bt == 0, (B, Bt)

    kernel = functools.partial(_fused_kernel, num_heads=num_heads, dv=dv,
                               ni0=ni0, ni1=ni1, n_out=n_out, d_pad=d_pad, col=col)

    out = pl.pallas_call(
        kernel,
        out_shape=jax.ShapeDtypeStruct((B * n_out, d_pad), jnp.float32),
        grid_spec=pltpu.PrefetchScalarGridSpec(
            num_scalar_prefetch=0,
            grid=(B // Bt,),
            in_specs=[
                pl.BlockSpec((Bt, N, 3 * dv), lambda b: (b, 0, 0)),
                # Constant slabs: same block every step -> DMA'd once by the pipeline.
                pl.BlockSpec(W_slab.shape, lambda b: (0, 0)),
                pl.BlockSpec(B_slab.shape, lambda b: (0, 0)),
                pl.BlockSpec(Q_slab.shape, lambda b: (0, 0, 0)),
            ],
            out_specs=pl.BlockSpec((Bt * n_out, d_pad), lambda b: (b, 0)),
        ),
        compiler_params=pltpu.CompilerParams(
            dimension_semantics=("parallel",),
            vmem_limit_bytes=int(vmem_budget)),
    )(XP, W_slab, B_slab, Q_slab)

    res = out.reshape(B, n_out, d_pad)[:, :, :d_out]
    # NOTE: full squeeze (all unit dims) to match nn.Module's `.squeeze()`.
    return jnp.squeeze(res)


# -----------------------------------------------------------------------------
# Deterministic parameter init (synthetic, Linear-style uniform / xavier-ish).
# -----------------------------------------------------------------------------
def _init_linear(key, din, dout):
    kw, kb = jax.random.split(key)
    bound = 1.0 / math.sqrt(din)
    w = jax.random.uniform(kw, (din, dout), jnp.float32, -bound, bound)
    b = jax.random.uniform(kb, (1, dout), jnp.float32, -bound, bound)
    return w, b


def _init_mab(key, dim_q, dim_k, dim_v):
    ks = jax.random.split(key, 4)
    wq, bq = _init_linear(ks[0], dim_q, dim_v)
    wk, bk = _init_linear(ks[1], dim_k, dim_v)
    wv, bv = _init_linear(ks[2], dim_k, dim_v)
    wo, bo = _init_linear(ks[3], dim_v, dim_v)
    return dict(wq=wq, bq=bq, wk=wk, bk=bk, wv=wv, bv=bv, wo=wo, bo=bo)


def _init_isab(key, dim_in, dim_out, num_inds):
    k0, k1, k2 = jax.random.split(key, 3)
    bound = math.sqrt(6.0 / (num_inds * dim_out + dim_out))
    I = jax.random.uniform(k0, (1, num_inds, dim_out), jnp.float32, -bound, bound)
    return dict(I=I,
                mab0=_init_mab(k1, dim_out, dim_in, dim_out),
                mab1=_init_mab(k2, dim_in, dim_out, dim_out))


def _init_pma(key, dim, num_seeds):
    k0, k1 = jax.random.split(key)
    bound = math.sqrt(6.0 / (num_seeds * dim + dim))
    S = jax.random.uniform(k0, (1, num_seeds, dim), jnp.float32, -bound, bound)
    return dict(S=S, mab=_init_mab(k1, dim, dim, dim))


def init_set_transformer(key, dim_input, num_outputs, dim_output,
                         num_inds, dim_hidden):
    k0, k1, k2, k3 = jax.random.split(key, 4)
    dec_w, dec_b = _init_linear(k3, dim_hidden, dim_output)
    return dict(
        isab0=_init_isab(k0, dim_input, dim_hidden, num_inds),
        isab1=_init_isab(k1, dim_hidden, dim_hidden, num_inds),
        pma=_init_pma(k2, dim_hidden, num_outputs),
        dec_w=dec_w, dec_b=dec_b,
    )


# -----------------------------------------------------------------------------
# Pure-JAX reference (mirrors the PyTorch code) for correctness checking.
# -----------------------------------------------------------------------------
def _mab_ref(Q, K, p, num_heads):
    Qp = Q @ p["wq"] + p["bq"][0]
    Kp = K @ p["wk"] + p["bk"][0]
    Vp = K @ p["wv"] + p["bv"][0]
    dv = Qp.shape[-1]
    split = lambda x: jnp.concatenate(jnp.split(x, num_heads, axis=2), axis=0)
    Q_, K_, V_ = split(Qp), split(Kp), split(Vp)
    A = jax.nn.softmax(Q_ @ jnp.swapaxes(K_, 1, 2) / math.sqrt(dv), axis=2)
    O = jnp.concatenate(jnp.split(Q_ + A @ V_, num_heads, axis=0), axis=2)
    return O + jax.nn.relu(O @ p["wo"] + p["bo"][0])


def _ref_forward(X, params, num_heads):
    def isab(X, p):
        B = X.shape[0]
        I = jnp.broadcast_to(p["I"], (B,) + p["I"].shape[1:])
        H = _mab_ref(I, X, p["mab0"], num_heads)
        return _mab_ref(X, H, p["mab1"], num_heads)
    X = isab(X, params["isab0"])
    X = isab(X, params["isab1"])
    B = X.shape[0]
    S = jnp.broadcast_to(params["pma"]["S"], (B,) + params["pma"]["S"].shape[1:])
    X = _mab_ref(S, X, params["pma"]["mab"], num_heads)
    return jnp.squeeze(X @ params["dec_w"] + params["dec_b"][0])


# -----------------------------------------------------------------------------
if __name__ == "__main__":
    # Small, module-consistent shapes.
    B, N = 2, 8
    dim_input, num_outputs, dim_output = 2, 1, 4
    num_inds, dim_hidden, num_heads = 32, 128, 4

    key = jax.random.PRNGKey(0)
    k_params, k_x = jax.random.split(key)
    params = init_set_transformer(k_params, dim_input, num_outputs,
                                  dim_output, num_inds, dim_hidden)
    X = jax.random.normal(k_x, (B, N, dim_input), jnp.float32)

    fwd = jax.jit(set_transformer_forward, static_argnums=(2,))
    out = jax.block_until_ready(fwd(X, params, num_heads))

    ref = jax.block_until_ready(_ref_forward(X, params, num_heads))
    assert out.shape == ref.shape == (B, dim_output), (out.shape, ref.shape)
    assert jnp.allclose(out, ref, atol=1e-4, rtol=1e-4), \
        f"max abs err {jnp.max(jnp.abs(out - ref))}"

    print("KERNEL_OK")
</pallas_src>

<mosaic_0001>
module attributes {stable_mosaic.version = 11 : i64} {
  func.func @_fused_kernel(%arg0: i32, %arg1: memref<2x8x384xf32, #tpu.memory_space<vmem>>, %arg2: memref<128x1920xf32, #tpu.memory_space<vmem>>, %arg3: memref<1x1920xf32, #tpu.memory_space<vmem>>, %arg4: memref<1x65x128xf32, #tpu.memory_space<vmem>>, %arg5: memref<2x128xf32, #tpu.memory_space<vmem>>) attributes {dimension_semantics = [#tpu.dimension_semantics<parallel>], iteration_bounds = array<i64: 1>, scalar_prefetch = 0 : i64, scratch_operands = 0 : i64, tpu.core_type = #tpu.core_type<tc>, window_params = [{transform_indices = @transform_0, window_bounds = array<i64: 2, 8, 384>}, {pipeline_mode = #tpu.pipeline_mode<synchronous>, transform_indices = @transform_1, window_bounds = array<i64: 128, 1920>}, {pipeline_mode = #tpu.pipeline_mode<synchronous>, transform_indices = @transform_2, window_bounds = array<i64: 1, 1920>}, {pipeline_mode = #tpu.pipeline_mode<synchronous>, transform_indices = @transform_3, window_bounds = array<i64: 1, 65, 128>}, {transform_indices = @transform_4, window_bounds = array<i64: 2, 128>}]} {
    %c0 = arith.constant 0 : index
    %c0_0 = arith.constant 0 : index
    %c0_1 = arith.constant 0 : index
    %0 = vector.load %arg1[%c0, %c0_0, %c0_1] : memref<2x8x384xf32, #tpu.memory_space<vmem>>, vector<2x8x384xf32>
    %1 = vector.extract_strided_slice %0 {offsets = [0, 0, 0], sizes = [2, 8, 128], strides = [1, 1, 1]} : vector<2x8x384xf32> to vector<2x8x128xf32>
    %2 = vector.extract_strided_slice %0 {offsets = [0, 0, 128], sizes = [2, 8, 128], strides = [1, 1, 1]} : vector<2x8x384xf32> to vector<2x8x128xf32>
    %3 = vector.extract_strided_slice %0 {offsets = [0, 0, 256], sizes = [2, 8, 128], strides = [1, 1, 1]} : vector<2x8x384xf32> to vector<2x8x128xf32>
    %c0_2 = arith.constant 0 : index
    %c0_3 = arith.constant 0 : index
    %c0_4 = arith.constant 0 : index
    %4 = vector.load %arg4[%c0_2, %c0_3, %c0_4] : memref<1x65x128xf32, #tpu.memory_space<vmem>>, vector<1x65x128xf32>
    %5 = vector.extract_strided_slice %4 {offsets = [0, 0, 0], sizes = [1, 32, 128], strides = [1, 1, 1]} : vector<1x65x128xf32> to vector<1x32x128xf32>
    %6 = vector.extract_strided_slice %4 {offsets = [0, 32, 0], sizes = [1, 32, 128], strides = [1, 1, 1]} : vector<1x65x128xf32> to vector<1x32x128xf32>
    %7 = vector.extract_strided_slice %4 {offsets = [0, 64, 0], sizes = [1, 1, 128], strides = [1, 1, 1]} : vector<1x65x128xf32> to vector<1x1x128xf32>
    %c0_5 = arith.constant 0 : index
    %c1152 = arith.constant 1152 : index
    %8 = vector.load %arg2[%c0_5, %c1152] : memref<128x1920xf32, #tpu.memory_space<vmem>>, vector<128x128xf32>
    %c0_6 = arith.constant 0 : index
    %c1152_7 = arith.constant 1152 : index
    %9 = vector.load %arg3[%c0_6, %c1152_7] : memref<1x1920xf32, #tpu.memory_space<vmem>>, vector<1x128xf32>
    %10 = vector.shape_cast %5 : vector<1x32x128xf32> to vector<1x32x128xf32>
    %11 = vector.broadcast %10 : vector<1x32x128xf32> to vector<2x32x128xf32>
    %12 = vector.extract_strided_slice %11 {offsets = [0, 0, 0], sizes = [2, 32, 32], strides = [1, 1, 1]} : vector<2x32x128xf32> to vector<2x32x32xf32>
    %13 = vector.extract_strided_slice %11 {offsets = [0, 0, 32], sizes = [2, 32, 32], strides = [1, 1, 1]} : vector<2x32x128xf32> to vector<2x32x32xf32>
    %14 = vector.extract_strided_slice %11 {offsets = [0, 0, 64], sizes = [2, 32, 32], strides = [1, 1, 1]} : vector<2x32x128xf32> to vector<2x32x32xf32>
    %15 = vector.extract_strided_slice %11 {offsets = [0, 0, 96], sizes = [2, 32, 32], strides = [1, 1, 1]} : vector<2x32x128xf32> to vector<2x32x32xf32>
    %16 = tpu.concatenate %12, %13, %14, %15 in 0 : vector<2x32x32xf32>, vector<2x32x32xf32>, vector<2x32x32xf32>, vector<2x32x32xf32> -> vector<8x32x32xf32>
    %17 = vector.extract_strided_slice %1 {offsets = [0, 0, 0], sizes = [2, 8, 32], strides = [1, 1, 1]} : vector<2x8x128xf32> to vector<2x8x32xf32>
    %18 = vector.extract_strided_slice %1 {offsets = [0, 0, 32], sizes = [2, 8, 32], strides = [1, 1, 1]} : vector<2x8x128xf32> to vector<2x8x32xf32>
    %19 = vector.extract_strided_slice %1 {offsets = [0, 0, 64], sizes = [2, 8, 32], strides = [1, 1, 1]} : vector<2x8x128xf32> to vector<2x8x32xf32>
    %20 = vector.extract_strided_slice %1 {offsets = [0, 0, 96], sizes = [2, 8, 32], strides = [1, 1, 1]} : vector<2x8x128xf32> to vector<2x8x32xf32>
    %21 = tpu.concatenate %17, %18, %19, %20 in 0 : vector<2x8x32xf32>, vector<2x8x32xf32>, vector<2x8x32xf32>, vector<2x8x32xf32> -> vector<8x8x32xf32>
    %22 = vector.extract_strided_slice %2 {offsets = [0, 0, 0], sizes = [2, 8, 32], strides = [1, 1, 1]} : vector<2x8x128xf32> to vector<2x8x32xf32>
    %23 = vector.extract_strided_slice %2 {offsets = [0, 0, 32], sizes = [2, 8, 32], strides = [1, 1, 1]} : vector<2x8x128xf32> to vector<2x8x32xf32>
    %24 = vector.extract_strided_slice %2 {offsets = [0, 0, 64], sizes = [2, 8, 32], strides = [1, 1, 1]} : vector<2x8x128xf32> to vector<2x8x32xf32>
    %25 = vector.extract_strided_slice %2 {offsets = [0, 0, 96], sizes = [2, 8, 32], strides = [1, 1, 1]} : vector<2x8x128xf32> to vector<2x8x32xf32>
    %26 = tpu.concatenate %22, %23, %24, %25 in 0 : vector<2x8x32xf32>, vector<2x8x32xf32>, vector<2x8x32xf32>, vector<2x8x32xf32> -> vector<8x8x32xf32>
    "tpu.trace_start"() <{level = 10 : i32, message = "zqd,zkd->zqk"}> : () -> ()
    %cst = arith.constant dense<0.000000e+00> : vector<8x32x8xf32>
    %27 = tpu.matmul %16, %21, %cst {dimension_numbers = #tpu.dot_dimension_numbers<[2], [2], [1], [1], [0, 0, 0, 1, 1, 1], [0], [0]>} : vector<8x32x32xf32>, vector<8x8x32xf32>, vector<8x32x8xf32> -> vector<8x32x8xf32>
    "tpu.trace_stop"() : () -> ()
    %cst_8 = arith.constant dense<0xFF800000> : vector<8x32xf32>
    %28 = vector.multi_reduction <maximumf>, %27, %cst_8 [2] : vector<8x32x8xf32> to vector<8x32xf32>
    %29 = vector.shape_cast %28 : vector<8x32xf32> to vector<8x32x1xf32>
    %30 = vector.broadcast %29 : vector<8x32x1xf32> to vector<8x32x8xf32>
    %31 = arith.subf %27, %30 : vector<8x32x8xf32>
    %32 = math.exp %31 : vector<8x32x8xf32>
    %cst_9 = arith.constant dense<0.000000e+00> : vector<8x32xf32>
    %33 = vector.multi_reduction <add>, %32, %cst_9 [2] : vector<8x32x8xf32> to vector<8x32xf32>
    %34 = vector.shape_cast %33 : vector<8x32xf32> to vector<8x32x1xf32>
    %35 = tpu.reciprocal %34 {approx = true} : vector<8x32x1xf32> -> vector<8x32x1xf32>
    %36 = arith.mulf %34, %35 : vector<8x32x1xf32>
    %cst_10 = arith.constant 2.000000e+00 : f32
    %37 = vector.broadcast %cst_10 : f32 to vector<8x32x1xf32>
    %38 = arith.subf %37, %36 : vector<8x32x1xf32>
    %39 = arith.mulf %35, %38 : vector<8x32x1xf32>
    %40 = vector.broadcast %39 : vector<8x32x1xf32> to vector<8x32x8xf32>
    %41 = arith.mulf %32, %40 : vector<8x32x8xf32>
    "tpu.trace_start"() <{level = 10 : i32, message = "zqk,zkd->zqd"}> : () -> ()
    %cst_11 = arith.constant dense<0.000000e+00> : vector<8x32x32xf32>
    %42 = tpu.matmul %41, %26, %cst_11 {dimension_numbers = #tpu.dot_dimension_numbers<[2], [1], [1], [2], [0, 0, 0, 1, 1, 2], [0], [0]>} : vector<8x32x8xf32>, vector<8x8x32xf32>, vector<8x32x32xf32> -> vector<8x32x32xf32>
    "tpu.trace_stop"() : () -> ()
    %43 = arith.addf %16, %42 : vector<8x32x32xf32>
    %44 = vector.extract_strided_slice %43 {offsets = [0, 0, 0], sizes = [2, 32, 32], strides = [1, 1, 1]} : vector<8x32x32xf32> to vector<2x32x32xf32>
    %45 = vector.extract_strided_slice %43 {offsets = [2, 0, 0], sizes = [2, 32, 32], strides = [1, 1, 1]} : vector<8x32x32xf32> to vector<2x32x32xf32>
    %46 = vector.extract_strided_slice %43 {offsets = [4, 0, 0], sizes = [2, 32, 32], strides = [1, 1, 1]} : vector<8x32x32xf32> to vector<2x32x32xf32>
    %47 = vector.extract_strided_slice %43 {offsets = [6, 0, 0], sizes = [2, 32, 32], strides = [1, 1, 1]} : vector<8x32x32xf32> to vector<2x32x32xf32>
    %48 = tpu.concatenate %44, %45, %46, %47 in 2 : vector<2x32x32xf32>, vector<2x32x32xf32>, vector<2x32x32xf32>, vector<2x32x32xf32> -> vector<2x32x128xf32>
    %49 = vector.shape_cast %48 : vector<2x32x128xf32> to vector<64x128xf32>
    %cst_12 = arith.constant dense<0.000000e+00> : vector<64x128xf32>
    %50 = tpu.matmul %49, %8, %cst_12 {dimension_numbers = #tpu.dot_dimension_numbers<[1], [0], [0], [1], [0, 0, 1, 1], [], []>} : vector<64x128xf32>, vector<128x128xf32>, vector<64x128xf32> -> vector<64x128xf32>
    %51 = vector.broadcast %9 : vector<1x128xf32> to vector<64x128xf32>
    %52 = arith.addf %50, %51 : vector<64x128xf32>
    %cst_13 = arith.constant 0.000000e+00 : f32
    %53 = vector.broadcast %cst_13 : f32 to vector<64x128xf32>
    %54 = arith.maximumf %52, %53 : vector<64x128xf32>
    %55 = vector.shape_cast %54 : vector<64x128xf32> to vector<2x32x128xf32>
    %56 = arith.addf %48, %55 : vector<2x32x128xf32>
    %c0_14 = arith.constant 0 : index
    %c0_15 = arith.constant 0 : index
    %57 = vector.load %arg2[%c0_14, %c0_15] : memref<128x1920xf32, #tpu.memory_space<vmem>>, vector<128x256xf32>
    %c0_16 = arith.constant 0 : index
    %c0_17 = arith.constant 0 : index
    %58 = vector.load %arg3[%c0_16, %c0_17] : memref<1x1920xf32, #tpu.memory_space<vmem>>, vector<1x256xf32>
    %59 = vector.shape_cast %56 : vector<2x32x128xf32> to vector<64x128xf32>
    %cst_18 = arith.constant dense<0.000000e+00> : vector<64x256xf32>
    %60 = tpu.matmul %59, %57, %cst_18 {dimension_numbers = #tpu.dot_dimension_numbers<[1], [0], [0], [1], [0, 0, 1, 1], [], []>} : vector<64x128xf32>, vector<128x256xf32>, vector<64x256xf32> -> vector<64x256xf32>
    %61 = vector.broadcast %58 : vector<1x256xf32> to vector<64x256xf32>
    %62 = arith.addf %60, %61 : vector<64x256xf32>
    %63 = vector.shape_cast %62 : vector<64x256xf32> to vector<2x32x256xf32>
    %64 = vector.extract_strided_slice %63 {offsets = [0, 0, 0], sizes = [2, 32, 128], strides = [1, 1, 1]} : vector<2x32x256xf32> to vector<2x32x128xf32>
    %65 = vector.extract_strided_slice %63 {offsets = [0, 0, 128], sizes = [2, 32, 128], strides = [1, 1, 1]} : vector<2x32x256xf32> to vector<2x32x128xf32>
    %c0_19 = arith.constant 0 : index
    %c1280 = arith.constant 1280 : index
    %66 = vector.load %arg2[%c0_19, %c1280] : memref<128x1920xf32, #tpu.memory_space<vmem>>, vector<128x128xf32>
    %c0_20 = arith.constant 0 : index
    %c1280_21 = arith.constant 1280 : index
    %67 = vector.load %arg3[%c0_20, %c1280_21] : memref<1x1920xf32, #tpu.memory_space<vmem>>, vector<1x128xf32>
    %68 = vector.extract_strided_slice %3 {offsets = [0, 0, 0], sizes = [2, 8, 32], strides = [1, 1, 1]} : vector<2x8x128xf32> to vector<2x8x32xf32>
    %69 = vector.extract_strided_slice %3 {offsets = [0, 0, 32], sizes = [2, 8, 32], strides = [1, 1, 1]} : vector<2x8x128xf32> to vector<2x8x32xf32>
    %70 = vector.extract_strided_slice %3 {offsets = [0, 0, 64], sizes = [2, 8, 32], strides = [1, 1, 1]} : vector<2x8x128xf32> to vector<2x8x32xf32>
    %71 = vector.extract_strided_slice %3 {offsets = [0, 0, 96], sizes = [2, 8, 32], strides = [1, 1, 1]} : vector<2x8x128xf32> to vector<2x8x32xf32>
    %72 = tpu.concatenate %68, %69, %70, %71 in 0 : vector<2x8x32xf32>, vector<2x8x32xf32>, vector<2x8x32xf32>, vector<2x8x32xf32> -> vector<8x8x32xf32>
    %73 = vector.extract_strided_slice %64 {offsets = [0, 0, 0], sizes = [2, 32, 32], strides = [1, 1, 1]} : vector<2x32x128xf32> to vector<2x32x32xf32>
    %74 = vector.extract_strided_slice %64 {offsets = [0, 0, 32], sizes = [2, 32, 32], strides = [1, 1, 1]} : vector<2x32x128xf32> to vector<2x32x32xf32>
    %75 = vector.extract_strided_slice %64 {offsets = [0, 0, 64], sizes = [2, 32, 32], strides = [1, 1, 1]} : vector<2x32x128xf32> to vector<2x32x32xf32>
    %76 = vector.extract_strided_slice %64 {offsets = [0, 0, 96], sizes = [2, 32, 32], strides = [1, 1, 1]} : vector<2x32x128xf32> to vector<2x32x32xf32>
    %77 = tpu.concatenate %73, %74, %75, %76 in 0 : vector<2x32x32xf32>, vector<2x32x32xf32>, vector<2x32x32xf32>, vector<2x32x32xf32> -> vector<8x32x32xf32>
    %78 = vector.extract_strided_slice %65 {offsets = [0, 0, 0], sizes = [2, 32, 32], strides = [1, 1, 1]} : vector<2x32x128xf32> to vector<2x32x32xf32>
    %79 = vector.extract_strided_slice %65 {offsets = [0, 0, 32], sizes = [2, 32, 32], strides = [1, 1, 1]} : vector<2x32x128xf32> to vector<2x32x32xf32>
    %80 = vector.extract_strided_slice %65 {offsets = [0, 0, 64], sizes = [2, 32, 32], strides = [1, 1, 1]} : vector<2x32x128xf32> to vector<2x32x32xf32>
    %81 = vector.extract_strided_slice %65 {offsets = [0, 0, 96], sizes = [2, 32, 32], strides = [1, 1, 1]} : vector<2x32x128xf32> to vector<2x32x32xf32>
    %82 = tpu.concatenate %78, %79, %80, %81 in 0 : vector<2x32x32xf32>, vector<2x32x32xf32>, vector<2x32x32xf32>, vector<2x32x32xf32> -> vector<8x32x32xf32>
    "tpu.trace_start"() <{level = 10 : i32, message = "zqd,zkd->zqk"}> : () -> ()
    %cst_22 = arith.constant dense<0.000000e+00> : vector<8x8x32xf32>
    %83 = tpu.matmul %72, %77, %cst_22 {dimension_numbers = #tpu.dot_dimension_numbers<[2], [2], [1], [1], [0, 0, 0, 1, 1, 1], [0], [0]>} : vector<8x8x32xf32>, vector<8x32x32xf32>, vector<8x8x32xf32> -> vector<8x8x32xf32>
    "tpu.trace_stop"() : () -> ()
    %cst_23 = arith.constant dense<0xFF800000> : vector<8x8xf32>
    %84 = vector.multi_reduction <maximumf>, %83, %cst_23 [2] : vector<8x8x32xf32> to vector<8x8xf32>
    %85 = vector.shape_cast %84 : vector<8x8xf32> to vector<8x8x1xf32>
    %86 = vector.broadcast %85 : vector<8x8x1xf32> to vector<8x8x32xf32>
    %87 = arith.subf %83, %86 : vector<8x8x32xf32>
    %88 = math.exp %87 : vector<8x8x32xf32>
    %cst_24 = arith.constant dense<0.000000e+00> : vector<8x8xf32>
    %89 = vector.multi_reduction <add>, %88, %cst_24 [2] : vector<8x8x32xf32> to vector<8x8xf32>
    %90 = vector.shape_cast %89 : vector<8x8xf32> to vector<8x8x1xf32>
    %91 = tpu.reciprocal %90 {approx = true} : vector<8x8x1xf32> -> vector<8x8x1xf32>
    %92 = arith.mulf %90, %91 : vector<8x8x1xf32>
    %cst_25 = arith.constant 2.000000e+00 : f32
    %93 = vector.broadcast %cst_25 : f32 to vector<8x8x1xf32>
    %94 = arith.subf %93, %92 : vector<8x8x1xf32>
    %95 = arith.mulf %91, %94 : vector<8x8x1xf32>
    %96 = vector.broadcast %95 : vector<8x8x1xf32> to vector<8x8x32xf32>
    %97 = arith.mulf %88, %96 : vector<8x8x32xf32>
    "tpu.trace_start"() <{level = 10 : i32, message = "zqk,zkd->zqd"}> : () -> ()
    %cst_26 = arith.constant dense<0.000000e+00> : vector<8x8x32xf32>
    %98 = tpu.matmul %97, %82, %cst_26 {dimension_numbers = #tpu.dot_dimension_numbers<[2], [1], [1], [2], [0, 0, 0, 1, 1, 2], [0], [0]>} : vector<8x8x32xf32>, vector<8x32x32xf32>, vector<8x8x32xf32> -> vector<8x8x32xf32>
    "tpu.trace_stop"() : () -> ()
    %99 = arith.addf %72, %98 : vector<8x8x32xf32>
    %100 = vector.extract_strided_slice %99 {offsets = [0, 0, 0], sizes = [2, 8, 32], strides = [1, 1, 1]} : vector<8x8x32xf32> to vector<2x8x32xf32>
    %101 = vector.extract_strided_slice %99 {offsets = [2, 0, 0], sizes = [2, 8, 32], strides = [1, 1, 1]} : vector<8x8x32xf32> to vector<2x8x32xf32>
    %102 = vector.extract_strided_slice %99 {offsets = [4, 0, 0], sizes = [2, 8, 32], strides = [1, 1, 1]} : vector<8x8x32xf32> to vector<2x8x32xf32>
    %103 = vector.extract_strided_slice %99 {offsets = [6, 0, 0], sizes = [2, 8, 32], strides = [1, 1, 1]} : vector<8x8x32xf32> to vector<2x8x32xf32>
    %104 = tpu.concatenate %100, %101, %102, %103 in 2 : vector<2x8x32xf32>, vector<2x8x32xf32>, vector<2x8x32xf32>, vector<2x8x32xf32> -> vector<2x8x128xf32>
    %105 = vector.shape_cast %104 : vector<2x8x128xf32> to vector<16x128xf32>
    %cst_27 = arith.constant dense<0.000000e+00> : vector<16x128xf32>
    %106 = tpu.matmul %105, %66, %cst_27 {dimension_numbers = #tpu.dot_dimension_numbers<[1], [0], [0], [1], [0, 0, 1, 1], [], []>} : vector<16x128xf32>, vector<128x128xf32>, vector<16x128xf32> -> vector<16x128xf32>
    %107 = vector.broadcast %67 : vector<1x128xf32> to vector<16x128xf32>
    %108 = arith.addf %106, %107 : vector<16x128xf32>
    %cst_28 = arith.constant 0.000000e+00 : f32
    %109 = vector.broadcast %cst_28 : f32 to vector<16x128xf32>
    %110 = arith.maximumf %108, %109 : vector<16x128xf32>
    %111 = vector.shape_cast %110 : vector<16x128xf32> to vector<2x8x128xf32>
    %112 = arith.addf %104, %111 : vector<2x8x128xf32>
    %c0_29 = arith.constant 0 : index
    %c256 = arith.constant 256 : index
    %113 = vector.load %arg2[%c0_29, %c256] : memref<128x1920xf32, #tpu.memory_space<vmem>>, vector<128x384xf32>
    %c0_30 = arith.constant 0 : index
    %c256_31 = arith.constant 256 : index
    %114 = vector.load %arg3[%c0_30, %c256_31] : memref<1x1920xf32, #tpu.memory_space<vmem>>, vector<1x384xf32>
    %115 = vector.shape_cast %112 : vector<2x8x128xf32> to vector<16x128xf32>
    %cst_32 = arith.constant dense<0.000000e+00> : vector<16x384xf32>
    %116 = tpu.matmul %115, %113, %cst_32 {dimension_numbers = #tpu.dot_dimension_numbers<[1], [0], [0], [1], [0, 0, 1, 1], [], []>} : vector<16x128xf32>, vector<128x384xf32>, vector<16x384xf32> -> vector<16x384xf32>
    %117 = vector.broadcast %114 : vector<1x384xf32> to vector<16x384xf32>
    %118 = arith.addf %116, %117 : vector<16x384xf32>
    %119 = vector.shape_cast %118 : vector<16x384xf32> to vector<2x8x384xf32>
    %120 = vector.extract_strided_slice %119 {offsets = [0, 0, 0], sizes = [2, 8, 128], strides = [1, 1, 1]} : vector<2x8x384xf32> to vector<2x8x128xf32>
    %121 = vector.extract_strided_slice %119 {offsets = [0, 0, 128], sizes = [2, 8, 128], strides = [1, 1, 1]} : vector<2x8x384xf32> to vector<2x8x128xf32>
    %122 = vector.extract_strided_slice %119 {offsets = [0, 0, 256], sizes = [2, 8, 128], strides = [1, 1, 1]} : vector<2x8x384xf32> to vector<2x8x128xf32>
    %c0_33 = arith.constant 0 : index
    %c1408 = arith.constant 1408 : index
    %123 = vector.load %arg2[%c0_33, %c1408] : memref<128x1920xf32, #tpu.memory_space<vmem>>, vector<128x128xf32>
    %c0_34 = arith.constant 0 : index
    %c1408_35 = arith.constant 1408 : index
    %124 = vector.load %arg3[%c0_34, %c1408_35] : memref<1x1920xf32, #tpu.memory_space<vmem>>, vector<1x128xf32>
    %125 = vector.shape_cast %6 : vector<1x32x128xf32> to vector<1x32x128xf32>
    %126 = vector.broadcast %125 : vector<1x32x128xf32> to vector<2x32x128xf32>
    %127 = vector.extract_strided_slice %126 {offsets = [0, 0, 0], sizes = [2, 32, 32], strides = [1, 1, 1]} : vector<2x32x128xf32> to vector<2x32x32xf32>
    %128 = vector.extract_strided_slice %126 {offsets = [0, 0, 32], sizes = [2, 32, 32], strides = [1, 1, 1]} : vector<2x32x128xf32> to vector<2x32x32xf32>
    %129 = vector.extract_strided_slice %126 {offsets = [0, 0, 64], sizes = [2, 32, 32], strides = [1, 1, 1]} : vector<2x32x128xf32> to vector<2x32x32xf32>
    %130 = vector.extract_strided_slice %126 {offsets = [0, 0, 96], sizes = [2, 32, 32], strides = [1, 1, 1]} : vector<2x32x128xf32> to vector<2x32x32xf32>
    %131 = tpu.concatenate %127, %128, %129, %130 in 0 : vector<2x32x32xf32>, vector<2x32x32xf32>, vector<2x32x32xf32>, vector<2x32x32xf32> -> vector<8x32x32xf32>
    %132 = vector.extract_strided_slice %120 {offsets = [0, 0, 0], sizes = [2, 8, 32], strides = [1, 1, 1]} : vector<2x8x128xf32> to vector<2x8x32xf32>
    %133 = vector.extract_strided_slice %120 {offsets = [0, 0, 32], sizes = [2, 8, 32], strides = [1, 1, 1]} : vector<2x8x128xf32> to vector<2x8x32xf32>
    %134 = vector.extract_strided_slice %120 {offsets = [0, 0, 64], sizes = [2, 8, 32], strides = [1, 1, 1]} : vector<2x8x128xf32> to vector<2x8x32xf32>
    %135 = vector.extract_strided_slice %120 {offsets = [0, 0, 96], sizes = [2, 8, 32], strides = [1, 1, 1]} : vector<2x8x128xf32> to vector<2x8x32xf32>
    %136 = tpu.concatenate %132, %133, %134, %135 in 0 : vector<2x8x32xf32>, vector<2x8x32xf32>, vector<2x8x32xf32>, vector<2x8x32xf32> -> vector<8x8x32xf32>
    %137 = vector.extract_strided_slice %121 {offsets = [0, 0, 0], sizes = [2, 8, 32], strides = [1, 1, 1]} : vector<2x8x128xf32> to vector<2x8x32xf32>
    %138 = vector.extract_strided_slice %121 {offsets = [0, 0, 32], sizes = [2, 8, 32], strides = [1, 1, 1]} : vector<2x8x128xf32> to vector<2x8x32xf32>
    %139 = vector.extract_strided_slice %121 {offsets = [0, 0, 64], sizes = [2, 8, 32], strides = [1, 1, 1]} : vector<2x8x128xf32> to vector<2x8x32xf32>
    %140 = vector.extract_strided_slice %121 {offsets = [0, 0, 96], sizes = [2, 8, 32], strides = [1, 1, 1]} : vector<2x8x128xf32> to vector<2x8x32xf32>
    %141 = tpu.concatenate %137, %138, %139, %140 in 0 : vector<2x8x32xf32>, vector<2x8x32xf32>, vector<2x8x32xf32>, vector<2x8x32xf32> -> vector<8x8x32xf32>
    "tpu.trace_start"() <{level = 10 : i32, message = "zqd,zkd->zqk"}> : () -> ()
    %cst_36 = arith.constant dense<0.000000e+00> : vector<8x32x8xf32>
    %142 = tpu.matmul %131, %136, %cst_36 {dimension_numbers = #tpu.dot_dimension_numbers<[2], [2], [1], [1], [0, 0, 0, 1, 1, 1], [0], [0]>} : vector<8x32x32xf32>, vector<8x8x32xf32>, vector<8x32x8xf32> -> vector<8x32x8xf32>
    "tpu.trace_stop"() : () -> ()
    %cst_37 = arith.constant dense<0xFF800000> : vector<8x32xf32>
    %143 = vector.multi_reduction <maximumf>, %142, %cst_37 [2] : vector<8x32x8xf32> to vector<8x32xf32>
    %144 = vector.shape_cast %143 : vector<8x32xf32> to vector<8x32x1xf32>
    %145 = vector.broadcast %144 : vector<8x32x1xf32> to vector<8x32x8xf32>
    %146 = arith.subf %142, %145 : vector<8x32x8xf32>
    %147 = math.exp %146 : vector<8x32x8xf32>
    %cst_38 = arith.constant dense<0.000000e+00> : vector<8x32xf32>
    %148 = vector.multi_reduction <add>, %147, %cst_38 [2] : vector<8x32x8xf32> to vector<8x32xf32>
    %149 = vector.shape_cast %148 : vector<8x32xf32> to vector<8x32x1xf32>
    %150 = tpu.reciprocal %149 {approx = true} : vector<8x32x1xf32> -> vector<8x32x1xf32>
    %151 = arith.mulf %149, %150 : vector<8x32x1xf32>
    %cst_39 = arith.constant 2.000000e+00 : f32
    %152 = vector.broadcast %cst_39 : f32 to vector<8x32x1xf32>
    %153 = arith.subf %152, %151 : vector<8x32x1xf32>
    %154 = arith.mulf %150, %153 : vector<8x32x1xf32>
    %155 = vector.broadcast %154 : vector<8x32x1xf32> to vector<8x32x8xf32>
    %156 = arith.mulf %147, %155 : vector<8x32x8xf32>
    "tpu.trace_start"() <{level = 10 : i32, message = "zqk,zkd->zqd"}> : () -> ()
    %cst_40 = arith.constant dense<0.000000e+00> : vector<8x32x32xf32>
    %157 = tpu.matmul %156, %141, %cst_40 {dimension_numbers = #tpu.dot_dimension_numbers<[2], [1], [1], [2], [0, 0, 0, 1, 1, 2], [0], [0]>} : vector<8x32x8xf32>, vector<8x8x32xf32>, vector<8x32x32xf32> -> vector<8x32x32xf32>
    "tpu.trace_stop"() : () -> ()
    %158 = arith.addf %131, %157 : vector<8x32x32xf32>
    %159 = vector.extract_strided_slice %158 {offsets = [0, 0, 0], sizes = [2, 32, 32], strides = [1, 1, 1]} : vector<8x32x32xf32> to vector<2x32x32xf32>
    %160 = vector.extract_strided_slice %158 {offsets = [2, 0, 0], sizes = [2, 32, 32], strides = [1, 1, 1]} : vector<8x32x32xf32> to vector<2x32x32xf32>
    %161 = vector.extract_strided_slice %158 {offsets = [4, 0, 0], sizes = [2, 32, 32], strides = [1, 1, 1]} : vector<8x32x32xf32> to vector<2x32x32xf32>
    %162 = vector.extract_strided_slice %158 {offsets = [6, 0, 0], sizes = [2, 32, 32], strides = [1, 1, 1]} : vector<8x32x32xf32> to vector<2x32x32xf32>
    %163 = tpu.concatenate %159, %160, %161, %162 in 2 : vector<2x32x32xf32>, vector<2x32x32xf32>, vector<2x32x32xf32>, vector<2x32x32xf32> -> vector<2x32x128xf32>
    %164 = vector.shape_cast %163 : vector<2x32x128xf32> to vector<64x128xf32>
    %cst_41 = arith.constant dense<0.000000e+00> : vector<64x128xf32>
    %165 = tpu.matmul %164, %123, %cst_41 {dimension_numbers = #tpu.dot_dimension_numbers<[1], [0], [0], [1], [0, 0, 1, 1], [], []>} : vector<64x128xf32>, vector<128x128xf32>, vector<64x128xf32> -> vector<64x128xf32>
    %166 = vector.broadcast %124 : vector<1x128xf32> to vector<64x128xf32>
    %167 = arith.addf %165, %166 : vector<64x128xf32>
    %cst_42 = arith.constant 0.000000e+00 : f32
    %168 = vector.broadcast %cst_42 : f32 to vector<64x128xf32>
    %169 = arith.maximumf %167, %168 : vector<64x128xf32>
    %170 = vector.shape_cast %169 : vector<64x128xf32> to vector<2x32x128xf32>
    %171 = arith.addf %163, %170 : vector<2x32x128xf32>
    %c0_43 = arith.constant 0 : index
    %c640 = arith.constant 640 : index
    %172 = vector.load %arg2[%c0_43, %c640] : memref<128x1920xf32, #tpu.memory_space<vmem>>, vector<128x256xf32>
    %c0_44 = arith.constant 0 : index
    %c640_45 = arith.constant 640 : index
    %173 = vector.load %arg3[%c0_44, %c640_45] : memref<1x1920xf32, #tpu.memory_space<vmem>>, vector<1x256xf32>
    %174 = vector.shape_cast %171 : vector<2x32x128xf32> to vector<64x128xf32>
    %cst_46 = arith.constant dense<0.000000e+00> : vector<64x256xf32>
    %175 = tpu.matmul %174, %172, %cst_46 {dimension_numbers = #tpu.dot_dimension_numbers<[1], [0], [0], [1], [0, 0, 1, 1], [], []>} : vector<64x128xf32>, vector<128x256xf32>, vector<64x256xf32> -> vector<64x256xf32>
    %176 = vector.broadcast %173 : vector<1x256xf32> to vector<64x256xf32>
    %177 = arith.addf %175, %176 : vector<64x256xf32>
    %178 = vector.shape_cast %177 : vector<64x256xf32> to vector<2x32x256xf32>
    %179 = vector.extract_strided_slice %178 {offsets = [0, 0, 0], sizes = [2, 32, 128], strides = [1, 1, 1]} : vector<2x32x256xf32> to vector<2x32x128xf32>
    %180 = vector.extract_strided_slice %178 {offsets = [0, 0, 128], sizes = [2, 32, 128], strides = [1, 1, 1]} : vector<2x32x256xf32> to vector<2x32x128xf32>
    %c0_47 = arith.constant 0 : index
    %c1536 = arith.constant 1536 : index
    %181 = vector.load %arg2[%c0_47, %c1536] : memref<128x1920xf32, #tpu.memory_space<vmem>>, vector<128x128xf32>
    %c0_48 = arith.constant 0 : index
    %c1536_49 = arith.constant 1536 : index
    %182 = vector.load %arg3[%c0_48, %c1536_49] : memref<1x1920xf32, #tpu.memory_space<vmem>>, vector<1x128xf32>
    %183 = vector.extract_strided_slice %122 {offsets = [0, 0, 0], sizes = [2, 8, 32], strides = [1, 1, 1]} : vector<2x8x128xf32> to vector<2x8x32xf32>
    %184 = vector.extract_strided_slice %122 {offsets = [0, 0, 32], sizes = [2, 8, 32], strides = [1, 1, 1]} : vector<2x8x128xf32> to vector<2x8x32xf32>
    %185 = vector.extract_strided_slice %122 {offsets = [0, 0, 64], sizes = [2, 8, 32], strides = [1, 1, 1]} : vector<2x8x128xf32> to vector<2x8x32xf32>
    %186 = vector.extract_strided_slice %122 {offsets = [0, 0, 96], sizes = [2, 8, 32], strides = [1, 1, 1]} : vector<2x8x128xf32> to vector<2x8x32xf32>
    %187 = tpu.concatenate %183, %184, %185, %186 in 0 : vector<2x8x32xf32>, vector<2x8x32xf32>, vector<2x8x32xf32>, vector<2x8x32xf32> -> vector<8x8x32xf32>
    %188 = vector.extract_strided_slice %179 {offsets = [0, 0, 0], sizes = [2, 32, 32], strides = [1, 1, 1]} : vector<2x32x128xf32> to vector<2x32x32xf32>
    %189 = vector.extract_strided_slice %179 {offsets = [0, 0, 32], sizes = [2, 32, 32], strides = [1, 1, 1]} : vector<2x32x128xf32> to vector<2x32x32xf32>
    %190 = vector.extract_strided_slice %179 {offsets = [0, 0, 64], sizes = [2, 32, 32], strides = [1, 1, 1]} : vector<2x32x128xf32> to vector<2x32x32xf32>
    %191 = vector.extract_strided_slice %179 {offsets = [0, 0, 96], sizes = [2, 32, 32], strides = [1, 1, 1]} : vector<2x32x128xf32> to vector<2x32x32xf32>
    %192 = tpu.concatenate %188, %189, %190, %191 in 0 : vector<2x32x32xf32>, vector<2x32x32xf32>, vector<2x32x32xf32>, vector<2x32x32xf32> -> vector<8x32x32xf32>
    %193 = vector.extract_strided_slice %180 {offsets = [0, 0, 0], sizes = [2, 32, 32], strides = [1, 1, 1]} : vector<2x32x128xf32> to vector<2x32x32xf32>
    %194 = vector.extract_strided_slice %180 {offsets = [0, 0, 32], sizes = [2, 32, 32], strides = [1, 1, 1]} : vector<2x32x128xf32> to vector<2x32x32xf32>
    %195 = vector.extract_strided_slice %180 {offsets = [0, 0, 64], sizes = [2, 32, 32], strides = [1, 1, 1]} : vector<2x32x128xf32> to vector<2x32x32xf32>
    %196 = vector.extract_strided_slice %180 {offsets = [0, 0, 96], sizes = [2, 32, 32], strides = [1, 1, 1]} : vector<2x32x128xf32> to vector<2x32x32xf32>
    %197 = tpu.concatenate %193, %194, %195, %196 in 0 : vector<2x32x32xf32>, vector<2x32x32xf32>, vector<2x32x32xf32>, vector<2x32x32xf32> -> vector<8x32x32xf32>
    "tpu.trace_start"() <{level = 10 : i32, message = "zqd,zkd->zqk"}> : () -> ()
    %cst_50 = arith.constant dense<0.000000e+00> : vector<8x8x32xf32>
    %198 = tpu.matmul %187, %192, %cst_50 {dimension_numbers = #tpu.dot_dimension_numbers<[2], [2], [1], [1], [0, 0, 0, 1, 1, 1], [0], [0]>} : vector<8x8x32xf32>, vector<8x32x32xf32>, vector<8x8x32xf32> -> vector<8x8x32xf32>
    "tpu.trace_stop"() : () -> ()
    %cst_51 = arith.constant dense<0xFF800000> : vector<8x8xf32>
    %199 = vector.multi_reduction <maximumf>, %198, %cst_51 [2] : vector<8x8x32xf32> to vector<8x8xf32>
    %200 = vector.shape_cast %199 : vector<8x8xf32> to vector<8x8x1xf32>
    %201 = vector.broadcast %200 : vector<8x8x1xf32> to vector<8x8x32xf32>
    %202 = arith.subf %198, %201 : vector<8x8x32xf32>
    %203 = math.exp %202 : vector<8x8x32xf32>
    %cst_52 = arith.constant dense<0.000000e+00> : vector<8x8xf32>
    %204 = vector.multi_reduction <add>, %203, %cst_52 [2] : vector<8x8x32xf32> to vector<8x8xf32>
    %205 = vector.shape_cast %204 : vector<8x8xf32> to vector<8x8x1xf32>
    %206 = tpu.reciprocal %205 {approx = true} : vector<8x8x1xf32> -> vector<8x8x1xf32>
    %207 = arith.mulf %205, %206 : vector<8x8x1xf32>
    %cst_53 = arith.constant 2.000000e+00 : f32
    %208 = vector.broadcast %cst_53 : f32 to vector<8x8x1xf32>
    %209 = arith.subf %208, %207 : vector<8x8x1xf32>
    %210 = arith.mulf %206, %209 : vector<8x8x1xf32>
    %211 = vector.broadcast %210 : vector<8x8x1xf32> to vector<8x8x32xf32>
    %212 = arith.mulf %203, %211 : vector<8x8x32xf32>
    "tpu.trace_start"() <{level = 10 : i32, message = "zqk,zkd->zqd"}> : () -> ()
    %cst_54 = arith.constant dense<0.000000e+00> : vector<8x8x32xf32>
    %213 = tpu.matmul %212, %197, %cst_54 {dimension_numbers = #tpu.dot_dimension_numbers<[2], [1], [1], [2], [0, 0, 0, 1, 1, 2], [0], [0]>} : vector<8x8x32xf32>, vector<8x32x32xf32>, vector<8x8x32xf32> -> vector<8x8x32xf32>
    "tpu.trace_stop"() : () -> ()
    %214 = arith.addf %187, %213 : vector<8x8x32xf32>
    %215 = vector.extract_strided_slice %214 {offsets = [0, 0, 0], sizes = [2, 8, 32], strides = [1, 1, 1]} : vector<8x8x32xf32> to vector<2x8x32xf32>
    %216 = vector.extract_strided_slice %214 {offsets = [2, 0, 0], sizes = [2, 8, 32], strides = [1, 1, 1]} : vector<8x8x32xf32> to vector<2x8x32xf32>
    %217 = vector.extract_strided_slice %214 {offsets = [4, 0, 0], sizes = [2, 8, 32], strides = [1, 1, 1]} : vector<8x8x32xf32> to vector<2x8x32xf32>
    %218 = vector.extract_strided_slice %214 {offsets = [6, 0, 0], sizes = [2, 8, 32], strides = [1, 1, 1]} : vector<8x8x32xf32> to vector<2x8x32xf32>
    %219 = tpu.concatenate %215, %216, %217, %218 in 2 : vector<2x8x32xf32>, vector<2x8x32xf32>, vector<2x8x32xf32>, vector<2x8x32xf32> -> vector<2x8x128xf32>
    %220 = vector.shape_cast %219 : vector<2x8x128xf32> to vector<16x128xf32>
    %cst_55 = arith.constant dense<0.000000e+00> : vector<16x128xf32>
    %221 = tpu.matmul %220, %181, %cst_55 {dimension_numbers = #tpu.dot_dimension_numbers<[1], [0], [0], [1], [0, 0, 1, 1], [], []>} : vector<16x128xf32>, vector<128x128xf32>, vector<16x128xf32> -> vector<16x128xf32>
    %222 = vector.broadcast %182 : vector<1x128xf32> to vector<16x128xf32>
    %223 = arith.addf %221, %222 : vector<16x128xf32>
    %cst_56 = arith.constant 0.000000e+00 : f32
    %224 = vector.broadcast %cst_56 : f32 to vector<16x128xf32>
    %225 = arith.maximumf %223, %224 : vector<16x128xf32>
    %226 = vector.shape_cast %225 : vector<16x128xf32> to vector<2x8x128xf32>
    %227 = arith.addf %219, %226 : vector<2x8x128xf32>
    %c0_57 = arith.constant 0 : index
    %c896 = arith.constant 896 : index
    %228 = vector.load %arg2[%c0_57, %c896] : memref<128x1920xf32, #tpu.memory_space<vmem>>, vector<128x256xf32>
    %c0_58 = arith.constant 0 : index
    %c896_59 = arith.constant 896 : index
    %229 = vector.load %arg3[%c0_58, %c896_59] : memref<1x1920xf32, #tpu.memory_space<vmem>>, vector<1x256xf32>
    %230 = vector.shape_cast %227 : vector<2x8x128xf32> to vector<16x128xf32>
    %cst_60 = arith.constant dense<0.000000e+00> : vector<16x256xf32>
    %231 = tpu.matmul %230, %228, %cst_60 {dimension_numbers = #tpu.dot_dimension_numbers<[1], [0], [0], [1], [0, 0, 1, 1], [], []>} : vector<16x128xf32>, vector<128x256xf32>, vector<16x256xf32> -> vector<16x256xf32>
    %232 = vector.broadcast %229 : vector<1x256xf32> to vector<16x256xf32>
    %233 = arith.addf %231, %232 : vector<16x256xf32>
    %234 = vector.shape_cast %233 : vector<16x256xf32> to vector<2x8x256xf32>
    %235 = vector.extract_strided_slice %234 {offsets = [0, 0, 0], sizes = [2, 8, 128], strides = [1, 1, 1]} : vector<2x8x256xf32> to vector<2x8x128xf32>
    %236 = vector.extract_strided_slice %234 {offsets = [0, 0, 128], sizes = [2, 8, 128], strides = [1, 1, 1]} : vector<2x8x256xf32> to vector<2x8x128xf32>
    %c0_61 = arith.constant 0 : index
    %c1664 = arith.constant 1664 : index
    %237 = vector.load %arg2[%c0_61, %c1664] : memref<128x1920xf32, #tpu.memory_space<vmem>>, vector<128x128xf32>
    %c0_62 = arith.constant 0 : index
    %c1664_63 = arith.constant 1664 : index
    %238 = vector.load %arg3[%c0_62, %c1664_63] : memref<1x1920xf32, #tpu.memory_space<vmem>>, vector<1x128xf32>
    %239 = vector.shape_cast %7 : vector<1x1x128xf32> to vector<1x1x128xf32>
    %240 = vector.broadcast %239 : vector<1x1x128xf32> to vector<2x1x128xf32>
    %241 = vector.extract_strided_slice %240 {offsets = [0, 0, 0], sizes = [2, 1, 32], strides = [1, 1, 1]} : vector<2x1x128xf32> to vector<2x1x32xf32>
    %242 = vector.extract_strided_slice %240 {offsets = [0, 0, 32], sizes = [2, 1, 32], strides = [1, 1, 1]} : vector<2x1x128xf32> to vector<2x1x32xf32>
    %243 = vector.extract_strided_slice %240 {offsets = [0, 0, 64], sizes = [2, 1, 32], strides = [1, 1, 1]} : vector<2x1x128xf32> to vector<2x1x32xf32>
    %244 = vector.extract_strided_slice %240 {offsets = [0, 0, 96], sizes = [2, 1, 32], strides = [1, 1, 1]} : vector<2x1x128xf32> to vector<2x1x32xf32>
    %245 = tpu.concatenate %241, %242, %243, %244 in 0 : vector<2x1x32xf32>, vector<2x1x32xf32>, vector<2x1x32xf32>, vector<2x1x32xf32> -> vector<8x1x32xf32>
    %246 = vector.extract_strided_slice %235 {offsets = [0, 0, 0], sizes = [2, 8, 32], strides = [1, 1, 1]} : vector<2x8x128xf32> to vector<2x8x32xf32>
    %247 = vector.extract_strided_slice %235 {offsets = [0, 0, 32], sizes = [2, 8, 32], strides = [1, 1, 1]} : vector<2x8x128xf32> to vector<2x8x32xf32>
    %248 = vector.extract_strided_slice %235 {offsets = [0, 0, 64], sizes = [2, 8, 32], strides = [1, 1, 1]} : vector<2x8x128xf32> to vector<2x8x32xf32>
    %249 = vector.extract_strided_slice %235 {offsets = [0, 0, 96], sizes = [2, 8, 32], strides = [1, 1, 1]} : vector<2x8x128xf32> to vector<2x8x32xf32>
    %250 = tpu.concatenate %246, %247, %248, %249 in 0 : vector<2x8x32xf32>, vector<2x8x32xf32>, vector<2x8x32xf32>, vector<2x8x32xf32> -> vector<8x8x32xf32>
    %251 = vector.extract_strided_slice %236 {offsets = [0, 0, 0], sizes = [2, 8, 32], strides = [1, 1, 1]} : vector<2x8x128xf32> to vector<2x8x32xf32>
    %252 = vector.extract_strided_slice %236 {offsets = [0, 0, 32], sizes = [2, 8, 32], strides = [1, 1, 1]} : vector<2x8x128xf32> to vector<2x8x32xf32>
    %253 = vector.extract_strided_slice %236 {offsets = [0, 0, 64], sizes = [2, 8, 32], strides = [1, 1, 1]} : vector<2x8x128xf32> to vector<2x8x32xf32>
    %254 = vector.extract_strided_slice %236 {offsets = [0, 0, 96], sizes = [2, 8, 32], strides = [1, 1, 1]} : vector<2x8x128xf32> to vector<2x8x32xf32>
    %255 = tpu.concatenate %251, %252, %253, %254 in 0 : vector<2x8x32xf32>, vector<2x8x32xf32>, vector<2x8x32xf32>, vector<2x8x32xf32> -> vector<8x8x32xf32>
    "tpu.trace_start"() <{level = 10 : i32, message = "zqd,zkd->zqk"}> : () -> ()
    %cst_64 = arith.constant dense<0.000000e+00> : vector<8x1x8xf32>
    %256 = tpu.matmul %245, %250, %cst_64 {dimension_numbers = #tpu.dot_dimension_numbers<[2], [2], [1], [1], [0, 0, 0, 1, 1, 1], [0], [0]>} : vector<8x1x32xf32>, vector<8x8x32xf32>, vector<8x1x8xf32> -> vector<8x1x8xf32>
    "tpu.trace_stop"() : () -> ()
    %cst_65 = arith.constant dense<0xFF800000> : vector<8x1xf32>
    %257 = vector.multi_reduction <maximumf>, %256, %cst_65 [2] : vector<8x1x8xf32> to vector<8x1xf32>
    %258 = vector.shape_cast %257 : vector<8x1xf32> to vector<8x1x1xf32>
    %259 = vector.broadcast %258 : vector<8x1x1xf32> to vector<8x1x8xf32>
    %260 = arith.subf %256, %259 : vector<8x1x8xf32>
    %261 = math.exp %260 : vector<8x1x8xf32>
    %cst_66 = arith.constant dense<0.000000e+00> : vector<8x1xf32>
    %262 = vector.multi_reduction <add>, %261, %cst_66 [2] : vector<8x1x8xf32> to vector<8x1xf32>
    %263 = vector.shape_cast %262 : vector<8x1xf32> to vector<8x1x1xf32>
    %264 = tpu.reciprocal %263 {approx = true} : vector<8x1x1xf32> -> vector<8x1x1xf32>
    %265 = arith.mulf %263, %264 : vector<8x1x1xf32>
    %cst_67 = arith.constant 2.000000e+00 : f32
    %266 = vector.broadcast %cst_67 : f32 to vector<8x1x1xf32>
    %267 = arith.subf %266, %265 : vector<8x1x1xf32>
    %268 = arith.mulf %264, %267 : vector<8x1x1xf32>
    %269 = vector.broadcast %268 : vector<8x1x1xf32> to vector<8x1x8xf32>
    %270 = arith.mulf %261, %269 : vector<8x1x8xf32>
    "tpu.trace_start"() <{level = 10 : i32, message = "zqk,zkd->zqd"}> : () -> ()
    %cst_68 = arith.constant dense<0.000000e+00> : vector<8x1x32xf32>
    %271 = tpu.matmul %270, %255, %cst_68 {dimension_numbers = #tpu.dot_dimension_numbers<[2], [1], [1], [2], [0, 0, 0, 1, 1, 2], [0], [0]>} : vector<8x1x8xf32>, vector<8x8x32xf32>, vector<8x1x32xf32> -> vector<8x1x32xf32>
    "tpu.trace_stop"() : () -> ()
    %272 = arith.addf %245, %271 : vector<8x1x32xf32>
    %273 = vector.extract_strided_slice %272 {offsets = [0, 0, 0], sizes = [2, 1, 32], strides = [1, 1, 1]} : vector<8x1x32xf32> to vector<2x1x32xf32>
    %274 = vector.extract_strided_slice %272 {offsets = [2, 0, 0], sizes = [2, 1, 32], strides = [1, 1, 1]} : vector<8x1x32xf32> to vector<2x1x32xf32>
    %275 = vector.extract_strided_slice %272 {offsets = [4, 0, 0], sizes = [2, 1, 32], strides = [1, 1, 1]} : vector<8x1x32xf32> to vector<2x1x32xf32>
    %276 = vector.extract_strided_slice %272 {offsets = [6, 0, 0], sizes = [2, 1, 32], strides = [1, 1, 1]} : vector<8x1x32xf32> to vector<2x1x32xf32>
    %277 = tpu.concatenate %273, %274, %275, %276 in 2 : vector<2x1x32xf32>, vector<2x1x32xf32>, vector<2x1x32xf32>, vector<2x1x32xf32> -> vector<2x1x128xf32>
    %278 = vector.shape_cast %277 : vector<2x1x128xf32> to vector<2x128xf32>
    %cst_69 = arith.constant dense<0.000000e+00> : vector<2x128xf32>
    %279 = tpu.matmul %278, %237, %cst_69 {dimension_numbers = #tpu.dot_dimension_numbers<[1], [0], [0], [1], [0, 0, 1, 1], [], []>} : vector<2x128xf32>, vector<128x128xf32>, vector<2x128xf32> -> vector<2x128xf32>
    %280 = vector.broadcast %238 : vector<1x128xf32> to vector<2x128xf32>
    %281 = arith.addf %279, %280 : vector<2x128xf32>
    %cst_70 = arith.constant 0.000000e+00 : f32
    %282 = vector.broadcast %cst_70 : f32 to vector<2x128xf32>
    %283 = arith.maximumf %281, %282 : vector<2x128xf32>
    %284 = vector.shape_cast %283 : vector<2x128xf32> to vector<2x1x128xf32>
    %285 = arith.addf %277, %284 : vector<2x1x128xf32>
    %c0_71 = arith.constant 0 : index
    %c1792 = arith.constant 1792 : index
    %286 = vector.load %arg2[%c0_71, %c1792] : memref<128x1920xf32, #tpu.memory_space<vmem>>, vector<128x128xf32>
    %c0_72 = arith.constant 0 : index
    %c1792_73 = arith.constant 1792 : index
    %287 = vector.load %arg3[%c0_72, %c1792_73] : memref<1x1920xf32, #tpu.memory_space<vmem>>, vector<1x128xf32>
    %288 = vector.shape_cast %285 : vector<2x1x128xf32> to vector<2x128xf32>
    %cst_74 = arith.constant dense<0.000000e+00> : vector<2x128xf32>
    %289 = tpu.matmul %288, %286, %cst_74 {dimension_numbers = #tpu.dot_dimension_numbers<[1], [0], [0], [1], [0, 0, 1, 1], [], []>} : vector<2x128xf32>, vector<128x128xf32>, vector<2x128xf32> -> vector<2x128xf32>
    %290 = vector.broadcast %287 : vector<1x128xf32> to vector<2x128xf32>
    %291 = arith.addf %289, %290 : vector<2x128xf32>
    %c0_75 = arith.constant 0 : index
    %c0_76 = arith.constant 0 : index
    %292 = vector.load %arg5[%c0_75, %c0_76] : memref<2x128xf32, #tpu.memory_space<vmem>>, vector<2x128xf32>
    tpu.vector_store %arg5[%c0_75, %c0_76], %291 {strides = array<i32>} : memref<2x128xf32, #tpu.memory_space<vmem>>, vector<2x128xf32>,
    return
  }
  func.func @transform_0(%arg0: i32) -> (i32, i32, i32) {
    %c0_i32 = arith.constant 0 : i32
    %c0_i32_0 = arith.constant 0 : i32
    %c0_i32_1 = arith.constant 0 : i32
    return %arg0, %c0_i32, %c0_i32_0 : i32, i32, i32
  }
  func.func @transform_1(%arg0: i32) -> (i32, i32) {
    %c0_i32 = arith.constant 0 : i32
    %c0_i32_0 = arith.constant 0 : i32
    %c0_i32_1 = arith.constant 0 : i32
    return %c0_i32, %c0_i32_0 : i32, i32
  }
  func.func @transform_2(%arg0: i32) -> (i32, i32) {
    %c0_i32 = arith.constant 0 : i32
    %c0_i32_0 = arith.constant 0 : i32
    %c0_i32_1 = arith.constant 0 : i32
    return %c0_i32, %c0_i32_0 : i32, i32
  }
  func.func @transform_3(%arg0: i32) -> (i32, i32, i32) {
    %c0_i32 = arith.constant 0 : i32
    %c0_i32_0 = arith.constant 0 : i32
    %c0_i32_1 = arith.constant 0 : i32
    %c0_i32_2 = arith.constant 0 : i32
    return %c0_i32, %c0_i32_0, %c0_i32_1 : i32, i32, i32
  }
  func.func @transform_4(%arg0: i32) -> (i32, i32) {
    %c0_i32 = arith.constant 0 : i32
    %c0_i32_0 = arith.constant 0 : i32
    return %arg0, %c0_i32 : i32, i32
  }
}

</mosaic_0001>

<bundles_post_ra>
// kernel: set_transformer_forward.1
= control target key start
LH: loop header
LB: loop body
LE: loop exit
PB: predicated region body
PF: predicated region fallthrough
CT: control target
= control target key end

     0   :  { %9 = vsyncpa [#allocation3], 0  ;;  %s15585_s0 = inlined_call_operand.hbm [shape: f32[2,8,384], index: 0, kind: input, shape index: {}]   ;;  %s15586_s1 = inlined_call_operand.hbm [shape: f32[128,1920], index: 1, kind: input, shape index: {}]   ;;  %s15587_s2 = inlined_call_operand.hbm [shape: f32[1,1920], index: 2, kind: input, shape index: {}]   ;;  %s15588_s3 = inlined_call_operand.hbm [shape: f32[1,65,128], index: 3, kind: input, shape index: {}]   ;;  %s15589_s4 = inlined_call_operand.hbm [shape: f32[2,128], index: 4, kind: output, shape index: {}]  }
   0x1   :  { %10 = vsyncpa [#allocation6], 0 }
   0x2   :  { %11 = vsyncpa [#allocation9], 0 }
   0x3   :  { %12 = vsyncpa [#allocation4], 0  ;;  %s13263_s15 = smov [#allocation5]   ;;  %s13145_s19 = scalar_lea.hbm %s15586_s1, 30720 }
   0x4   :  { %s30_s16 = sshll.u32 %s13263_s15, 4  ;;  %p13146_p0 = scmp.ne.s32.totalorder %s15586_s1, %s13145_s19  ;;  %s31_s16 = int_to_ptr.vmem [resolvable:$true] %s30_s16 }
   0x5   :  { %p13149_p1 = scmp.lt.u32.totalorder %s13145_s19, %s15586_s1 }
   0x7   :  { %p13151_p2 = pnand %p13149_p1, %p13146_p0 }
   0x9   :  { %13154 = shalt.err (!%p13151_p2)
}
   0xa   :  { %s13155_s24 = scalar_lea.vmem %s31_s16, 30720  ;;  %p13160_p4 = scmp.lt.s32.totalorder %s31_s16, %s31_s16 }
   0xb   :  { %p13156_p3 = scmp.ne.s32.totalorder %s31_s16, %s13155_s24  ;;  %p13161_p5 = scmp.lt.s32.totalorder %s13155_s24, %s13155_s24 }
   0xd   :  { %p13162_p6 = por %p13161_p5, %p13160_p4 }
   0xf   :  { %p13163_p7 = pnand %p13162_p6, %p13156_p3 }
  0x11   :  { %13166 = shalt.err (!%p13163_p7)
}
  0x12   :  { %s13264_s25 = smov 1920   ;;  %s13265_s26 = smov 120  }
  0x13   :  { %36 = dma.hbm_to_vmem [thread:$0]  %s15586_s1, 30720, %s31_s16, [#allocation6], %s13264_s25, %s13264_s25, %s13265_s26  }
  0x14   :  { %s13266_s29 = smov [#allocation2]   ;;  %s13167_s7 = scalar_lea.hbm %s15585_s0, 768 }
  0x15   :  { %s18_s30 = sshll.u32 %s13266_s29, 4  ;;  %p13168_p8 = scmp.ne.s32.totalorder %s15585_s0, %s13167_s7  ;;  %s19_s30 = int_to_ptr.vmem [resolvable:$true] %s18_s30 }
  0x16   :  { %p13171_p9 = scmp.lt.u32.totalorder %s13167_s7, %s15585_s0 }
  0x18   :  { %p13173_p10 = pnand %p13171_p9, %p13168_p8 }
  0x1a   :  { %13176 = shalt.err (!%p13173_p10)
}
  0x1b   :  { %s13177_s12 = scalar_lea.vmem %s19_s30, 768  ;;  %p13182_p12 = scmp.lt.s32.totalorder %s19_s30, %s19_s30 }
  0x1c   :  { %p13178_p11 = scmp.ne.s32.totalorder %s19_s30, %s13177_s12  ;;  %p13183_p13 = scmp.lt.s32.totalorder %s13177_s12, %s13177_s12 }
  0x1e   :  { %p13184_p0 = por %p13183_p13, %p13182_p12 }
  0x20   :  { %p13185_p1 = pnand %p13184_p0, %p13178_p11 }
  0x22   :  { %13188 = shalt.err (!%p13185_p1)
}
  0x23   :  { %s13267_s1 = smov 384   ;;  %s13268_s13 = smov 24  }
  0x24   :  { %24 = dma.hbm_to_vmem [thread:$0]  %s15585_s0, 768, %s19_s30, [#allocation3], %s13267_s1, %s13267_s1, %s13268_s13  }
  0x25   :  { %s13269_s16 = smov [#allocation7]   ;;  %s13270_s18 = smov [#allocation8]  }
  0x26   :  { %s43_s17 = sshll.u32 %s13269_s16, 4  ;;  %s52_s19 = sshll.u32 %s13270_s18, 4  ;;  %s44_s17 = int_to_ptr.vmem [resolvable:$true] %s43_s17  ;;  %s13330_s19 = int_to_ptr.vmem [resolvable:$true] %s52_s19 }
  0x27   :  { %s13189_s22 = scalar_lea.hbm %s15587_s2, 240 }
  0x28   :  { %p13190_p2 = scmp.ne.s32.totalorder %s15587_s2, %s13189_s22  ;;  %p13193_p3 = scmp.lt.u32.totalorder %s13189_s22, %s15587_s2 }
  0x2a   :  { %p13195_p4 = pnand %p13193_p3, %p13190_p2 }
  0x2c   :  { %13198 = shalt.err (!%p13195_p4)
}
  0x2d   :  { %s13199_s0 = scalar_lea.vmem %s44_s17, 240  ;;  %s13203_s27 = scalar_lea.vmem %s44_s17, 256 }
  0x2e   :  { %p13200_p5 = scmp.ne.s32.totalorder %s44_s17, %s13199_s0  ;;  %p13204_p6 = scmp.lt.s32.totalorder %s44_s17, %s44_s17 }
  0x2f   :  { %p13205_p7 = scmp.lt.s32.totalorder %s13203_s27, %s13199_s0 }
  0x31   :  { %p13206_p8 = por %p13205_p7, %p13204_p6 }
  0x33   :  { %p13207_p9 = pnand %p13206_p8, %p13200_p5 }
  0x35   :  { %13210 = shalt.err (!%p13207_p9)
}
  0x36   :  { %46 = dma.hbm_to_vmem [thread:$0]  %s15587_s2, 240, %s44_s17, [#allocation6]  }
  0x37   :  { %s13211_s6 = scalar_lea.hbm %s15588_s3, 1152 }
  0x38   :  { %p13212_p10 = scmp.ne.s32.totalorder %s15588_s3, %s13211_s6  ;;  %p13215_p11 = scmp.lt.u32.totalorder %s13211_s6, %s15588_s3 }
  0x3a   :  { %p13217_p12 = pnand %p13215_p11, %p13212_p10 }
  0x3c   :  { %13220 = shalt.err (!%p13217_p12)
}
  0x3d   :  { %s13221_s11 = scalar_lea.vmem %s13330_s19, 1152  ;;  %p13226_p0 = scmp.lt.s32.totalorder %s13330_s19, %s13330_s19 }
  0x3e   :  { %p13222_p13 = scmp.ne.s32.totalorder %s13330_s19, %s13221_s11  ;;  %p13227_p1 = scmp.lt.s32.totalorder %s13221_s11, %s13221_s11 }
  0x40   :  { %p13228_p2 = por %p13227_p1, %p13226_p0 }
  0x42   :  { %p13229_p3 = pnand %p13228_p2, %p13222_p13 }
  0x44   :  { %13232 = shalt.err (!%p13229_p3)
}
  0x45   :  { %s13271_s2 = smov 128   ;;  %s13272_s12 = smov 8  }
  0x46   :  { %58 = dma.hbm_to_vmem [thread:$0]  %s15588_s3, 1152, %s13330_s19, [#allocation9], %s13271_s2, %s13271_s2, %s13272_s12  }
  0x47   :  { %13255 = dma.done.wait [#allocation3], 768  }
  0x48   :  { %13256 = vsyncadd [#allocation3], 4294966528 }
  0x49   :  { %13257 = dma.done.wait [#allocation6], 30960  }
  0x4a   :  { %13258 = vsyncadd [#allocation6], 4294936336 }
  0x4b   :  { %13259 = dma.done.wait [#allocation9], 1152  }
  0x4c   :  { %13260 = vsyncadd [#allocation9], 4294966144  ;;  %vm177_vm0 = vcmask 261120   ;;  %v71_v0 = vld [vmem:[#allocation2] sm:$0xff]  ;;  %v78_v1 = vld [vmem:[#allocation8 + $0x8] sm:$0xff]  ;;  %s13273_s14 = smov 96  }
  0x4d   :  { %v77_v2 = vld [vmem:[#allocation8] sm:$0xff]  ;;  %145 = vrot.lane.b32.xlu0 %v71_v0, %s13273_s14  ;;  %11014 = vmatprep.subr.msk.mxu0 %vm177_vm0, %v71_v0  ;;  %v74_v3 = vld [vmem:[#allocation2 + $0x18] sm:$0xff]  ;;  %v79_v4 = vld [vmem:[#allocation8 + $0x10] sm:$0xff]  ;;  %s13274_s3 = smov 64   ;;  %s13275_s15 = smov 32   ;;  %vm906_vm1 = vcmask 64512  }
  0x4e   :  { %11015 = vmatpush3.xpose.msk.msra.mxu0 %vm177_vm0, %v71_v0  ;;  %109 = vrot.lane.b32.xlu1 %v78_v1, %s13273_s14  ;;  %v80_v5 = vld [vmem:[#allocation8 + $0x18] sm:$0xff]  ;;  %v13391_v6 = vld [vmem:[#allocation2 + $0x8] sm:$0xff]  ;;  %v13516_v42 = vld [vmem:[#allocation2 + $0x20] sm:$0xff]  ;;  %vm2267_vm2 = vcmask 523264   ;;  %vm2276_vm3 = vcmask 785408   ;;  %vm13278_vm4 = vmmov 0  }
  0x4f   :  { %11016 = vmatprep.mubr.msk.f32.mxu0 %vm177_vm0, %v77_v2  ;;  %11022 = vmatprep.subr.msk.mxu1 %vm177_vm0, %v74_v3  ;;  %vm14021_vm5 = vmpackc.low %vm177_vm0, %vm177_vm0  ;;  %vm9295_vm6 = vcmask 57344   ;;  %vm10039_vm7 = vcmask 1041409   ;;  %s13280_s16 = smov [#allocation10]  }
  0x50   :  { %11023 = vmatpush3.xpose.msk.msra.mxu1 %vm177_vm0, %v74_v3  ;;  %11024 = vmatprep.mubr.msk.f32.mxu1 %vm177_vm0, %v77_v2  ;;  %s10245_s17 = sshll.u32 %s13280_s16, 4  ;;  %s10246_s17 = int_to_ptr.vmem [resolvable:$true] %s10245_s17 }
  0x51   :  { %107 = vrot.lane.b32.xlu0 %v77_v2, %s13273_s14  ;;  %11017 = vmatmul.mubr.msk.f32.vlgmr.msra.gmra.mrb[0].mxu0 %vm177_vm0, %v78_v1  ;;  %s13233_s18 = scalar_lea.vmem %s10246_s17, 32  ;;  %p13238_p5 = scmp.lt.s32.totalorder %s10246_s17, %s10246_s17 }
  0x52   :  { %111 = vrot.lane.b32.xlu1 %v79_v4, %s13273_s14  ;;  %11019 = vmatprep.mubr.msk.f32.mxu0 %vm177_vm0, %v79_v4  ;;  %p13234_p4 = scmp.ne.s32.totalorder %s10246_s17, %s13233_s18  ;;  %p13239_p6 = scmp.lt.s32.totalorder %s13233_s18, %s13233_s18 }
  0x53   :  { %11025 = vmatmul.mubr.msk.f32.vlgmr.msra.gmra.mrb[0].mxu1 %vm177_vm0, %v78_v1 }
  0x54   :  { %11027 = vmatprep.mubr.msk.f32.mxu1 %vm177_vm0, %v79_v4  ;;  %p13240_p7 = por %p13239_p6, %p13238_p5 }
  0x55   :  { %113 = vrot.lane.b32.xlu0 %v80_v5, %s13273_s14  ;;  %11020 = vmatmul.mubr.msk.f32.gmra.mrb[2].mxu0 %vm177_vm0, %v80_v5 }
  0x56   :  { %149 = vrot.lane.b32.xlu1 %v71_v0, %s13274_s3  ;;  %p13241_p8 = pnand %p13240_p7, %p13234_p4 }
  0x57   :  { %11028 = vmatmul.mubr.msk.f32.gmra.mrb[2].mxu1 %vm177_vm0, %v80_v5 }
  0x59   :  { %119 = vrot.lane.b32.xlu0 %v77_v2, %s13274_s3 }
  0x5a   :  { %121 = vrot.lane.b32.xlu1 %v78_v1, %s13274_s3 }
  0x5d   :  { %123 = vrot.lane.b32.xlu0 %v79_v4, %s13274_s3 }
  0x5e   :  { %125 = vrot.lane.b32.xlu1 %v80_v5, %s13274_s3 }
  0x61   :  { %147 = vrot.lane.b32.xlu0 %v74_v3, %s13273_s14 }
  0x62   :  { %153 = vrot.lane.b32.xlu1 %v71_v0, %s13275_s15 }
  0x65   :  { %131 = vrot.lane.b32.xlu0 %v77_v2, %s13275_s15 }
  0x66   :  { %133 = vrot.lane.b32.xlu1 %v78_v1, %s13275_s15 }
  0x69   :  { %151 = vrot.lane.b32.xlu0 %v74_v3, %s13274_s3 }
  0x6a   :  { %135 = vrot.lane.b32.xlu1 %v79_v4, %s13275_s15 }
  0x6d   :  { %137 = vrot.lane.b32.xlu0 %v80_v5, %s13275_s15 }
  0x6e   :  { %155 = vrot.lane.b32.xlu1 %v74_v3, %s13275_s15 }
  0x72   :  { %159 = vrot.lane.b32.xlu1 %v13391_v6, %s13273_s14 }
  0xbf   :  { %v146_v7 = vpop.permute.xlu0 %145 }
  0xc0   :  { %11030 = vmatprep.subr.msk.mxu0 %vm177_vm0, %v146_v7  ;;  %v13396_v8 = vpop.permute.xlu1 %109 }
  0xc1   :  { %11031 = vmatpush3.xpose.msk.msra.mxu0 %vm177_vm0, %v146_v7 }
  0xc3   :  { %v13399_v9 = vpop.permute.xlu0 %107 }
  0xc4   :  { %11032 = vmatprep.mubr.msk.f32.mxu0 %vm177_vm0, %v13399_v9  ;;  %11040 = vmatprep.mubr.msk.f32.mxu1 %vm177_vm0, %v13399_v9  ;;  %v13405_v10 = vpop.permute.xlu1 %111 }
  0xc5   :  { %11033 = vmatmul.mubr.msk.f32.vlgmr.msra.gmra.mrb[4].mxu0 %vm177_vm0, %v13396_v8 }
  0xc6   :  { %11035 = vmatprep.mubr.msk.f32.mxu0 %vm177_vm0, %v13405_v10 }
  0xc7   :  { %v13411_v11 = vpop.permute.xlu0 %113 }
  0xc8   :  { %v150_v12 = vpop.permute.xlu1 %149 }
  0xc9   :  { %11036 = vmatmul.mubr.msk.f32.gmra.mrb[6].mxu0 %vm177_vm0, %v13411_v11  ;;  %11046 = vmatprep.subr.msk.mxu0 %vm177_vm0, %v150_v12 }
  0xca   :  { %11047 = vmatpush3.xpose.msk.msra.mxu0 %vm177_vm0, %v150_v12 }
  0xcb   :  { %v13417_v13 = vpop.permute.xlu0 %119 }
  0xcc   :  { %15642 = vst [vmem:[#allocation15_spill] sm:$0xff] %v13417_v13  ;;  %11048 = vmatprep.mubr.msk.f32.mxu0 %vm177_vm0, %v13417_v13  ;;  %v13421_v14 = vpop.permute.xlu1 %121 }
  0xcd   :  { %15643 = vst [vmem:[#allocation16_spill] sm:$0xff] %v13421_v14  ;;  %11049 = vmatmul.mubr.msk.f32.vlgmr.msra.gmra.mrb[8].mxu0 %vm177_vm0, %v13421_v14 }
  0xcf   :  { %v13425_v15 = vpop.permute.xlu0 %123 }
  0xd0   :  { %15644 = vst [vmem:[#allocation17_spill] sm:$0xff] %v13425_v15  ;;  %11051 = vmatprep.mubr.msk.f32.mxu0 %vm177_vm0, %v13425_v15  ;;  %v13429_v16 = vpop.permute.xlu1 %125 }
  0xd1   :  { %15645 = vst [vmem:[#allocation18_spill] sm:$0xff] %v13429_v16  ;;  %11052 = vmatmul.mubr.msk.f32.gmra.mrb[10].mxu0 %vm177_vm0, %v13429_v16 }
  0xd3   :  { %v148_v17 = vpop.permute.xlu0 %147 }
  0xd4   :  { %11038 = vmatprep.subr.msk.mxu1 %vm177_vm0, %v148_v17  ;;  %v154_v18 = vpop.permute.xlu1 %153 }
  0xd5   :  { %11039 = vmatpush3.xpose.msk.msra.mxu1 %vm177_vm0, %v148_v17  ;;  %11062 = vmatprep.subr.msk.mxu0 %vm177_vm0, %v154_v18 }
  0xd6   :  { %11063 = vmatpush3.xpose.msk.msra.mxu0 %vm177_vm0, %v154_v18 }
  0xd7   :  { %v13437_v19 = vpop.permute.xlu0 %131  ;;  %11078 = vmatprep.subr.mxu0 %v13391_v6 }
  0xd8   :  { %15646 = vst [vmem:[#allocation19_spill] sm:$0xff] %v13437_v19  ;;  %11041 = vmatmul.mubr.msk.f32.vlgmr.msra.gmra.mrb[4].mxu1 %vm177_vm0, %v13396_v8  ;;  %v13442_v20 = vpop.permute.xlu1 %133  ;;  %11064 = vmatprep.mubr.msk.f32.mxu0 %vm177_vm0, %v13437_v19 }
  0xd9   :  { %15647 = vst [vmem:[#allocation20_spill] sm:$0xff] %v13442_v20  ;;  %11043 = vmatprep.mubr.msk.f32.mxu1 %vm177_vm0, %v13405_v10  ;;  %11065 = vmatmul.mubr.msk.f32.vlgmr.msra.gmra.mrb[12].mxu0 %vm177_vm0, %v13442_v20 }
  0xda   :  { %11079 = vmatpush3.msra.mxu0 %v13391_v6 }
  0xdb   :  { %v152_v21 = vpop.permute.xlu0 %151 }
  0xdc   :  { %11044 = vmatmul.mubr.msk.f32.gmra.mrb[6].mxu1 %vm177_vm0, %v13411_v11  ;;  %11054 = vmatprep.subr.msk.mxu1 %vm177_vm0, %v152_v21  ;;  %v13454_v22 = vpop.permute.xlu1 %135 }
  0xdd   :  { %15648 = vst [vmem:[#allocation21_spill] sm:$0xff] %v13454_v22  ;;  %11055 = vmatpush3.xpose.msk.msra.mxu1 %vm177_vm0, %v152_v21  ;;  %11056 = vmatprep.mubr.msk.f32.mxu1 %vm177_vm0, %v13417_v13 }
  0xde   :  { %11067 = vmatprep.mubr.msk.f32.mxu0 %vm177_vm0, %v13454_v22 }
  0xdf   :  { %v13461_v23 = vpop.permute.xlu0 %137 }
  0xe0   :  { %15649 = vst [vmem:[#allocation22_spill] sm:$0xff] %v13461_v23  ;;  %11057 = vmatmul.mubr.msk.f32.vlgmr.msra.gmra.mrb[8].mxu1 %vm177_vm0, %v13421_v14  ;;  %v156_v24 = vpop.permute.xlu1 %155  ;;  %11068 = vmatmul.mubr.msk.f32.gmra.mrb[14].mxu0 %vm177_vm0, %v13461_v23 }
  0xe1   :  { %11059 = vmatprep.mubr.msk.f32.mxu1 %vm177_vm0, %v13425_v15  ;;  %11070 = vmatprep.subr.msk.mxu1 %vm177_vm0, %v156_v24 }
  0xe2   :  { %11071 = vmatpush3.xpose.msk.msra.mxu1 %vm177_vm0, %v156_v24 }
  0xe3   :  { %11086 = vmatprep.subr.mxu1 %v13516_v42 }
  0xe4   :  { %11060 = vmatmul.mubr.msk.f32.gmra.mrb[10].mxu1 %vm177_vm0, %v13429_v16  ;;  %v13509_v39 = vpop.permute.xlu1 %159 }
  0xe5   :  { %11072 = vmatprep.mubr.msk.f32.mxu1 %vm177_vm0, %v13437_v19  ;;  %11094 = vmatprep.subr.mxu0 %v13509_v39 }
  0xe8   :  { %11073 = vmatmul.mubr.msk.f32.vlgmr.msra.gmra.mrb[12].mxu1 %vm177_vm0, %v13442_v20 }
  0xe9   :  { %11075 = vmatprep.mubr.msk.f32.mxu1 %vm177_vm0, %v13454_v22  ;;  %11087 = vmatpush3.msra.mxu1 %v13516_v42 }
  0xec   :  { %11076 = vmatmul.mubr.msk.f32.gmra.mrb[14].mxu1 %vm177_vm0, %v13461_v23 }
 0x124   :  { %v13481_v25 = vpop.f32.mrb[0].mxu0 }
 0x125   :  { %v13483_v26 = vpop.f32.mrb[1].mxu0  ;;  %v910_v27 = vsel %vm906_vm1, %v13481_v25, -inf }
 0x126   :  { %911 = vmax.xlane.f32.xlu1 %v910_v27  ;;  %v907_v28 = vsel %vm906_vm1, %v13483_v26, -inf  ;;  %v13489_v29 = vpop.f32.mrb[0].mxu1 }
 0x127   :  { %908 = vmax.xlane.f32.xlu0 %v907_v28  ;;  %v922_v30 = vsel %vm906_vm1, %v13489_v29, -inf  ;;  %v13493_v31 = vpop.f32.mrb[1].mxu1 }
 0x128   :  { %v13495_v32 = vpop.f32.mrb[2].mxu0  ;;  %v919_v36 = vsel %vm906_vm1, %v13493_v31, -inf }
 0x129   :  { %v916_v33 = vsel %vm906_vm1, %v13495_v32, -inf  ;;  %v13499_v34 = vpop.f32.mrb[3].mxu0 }
 0x12a   :  { %923 = vmax.xlane.f32.xlu1 %v922_v30  ;;  %v13501_v35 = vpop.f32.mrb[2].mxu1  ;;  %v913_v38 = vsel %vm906_vm1, %v13499_v34, -inf }
 0x12b   :  { %917 = vmax.xlane.f32.xlu0 %v916_v33  ;;  %v13505_v37 = vpop.f32.mrb[3].mxu1  ;;  %v928_v40 = vsel %vm906_vm1, %v13501_v35, -inf }
 0x12c   :  { %v925_v41 = vsel %vm906_vm1, %v13505_v37, -inf }
 0x12e   :  { %920 = vmax.xlane.f32.xlu1 %v919_v36 }
 0x12f   :  { %914 = vmax.xlane.f32.xlu0 %v913_v38 }
 0x132   :  { %929 = vmax.xlane.f32.xlu1 %v928_v40 }
 0x136   :  { %926 = vmax.xlane.f32.xlu1 %v925_v41 }
 0x198   :  { %v13520_v43 = vpop.f32.mrb[4].mxu0 }
 0x199   :  { %v934_v44 = vsel %vm906_vm1, %v13520_v43, -inf  ;;  %v13524_v45 = vpop.f32.mrb[5].mxu0 }
 0x19a   :  { %935 = vmax.xlane.f32.xlu0 %v934_v44  ;;  %v931_v60 = vsel %vm906_vm1, %v13524_v45, -inf }
 0x19c   :  { %v13526_v46 = vpop.f32.mrb[6].mxu0 }
 0x19d   :  { %v13528_v47 = vpop.f32.mrb[7].mxu0  ;;  %v940_v48 = vsel %vm906_vm1, %v13526_v46, -inf }
 0x19e   :  { %941 = vmax.xlane.f32.xlu0 %v940_v48  ;;  %v937_v7 = vsel %vm906_vm1, %v13528_v47, -inf }
 0x1a0   :  { %v13532_v49 = vpop.f32.mrb[8].mxu0 }
 0x1a1   :  { %v13534_v50 = vpop.f32.mrb[9].mxu0  ;;  %v958_v62 = vsel %vm906_vm1, %v13532_v49, -inf }
 0x1a2   :  { %v955_v12 = vsel %vm906_vm1, %v13534_v50, -inf }
 0x1a4   :  { %v13536_v51 = vpop.f32.mrb[10].mxu0 }
 0x1a5   :  { %v13538_v52 = vpop.f32.mrb[11].mxu0  ;;  %v964_v21 = vsel %vm906_vm1, %v13536_v51, -inf }
 0x1a6   :  { %v961_v38 = vsel %vm906_vm1, %v13538_v52, -inf }
 0x1ab   :  { %v13540_v53 = vpop.f32.mrb[4].mxu1 }
 0x1ac   :  { %v13542_v54 = vpop.f32.mrb[5].mxu1  ;;  %v946_v55 = vsel %vm906_vm1, %v13540_v53, -inf  ;;  %v13546_v56 = vpop.f32.mrb[12].mxu0 }
 0x1ad   :  { %947 = vmax.xlane.f32.xlu1 %v946_v55  ;;  %v13548_v57 = vpop.f32.mrb[13].mxu0  ;;  %v943_v1 = vsel %vm906_vm1, %v13542_v54, -inf  ;;  %v982_v41 = vsel %vm906_vm1, %v13546_v56, -inf }
 0x1ae   :  { %v979_v55 = vsel %vm906_vm1, %v13548_v57, -inf }
 0x1af   :  { %v13550_v58 = vpop.f32.mrb[6].mxu1 }
 0x1b0   :  { %v13552_v59 = vpop.f32.mrb[7].mxu1  ;;  %v952_v61 = vsel %vm906_vm1, %v13550_v58, -inf }
 0x1b1   :  { %932 = vmax.xlane.f32.xlu1 %v931_v60  ;;  %953 = vmax.xlane.f32.xlu0 %v952_v61  ;;  %v949_v18 = vsel %vm906_vm1, %v13552_v59, -inf }
 0x1b3   :  { %v13560_v63 = vpop.f32.mrb[8].mxu1  ;;  %v13566_v2 = vpop.f32.mrb[14].mxu0 }
 0x1b4   :  { %v13562_v0 = vpop.f32.mrb[9].mxu1  ;;  %v13568_v3 = vpop.f32.mrb[15].mxu0  ;;  %v970_v28 = vsel %vm906_vm1, %v13560_v63, -inf  ;;  %v988_v60 = vsel %vm906_vm1, %v13566_v2, -inf }
 0x1b5   :  { %944 = vmax.xlane.f32.xlu1 %v943_v1  ;;  %959 = vmax.xlane.f32.xlu0 %v958_v62  ;;  %v967_v36 = vsel %vm906_vm1, %v13562_v0, -inf  ;;  %v985_v62 = vsel %vm906_vm1, %v13568_v3, -inf  ;;  %v912_v1 = vpop.xlane.xlu1 %911 }
 0x1b7   :  { %v13570_v4 = vpop.f32.mrb[10].mxu1 }
 0x1b8   :  { %v13572_v5 = vpop.f32.mrb[11].mxu1  ;;  %v976_v30 = vsel %vm906_vm1, %v13570_v4, -inf }
 0x1b9   :  { %938 = vmax.xlane.f32.xlu1 %v937_v7  ;;  %956 = vmax.xlane.f32.xlu0 %v955_v12  ;;  %v973_v40 = vsel %vm906_vm1, %v13572_v5, -inf  ;;  %v924_v7 = vpop.xlane.xlu1 %923 }
 0x1ba   :  { %v1008_v12 = vsub.f32 %v13489_v29, %v924_v7 }
 0x1bb   :  { %v13578_v17 = vpop.f32.mrb[12].mxu1 }
 0x1bc   :  { %v13584_v24 = vpop.f32.mrb[13].mxu1  ;;  %v994_v48 = vsel %vm906_vm1, %v13578_v17, -inf }
 0x1bd   :  { %950 = vmax.xlane.f32.xlu1 %v949_v18  ;;  %965 = vmax.xlane.f32.xlu0 %v964_v21  ;;  %v991_v44 = vsel %vm906_vm1, %v13584_v24, -inf  ;;  %v909_v18 = vpop.xlane.xlu0 %908  ;;  %v921_v21 = vpop.xlane.xlu1 %920 }
 0x1bf   :  { %v13586_v27 = vpop.f32.mrb[14].mxu1 }
 0x1c0   :  { %v13592_v33 = vpop.f32.mrb[15].mxu1  ;;  %v1000_v61 = vsel %vm906_vm1, %v13586_v27, -inf }
 0x1c1   :  { %971 = vmax.xlane.f32.xlu1 %v970_v28  ;;  %977 = vmax.xlane.f32.xlu0 %v976_v30  ;;  %v1003_v28 = vsub.f32 %v13483_v26, %v909_v18  ;;  %v1045_v30 = vmul.f32 1.442695, %v1008_v12  ;;  %v997_v12 = vsel %vm906_vm1, %v13592_v33, -inf }
 0x1c3   :  { %12783 = vpow2.f32 %v1045_v30 }
 0x1c5   :  { %968 = vmax.xlane.f32.xlu1 %v967_v36  ;;  %962 = vmax.xlane.f32.xlu0 %v961_v38  ;;  %v918_v36 = vpop.xlane.xlu0 %917  ;;  %v1035_v38 = vmul.f32 1.442695, %v1003_v28 }
 0x1c7   :  { %12785 = vpow2.f32 %v1035_v38 }
 0x1c9   :  { %974 = vmax.xlane.f32.xlu1 %v973_v40  ;;  %983 = vmax.xlane.f32.xlu0 %v982_v41  ;;  %v1007_v40 = vsub.f32 %v13493_v31, %v921_v21  ;;  %v930_v41 = vpop.xlane.xlu1 %929 }
 0x1ca   :  { %v1010_v29 = vsub.f32 %v13501_v35, %v930_v41 }
 0x1cd   :  { %992 = vmax.xlane.f32.xlu1 %v991_v44  ;;  %995 = vmax.xlane.f32.xlu0 %v994_v48  ;;  %v1004_v44 = vsub.f32 %v13481_v25, %v912_v1  ;;  %v1043_v48 = vmul.f32 1.442695, %v1007_v40  ;;  %v927_v7 = vpop.xlane.xlu1 %926  ;;  %v13627_v31 = vpop.eup %12783 }
 0x1ce   :  { %v1009_v35 = vsub.f32 %v13505_v37, %v927_v7 }
 0x1cf   :  { %12787 = vpow2.f32 %v1043_v48 }
 0x1d1   :  { %980 = vmax.xlane.f32.xlu0 %v979_v55  ;;  %v915_v55 = vpop.xlane.xlu0 %914  ;;  %v13632_v18 = vpop.eup %12785 }
 0x1d2   :  { %v1005_v26 = vsub.f32 %v13499_v34, %v915_v55  ;;  %v1047_v34 = vmul.f32 1.442695, %v1009_v35  ;;  %v1099_v21 = vsel %vm906_vm1, %v13632_v18, 0.0 }
 0x1d4   :  { %v1039_v1 = vmul.f32 1.442695, %v1005_v26 }
 0x1d5   :  { %989 = vmax.xlane.f32.xlu0 %v988_v60  ;;  %v1037_v60 = vmul.f32 1.442695, %v1004_v44 }
 0x1d7   :  { %12789 = vpow2.f32 %v1037_v60 }
 0x1d9   :  { %1001 = vmax.xlane.f32.xlu0 %v1000_v61  ;;  %v1006_v61 = vsub.f32 %v13495_v32, %v918_v36  ;;  %v1114_v32 = vsel %vm906_vm1, %v13627_v31, 0.0  ;;  %v13636_v28 = vpop.eup %12787 }
 0x1da   :  { %v1111_v37 = vsel %vm906_vm1, %v13636_v28, 0.0 }
 0x1db   :  { %v1041_v25 = vmul.f32 1.442695, %v1006_v61 }
 0x1dd   :  { %986 = vmax.xlane.f32.xlu0 %v985_v62  ;;  %v1049_v62 = vmul.f32 1.442695, %v1010_v29 }
 0x1de   :  { %161 = vrot.lane.b32.xlu1 %v13516_v42, %s13273_s14 }
 0x1df   :  { %12791 = vpow2.f32 %v1049_v62 }
 0x1e0   :  { %12793 = vpow2.f32 %v1041_v25 }
 0x1e1   :  { %12795 = vpow2.f32 %v1039_v1  ;;  %v13638_v30 = vpop.eup %12789 }
 0x1e2   :  { %12797 = vpow2.f32 %v1047_v34  ;;  %v1102_v41 = vsel %vm906_vm1, %v13638_v30, 0.0 }
 0x1e9   :  { %v13642_v36 = vpop.eup %12791 }
 0x1ea   :  { %v13644_v38 = vpop.eup %12793  ;;  %v1120_v40 = vsel %vm906_vm1, %v13642_v36, 0.0 }
 0x1eb   :  { %v13650_v44 = vpop.eup %12795  ;;  %v1108_v29 = vsel %vm906_vm1, %v13644_v38, 0.0 }
 0x1ec   :  { %v1105_v48 = vsel %vm906_vm1, %v13650_v44, 0.0  ;;  %v13656_v55 = vpop.eup %12797 }
 0x1ed   :  { %v1117_v60 = vsel %vm906_vm1, %v13656_v55, 0.0 }
 0x1f3   :  { %165 = vrot.lane.b32.xlu0 %v13391_v6, %s13274_s3 }
 0x202   :  { %998 = vmax.xlane.f32.xlu1 %v997_v12 }
 0x206   :  { %1115 = vadd.xlane.f32.xlu1 %v1114_v32 }
 0x20a   :  { %1100 = vadd.xlane.f32.xlu1 %v1099_v21 }
 0x20e   :  { %1112 = vadd.xlane.f32.xlu1 %v1111_v37 }
 0x212   :  { %1121 = vadd.xlane.f32.xlu1 %v1120_v40  ;;  %1103 = vadd.xlane.f32.xlu0 %v1102_v41 }
 0x216   :  { %1106 = vadd.xlane.f32.xlu1 %v1105_v48  ;;  %1109 = vadd.xlane.f32.xlu0 %v1108_v29 }
 0x21a   :  { %1118 = vadd.xlane.f32.xlu1 %v1117_v60 }
 0x227   :  { %v936_v61 = vpop.xlane.xlu0 %935 }
 0x228   :  { %v1012_v26 = vsub.f32 %v13520_v43, %v936_v61 }
 0x22a   :  { %v1053_v62 = vmul.f32 1.442695, %v1012_v26 }
 0x22b   :  { %v942_v7 = vpop.xlane.xlu0 %941 }
 0x22c   :  { %12799 = vpow2.f32 %v1053_v62  ;;  %v1014_v12 = vsub.f32 %v13526_v46, %v942_v7 }
 0x22e   :  { %v1057_v25 = vmul.f32 1.442695, %v1014_v12 }
 0x230   :  { %12801 = vpow2.f32 %v1057_v25 }
 0x236   :  { %v13662_v1 = vpop.eup %12799 }
 0x237   :  { %v1126_v35 = vsel %vm906_vm1, %v13662_v1, 0.0 }
 0x238   :  { %1127 = vadd.xlane.f32.xlu0 %v1126_v35 }
 0x23a   :  { %v13666_v32 = vpop.eup %12801  ;;  %v948_v34 = vpop.xlane.xlu1 %947 }
 0x23b   :  { %v1016_v21 = vsub.f32 %v13540_v53, %v948_v34  ;;  %v1132_v43 = vsel %vm906_vm1, %v13666_v32, 0.0 }
 0x23c   :  { %1133 = vadd.xlane.f32.xlu0 %v1132_v43 }
 0x23d   :  { %v1061_v37 = vmul.f32 1.442695, %v1016_v21 }
 0x23e   :  { %v933_v40 = vpop.xlane.xlu1 %932  ;;  %v954_v46 = vpop.xlane.xlu0 %953 }
 0x23f   :  { %12803 = vpow2.f32 %v1061_v37  ;;  %v1011_v41 = vsub.f32 %v13524_v45, %v933_v40  ;;  %v1018_v48 = vsub.f32 %v13550_v58, %v954_v46 }
 0x241   :  { %v1051_v29 = vmul.f32 1.442695, %v1011_v41  ;;  %v1065_v60 = vmul.f32 1.442695, %v1018_v48 }
 0x242   :  { %v945_v61 = vpop.xlane.xlu1 %944  ;;  %v960_v26 = vpop.xlane.xlu0 %959 }
 0x243   :  { %12805 = vpow2.f32 %v1051_v29  ;;  %v1015_v62 = vsub.f32 %v13542_v54, %v945_v61  ;;  %v1020_v53 = vsub.f32 %v13532_v49, %v960_v26 }
 0x244   :  { %12807 = vpow2.f32 %v1065_v60 }
 0x245   :  { %v1059_v7 = vmul.f32 1.442695, %v1015_v62  ;;  %v1069_v12 = vmul.f32 1.442695, %v1020_v53 }
 0x246   :  { %v939_v25 = vpop.xlane.xlu1 %938  ;;  %v957_v35 = vpop.xlane.xlu0 %956 }
 0x247   :  { %12809 = vpow2.f32 %v1059_v7  ;;  %v1013_v34 = vsub.f32 %v13528_v47, %v939_v25  ;;  %v1019_v45 = vsub.f32 %v13534_v50, %v957_v35 }
 0x248   :  { %12811 = vpow2.f32 %v1069_v12 }
 0x249   :  { %v13677_v58 = vpop.eup %12803  ;;  %v1055_v21 = vmul.f32 1.442695, %v1013_v34  ;;  %v1067_v43 = vmul.f32 1.442695, %v1019_v45 }
 0x24a   :  { %v951_v37 = vpop.xlane.xlu1 %950  ;;  %v966_v40 = vpop.xlane.xlu0 %965  ;;  %v1138_v49 = vsel %vm906_vm1, %v13677_v58, 0.0 }
 0x24b   :  { %12813 = vpow2.f32 %v1055_v21  ;;  %v1017_v54 = vsub.f32 %v13552_v59, %v951_v37  ;;  %v1022_v46 = vsub.f32 %v13536_v51, %v966_v40  ;;  %1139 = vadd.xlane.f32.xlu1 %v1138_v49 }
 0x24c   :  { %12815 = vpow2.f32 %v1067_v43 }
 0x24d   :  { %v13683_v47 = vpop.eup %12805  ;;  %v1063_v50 = vmul.f32 1.442695, %v1017_v54  ;;  %v1073_v41 = vmul.f32 1.442695, %v1022_v46 }
 0x24e   :  { %v13685_v48 = vpop.eup %12807  ;;  %v972_v29 = vpop.xlane.xlu1 %971  ;;  %v1123_v61 = vsel %vm906_vm1, %v13683_v47, 0.0 }
 0x24f   :  { %v978_v60 = vpop.xlane.xlu0 %977  ;;  %12817 = vpow2.f32 %v1063_v50  ;;  %v1024_v26 = vsub.f32 %v13560_v63, %v972_v29  ;;  %1124 = vadd.xlane.f32.xlu1 %v1123_v61  ;;  %v1144_v51 = vsel %vm906_vm1, %v13685_v48, 0.0 }
 0x250   :  { %v1026_v59 = vsub.f32 %v13570_v4, %v978_v60  ;;  %12819 = vpow2.f32 %v1073_v41  ;;  %1145 = vadd.xlane.f32.xlu0 %v1144_v51 }
 0x251   :  { %v13693_v62 = vpop.eup %12809  ;;  %v1077_v53 = vmul.f32 1.442695, %v1024_v26 }
 0x252   :  { %v1081_v7 = vmul.f32 1.442695, %v1026_v59  ;;  %v13695_v12 = vpop.eup %12811  ;;  %v969_v25 = vpop.xlane.xlu1 %968  ;;  %v1135_v34 = vsel %vm906_vm1, %v13693_v62, 0.0 }
 0x253   :  { %v963_v35 = vpop.xlane.xlu0 %962  ;;  %12821 = vpow2.f32 %v1077_v53  ;;  %v1023_v63 = vsub.f32 %v13562_v0, %v969_v25  ;;  %1136 = vadd.xlane.f32.xlu1 %v1135_v34  ;;  %v1150_v45 = vsel %vm906_vm1, %v13695_v12, 0.0 }
 0x254   :  { %v1021_v4 = vsub.f32 %v13538_v52, %v963_v35  ;;  %12823 = vpow2.f32 %v1081_v7  ;;  %1151 = vadd.xlane.f32.xlu0 %v1150_v45 }
 0x255   :  { %v13703_v21 = vpop.eup %12813  ;;  %v1075_v43 = vmul.f32 1.442695, %v1023_v63 }
 0x256   :  { %v1071_v37 = vmul.f32 1.442695, %v1021_v4  ;;  %v13705_v40 = vpop.eup %12815  ;;  %v975_v49 = vpop.xlane.xlu1 %974  ;;  %v1129_v46 = vsel %vm906_vm1, %v13703_v21, 0.0 }
 0x257   :  { %v984_v54 = vpop.xlane.xlu0 %983  ;;  %12825 = vpow2.f32 %v1075_v43  ;;  %v1025_v52 = vsub.f32 %v13572_v5, %v975_v49  ;;  %1130 = vadd.xlane.f32.xlu1 %v1129_v46  ;;  %v1147_v50 = vsel %vm906_vm1, %v13705_v40, 0.0 }
 0x258   :  { %v1028_v0 = vsub.f32 %v13546_v56, %v984_v54  ;;  %12827 = vpow2.f32 %v1071_v37  ;;  %1148 = vadd.xlane.f32.xlu0 %v1147_v50 }
 0x259   :  { %v13713_v41 = vpop.eup %12817  ;;  %v1079_v29 = vmul.f32 1.442695, %v1025_v52 }
 0x25a   :  { %v1085_v60 = vmul.f32 1.442695, %v1028_v0  ;;  %v13715_v61 = vpop.eup %12819  ;;  %v993_v26 = vpop.xlane.xlu1 %992  ;;  %v1141_v51 = vsel %vm906_vm1, %v13713_v41, 0.0 }
 0x25b   :  { %v996_v59 = vpop.xlane.xlu0 %995  ;;  %12829 = vpow2.f32 %v1079_v29  ;;  %1142 = vadd.xlane.f32.xlu1 %v1141_v51  ;;  %v1156_v5 = vsel %vm906_vm1, %v13715_v61, 0.0  ;;  %v1031_v35 = vsub.f32 %v13584_v24, %v993_v26 }
 0x25c   :  { %v1032_v56 = vsub.f32 %v13578_v17, %v996_v59  ;;  %12831 = vpow2.f32 %v1085_v60  ;;  %1157 = vadd.xlane.f32.xlu0 %v1156_v5 }
 0x25d   :  { %v13722_v53 = vpop.eup %12821  ;;  %v1091_v49 = vmul.f32 1.442695, %v1031_v35 }
 0x25e   :  { %v1093_v7 = vmul.f32 1.442695, %v1032_v56  ;;  %v13724_v25 = vpop.eup %12823  ;;  %v13727_v34 = vpop.permute.xlu1 %161  ;;  %v1162_v4 = vsel %vm906_vm1, %v13722_v53, 0.0 }
 0x25f   :  { %v981_v63 = vpop.xlane.xlu0 %980  ;;  %1163 = vadd.xlane.f32.xlu1 %v1162_v4  ;;  %11102 = vmatprep.subr.mxu1 %v13727_v34  ;;  %v1168_v45 = vsel %vm906_vm1, %v13724_v25, 0.0 }
 0x260   :  { %v1027_v17 = vsub.f32 %v13548_v57, %v981_v63  ;;  %12833 = vpow2.f32 %v1093_v7  ;;  %1169 = vadd.xlane.f32.xlu0 %v1168_v45 }
 0x261   :  { %v13735_v43 = vpop.eup %12825 }
 0x262   :  { %v1083_v37 = vmul.f32 1.442695, %v1027_v17  ;;  %v13737_v24 = vpop.eup %12827  ;;  %v1159_v46 = vsel %vm906_vm1, %v13735_v43, 0.0 }
 0x263   :  { %v990_v54 = vpop.xlane.xlu0 %989  ;;  %1160 = vadd.xlane.f32.xlu1 %v1159_v46  ;;  %v1153_v52 = vsel %vm906_vm1, %v13737_v24, 0.0 }
 0x264   :  { %12835 = vpow2.f32 %v1083_v37  ;;  %v1030_v57 = vsub.f32 %v13566_v2, %v990_v54  ;;  %1154 = vadd.xlane.f32.xlu0 %v1153_v52 }
 0x265   :  { %v13744_v0 = vpop.eup %12829  ;;  %12837 = vpow2.f32 %v1091_v49 }
 0x266   :  { %v13746_v50 = vpop.eup %12831  ;;  %v1089_v29 = vmul.f32 1.442695, %v1030_v57  ;;  %v1165_v26 = vsel %vm906_vm1, %v13744_v0, 0.0 }
 0x267   :  { %v1002_v60 = vpop.xlane.xlu0 %1001  ;;  %1166 = vadd.xlane.f32.xlu1 %v1165_v26  ;;  %v1174_v2 = vsel %vm906_vm1, %v13746_v50, 0.0 }
 0x268   :  { %v1034_v59 = vsub.f32 %v13586_v27, %v1002_v60  ;;  %1175 = vadd.xlane.f32.xlu0 %v1174_v2  ;;  %12839 = vpow2.f32 %v1089_v29 }
 0x26a   :  { %v13753_v51 = vpop.eup %12833  ;;  %v1097_v56 = vmul.f32 1.442695, %v1034_v59 }
 0x26b   :  { %v987_v5 = vpop.xlane.xlu0 %986  ;;  %v1186_v35 = vsel %vm906_vm1, %v13753_v51, 0.0 }
 0x26c   :  { %v1029_v7 = vsub.f32 %v13568_v3, %v987_v5  ;;  %1187 = vadd.xlane.f32.xlu0 %v1186_v35  ;;  %12841 = vpow2.f32 %v1097_v56 }
 0x26e   :  { %v13758_v63 = vpop.eup %12835  ;;  %v1087_v27 = vmul.f32 1.442695, %v1029_v7 }
 0x26f   :  { %v1171_v4 = vsel %vm906_vm1, %v13758_v63, 0.0  ;;  %v13762_v17 = vpop.eup %12837  ;;  %v13783_v2 = vpop.permute.xlu0 %165 }
 0x270   :  { %1172 = vadd.xlane.f32.xlu0 %v1171_v4  ;;  %12843 = vpow2.f32 %v1087_v27  ;;  %v1183_v45 = vsel %vm906_vm1, %v13762_v17, 0.0 }
 0x272   :  { %v13766_v37 = vpop.eup %12839 }
 0x273   :  { %v1180_v3 = vsel %vm906_vm1, %v13766_v37, 0.0 }
 0x274   :  { %1184 = vadd.xlane.f32.xlu0 %v1183_v45 }
 0x276   :  { %v13770_v49 = vpop.eup %12841 }
 0x277   :  { %v1192_v54 = vsel %vm906_vm1, %v13770_v49, 0.0 }
 0x278   :  { %1181 = vadd.xlane.f32.xlu0 %v1180_v3  ;;  %167 = vrot.lane.b32.xlu1 %v13516_v42, %s13274_s3 }
 0x27a   :  { %v13776_v46 = vpop.eup %12843 }
 0x27b   :  { %v1177_v57 = vsel %vm906_vm1, %v13776_v46, 0.0 }
 0x27c   :  { %1193 = vadd.xlane.f32.xlu0 %v1192_v54 }
 0x280   :  { %1178 = vadd.xlane.f32.xlu0 %v1177_v57 }
 0x28f   :  { %v999_v52 = vpop.xlane.xlu1 %998 }
 0x290   :  { %v1033_v29 = vsub.f32 %v13592_v33, %v999_v52 }
 0x292   :  { %v1095_v60 = vmul.f32 1.442695, %v1033_v29 }
 0x293   :  { %v1116_v26 = vpop.xlane.xlu1 %1115 }
 0x294   :  { %12845 = vpow2.f32 %v1095_v60 }
 0x295   :  { %12847 = vrcp.f32 %v1116_v26 }
 0x296   :  { %171 = vrot.lane.b32.xlu0 %v13391_v6, %s13275_s15 }
 0x297   :  { %v1101_v59 = vpop.xlane.xlu1 %1100 }
 0x298   :  { %12849 = vrcp.f32 %v1101_v59 }
 0x29b   :  { %v1113_v56 = vpop.xlane.xlu1 %1112 }
 0x29c   :  { %12851 = vrcp.f32 %v1113_v56 }
 0x29e   :  { %v13785_v5 = vpop.eup %12845 }
 0x29f   :  { %v12848_v7 = vpop.eup %12847  ;;  %v1122_v35 = vpop.xlane.xlu1 %1121  ;;  %v1189_v33 = vsel %vm906_vm1, %v13785_v5, 0.0 }
 0x2a0   :  { %v1104_v27 = vpop.xlane.xlu0 %1103  ;;  %12853 = vrcp.f32 %v1122_v35  ;;  %1190 = vadd.xlane.f32.xlu1 %v1189_v33  ;;  %v1232_v45 = vmul.f32 %v12848_v7, %v1116_v26 }
 0x2a1   :  { %12855 = vrcp.f32 %v1104_v27 }
 0x2a2   :  { %v12850_v4 = vpop.eup %12849  ;;  %v1264_v29 = vsub.f32 2.0, %v1232_v45 }
 0x2a3   :  { %v1227_v6 = vmul.f32 %v12850_v4, %v1101_v59  ;;  %v1107_v3 = vpop.xlane.xlu1 %1106 }
 0x2a4   :  { %v1110_v54 = vpop.xlane.xlu0 %1109  ;;  %12857 = vrcp.f32 %v1107_v3  ;;  %v1296_v33 = vmul.f32 %v12848_v7, %v1264_v29 }
 0x2a5   :  { %v1259_v57 = vsub.f32 2.0, %v1227_v6  ;;  %12859 = vrcp.f32 %v1110_v54 }
 0x2a6   :  { %v12852_v52 = vpop.eup %12851  ;;  %v1328_v13 = vmul.f32 %v13627_v31, %v1296_v33 }
 0x2a7   :  { %v1291_v60 = vmul.f32 %v12850_v4, %v1259_v57  ;;  %v1231_v22 = vmul.f32 %v12852_v52, %v1113_v56  ;;  %v1119_v23 = vpop.xlane.xlu1 %1118 }
 0x2a8   :  { %12861 = vrcp.f32 %v1119_v23 }
 0x2a9   :  { %v1263_v19 = vsub.f32 2.0, %v1231_v22  ;;  %v1323_v20 = vmul.f32 %v13632_v18, %v1291_v60 }
 0x2aa   :  { %v12854_v15 = vpop.eup %12853 }
 0x2ab   :  { %v12856_v16 = vpop.eup %12855  ;;  %v1295_v14 = vmul.f32 %v12852_v52, %v1263_v19  ;;  %11080 = vmatprep.mubr.msk.f32.mxu0 %vm906_vm1, %v1323_v20  ;;  %v1234_v45 = vmul.f32 %v12854_v15, %v1122_v35 }
 0x2ac   :  { %v1228_v26 = vmul.f32 %v12856_v16, %v1104_v27 }
 0x2ad   :  { %v1327_v59 = vmul.f32 %v13636_v28, %v1295_v14  ;;  %v1266_v19 = vsub.f32 2.0, %v1234_v45 }
 0x2ae   :  { %v12858_v6 = vpop.eup %12857  ;;  %v1260_v4 = vsub.f32 2.0, %v1228_v26 }
 0x2af   :  { %v12860_v56 = vpop.eup %12859  ;;  %v1229_v57 = vmul.f32 %v12858_v6, %v1107_v3  ;;  %11088 = vmatprep.mubr.msk.f32.mxu1 %vm906_vm1, %v1327_v59  ;;  %v1298_v3 = vmul.f32 %v12854_v15, %v1266_v19 }
 0x2b0   :  { %v1292_v22 = vmul.f32 %v12856_v16, %v1260_v4  ;;  %v1230_v18 = vmul.f32 %v12860_v56, %v1110_v54  ;;  %11089 = vmatmul.mubr.msk.f32.vlgmr.msra.gmra.mrb[16].mxu1 %vm906_vm1, %v1328_v13 }
 0x2b1   :  { %v1261_v7 = vsub.f32 2.0, %v1229_v57  ;;  %11103 = vmatpush3.msra.mxu1 %v13727_v34  ;;  %173 = vrot.lane.b32.xlu1 %v13516_v42, %s13275_s15 }
 0x2b2   :  { %v12862_v14 = vpop.eup %12861  ;;  %v1324_v20 = vmul.f32 %v13638_v30, %v1292_v22  ;;  %v1262_v31 = vsub.f32 2.0, %v1230_v18  ;;  %v1330_v30 = vmul.f32 %v13642_v36, %v1298_v3 }
 0x2b3   :  { %v1293_v28 = vmul.f32 %v12858_v6, %v1261_v7  ;;  %v1233_v35 = vmul.f32 %v12862_v14, %v1119_v23 }
 0x2b4   :  { %v1294_v27 = vmul.f32 %v12860_v56, %v1262_v31  ;;  %11081 = vmatmul.mubr.msk.f32.vlgmr.msra.gmra.mrb[16].mxu0 %vm906_vm1, %v1324_v20 }
 0x2b5   :  { %v1265_v16 = vsub.f32 2.0, %v1233_v35  ;;  %11095 = vmatpush3.msra.mxu0 %v13509_v39  ;;  %v1325_v13 = vmul.f32 %v13650_v44, %v1293_v28 }
 0x2b6   :  { %11110 = vmatprep.subr.mxu0 %v13783_v2  ;;  %v1326_v42 = vmul.f32 %v13644_v38, %v1294_v27 }
 0x2b7   :  { %v1297_v34 = vmul.f32 %v12862_v14, %v1265_v16  ;;  %11083 = vmatprep.mubr.msk.f32.mxu0 %vm906_vm1, %v1325_v13 }
 0x2b8   :  { %11084 = vmatmul.mubr.msk.f32.gmra.mrb[18].mxu0 %vm906_vm1, %v1326_v42 }
 0x2b9   :  { %v1329_v23 = vmul.f32 %v13656_v55, %v1297_v34 }
 0x2bb   :  { %11091 = vmatprep.mubr.msk.f32.mxu1 %vm906_vm1, %v1329_v23 }
 0x2bc   :  { %11092 = vmatmul.mubr.msk.f32.gmra.mrb[18].mxu1 %vm906_vm1, %v1330_v30 }
 0x2c5   :  { %v1128_v39 = vpop.xlane.xlu0 %1127 }
 0x2c6   :  { %12863 = vrcp.f32 %v1128_v39 }
 0x2c9   :  { %v1134_v44 = vpop.xlane.xlu0 %1133 }
 0x2d0   :  { %v12864_v52 = vpop.eup %12863 }
 0x2d1   :  { %v1236_v36 = vmul.f32 %v12864_v52, %v1128_v39 }
 0x2d3   :  { %v1268_v45 = vsub.f32 2.0, %v1236_v36 }
 0x2d5   :  { %v1300_v20 = vmul.f32 %v12864_v52, %v1268_v45 }
 0x2d7   :  { %v1332_v30 = vmul.f32 %v13662_v1, %v1300_v20 }
 0x2d8   :  { %v1140_v15 = vpop.xlane.xlu1 %1139 }
 0x2d9   :  { %12865 = vrcp.f32 %v1140_v15 }
 0x2da   :  { %12867 = vrcp.f32 %v1134_v44 }
 0x2dc   :  { %v1125_v38 = vpop.xlane.xlu1 %1124 }
 0x2dd   :  { %12869 = vrcp.f32 %v1125_v38  ;;  %v1146_v54 = vpop.xlane.xlu0 %1145 }
 0x2de   :  { %12871 = vrcp.f32 %v1146_v54 }
 0x2e0   :  { %v1137_v29 = vpop.xlane.xlu1 %1136 }
 0x2e1   :  { %12873 = vrcp.f32 %v1137_v29  ;;  %v1152_v55 = vpop.xlane.xlu0 %1151 }
 0x2e2   :  { %12875 = vrcp.f32 %v1152_v55 }
 0x2e3   :  { %v12866_v60 = vpop.eup %12865 }
 0x2e4   :  { %v1131_v33 = vpop.xlane.xlu1 %1130  ;;  %v12868_v59 = vpop.eup %12867  ;;  %v1240_v4 = vmul.f32 %v12866_v60, %v1140_v15 }
 0x2e5   :  { %12877 = vrcp.f32 %v1131_v33  ;;  %v1149_v26 = vpop.xlane.xlu0 %1148  ;;  %v1238_v7 = vmul.f32 %v12868_v59, %v1134_v44 }
 0x2e6   :  { %12879 = vrcp.f32 %v1149_v26  ;;  %v1272_v31 = vsub.f32 2.0, %v1240_v4 }
 0x2e7   :  { %v12870_v6 = vpop.eup %12869  ;;  %v1270_v3 = vsub.f32 2.0, %v1238_v7 }
 0x2e8   :  { %v1235_v56 = vmul.f32 %v12870_v6, %v1125_v38  ;;  %v1143_v57 = vpop.xlane.xlu1 %1142  ;;  %v12872_v18 = vpop.eup %12871  ;;  %v1304_v39 = vmul.f32 %v12866_v60, %v1272_v31 }
 0x2e9   :  { %12881 = vrcp.f32 %v1143_v57  ;;  %v1158_v22 = vpop.xlane.xlu0 %1157  ;;  %v1242_v15 = vmul.f32 %v12872_v18, %v1146_v54  ;;  %v1302_v4 = vmul.f32 %v12868_v59, %v1270_v3 }
 0x2ea   :  { %v1267_v14 = vsub.f32 2.0, %v1235_v56  ;;  %12883 = vrcp.f32 %v1158_v22  ;;  %v1336_v54 = vmul.f32 %v13677_v58, %v1304_v39 }
 0x2eb   :  { %v12874_v19 = vpop.eup %12873 }
 0x2ec   :  { %v12876_v28 = vpop.eup %12875  ;;  %v1299_v35 = vmul.f32 %v12870_v6, %v1267_v14  ;;  %v1239_v27 = vmul.f32 %v12874_v19, %v1137_v29  ;;  %v1164_v16 = vpop.xlane.xlu1 %1163 }
 0x2ed   :  { %12885 = vrcp.f32 %v1164_v16  ;;  %v1170_v13 = vpop.xlane.xlu0 %1169  ;;  %v1244_v44 = vmul.f32 %v12876_v28, %v1152_v55  ;;  %v1274_v55 = vsub.f32 2.0, %v1242_v15 }
 0x2ee   :  { %v1271_v42 = vsub.f32 2.0, %v1239_v27  ;;  %12887 = vrcp.f32 %v1170_v13  ;;  %v1331_v34 = vmul.f32 %v13683_v47, %v1299_v35  ;;  %v1334_v27 = vmul.f32 %v13666_v32, %v1302_v4 }
 0x2ef   :  { %v12878_v23 = vpop.eup %12877  ;;  %v1276_v60 = vsub.f32 2.0, %v1244_v44  ;;  %v1306_v35 = vmul.f32 %v12872_v18, %v1274_v55 }
 0x2f0   :  { %v12880_v38 = vpop.eup %12879  ;;  %v1303_v52 = vmul.f32 %v12874_v19, %v1271_v42  ;;  %v1237_v36 = vmul.f32 %v12878_v23, %v1131_v33  ;;  %v1161_v45 = vpop.xlane.xlu1 %1160  ;;  %11096 = vmatprep.mubr.msk.f32.mxu0 %vm906_vm1, %v1331_v34 }
 0x2f1   :  { %v1243_v29 = vmul.f32 %v12880_v38, %v1149_v26  ;;  %12889 = vrcp.f32 %v1161_v45  ;;  %v1155_v6 = vpop.xlane.xlu0 %1154  ;;  %11097 = vmatmul.mubr.msk.f32.vlgmr.msra.gmra.mrb[20].mxu0 %vm906_vm1, %v1332_v30  ;;  %v1308_v58 = vmul.f32 %v12876_v28, %v1276_v60 }
 0x2f2   :  { %v1269_v56 = vsub.f32 2.0, %v1237_v36  ;;  %12891 = vrcp.f32 %v1155_v6  ;;  %11111 = vmatpush3.msra.mxu0 %v13783_v2  ;;  %v1335_v1 = vmul.f32 %v13693_v62, %v1303_v52 }
 0x2f3   :  { %v12882_v47 = vpop.eup %12881  ;;  %v1275_v33 = vsub.f32 2.0, %v1243_v29 }
 0x2f4   :  { %v1301_v7 = vmul.f32 %v12878_v23, %v1269_v56  ;;  %v1241_v14 = vmul.f32 %v12882_v47, %v1143_v57  ;;  %11104 = vmatprep.mubr.msk.f32.mxu1 %vm906_vm1, %v1335_v1  ;;  %v1167_v26 = vpop.xlane.xlu1 %1166  ;;  %v12884_v19 = vpop.eup %12883 }
 0x2f5   :  { %v1307_v20 = vmul.f32 %v12880_v38, %v1275_v33  ;;  %12893 = vrcp.f32 %v1167_v26  ;;  %v1176_v59 = vpop.xlane.xlu0 %1175  ;;  %11105 = vmatmul.mubr.msk.f32.vlgmr.msra.gmra.mrb[20].mxu1 %vm906_vm1, %v1336_v54  ;;  %v1246_v57 = vmul.f32 %v12884_v19, %v1158_v22  ;;  %v1340_v22 = vmul.f32 %v13695_v12, %v1308_v58 }
 0x2f6   :  { %v1273_v2 = vsub.f32 2.0, %v1241_v14  ;;  %v1333_v62 = vmul.f32 %v13703_v21, %v1301_v7  ;;  %12895 = vrcp.f32 %v1176_v59 }
 0x2f7   :  { %v12886_v31 = vpop.eup %12885  ;;  %v1339_v30 = vmul.f32 %v13705_v40, %v1307_v20  ;;  %v1278_v40 = vsub.f32 2.0, %v1246_v57 }
 0x2f8   :  { %v12888_v3 = vpop.eup %12887  ;;  %v1305_v42 = vmul.f32 %v12882_v47, %v1273_v2  ;;  %v1248_v34 = vmul.f32 %v12886_v31, %v1164_v16  ;;  %v168_v23 = vpop.permute.xlu1 %167  ;;  %11099 = vmatprep.mubr.msk.f32.mxu0 %vm906_vm1, %v1333_v62  ;;  %v1338_v16 = vmul.f32 %v13685_v48, %v1306_v35 }
 0x2f9   :  { %v13823_v39 = vpop.xlane.xlu0 %1187  ;;  %11100 = vmatmul.mubr.msk.f32.gmra.mrb[22].mxu0 %vm906_vm1, %v1334_v27  ;;  %11118 = vmatprep.subr.mxu1 %v168_v23  ;;  %v1250_v28 = vmul.f32 %v12888_v3, %v1170_v13  ;;  %v1310_v13 = vmul.f32 %v12884_v19, %v1278_v40 }
 0x2fa   :  { %11112 = vmatprep.mubr.msk.f32.mxu0 %vm906_vm1, %v1339_v30  ;;  %11119 = vmatpush3.msra.mxu1 %v168_v23  ;;  %v1337_v32 = vmul.f32 %v13713_v41, %v1305_v42  ;;  %v1280_v18 = vsub.f32 2.0, %v1248_v34 }
 0x2fb   :  { %v12890_v21 = vpop.eup %12889  ;;  %v1282_v12 = vsub.f32 2.0, %v1250_v28  ;;  %v1342_v14 = vmul.f32 %v13715_v61, %v1310_v13 }
 0x2fc   :  { %v12892_v15 = vpop.eup %12891  ;;  %v1247_v44 = vmul.f32 %v12890_v21, %v1161_v45  ;;  %11107 = vmatprep.mubr.msk.f32.mxu1 %vm906_vm1, %v1337_v32  ;;  %v1312_v29 = vmul.f32 %v12886_v31, %v1280_v18 }
 0x2fd   :  { %v1245_v38 = vmul.f32 %v12892_v15, %v1155_v6  ;;  %v1173_v52 = vpop.xlane.xlu0 %1172  ;;  %11108 = vmatmul.mubr.msk.f32.gmra.mrb[22].mxu1 %vm906_vm1, %v1338_v16  ;;  %11113 = vmatmul.mubr.msk.f32.vlgmr.msra.gmra.mrb[24].mxu0 %vm906_vm1, %v1340_v22  ;;  %v1314_v60 = vmul.f32 %v12888_v3, %v1282_v12 }
 0x2fe   :  { %v1279_v36 = vsub.f32 2.0, %v1247_v44  ;;  %12897 = vrcp.f32 %v1173_v52  ;;  %v1344_v55 = vmul.f32 %v13722_v53, %v1312_v29 }
 0x2ff   :  { %v12894_v41 = vpop.eup %12893  ;;  %v1277_v4 = vsub.f32 2.0, %v1245_v38  ;;  %v1346_v53 = vmul.f32 %v13724_v25, %v1314_v60  ;;  %v87_v60 = vld [vmem:[#allocation5 + $0xc0] sm:$0xff] }
 0x300   :  { %v1311_v56 = vmul.f32 %v12890_v21, %v1279_v36  ;;  %v1249_v48 = vmul.f32 %v12894_v41, %v1167_v26  ;;  %v12896_v54 = vpop.eup %12895 }
 0x301   :  { %v1309_v1 = vmul.f32 %v12892_v15, %v1277_v4  ;;  %v1185_v47 = vpop.xlane.xlu0 %1184  ;;  %v1252_v19 = vmul.f32 %v12896_v54, %v1176_v59 }
 0x302   :  { %v1281_v45 = vsub.f32 2.0, %v1249_v48  ;;  %12899 = vrcp.f32 %v1185_v47  ;;  %v1343_v6 = vmul.f32 %v13735_v43, %v1311_v56 }
 0x303   :  { %v1341_v33 = vmul.f32 %v13737_v24, %v1309_v1  ;;  %v1284_v61 = vsub.f32 2.0, %v1252_v19 }
 0x304   :  { %v1313_v7 = vmul.f32 %v12894_v41, %v1281_v45  ;;  %11120 = vmatprep.mubr.msk.f32.mxu1 %vm906_vm1, %v1343_v6 }
 0x305   :  { %11115 = vmatprep.mubr.msk.f32.mxu0 %vm906_vm1, %v1341_v33  ;;  %v1182_v26 = vpop.xlane.xlu0 %1181  ;;  %11121 = vmatmul.mubr.msk.f32.vlgmr.msra.gmra.mrb[24].mxu1 %vm906_vm1, %v1344_v55  ;;  %v1316_v27 = vmul.f32 %v12896_v54, %v1284_v61 }
 0x306   :  { %11116 = vmatmul.mubr.msk.f32.gmra.mrb[26].mxu0 %vm906_vm1, %v1342_v14  ;;  %v1345_v43 = vmul.f32 %v13744_v0, %v1313_v7  ;;  %12901 = vrcp.f32 %v1182_v26  ;;  %v88_v7 = vld [vmem:[#allocation5 + $0x138] sm:$0xff]  ;;  %v89_v14 = vld [vmem:[#allocation5 + $0x1b0] sm:$0xff] }
 0x307   :  { %v1348_v34 = vmul.f32 %v13746_v50, %v1316_v27 }
 0x308   :  { %v12898_v20 = vpop.eup %12897  ;;  %11123 = vmatprep.mubr.msk.f32.mxu1 %vm906_vm1, %v1345_v43 }
 0x309   :  { %v1251_v24 = vmul.f32 %v12898_v20, %v1173_v52  ;;  %v1194_v2 = vpop.xlane.xlu0 %1193  ;;  %11124 = vmatmul.mubr.msk.f32.gmra.mrb[26].mxu1 %vm906_vm1, %v1346_v53 }
 0x30b   :  { %v1283_v62 = vsub.f32 2.0, %v1251_v24  ;;  %v91_v24 = vld [vmem:[#allocation5 + $0x2a0] sm:$0xff] }
 0x30c   :  { %v12900_v31 = vpop.eup %12899 }
 0x30d   :  { %v1315_v35 = vmul.f32 %v12898_v20, %v1283_v62  ;;  %v1255_v58 = vmul.f32 %v12900_v31, %v1185_v47  ;;  %v1179_v59 = vpop.xlane.xlu0 %1178  ;;  %v90_v20 = vld [vmem:[#allocation5 + $0x228] sm:$0xff] }
 0x30e   :  { %12903 = vrcp.f32 %v1179_v59 }
 0x30f   :  { %v1287_v3 = vsub.f32 2.0, %v1255_v58  ;;  %v1347_v0 = vmul.f32 %v13758_v63, %v1315_v35  ;;  %12905 = vrcp.f32 %v13823_v39  ;;  %v92_v58 = vld [vmem:[#allocation5 + $0x318] sm:$0xff] }
 0x310   :  { %v12902_v42 = vpop.eup %12901  ;;  %12907 = vrcp.f32 %v1194_v2 }
 0x311   :  { %v1319_v25 = vmul.f32 %v12900_v31, %v1287_v3  ;;  %11128 = vmatprep.mubr.msk.f32.mxu0 %vm906_vm1, %v1347_v0  ;;  %v172_v57 = vpop.permute.xlu0 %171  ;;  %v1254_v30 = vmul.f32 %v12902_v42, %v1182_v26  ;;  %v11969_v26 = vpack.c.bf16 %v89_v14, %v88_v7  ;;  %v15655_v14 = vld [vmem:[#allocation19_spill] sm:$0xff] }
 0x312   :  { %11126 = vmatprep.subr.mxu0 %v172_v57 }
 0x313   :  { %11127 = vmatpush3.msra.mxu0 %v172_v57  ;;  %v1351_v23 = vmul.f32 %v13762_v17, %v1319_v25  ;;  %v1286_v21 = vsub.f32 2.0, %v1254_v30  ;;  %v95_v57 = vld [vmem:[#allocation5 + $0x480] sm:$0xff] }
 0x314   :  { %11129 = vmatmul.mubr.msk.f32.vlgmr.msra.gmra.mrb[28].mxu0 %vm906_vm1, %v1348_v34 }
 0x315   :  { %11136 = vmatprep.mubr.msk.f32.mxu1 %vm906_vm1, %v1351_v23  ;;  %v1318_v18 = vmul.f32 %v12902_v42, %v1286_v21  ;;  %v97_v21 = vld [vmem:[#allocation5 + $0x570] sm:$0xff] }
 0x317   :  { %v1350_v50 = vmul.f32 %v13766_v37, %v1318_v18 }
 0x318   :  { %v12904_v32 = vpop.eup %12903 }
 0x319   :  { %v1253_v63 = vmul.f32 %v12904_v32, %v1179_v59  ;;  %v12906_v17 = vpop.eup %12905  ;;  %v93_v59 = vld [vmem:[#allocation5 + $0x390] sm:$0xff] }
 0x31a   :  { %v1256_v15 = vmul.f32 %v12906_v17, %v13823_v39  ;;  %v12908_v52 = vpop.eup %12907  ;;  %v11977_v27 = vpack.c.bf16 %v93_v59, %v92_v58 }
 0x31b   :  { %v1285_v22 = vsub.f32 2.0, %v1253_v63  ;;  %v98_v63 = vld [vmem:[#allocation5 + $0x5e8] sm:$0xff] }
 0x31c   :  { %v1288_v40 = vsub.f32 2.0, %v1256_v15 }
 0x31d   :  { %v1317_v28 = vmul.f32 %v12904_v32, %v1285_v22  ;;  %v96_v32 = vld [vmem:[#allocation5 + $0x4f8] sm:$0xff] }
 0x31e   :  { %v1320_v38 = vmul.f32 %v12906_v17, %v1288_v40  ;;  %v100_v40 = vld [vmem:[#allocation5 + $0x6d8] sm:$0xff] }
 0x31f   :  { %v1349_v16 = vmul.f32 %v13776_v46, %v1317_v28  ;;  %v1258_v46 = vmul.f32 %v12908_v52, %v1194_v2  ;;  %v11973_v2 = vpack.c.bf16 %v91_v24, %v90_v20  ;;  %v11985_v28 = vpack.c.bf16 %v97_v21, %v96_v32  ;;  %v15656_v20 = vld [vmem:[#allocation22_spill] sm:$0xff] }
 0x320   :  { %v1352_v41 = vmul.f32 %v13753_v51, %v1320_v38  ;;  %v15651_v38 = vld [vmem:[#allocation16_spill] sm:$0xff] }
 0x321   :  { %11131 = vmatprep.mubr.msk.f32.mxu0 %vm906_vm1, %v1349_v16  ;;  %v1290_v29 = vsub.f32 2.0, %v1258_v46  ;;  %v99_v16 = vld [vmem:[#allocation5 + $0x660] sm:$0xff] }
 0x322   :  { %11132 = vmatmul.mubr.msk.f32.gmra.mrb[30].mxu0 %vm906_vm1, %v1350_v50  ;;  %v15650_v50 = vld [vmem:[#allocation15_spill] sm:$0xff]  ;;  %v11989_v15 = vpack.c.bf16 %v99_v16, %v98_v63 }
 0x323   :  { %v1322_v13 = vmul.f32 %v12908_v52, %v1290_v29  ;;  %v15652_v29 = vld [vmem:[#allocation18_spill] sm:$0xff]  ;;  %v2420_v16 = vld [vmem:[#allocation5 + $0x1e0] sm:$0xff] }
 0x325   :  { %v1354_v48 = vmul.f32 %v13770_v49, %v1322_v13  ;;  %v86_v49 = vld [vmem:[#allocation5 + $0x48] sm:$0xff] }
 0x326   :  { %v11965_v33 = vpack.c.bf16 %v87_v60, %v86_v49  ;;  %v15653_v13 = vld [vmem:[#allocation17_spill] sm:$0xff]  ;;  %v15654_v60 = vld [vmem:[#allocation20_spill] sm:$0xff] }
 0x328   :  { %11966 = vmatprep.subr.bf16.mxu0 %v11965_v33 }
 0x329   :  { %11968 = vmatpush3.bf16.msra.mxu0 %v11965_v33 }
 0x32a   :  { %11970 = vmatprep.subr.bf16.mxu0 %v11969_v26 }
 0x32d   :  { %v1191_v44 = vpop.xlane.xlu1 %1190  ;;  %11972 = vmatpush3.bf16.msra.mxu0 %v11969_v26 }
 0x32e   :  { %12909 = vrcp.f32 %v1191_v44  ;;  %11974 = vmatprep.subr.bf16.mxu0 %v11973_v2 }
 0x331   :  { %v174_v36 = vpop.permute.xlu1 %173  ;;  %11976 = vmatpush3.bf16.msra.mxu0 %v11973_v2 }
 0x332   :  { %11134 = vmatprep.subr.mxu1 %v174_v36  ;;  %11978 = vmatprep.subr.bf16.mxu0 %v11977_v27 }
 0x333   :  { %11135 = vmatpush3.msra.mxu1 %v174_v36 }
 0x334   :  { %11137 = vmatmul.mubr.msk.f32.vlgmr.msra.gmra.mrb[28].mxu1 %vm906_vm1, %v1352_v41 }
 0x335   :  { %11980 = vmatpush3.bf16.msra.mxu0 %v11977_v27 }
 0x338   :  { %v12910_v37 = vpop.eup %12909 }
 0x339   :  { %v1257_v12 = vmul.f32 %v12910_v37, %v1191_v44  ;;  %v101_v44 = vld [vmem:[#allocation5 + $0x750] sm:$0xff] }
 0x33a   :  { %v11993_v36 = vpack.c.bf16 %v101_v44, %v100_v40 }
 0x33b   :  { %v1289_v4 = vsub.f32 2.0, %v1257_v12 }
 0x33d   :  { %v1321_v39 = vmul.f32 %v12910_v37, %v1289_v4 }
 0x33f   :  { %v1353_v56 = vmul.f32 %v13785_v5, %v1321_v39 }
 0x341   :  { %11139 = vmatprep.mubr.msk.f32.mxu1 %vm906_vm1, %v1353_v56 }
 0x342   :  { %11140 = vmatmul.mubr.msk.f32.gmra.mrb[30].mxu1 %vm906_vm1, %v1354_v48 }
 0x383   :  { %v13863_v51 = vpop.f32.mrb[16].mxu1 }
 0x384   :  { %v13865_v1 = vpop.f32.mrb[17].mxu1 }
 0x387   :  { %v13867_v47 = vpop.f32.mrb[16].mxu0 }
 0x388   :  { %v13869_v45 = vpop.f32.mrb[17].mxu0 }
 0x38b   :  { %v13871_v6 = vpop.f32.mrb[18].mxu0 }
 0x38c   :  { %v13873_v54 = vpop.f32.mrb[19].mxu0 }
 0x38f   :  { %v13875_v55 = vpop.f32.mrb[18].mxu1 }
 0x390   :  { %v13877_v5 = vpop.f32.mrb[19].mxu1 }
 0x3c4   :  { %v11098_v19 = vpop.f32.mrb[20].mxu0 }
 0x3c5   :  { %v2140_v43 = vadd.f32 %v11098_v19, %v13396_v8  ;;  %v1627_v53 = vpop.f32.mrb[21].mxu0 }
 0x3c6   :  { %v2139_v0 = vadd.f32 %v1627_v53, %v13399_v9 }
 0x3c7   :  { %2173 = vrot.lane.b32.xlu1 %v2140_v43, %s13275_s15 }
 0x3c8   :  { %v11106_v61 = vpop.f32.mrb[20].mxu1 }
 0x3c9   :  { %v2144_v62 = vadd.f32 %v11106_v61, %v13396_v8  ;;  %v1724_v31 = vpop.f32.mrb[21].mxu1  ;;  %v94_v8 = vld [vmem:[#allocation5 + $0x408] sm:$0xff] }
 0x3ca   :  { %v2143_v35 = vadd.f32 %v1724_v31, %v13399_v9  ;;  %v11981_v34 = vpack.c.bf16 %v95_v57, %v94_v8  ;;  %v15657_v61 = vld [vmem:[#allocation21_spill] sm:$0xff]  ;;  %v2414_v57 = vld [vmem:[#allocation5 + $0x78] sm:$0xff] }
 0x3cb   :  { %2181 = vrot.lane.b32.xlu1 %v2144_v62, %s13275_s15 }
 0x3cc   :  { %2179 = vrot.lane.b32.xlu0 %v2143_v35, %s13275_s15  ;;  %v11101_v3 = vpop.f32.mrb[22].mxu0  ;;  %11982 = vmatprep.subr.bf16.mxu0 %v11981_v34 }
 0x3cd   :  { %v1637_v42 = vpop.f32.mrb[23].mxu0  ;;  %v2142_v22 = vadd.f32 %v11101_v3, %v13411_v11  ;;  %11984 = vmatpush3.bf16.msra.mxu0 %v11981_v34  ;;  %v2417_v34 = vld [vmem:[#allocation5 + $0xf8] sm:$0xff] }
 0x3ce   :  { %v2141_v25 = vadd.f32 %v1637_v42, %v13405_v10  ;;  %11986 = vmatprep.subr.bf16.mxu0 %v11985_v28  ;;  %v2415_v42 = vld [vmem:[#allocation5 + $0x80] sm:$0xff] }
 0x3cf   :  { %2171 = vrot.lane.b32.xlu1 %v2139_v0, %s13275_s15  ;;  %v2413_v0 = vld [vmem:[#allocation5 + $0x8] sm:$0xff] }
 0x3d0   :  { %2175 = vrot.lane.b32.xlu0 %v2141_v25, %s13275_s15  ;;  %v11109_v23 = vpop.f32.mrb[22].mxu1  ;;  %v11114_v30 = vpop.f32.mrb[24].mxu0  ;;  %v2412_v25 = vld [vmem:[#allocation5] sm:$0xff]  ;;  %v11997_v8 = vpack.c.bf16 %v2415_v42, %v2413_v0 }
 0x3d1   :  { %v1734_v9 = vpop.f32.mrb[23].mxu1  ;;  %v1821_v18 = vpop.f32.mrb[25].mxu0  ;;  %v2148_v52 = vadd.f32 %v11114_v30, %v15651_v38  ;;  %11988 = vmatpush3.bf16.msra.mxu0 %v11985_v28  ;;  %v2146_v27 = vadd.f32 %v11109_v23, %v13411_v11  ;;  %v2419_v30 = vld [vmem:[#allocation5 + $0x170] sm:$0xff]  ;;  %v11999_v21 = vpack.c.bf16 %v2414_v57, %v2412_v25  ;;  %v2421_v11 = vld [vmem:[#allocation5 + $0x1e8] sm:$0xff]  ;;  %v2423_v23 = vld [vmem:[#allocation5 + $0x260] sm:$0xff] }
 0x3d2   :  { %v2147_v17 = vadd.f32 %v1821_v18, %v15650_v50  ;;  %11990 = vmatprep.subr.bf16.mxu0 %v11989_v15  ;;  %v2145_v3 = vadd.f32 %v1734_v9, %v13405_v10  ;;  %v12001_v63 = vpack.c.bf16 %v2419_v30, %v2417_v34  ;;  %v2418_v18 = vld [vmem:[#allocation5 + $0x168] sm:$0xff]  ;;  %11998 = vmatprep.subr.bf16.mxu1 %v11997_v8 }
 0x3d3   :  { %2177 = vrot.lane.b32.xlu1 %v2142_v22, %s13275_s15  ;;  %v2416_v22 = vld [vmem:[#allocation5 + $0xf0] sm:$0xff]  ;;  %12000 = vmatpush1.bf16.msra.mxu1 %v11999_v21  ;;  %v12005_v28 = vpack.c.bf16 %v2423_v23, %v2421_v11  ;;  %v13137_v21 = vld [vmem:[#allocation8 + $0x10] sm:$0xff] }
 0x3d4   :  { %2203 = vrot.lane.b32.xlu0 %v2147_v17, %s13274_s3  ;;  %v12003_v9 = vpack.c.bf16 %v2418_v18, %v2416_v22  ;;  %12002 = vmatprep.subr.bf16.mxu1 %v12001_v63  ;;  %v2425_v17 = vld [vmem:[#allocation5 + $0x2d8] sm:$0xff]  ;;  %v2133_v63 = vadd.f32 %v13137_v21, %v13873_v54  ;;  %v13138_v22 = vld [vmem:[#allocation8 + $0x18] sm:$0xff] }
 0x3d5   :  { %11992 = vmatpush3.bf16.msra.mxu0 %v11989_v15  ;;  %v2427_v15 = vld [vmem:[#allocation5 + $0x350] sm:$0xff]  ;;  %v2134_v18 = vadd.f32 %v13138_v22, %v13871_v6 }
 0x3d6   :  { %11994 = vmatprep.subr.bf16.mxu0 %v11993_v36 }
 0x3d7   :  { %2205 = vrot.lane.b32.xlu1 %v2148_v52, %s13274_s3  ;;  %12004 = vmatpush1.bf16.msra.mxu1 %v12003_v9 }
 0x3d8   :  { %v11122_v41 = vpop.f32.mrb[24].mxu1  ;;  %12006 = vmatprep.subr.bf16.mxu1 %v12005_v28 }
 0x3d9   :  { %v11117_v46 = vpop.f32.mrb[26].mxu0  ;;  %v1918_v37 = vpop.f32.mrb[25].mxu1  ;;  %11996 = vmatpush3.bf16.msra.mxu0 %v11993_v36  ;;  %v2152_v19 = vadd.f32 %v11122_v41, %v15651_v38  ;;  %v12009_v41 = vpack.c.bf16 %v2427_v15, %v2425_v17 }
 0x3da   :  { %v2150_v12 = vadd.f32 %v11117_v46, %v15652_v29  ;;  %v1831_v4 = vpop.f32.mrb[27].mxu0  ;;  %v2151_v43 = vadd.f32 %v1918_v37, %v15650_v50  ;;  %v2422_v50 = vld [vmem:[#allocation5 + $0x258] sm:$0xff]  ;;  %v2424_v46 = vld [vmem:[#allocation5 + $0x2d0] sm:$0xff]  ;;  %v2426_v37 = vld [vmem:[#allocation5 + $0x348] sm:$0xff] }
 0x3db   :  { %v2149_v39 = vadd.f32 %v1831_v4, %v15653_v13  ;;  %v12007_v52 = vpack.c.bf16 %v2422_v50, %v2420_v16  ;;  %v12011_v4 = vpack.c.bf16 %v2426_v37, %v2424_v46 }
 0x3dc   :  { %2209 = vrot.lane.b32.xlu1 %v2150_v12, %s13274_s3  ;;  %v11125_v56 = vpop.f32.mrb[26].mxu1  ;;  %v2431_v12 = vld [vmem:[#allocation5 + $0x440] sm:$0xff] }
 0x3dd   :  { %2207 = vrot.lane.b32.xlu0 %v2149_v39, %s13274_s3  ;;  %v1928_v48 = vpop.f32.mrb[27].mxu1  ;;  %v2154_v32 = vadd.f32 %v11125_v56, %v15652_v29  ;;  %v2429_v29 = vld [vmem:[#allocation5 + $0x3c8] sm:$0xff]  ;;  %12008 = vmatpush1.bf16.msra.mxu1 %v12007_v52  ;;  %v2428_v39 = vld [vmem:[#allocation5 + $0x3c0] sm:$0xff]  ;;  %v2430_v56 = vld [vmem:[#allocation5 + $0x438] sm:$0xff] }
 0x3de   :  { %v2153_v10 = vadd.f32 %v1928_v48, %v15653_v13  ;;  %12010 = vmatprep.subr.bf16.mxu1 %v12009_v41  ;;  %v12013_v13 = vpack.c.bf16 %v2431_v12, %v2429_v29  ;;  %v2433_v48 = vld [vmem:[#allocation5 + $0x4b8] sm:$0xff]  ;;  %v2137_v12 = vadd.f32 %v13137_v21, %v13877_v5  ;;  %v2439_v5 = vld [vmem:[#allocation5 + $0x620] sm:$0xff] }
 0x3e1   :  { %12012 = vmatpush1.bf16.msra.mxu1 %v12011_v4  ;;  %v2138_v4 = vadd.f32 %v13138_v22, %v13875_v55  ;;  %v2437_v55 = vld [vmem:[#allocation5 + $0x5a8] sm:$0xff] }
 0x3e2   :  { %12014 = vmatprep.subr.bf16.mxu1 %v12013_v13 }
 0x3e7   :  { %v11130_v49 = vpop.f32.mrb[28].mxu0 }
 0x3e8   :  { %v2156_v33 = vadd.f32 %v11130_v49, %v15654_v60  ;;  %v2015_v7 = vpop.f32.mrb[29].mxu0  ;;  %v2435_v49 = vld [vmem:[#allocation5 + $0x530] sm:$0xff] }
 0x3e9   :  { %v2155_v26 = vadd.f32 %v2015_v7, %v15655_v14  ;;  %v2432_v7 = vld [vmem:[#allocation5 + $0x4b0] sm:$0xff] }
 0x3ea   :  { %2237 = vrot.lane.b32.xlu1 %v2156_v33, %s13273_s14  ;;  %v12017_v33 = vpack.c.bf16 %v2435_v49, %v2433_v48 }
 0x3eb   :  { %2235 = vrot.lane.b32.xlu0 %v2155_v26, %s13273_s14 }
 0x3ee   :  { %2213 = vrot.lane.b32.xlu1 %v2152_v19, %s13274_s3 }
 0x3ef   :  { %2211 = vrot.lane.b32.xlu0 %v2151_v43, %s13274_s3 }
 0x3f5   :  { %v11133_v53 = vpop.f32.mrb[30].mxu0 }
 0x3f6   :  { %v2158_v24 = vadd.f32 %v11133_v53, %v15656_v20  ;;  %v2025_v2 = vpop.f32.mrb[31].mxu0 }
 0x3f7   :  { %v2157_v62 = vadd.f32 %v2025_v2, %v15657_v61 }
 0x3f8   :  { %2241 = vrot.lane.b32.xlu1 %v2158_v24, %s13273_s14 }
 0x3f9   :  { %2239 = vrot.lane.b32.xlu0 %v2157_v62, %s13273_s14 }
 0x407   :  { %v11138_v31 = vpop.f32.mrb[28].mxu1 }
 0x408   :  { %v2160_v35 = vadd.f32 %v11138_v31, %v15654_v60  ;;  %v2112_v58 = vpop.f32.mrb[29].mxu1  ;;  %v12015_v60 = vpack.c.bf16 %v2430_v56, %v2428_v39 }
 0x409   :  { %v2159_v59 = vadd.f32 %v2112_v58, %v15655_v14  ;;  %v2434_v14 = vld [vmem:[#allocation5 + $0x528] sm:$0xff]  ;;  %v13135_v58 = vld [vmem:[#allocation8] sm:$0xff] }
 0x40a   :  { %2245 = vrot.lane.b32.xlu1 %v2160_v35, %s13273_s14  ;;  %12016 = vmatpush1.bf16.msra.mxu1 %v12015_v60  ;;  %v12019_v26 = vpack.c.bf16 %v2434_v14, %v2432_v7  ;;  %v2135_v6 = vadd.f32 %v13135_v58, %v13865_v1  ;;  %v12021_v14 = vpack.c.bf16 %v2439_v5, %v2437_v55 }
 0x40b   :  { %2243 = vrot.lane.b32.xlu0 %v2159_v59, %s13273_s14  ;;  %12018 = vmatprep.subr.bf16.mxu1 %v12017_v33  ;;  %v2131_v59 = vadd.f32 %v13135_v58, %v13869_v45 }
 0x40e   :  { %2185 = vrot.lane.b32.xlu1 %v2146_v27, %s13275_s15  ;;  %12020 = vmatpush1.bf16.msra.mxu1 %v12019_v26  ;;  %v13136_v27 = vld [vmem:[#allocation8 + $0x8] sm:$0xff]  ;;  %v2436_v26 = vld [vmem:[#allocation5 + $0x5a0] sm:$0xff] }
 0x40f   :  { %2183 = vrot.lane.b32.xlu0 %v2145_v3, %s13275_s15  ;;  %v2132_v3 = vadd.f32 %v13136_v27, %v13867_v47  ;;  %v2136_v17 = vadd.f32 %v13136_v27, %v13863_v51  ;;  %12022 = vmatprep.subr.bf16.mxu1 %v12021_v14 }
 0x412   :  { %2217 = vrot.lane.b32.xlu1 %v2154_v32, %s13274_s3 }
 0x413   :  { %2215 = vrot.lane.b32.xlu0 %v2153_v10, %s13274_s3 }
 0x415   :  { %v11141_v40 = vpop.f32.mrb[30].mxu1 }
 0x416   :  { %v2162_v44 = vadd.f32 %v11141_v40, %v15656_v20  ;;  %v2122_v38 = vpop.f32.mrb[31].mxu1 }
 0x417   :  { %v2161_v36 = vadd.f32 %v2122_v38, %v15657_v61 }
 0x418   :  { %2249 = vrot.lane.b32.xlu1 %v2162_v44, %s13273_s14 }
 0x419   :  { %2247 = vrot.lane.b32.xlu0 %v2161_v36, %s13273_s14 }
 0x439   :  { %v2174_v19 = vpop.permute.xlu1 %2173 }
 0x43a   :  { %v2260_v25 = vsel %vm177_vm0, %v2132_v3, %v2174_v19  ;;  %v2438_v19 = vld [vmem:[#allocation5 + $0x618] sm:$0xff] }
 0x43d   :  { %v2182_v43 = vpop.permute.xlu1 %2181 }
 0x43e   :  { %v2180_v20 = vpop.permute.xlu0 %2179  ;;  %v2264_v44 = vsel %vm177_vm0, %v2136_v17, %v2182_v43  ;;  %v12023_v43 = vpack.c.bf16 %v2438_v19, %v2436_v26 }
 0x43f   :  { %v2263_v15 = vsel %vm177_vm0, %v2135_v6, %v2180_v20  ;;  %v2443_v20 = vld [vmem:[#allocation5 + $0x710] sm:$0xff] }
 0x440   :  { %12024 = vmatpush1.bf16.msra.mxu1 %v12023_v43 }
 0x441   :  { %v2172_v53 = vpop.permute.xlu1 %2171 }
 0x442   :  { %v2176_v2 = vpop.permute.xlu0 %2175  ;;  %v2259_v0 = vsel %vm177_vm0, %v2131_v59, %v2172_v53  ;;  %v2441_v53 = vld [vmem:[#allocation5 + $0x698] sm:$0xff] }
 0x443   :  { %v2261_v11 = vsel %vm177_vm0, %v2133_v63, %v2176_v2  ;;  %v2440_v2 = vld [vmem:[#allocation5 + $0x690] sm:$0xff] }
 0x445   :  { %v2178_v24 = vpop.permute.xlu1 %2177 }
 0x446   :  { %v2204_v62 = vpop.permute.xlu0 %2203  ;;  %v2262_v23 = vsel %vm177_vm0, %v2134_v18, %v2178_v24  ;;  %v12025_v24 = vpack.c.bf16 %v2443_v20, %v2441_v53 }
 0x447   :  { %v2268_v8 = vsel %vm2267_vm2, %v2259_v0, %v2204_v62 }
 0x448   :  { %12026 = vmatprep.subr.bf16.mxu1 %v12025_v24 }
 0x449   :  { %v2206_v61 = vpop.permute.xlu1 %2205 }
 0x44a   :  { %v2269_v34 = vsel %vm2267_vm2, %v2260_v25, %v2206_v61  ;;  %v2442_v61 = vld [vmem:[#allocation5 + $0x708] sm:$0xff] }
 0x44b   :  { %v12027_v62 = vpack.c.bf16 %v2442_v61, %v2440_v2 }
 0x44d   :  { %12028 = vmatpush1.bf16.msra.mxu1 %v12027_v62 }
 0x44e   :  { %v2210_v31 = vpop.permute.xlu1 %2209 }
 0x44f   :  { %v2208_v35 = vpop.permute.xlu0 %2207  ;;  %v2271_v16 = vsel %vm2267_vm2, %v2262_v23, %v2210_v31  ;;  %v15608_v31 = vmov 0.0  }
 0x450   :  { %v2270_v9 = vsel %vm2267_vm2, %v2261_v11, %v2208_v35  ;;  %2520 = vmatprep.mubr.f32.mxu1 %v15608_v31  ;;  %v10328_v35 = vld [vmem:[#allocation7 + $0x9] ss:$0 sm:$0xff] }
 0x45c   :  { %v2238_v42 = vpop.permute.xlu1 %2237 }
 0x45d   :  { %v2236_v57 = vpop.permute.xlu0 %2235  ;;  %v13937_v45 = vsel %vm2276_vm3, %v2269_v34, %v2238_v42 }
 0x45e   :  { %v13934_v30 = vsel %vm2276_vm3, %v2268_v8, %v2236_v57 }
 0x45f   :  { %11174 = vmatprep.mubr.f32.mxu0 %v13934_v30 }
 0x460   :  { %11175 = vmatmul.mubr.f32.vlgmr.msra.gmra.mrb[32].mxu0 %v13937_v45  ;;  %v2214_v47 = vpop.permute.xlu1 %2213 }
 0x461   :  { %v2212_v32 = vpop.permute.xlu0 %2211  ;;  %v2273_v36 = vsel %vm2267_vm2, %v2264_v44, %v2214_v47 }
 0x462   :  { %v2272_v38 = vsel %vm2267_vm2, %v2263_v15, %v2212_v32 }
 0x46a   :  { %v2242_v10 = vpop.permute.xlu1 %2241 }
 0x46b   :  { %v2240_v28 = vpop.permute.xlu0 %2239  ;;  %v13952_v54 = vsel %vm2276_vm3, %v2271_v16, %v2242_v10 }
 0x46c   :  { %v13948_v50 = vsel %vm2276_vm3, %v2270_v9, %v2240_v28 }
 0x46d   :  { %11177 = vmatprep.mubr.f32.mxu0 %v13948_v50 }
 0x46e   :  { %11178 = vmatmul.mubr.f32.gmra.mrb[34].mxu0 %v13952_v54 }
 0x47c   :  { %v2246_v40 = vpop.permute.xlu1 %2245 }
 0x47d   :  { %v2244_v52 = vpop.permute.xlu0 %2243  ;;  %v13966_v46 = vsel %vm2276_vm3, %v2273_v36, %v2246_v40  ;;  %v2446_v36 = vlaneseq }
 0x47e   :  { %v13962_v41 = vsel %vm2276_vm3, %v2272_v38, %v2244_v52  ;;  %v15606_v52 = vmov 0.0|0.0  }
 0x47f   :  { %11180 = vmatprep.mubr.f32.mxu0 %v13962_v41  ;;  %12029 = vmatprep.subr.bf16.mxu0 %v15606_v52 }
 0x480   :  { %v2186_v1 = vpop.permute.xlu1 %2185  ;;  %11181 = vmatmul.mubr.f32.gmra.mrb[36].mxu0 %v13966_v46  ;;  %12045 = vmatprep.subr.bf16.mxu1 %v15606_v52 }
 0x481   :  { %v2184_v51 = vpop.permute.xlu0 %2183  ;;  %v2266_v56 = vsel %vm177_vm0, %v2138_v4, %v2186_v1  ;;  %v2444_v1 = vld [vmem:[#allocation7] sm:$0x3] }
 0x482   :  { %v2265_v13 = vsel %vm177_vm0, %v2137_v12, %v2184_v51 }
 0x484   :  { %v2218_v37 = vpop.permute.xlu1 %2217 }
 0x485   :  { %v2216_v29 = vpop.permute.xlu0 %2215  ;;  %v2275_v60 = vsel %vm2267_vm2, %v2266_v56, %v2218_v37 }
 0x486   :  { %v2274_v48 = vsel %vm2267_vm2, %v2265_v13, %v2216_v29 }
 0x48a   :  { %v2250_v39 = vpop.permute.xlu1 %2249 }
 0x48b   :  { %v2248_v49 = vpop.permute.xlu0 %2247  ;;  %v13980_v7 = vsel %vm2276_vm3, %v2275_v60, %v2250_v39 }
 0x48c   :  { %v13976_v33 = vsel %vm2276_vm3, %v2274_v48, %v2248_v49 }
 0x48d   :  { %11183 = vmatprep.mubr.f32.mxu0 %v13976_v33 }
 0x48e   :  { %11184 = vmatmul.mubr.f32.gmra.mrb[38].mxu0 %v13980_v7 }
 0x48f   :  { %11194 = vmatprep.mubr.msk.f32.mxu0 %vm13278_vm4, %v15608_v31 }
 0x533   :  { %v11176_v58 = vpop.f32.mrb[32].mxu0 }
 0x534   :  { %v2357_v59 = vpop.f32.mrb[33].mxu0  ;;  %v2363_v27 = vadd.f32 %v11176_v58, %v10328_v35 }
 0x535   :  { %v2358_v3 = vadd.f32 %v10328_v35, %v2357_v59 }
 0x536   :  { %v2397_v42 = vmax.f32 %v2363_v27, 0.0  ;;  %v73_v27 = vld [vmem:[#allocation2 + $0x10] sm:$0xff] }
 0x537   :  { %v2396_v0 = vmax.f32 %v2358_v3, 0.0 }
 0x538   :  { %v2405_v8 = vadd.f32 %v2397_v42, %v13937_v45 }
 0x539   :  { %v2404_v25 = vadd.f32 %v2396_v0, %v13934_v30 }
 0x53b   :  { %2521 = vmatmul.mubr.f32.vlgmr.msra.gmra.mrb[32].mxu1 %v2404_v25 }
 0x53c   :  { %2526 = vmatprep.mubr.f32.mxu1 %v15608_v31 }
 0x53f   :  { %2527 = vmatmul.mubr.f32.gmra.mrb[34].mxu1 %v2405_v8 }
 0x540   :  { %2532 = vmatprep.mubr.f32.mxu1 %v15608_v31 }
 0x541   :  { %v11179_v57 = vpop.f32.mrb[34].mxu0 }
 0x542   :  { %v2367_v34 = vpop.f32.mrb[35].mxu0  ;;  %v2373_v47 = vadd.f32 %v11179_v57, %v10328_v35 }
 0x543   :  { %v2368_v32 = vadd.f32 %v10328_v35, %v2367_v34 }
 0x544   :  { %v2399_v63 = vmax.f32 %v2373_v47, 0.0 }
 0x545   :  { %v2398_v21 = vmax.f32 %v2368_v32, 0.0 }
 0x546   :  { %v2407_v30 = vadd.f32 %v2399_v63, %v13952_v54 }
 0x547   :  { %v2406_v22 = vadd.f32 %v2398_v21, %v13948_v50 }
 0x549   :  { %2533 = vmatmul.mubr.f32.gmra.mrb[36].mxu1 %v2406_v22 }
 0x54a   :  { %2538 = vmatprep.mubr.f32.mxu1 %v15608_v31 }
 0x54d   :  { %2539 = vmatmul.mubr.f32.gmra.mrb[38].mxu1 %v2407_v30 }
 0x54e   :  { %2544 = vmatprep.mubr.f32.mxu1 %v15608_v31 }
 0x553   :  { %v11182_v45 = vpop.f32.mrb[36].mxu0 }
 0x554   :  { %v2377_v18 = vpop.f32.mrb[37].mxu0  ;;  %v2383_v11 = vadd.f32 %v11182_v45, %v10328_v35 }
 0x555   :  { %v2378_v10 = vadd.f32 %v10328_v35, %v2377_v18 }
 0x556   :  { %v2401_v9 = vmax.f32 %v2383_v11, 0.0 }
 0x557   :  { %v2400_v23 = vmax.f32 %v2378_v10, 0.0 }
 0x558   :  { %v2409_v16 = vadd.f32 %v2401_v9, %v13966_v46 }
 0x559   :  { %v2408_v28 = vadd.f32 %v2400_v23, %v13962_v41  ;;  %v14005_v41 = vshrl.u32 %v2446_v36, 7 }
 0x55b   :  { %2545 = vmatmul.mubr.f32.gmra.mrb[40].mxu1 %v2408_v28  ;;  %15658 = vst [vmem:[#allocation15_spill] sm:$0xff] %v14005_v41  ;;  %v14008_v46 = vsub.s32 0, %v14005_v41  ;;  %v14011_v51 = vsub.s32 1, %v14005_v41 }
 0x55c   :  { %2550 = vmatprep.mubr.f32.mxu1 %v15608_v31 }
 0x55d   :  { %15659 = vst [vmem:[#allocation16_spill] sm:$0xff] %v14008_v46  ;;  %15660 = vst [vmem:[#allocation18_spill] sm:$0xff] %v14011_v51  ;;  %v2449_v29 = vrot.slane %v2444_v1, %v14008_v46  ;;  %v2453_v4 = vrot.slane %v2444_v1, %v14011_v51 }
 0x55f   :  { %2551 = vmatmul.mubr.f32.gmra.mrb[42].mxu1 %v2409_v16 }
 0x560   :  { %2556 = vmatprep.mubr.f32.mxu1 %v15608_v31 }
 0x561   :  { %v11185_v50 = vpop.f32.mrb[38].mxu0 }
 0x562   :  { %v2387_v54 = vpop.f32.mrb[39].mxu0  ;;  %v2393_v6 = vadd.f32 %v11185_v50, %v10328_v35 }
 0x563   :  { %v2388_v17 = vadd.f32 %v10328_v35, %v2387_v54 }
 0x564   :  { %v2403_v40 = vmax.f32 %v2393_v6, 0.0 }
 0x565   :  { %v2402_v15 = vmax.f32 %v2388_v17, 0.0  ;;  %v14092_v17 = vld [vmem:[#allocation2 + $0x28] sm:$0xff] }
 0x566   :  { %v2411_v38 = vadd.f32 %v2403_v40, %v13980_v7 }
 0x567   :  { %v2410_v44 = vadd.f32 %v2402_v15, %v13976_v33  ;;  %v15661_v33 = vmov 0 }
 0x568   :  { %v15662_v33 = vsel %vm14021_vm5, 4294967295, %v15661_v33 }
 0x569   :  { %2557 = vmatmul.mubr.f32.gmra.mrb[44].mxu1 %v2410_v44  ;;  %15663 = vst [vmem:[#allocation17_spill] sm:$0xff] %v15662_v33 }
 0x56a   :  { %2562 = vmatprep.mubr.f32.mxu1 %v15608_v31 }
 0x56d   :  { %2563 = vmatmul.mubr.f32.gmra.mrb[46].mxu1 %v2411_v38 }
 0x56e   :  { %11216 = vmatprep.mubr.msk.f32.mxu1 %vm13278_vm4, %v15608_v31 }
 0x60e   :  { %v2522_v37 = vpop.f32.mrb[32].mxu1 }
 0x60f   :  { %v2524_v12 = vpop.f32.mrb[33].mxu1  ;;  %v2523_v39 = vadd.f32 %v2522_v37, %v2449_v29 }
 0x610   :  { %v14015_v49 = vadd.f32 %v2524_v12, %v2453_v4 }
 0x612   :  { %v2528_v13 = vpop.f32.mrb[34].mxu1 }
 0x613   :  { %v2529_v56 = vadd.f32 %v2528_v13, %v2449_v29  ;;  %v2530_v48 = vpop.f32.mrb[35].mxu1 }
 0x614   :  { %v14017_v60 = vadd.f32 %v2530_v48, %v2453_v4 }
 0x615   :  { %v12030_v7 = vpack.c.bf16 %v2529_v56, %v2523_v39  ;;  %v12543_v55 = vpack.i.bf16 %v2529_v56, %v2523_v39 }
 0x616   :  { %v14027_v5 = vpack.i.bf16 %v14017_v60, %v14015_v49  ;;  %v12094_v14 = vpack.c.bf16 %v14017_v60, %v14015_v49 }
 0x617   :  { %12544 = vrot.lane.b32.xlu0 %v12543_v55, %s13273_s14  ;;  %12032 = vmatpush3.bf16.xpose.msk.msra.mxu0 %vm14021_vm5, %v12030_v7 }
 0x618   :  { %12033 = vmatprep.subr.bf16.mxu0 %v15606_v52 }
 0x61c   :  { %v2534_v26 = vpop.f32.mrb[36].mxu1 }
 0x61d   :  { %v2536_v19 = vpop.f32.mrb[37].mxu1  ;;  %v2535_v53 = vadd.f32 %v2534_v26, %v2449_v29 }
 0x61e   :  { %v14035_v2 = vadd.f32 %v2536_v19, %v2453_v4 }
 0x620   :  { %v2540_v43 = vpop.f32.mrb[38].mxu1 }
 0x621   :  { %v2541_v20 = vadd.f32 %v2540_v43, %v2449_v29  ;;  %v2542_v24 = vpop.f32.mrb[39].mxu1 }
 0x622   :  { %v14037_v61 = vadd.f32 %v2542_v24, %v2453_v4 }
 0x623   :  { %v12034_v62 = vpack.c.bf16 %v2541_v20, %v2535_v53  ;;  %v12553_v35 = vpack.i.bf16 %v2541_v20, %v2535_v53 }
 0x624   :  { %v14041_v58 = vpack.i.bf16 %v14037_v61, %v14035_v2  ;;  %v12097_v59 = vpack.c.bf16 %v14037_v61, %v14035_v2 }
 0x625   :  { %12554 = vrot.lane.b32.xlu0 %v12553_v35, %s13273_s14  ;;  %12036 = vmatpush3.bf16.xpose.msk.msra.mxu0 %vm14021_vm5, %v12034_v62 }
 0x626   :  { %12037 = vmatprep.subr.bf16.mxu0 %v15606_v52 }
 0x629   :  { %12564 = vrot.lane.b32.xlu0 %v12543_v55, %s13274_s3 }
 0x62c   :  { %11195 = vmatmul.mubr.msk.f32.vlgmr.msra.gmra.mrb[40].mxu0 %vm177_vm0, %v73_v27 }
 0x62d   :  { %2588 = vrot.lane.b32.xlu0 %v73_v27, %s13273_s14  ;;  %11205 = vmatprep.mubr.msk.f32.mxu0 %vm13278_vm4, %v15608_v31 }
 0x62e   :  { %v2546_v3 = vpop.f32.mrb[40].mxu1 }
 0x62f   :  { %v2548_v0 = vpop.f32.mrb[41].mxu1  ;;  %v2547_v25 = vadd.f32 %v2546_v3, %v2449_v29 }
 0x630   :  { %v14055_v34 = vadd.f32 %v2548_v0, %v2453_v4 }
 0x631   :  { %12574 = vrot.lane.b32.xlu0 %v12553_v35, %s13274_s3 }
 0x632   :  { %v2552_v42 = vpop.f32.mrb[42].mxu1 }
 0x633   :  { %v2553_v8 = vadd.f32 %v2552_v42, %v2449_v29  ;;  %v2554_v57 = vpop.f32.mrb[43].mxu1 }
 0x634   :  { %v14057_v47 = vadd.f32 %v2554_v57, %v2453_v4 }
 0x635   :  { %v12038_v32 = vpack.c.bf16 %v2553_v8, %v2547_v25  ;;  %12584 = vrot.lane.b32.xlu0 %v12543_v55, %s13275_s15  ;;  %v12548_v21 = vpack.i.bf16 %v2553_v8, %v2547_v25 }
 0x636   :  { %v14062_v63 = vpack.i.bf16 %v14057_v47, %v14055_v34  ;;  %v12100_v22 = vpack.c.bf16 %v14057_v47, %v14055_v34 }
 0x637   :  { %12549 = vrot.lane.b32.xlu1 %v12548_v21, %s13273_s14  ;;  %12040 = vmatpush3.bf16.xpose.msk.msra.mxu0 %vm14021_vm5, %v12038_v32 }
 0x638   :  { %12041 = vmatprep.subr.bf16.mxu0 %v15606_v52 }
 0x639   :  { %2594 = vrot.lane.b32.xlu0 %v73_v27, %s13274_s3 }
 0x63c   :  { %v2558_v30 = vpop.f32.mrb[44].mxu1 }
 0x63d   :  { %12594 = vrot.lane.b32.xlu0 %v12553_v35, %s13275_s15  ;;  %v2560_v45 = vpop.f32.mrb[45].mxu1  ;;  %v2559_v11 = vadd.f32 %v2558_v30, %v2449_v29 }
 0x63e   :  { %v14073_v9 = vadd.f32 %v2560_v45, %v2453_v4 }
 0x640   :  { %v2564_v18 = vpop.f32.mrb[46].mxu1 }
 0x641   :  { %2600 = vrot.lane.b32.xlu0 %v73_v27, %s13275_s15  ;;  %v2565_v10 = vadd.f32 %v2564_v18, %v2449_v29  ;;  %v2566_v23 = vpop.f32.mrb[47].mxu1 }
 0x642   :  { %v14075_v28 = vadd.f32 %v2566_v23, %v2453_v4 }
 0x643   :  { %v12042_v16 = vpack.c.bf16 %v2565_v10, %v2559_v11  ;;  %v12558_v50 = vpack.i.bf16 %v2565_v10, %v2559_v11 }
 0x644   :  { %v14079_v54 = vpack.i.bf16 %v14075_v28, %v14073_v9  ;;  %v12103_v6 = vpack.c.bf16 %v14075_v28, %v14073_v9 }
 0x645   :  { %12609 = vrot.lane.b32.xlu0 %v14062_v63, %s13273_s14  ;;  %12559 = vrot.lane.b32.xlu1 %v12558_v50, %s13273_s14 }
 0x646   :  { %12044 = vmatpush3.bf16.xpose.msk.msra.mxu0 %vm14021_vm5, %v12042_v16 }
 0x647   :  { %12053 = vmatprep.subr.bf16.mxu0 %v15606_v52 }
 0x649   :  { %12619 = vrot.lane.b32.xlu0 %v14027_v5, %s13274_s3  ;;  %12569 = vrot.lane.b32.xlu1 %v12548_v21, %s13274_s3 }
 0x64d   :  { %11206 = vmatmul.mubr.msk.f32.vlgmr.msra.gmra.mrb[42].mxu0 %vm177_vm0, %v14092_v17  ;;  %2590 = vrot.lane.b32.xlu1 %v14092_v17, %s13273_s14 }
 0x64e   :  { %11227 = vmatprep.mubr.msk.f32.mxu0 %vm13278_vm4, %v15608_v31 }
 0x651   :  { %12579 = vrot.lane.b32.xlu1 %v12558_v50, %s13274_s3 }
 0x655   :  { %12589 = vrot.lane.b32.xlu1 %v12548_v21, %s13275_s15 }
 0x659   :  { %2596 = vrot.lane.b32.xlu1 %v14092_v17, %s13274_s3 }
 0x65d   :  { %12599 = vrot.lane.b32.xlu1 %v12558_v50, %s13275_s15 }
 0x661   :  { %2602 = vrot.lane.b32.xlu1 %v14092_v17, %s13275_s15 }
 0x665   :  { %12604 = vrot.lane.b32.xlu1 %v14027_v5, %s13273_s14 }
 0x669   :  { %12614 = vrot.lane.b32.xlu1 %v14041_v58, %s13273_s14 }
 0x66d   :  { %12624 = vrot.lane.b32.xlu1 %v14062_v63, %s13274_s3 }
 0x671   :  { %12629 = vrot.lane.b32.xlu1 %v14079_v54, %s13273_s14 }
 0x689   :  { %v12545_v15 = vpop.permute.xlu0 %12544 }
 0x68a   :  { %v12547_v40 = vunpack.i.h.bf16 %v12545_v15  ;;  %v12546_v44 = vunpack.i.l.bf16 %v12545_v15 }
 0x68c   :  { %v12046_v38 = vpack.c.bf16 %v12547_v40, %v12546_v44 }
 0x68e   :  { %12048 = vmatpush3.bf16.xpose.msk.msra.mxu1 %vm14021_vm5, %v12046_v38 }
 0x68f   :  { %12049 = vmatprep.subr.bf16.mxu1 %v15606_v52 }
 0x697   :  { %v12555_v36 = vpop.permute.xlu0 %12554 }
 0x698   :  { %v12557_v1 = vunpack.i.h.bf16 %v12555_v36  ;;  %v12556_v37 = vunpack.i.l.bf16 %v12555_v36 }
 0x69a   :  { %v12050_v29 = vpack.c.bf16 %v12557_v1, %v12556_v37 }
 0x69b   :  { %v12565_v12 = vpop.permute.xlu0 %12564 }
 0x69c   :  { %12052 = vmatpush3.bf16.xpose.msk.msra.mxu1 %vm14021_vm5, %v12050_v29  ;;  %v12567_v4 = vunpack.i.h.bf16 %v12565_v12  ;;  %v12566_v13 = vunpack.i.l.bf16 %v12565_v12 }
 0x69d   :  { %12061 = vmatprep.subr.bf16.mxu1 %v15606_v52 }
 0x69e   :  { %v12062_v56 = vpack.c.bf16 %v12567_v4, %v12566_v13 }
 0x69f   :  { %v14121_v39 = vpop.permute.xlu0 %2588 }
 0x6a3   :  { %v12575_v48 = vpop.permute.xlu0 %12574  ;;  %11217 = vmatmul.mubr.msk.f32.vlgmr.msra.gmra.mrb[48].mxu1 %vm177_vm0, %v14121_v39 }
 0x6a4   :  { %12064 = vmatpush3.bf16.xpose.msk.msra.mxu1 %vm14021_vm5, %v12062_v56  ;;  %11238 = vmatprep.mubr.msk.f32.mxu1 %vm13278_vm4, %v15608_v31  ;;  %v12577_v7 = vunpack.i.h.bf16 %v12575_v48  ;;  %v12576_v55 = vunpack.i.l.bf16 %v12575_v48 }
 0x6a5   :  { %12065 = vmatprep.subr.bf16.mxu1 %v15606_v52 }
 0x6a6   :  { %v12066_v43 = vpack.c.bf16 %v12577_v7, %v12576_v55 }
 0x6a7   :  { %v12585_v26 = vpop.permute.xlu0 %12584 }
 0x6a8   :  { %v12587_v35 = vunpack.i.h.bf16 %v12585_v26  ;;  %v12586_v27 = vunpack.i.l.bf16 %v12585_v26 }
 0x6a9   :  { %v12550_v19 = vpop.permute.xlu1 %12549 }
 0x6aa   :  { %v12552_v53 = vunpack.i.h.bf16 %v12550_v19  ;;  %v12551_v20 = vunpack.i.l.bf16 %v12550_v19  ;;  %v12078_v3 = vpack.c.bf16 %v12587_v35, %v12586_v27 }
 0x6ab   :  { %v14132_v62 = vpop.permute.xlu0 %2594 }
 0x6ac   :  { %v12054_v24 = vpack.c.bf16 %v12552_v53, %v12551_v20  ;;  %12068 = vmatpush3.bf16.xpose.msk.msra.mxu1 %vm14021_vm5, %v12066_v43 }
 0x6ad   :  { %12077 = vmatprep.subr.bf16.mxu1 %v15606_v52 }
 0x6ae   :  { %12056 = vmatpush3.bf16.xpose.msk.msra.mxu0 %vm14021_vm5, %v12054_v24 }
 0x6af   :  { %12057 = vmatprep.subr.bf16.mxu0 %v15606_v52  ;;  %v12595_v0 = vpop.permute.xlu0 %12594 }
 0x6b0   :  { %v12597_v42 = vunpack.i.h.bf16 %v12595_v0  ;;  %v12596_v25 = vunpack.i.l.bf16 %v12595_v0 }
 0x6b2   :  { %v12082_v21 = vpack.c.bf16 %v12597_v42, %v12596_v25 }
 0x6b3   :  { %11239 = vmatmul.mubr.msk.f32.vlgmr.msra.gmra.mrb[50].mxu1 %vm177_vm0, %v14132_v62  ;;  %v14153_v23 = vpop.permute.xlu0 %2600 }
 0x6b4   :  { %12080 = vmatpush3.bf16.xpose.msk.msra.mxu1 %vm14021_vm5, %v12078_v3  ;;  %11260 = vmatprep.mubr.msk.f32.mxu1 %vm13278_vm4, %v15608_v31 }
 0x6b5   :  { %12081 = vmatprep.subr.bf16.mxu1 %v15606_v52 }
 0x6b7   :  { %v12560_v8 = vpop.permute.xlu1 %12559  ;;  %v14200_v0 = vpop.permute.xlu0 %12609 }
 0x6b8   :  { %v12562_v57 = vunpack.i.h.bf16 %v12560_v8  ;;  %v12561_v32 = vunpack.i.l.bf16 %v12560_v8 }
 0x6ba   :  { %v12058_v30 = vpack.c.bf16 %v12562_v57, %v12561_v32 }
 0x6bb   :  { %v12570_v45 = vpop.permute.xlu1 %12569  ;;  %v14203_v57 = vpop.permute.xlu0 %12619 }
 0x6bc   :  { %12084 = vmatpush3.bf16.xpose.msk.msra.mxu1 %vm14021_vm5, %v12082_v21  ;;  %12060 = vmatpush3.bf16.xpose.msk.msra.mxu0 %vm14021_vm5, %v12058_v30  ;;  %v12572_v18 = vunpack.i.h.bf16 %v12570_v45  ;;  %v12571_v11 = vunpack.i.l.bf16 %v12570_v45 }
 0x6bd   :  { %12093 = vmatprep.subr.bf16.mxu1 %v15606_v52  ;;  %12069 = vmatprep.subr.bf16.mxu0 %v15606_v52 }
 0x6be   :  { %v12070_v16 = vpack.c.bf16 %v12572_v18, %v12571_v11 }
 0x6bf   :  { %v14151_v10 = vpop.permute.xlu1 %2590 }
 0x6c3   :  { %11261 = vmatmul.mubr.msk.f32.vlgmr.msra.gmra.mrb[52].mxu1 %vm177_vm0, %v14153_v23  ;;  %v12580_v50 = vpop.permute.xlu1 %12579  ;;  %11228 = vmatmul.mubr.msk.f32.vlgmr.msra.gmra.mrb[44].mxu0 %vm177_vm0, %v14151_v10 }
 0x6c4   :  { %12095 = vmatpush3.bf16.msra.mxu1 %v12094_v14  ;;  %12072 = vmatpush3.bf16.xpose.msk.msra.mxu0 %vm14021_vm5, %v12070_v16  ;;  %v12582_v15 = vunpack.i.h.bf16 %v12580_v50  ;;  %v12581_v40 = vunpack.i.l.bf16 %v12580_v50 }
 0x6c5   :  { %12096 = vmatprep.subr.bf16.mxu1 %v15606_v52  ;;  %12073 = vmatprep.subr.bf16.mxu0 %v15606_v52 }
 0x6c6   :  { %11249 = vmatprep.mubr.msk.f32.mxu0 %vm13278_vm4, %v15608_v31  ;;  %11282 = vmatprep.mubr.msk.f32.mxu1 %vm13278_vm4, %v15608_v31  ;;  %v12074_v49 = vpack.c.bf16 %v12582_v15, %v12581_v40 }
 0x6c7   :  { %v12590_v44 = vpop.permute.xlu1 %12589 }
 0x6c8   :  { %12098 = vmatpush3.bf16.msra.mxu1 %v12097_v59  ;;  %v12592_v14 = vunpack.i.h.bf16 %v12590_v44  ;;  %v12591_v38 = vunpack.i.l.bf16 %v12590_v44 }
 0x6c9   :  { %12099 = vmatprep.subr.bf16.mxu1 %v15606_v52 }
 0x6ca   :  { %v12086_v1 = vpack.c.bf16 %v12592_v14, %v12591_v38 }
 0x6cb   :  { %v14174_v60 = vpop.permute.xlu1 %2596 }
 0x6cc   :  { %12076 = vmatpush3.bf16.xpose.msk.msra.mxu0 %vm14021_vm5, %v12074_v49 }
 0x6cd   :  { %12085 = vmatprep.subr.bf16.mxu0 %v15606_v52 }
 0x6cf   :  { %v12600_v36 = vpop.permute.xlu1 %12599 }
 0x6d0   :  { %v12602_v2 = vunpack.i.h.bf16 %v12600_v36  ;;  %v12601_v61 = vunpack.i.l.bf16 %v12600_v36 }
 0x6d2   :  { %v12090_v29 = vpack.c.bf16 %v12602_v2, %v12601_v61 }
 0x6d3   :  { %v14179_v37 = vpop.permute.xlu1 %2602  ;;  %11250 = vmatmul.mubr.msk.f32.vlgmr.msra.gmra.mrb[46].mxu0 %vm177_vm0, %v14174_v60 }
 0x6d4   :  { %12088 = vmatpush3.bf16.xpose.msk.msra.mxu0 %vm14021_vm5, %v12086_v1  ;;  %11271 = vmatprep.mubr.msk.f32.mxu0 %vm13278_vm4, %v15608_v31 }
 0x6d5   :  { %12089 = vmatprep.subr.bf16.mxu0 %v15606_v52 }
 0x6d7   :  { %v12605_v59 = vpop.permute.xlu1 %12604 }
 0x6d8   :  { %v12607_v12 = vunpack.i.h.bf16 %v12605_v59  ;;  %v12606_v4 = vunpack.i.l.bf16 %v12605_v59 }
 0x6da   :  { %v12106_v56 = vpack.c.bf16 %v12607_v12, %v12606_v4 }
 0x6db   :  { %v12615_v13 = vpop.permute.xlu1 %12614 }
 0x6dc   :  { %12092 = vmatpush3.bf16.xpose.msk.msra.mxu0 %vm14021_vm5, %v12090_v29  ;;  %v12617_v48 = vunpack.i.h.bf16 %v12615_v13  ;;  %v12616_v7 = vunpack.i.l.bf16 %v12615_v13 }
 0x6dd   :  { %12105 = vmatprep.subr.bf16.mxu0 %v15606_v52 }
 0x6de   :  { %v12109_v55 = vpack.c.bf16 %v12617_v48, %v12616_v7 }
 0x6df   :  { %v14218_v61 = vpop.permute.xlu1 %12624 }
 0x6e3   :  { %11272 = vmatmul.mubr.msk.f32.vlgmr.msra.gmra.mrb[48].mxu0 %vm177_vm0, %v14179_v37  ;;  %v14222_v59 = vpop.permute.xlu1 %12629 }
 0x6e4   :  { %12107 = vmatpush3.bf16.msra.mxu0 %v12106_v56  ;;  %11304 = vmatprep.mubr.msk.f32.mxu0 %vm13278_vm4, %v15608_v31 }
 0x6e5   :  { %12108 = vmatprep.subr.bf16.mxu0 %v15606_v52 }
 0x6e8   :  { %12110 = vmatpush3.bf16.msra.mxu0 %v12109_v55 }
 0x6e9   :  { %12117 = vmatprep.subr.bf16.mxu0 %v15606_v52 }
 0x6ff   :  { %v2818_v26 = vpop.f32.mrb[40].mxu0 }
 0x700   :  { %v3382_v19 = vsel %vm177_vm0, %v2818_v26, -inf  ;;  %v11196_v43 = vpop.f32.mrb[41].mxu0 }
 0x701   :  { %3383 = vmax.xlane.f32.xlu0 %v3382_v19 }
 0x720   :  { %v2898_v53 = vpop.f32.mrb[42].mxu0 }
 0x721   :  { %v3385_v20 = vsel %vm177_vm0, %v2898_v53, -inf  ;;  %v11207_v24 = vpop.f32.mrb[43].mxu0 }
 0x722   :  { %3386 = vmax.xlane.f32.xlu1 %v3385_v20 }
 0x776   :  { %v2978_v35 = vpop.f32.mrb[48].mxu1 }
 0x777   :  { %v3388_v27 = vsel %vm177_vm0, %v2978_v35, -inf  ;;  %v11218_v3 = vpop.f32.mrb[49].mxu1 }
 0x778   :  { %3389 = vmax.xlane.f32.xlu0 %v3388_v27 }
 0x786   :  { %v3138_v42 = vpop.f32.mrb[50].mxu1 }
 0x787   :  { %v3394_v25 = vsel %vm177_vm0, %v3138_v42, -inf  ;;  %v11240_v8 = vpop.f32.mrb[51].mxu1 }
 0x788   :  { %3395 = vmax.xlane.f32.xlu1 %v3394_v25 }
 0x78e   :  { %v3384_v32 = vpop.xlane.xlu0 %3383 }
 0x78f   :  { %v3406_v21 = vsub.f32 %v2818_v26, %v3384_v32 }
 0x791   :  { %v3414_v30 = vmul.f32 1.442695, %v3406_v21 }
 0x793   :  { %12911 = vpow2.f32 %v3414_v30 }
 0x796   :  { %v3298_v45 = vpop.f32.mrb[52].mxu1  ;;  %v3058_v18 = vpop.f32.mrb[44].mxu0 }
 0x797   :  { %v11229_v11 = vpop.f32.mrb[45].mxu0  ;;  %v3400_v16 = vsel %vm177_vm0, %v3298_v45, -inf  ;;  %v3391_v50 = vsel %vm177_vm0, %v3058_v18, -inf  ;;  %v11262_v15 = vpop.f32.mrb[53].mxu1 }
 0x798   :  { %3401 = vmax.xlane.f32.xlu1 %v3400_v16  ;;  %3392 = vmax.xlane.f32.xlu0 %v3391_v50 }
 0x79d   :  { %v12912_v40 = vpop.eup %12911 }
 0x79e   :  { %v3430_v44 = vsel %vm177_vm0, %v12912_v40, 0.0 }
 0x79f   :  { %3431 = vadd.xlane.f32.xlu1 %v3430_v44 }
 0x7a6   :  { %v14208_v49 = vpop.f32.mrb[46].mxu0 }
 0x7a7   :  { %v3397_v14 = vsel %vm177_vm0, %v14208_v49, -inf  ;;  %v11251_v38 = vpop.f32.mrb[47].mxu0 }
 0x7a8   :  { %3398 = vmax.xlane.f32.xlu0 %v3397_v14 }
 0x7af   :  { %v3387_v29 = vpop.xlane.xlu1 %3386 }
 0x7b0   :  { %12639 = vrot.lane.b32.xlu1 %v14079_v54, %s13274_s3  ;;  %v3407_v12 = vsub.f32 %v2898_v53, %v3387_v29  ;;  %v12612_v29 = vunpack.i.h.bf16 %v14200_v0 }
 0x7b2   :  { %v3416_v4 = vmul.f32 1.442695, %v3407_v12  ;;  %v12611_v12 = vunpack.i.l.bf16 %v14200_v0 }
 0x7b4   :  { %12913 = vpow2.f32 %v3416_v4 }
 0x7b6   :  { %v14214_v36 = vpop.f32.mrb[48].mxu0 }
 0x7b7   :  { %v3403_v1 = vsel %vm177_vm0, %v14214_v36, -inf  ;;  %v11273_v2 = vpop.f32.mrb[49].mxu0 }
 0x7b8   :  { %3404 = vmax.xlane.f32.xlu0 %v3403_v1 }
 0x7be   :  { %v14224_v13 = vpop.eup %12913 }
 0x7bf   :  { %v3433_v56 = vsel %vm177_vm0, %v14224_v13, 0.0 }
 0x7ce   :  { %12634 = vrot.lane.b32.xlu0 %v14041_v58, %s13274_s3 }
 0x7ed   :  { %3434 = vadd.xlane.f32.xlu0 %v3433_v56 }
 0x805   :  { %v3390_v48 = vpop.xlane.xlu0 %3389 }
 0x806   :  { %v3408_v7 = vsub.f32 %v2978_v35, %v3390_v48  ;;  %v12112_v48 = vpack.c.bf16 %v12612_v29, %v12611_v12 }
 0x808   :  { %v3418_v55 = vmul.f32 1.442695, %v3408_v7  ;;  %v12632_v7 = vunpack.i.h.bf16 %v14222_v59 }
 0x80a   :  { %12915 = vpow2.f32 %v3418_v55  ;;  %v12631_v55 = vunpack.i.l.bf16 %v14222_v59  ;;  %v12622_v59 = vunpack.i.h.bf16 %v14203_v57 }
 0x814   :  { %v14228_v26 = vpop.eup %12915 }
 0x815   :  { %v3436_v19 = vsel %vm177_vm0, %v14228_v26, 0.0  ;;  %v3396_v43 = vpop.xlane.xlu1 %3395 }
 0x816   :  { %3437 = vadd.xlane.f32.xlu1 %v3436_v19  ;;  %v3410_v25 = vsub.f32 %v3138_v42, %v3396_v43 }
 0x818   :  { %v3422_v30 = vmul.f32 1.442695, %v3410_v25 }
 0x825   :  { %v3393_v53 = vpop.xlane.xlu0 %3392  ;;  %v3402_v24 = vpop.xlane.xlu1 %3401 }
 0x826   :  { %v3409_v20 = vsub.f32 %v3058_v18, %v3393_v53  ;;  %v3412_v11 = vsub.f32 %v3298_v45, %v3402_v24 }
 0x827   :  { %12649 = vrot.lane.b32.xlu1 %v14062_v63, %s13275_s15 }
 0x828   :  { %v3420_v27 = vmul.f32 1.442695, %v3409_v20  ;;  %v3426_v63 = vmul.f32 1.442695, %v3412_v11  ;;  %v12621_v20 = vunpack.i.l.bf16 %v14203_v57  ;;  %v12627_v11 = vunpack.i.h.bf16 %v14218_v61 }
 0x82a   :  { %12917 = vpow2.f32 %v3420_v27 }
 0x82c   :  { %v3432_v3 = vpop.xlane.xlu1 %3431 }
 0x82d   :  { %12919 = vrcp.f32 %v3432_v3 }
 0x82e   :  { %12921 = vpow2.f32 %v3422_v30 }
 0x82f   :  { %12923 = vpow2.f32 %v3426_v63 }
 0x830   :  { %v12640_v0 = vpop.permute.xlu1 %12639 }
 0x834   :  { %v14234_v35 = vpop.eup %12917 }
 0x835   :  { %v3439_v8 = vsel %vm177_vm0, %v14234_v35, 0.0  ;;  %v3399_v47 = vpop.xlane.xlu0 %3398 }
 0x836   :  { %3440 = vadd.xlane.f32.xlu0 %v3439_v8 }
 0x837   :  { %v12920_v32 = vpop.eup %12919 }
 0x838   :  { %v3462_v21 = vmul.f32 %v12920_v32, %v3432_v3  ;;  %v14249_v42 = vpop.eup %12921  ;;  %v12118_v3 = vpack.c.bf16 %v12622_v59, %v12621_v20 }
 0x839   :  { %v3442_v45 = vsel %vm177_vm0, %v14249_v42, 0.0  ;;  %v14253_v15 = vpop.eup %12923 }
 0x83a   :  { %v3470_v18 = vsub.f32 2.0, %v3462_v21  ;;  %v3448_v34 = vsel %vm177_vm0, %v14253_v15, 0.0 }
 0x83c   :  { %v3478_v16 = vmul.f32 %v12920_v32, %v3470_v18  ;;  %v12626_v18 = vunpack.i.l.bf16 %v14218_v61 }
 0x83e   :  { %v3486_v50 = vmul.f32 %v12912_v40, %v3478_v16 }
 0x840   :  { %11283 = vmatmul.mubr.msk.f32.vlgmr.msra.gmra.mrb[54].mxu1 %vm177_vm0, %v3486_v50 }
 0x841   :  { %12101 = vmatpush3.bf16.msra.mxu1 %v12100_v22  ;;  %11293 = vmatprep.mubr.msk.f32.mxu1 %vm13278_vm4, %v15608_v31  ;;  %v3411_v22 = vsub.f32 %v14208_v49, %v3399_v47  ;;  %v12641_v47 = vunpack.i.l.bf16 %v12640_v0 }
 0x842   :  { %12102 = vmatprep.subr.bf16.mxu1 %v15606_v52 }
 0x843   :  { %v3424_v28 = vmul.f32 1.442695, %v3411_v22 }
 0x845   :  { %12104 = vmatpush3.bf16.msra.mxu1 %v12103_v6  ;;  %v3405_v9 = vpop.xlane.xlu0 %3404  ;;  %12925 = vpow2.f32 %v3424_v28 }
 0x846   :  { %12111 = vmatprep.subr.bf16.mxu1 %v15606_v52  ;;  %v3413_v6 = vsub.f32 %v14214_v36, %v3405_v9 }
 0x848   :  { %v3428_v40 = vmul.f32 1.442695, %v3413_v6 }
 0x849   :  { %v12635_v38 = vpop.permute.xlu0 %12634 }
 0x84a   :  { %12927 = vpow2.f32 %v3428_v40  ;;  %v12637_v25 = vunpack.i.h.bf16 %v12635_v38  ;;  %v12636_v8 = vunpack.i.l.bf16 %v12635_v38 }
 0x84b   :  { %3443 = vadd.xlane.f32.xlu1 %v3442_v45  ;;  %v12124_v45 = vpack.c.bf16 %v12627_v11, %v12626_v18 }
 0x84c   :  { %12644 = vrot.lane.b32.xlu0 %v14027_v5, %s13275_s15  ;;  %v12121_v32 = vpack.c.bf16 %v12637_v25, %v12636_v8 }
 0x84f   :  { %3449 = vadd.xlane.f32.xlu1 %v3448_v34  ;;  %v14263_v44 = vpop.eup %12925  ;;  %v12642_v34 = vunpack.i.h.bf16 %v12640_v0 }
 0x850   :  { %v3445_v5 = vsel %vm177_vm0, %v14263_v44, 0.0 }
 0x851   :  { %v12127_v9 = vpack.c.bf16 %v12642_v34, %v12641_v47  ;;  %v2569_v47 = vld [vmem:[#allocation5 + $0x50] sm:$0xff] }
 0x854   :  { %v14267_v14 = vpop.eup %12927 }
 0x855   :  { %v3451_v49 = vsel %vm177_vm0, %v14267_v14, 0.0 }
 0x860   :  { %12659 = vrot.lane.b32.xlu1 %v14079_v54, %s13275_s15 }
 0x86b   :  { %3446 = vadd.xlane.f32.xlu0 %v3445_v5 }
 0x86f   :  { %3452 = vadd.xlane.f32.xlu0 %v3451_v49 }
 0x87a   :  { %v3435_v36 = vpop.xlane.xlu0 %3434 }
 0x87b   :  { %12929 = vrcp.f32 %v3435_v36 }
 0x885   :  { %v12930_v1 = vpop.eup %12929  ;;  %12654 = vrot.lane.b32.xlu0 %v14041_v58, %s13275_s15  ;;  %v12115_v58 = vpack.c.bf16 %v12632_v7, %v12631_v55 }
 0x886   :  { %v3463_v2 = vmul.f32 %v12930_v1, %v3435_v36 }
 0x888   :  { %v3471_v54 = vsub.f32 2.0, %v3463_v2 }
 0x88a   :  { %v3479_v4 = vmul.f32 %v12930_v1, %v3471_v54 }
 0x88c   :  { %v3487_v56 = vmul.f32 %v14224_v13, %v3479_v4 }
 0x88e   :  { %11294 = vmatmul.mubr.msk.f32.vlgmr.msra.gmra.mrb[56].mxu1 %vm177_vm0, %v3487_v56 }
 0x88f   :  { %12113 = vmatpush3.bf16.msra.mxu1 %v12112_v48  ;;  %11315 = vmatprep.mubr.msk.f32.mxu1 %vm13278_vm4, %v15608_v31 }
 0x890   :  { %12114 = vmatprep.subr.bf16.mxu1 %v15606_v52 }
 0x893   :  { %12116 = vmatpush3.bf16.msra.mxu1 %v12115_v58 }
 0x894   :  { %12123 = vmatprep.subr.bf16.mxu1 %v15606_v52 }
 0x8a3   :  { %v3438_v19 = vpop.xlane.xlu1 %3437 }
 0x8a4   :  { %12931 = vrcp.f32 %v3438_v19 }
 0x8a7   :  { %v12650_v16 = vpop.permute.xlu1 %12649 }
 0x8a8   :  { %v12651_v59 = vunpack.i.l.bf16 %v12650_v16 }
 0x8ae   :  { %v12932_v13 = vpop.eup %12931 }
 0x8af   :  { %v3464_v43 = vmul.f32 %v12932_v13, %v3438_v19 }
 0x8b1   :  { %v3472_v53 = vsub.f32 2.0, %v3464_v43 }
 0x8b3   :  { %v3480_v24 = vmul.f32 %v12932_v13, %v3472_v53  ;;  %v12652_v53 = vunpack.i.h.bf16 %v12650_v16 }
 0x8b5   :  { %v3488_v27 = vmul.f32 %v14228_v26, %v3480_v24  ;;  %v12136_v8 = vpack.c.bf16 %v12652_v53, %v12651_v59  ;;  %v4205_v53 = vld [vmem:[#allocation5 + $0x90] sm:$0xff] }
 0x8b6   :  { %v4201_v59 = vld [vmem:[#allocation5 + $0x10] sm:$0xff] }
 0x8b7   :  { %11305 = vmatmul.mubr.msk.f32.vlgmr.msra.gmra.mrb[50].mxu0 %vm177_vm0, %v3488_v27 }
 0x8b8   :  { %12119 = vmatpush3.bf16.msra.mxu0 %v12118_v3  ;;  %11326 = vmatprep.mubr.msk.f32.mxu0 %vm13278_vm4, %v15608_v31 }
 0x8b9   :  { %12120 = vmatprep.subr.bf16.mxu0 %v15606_v52 }
 0x8bc   :  { %12122 = vmatpush3.bf16.msra.mxu0 %v12121_v32 }
 0x8bd   :  { %12129 = vmatprep.subr.bf16.mxu0 %v15606_v52 }
 0x8c3   :  { %v3441_v21 = vpop.xlane.xlu0 %3440 }
 0x8c4   :  { %12933 = vrcp.f32 %v3441_v21 }
 0x8c7   :  { %v12645_v28 = vpop.permute.xlu0 %12644 }
 0x8c8   :  { %v12647_v40 = vunpack.i.h.bf16 %v12645_v28  ;;  %v12646_v5 = vunpack.i.l.bf16 %v12645_v28  ;;  %v2572_v28 = vld [vmem:[#allocation5 + $0x1b8] sm:$0xff] }
 0x8ca   :  { %v12130_v36 = vpack.c.bf16 %v12647_v40, %v12646_v5  ;;  %v2574_v40 = vld [vmem:[#allocation5 + $0x2a8] sm:$0xff]  ;;  %v2575_v5 = vld [vmem:[#allocation5 + $0x320] sm:$0xff] }
 0x8ce   :  { %v12934_v57 = vpop.eup %12933 }
 0x8cf   :  { %v3465_v30 = vmul.f32 %v12934_v57, %v3441_v21 }
 0x8d1   :  { %v3473_v26 = vsub.f32 2.0, %v3465_v30 }
 0x8d3   :  { %v3481_v63 = vmul.f32 %v12934_v57, %v3473_v26 }
 0x8d5   :  { %v3489_v50 = vmul.f32 %v14234_v35, %v3481_v63 }
 0x8d7   :  { %11316 = vmatmul.mubr.msk.f32.vlgmr.msra.gmra.mrb[58].mxu1 %vm177_vm0, %v3489_v50 }
 0x8d8   :  { %v3444_v22 = vpop.xlane.xlu1 %3443  ;;  %12125 = vmatpush3.bf16.msra.mxu1 %v12124_v45  ;;  %11337 = vmatprep.mubr.msk.f32.mxu1 %vm13278_vm4, %v15608_v31 }
 0x8d9   :  { %12935 = vrcp.f32 %v3444_v22  ;;  %12126 = vmatprep.subr.bf16.mxu1 %v15606_v52 }
 0x8dc   :  { %12128 = vmatpush3.bf16.msra.mxu1 %v12127_v9  ;;  %v3450_v1 = vpop.xlane.xlu1 %3449  ;;  %v2571_v9 = vld [vmem:[#allocation5 + $0x140] sm:$0xff] }
 0x8dd   :  { %12135 = vmatprep.subr.bf16.mxu1 %v15606_v52  ;;  %12937 = vrcp.f32 %v3450_v1 }
 0x8e0   :  { %v12660_v20 = vpop.permute.xlu1 %12659 }
 0x8e1   :  { %v12662_v32 = vunpack.i.h.bf16 %v12660_v20  ;;  %v12661_v21 = vunpack.i.l.bf16 %v12660_v20 }
 0x8e3   :  { %v12936_v61 = vpop.eup %12935  ;;  %v12139_v57 = vpack.c.bf16 %v12662_v32, %v12661_v21 }
 0x8e4   :  { %v3466_v35 = vmul.f32 %v12936_v61, %v3444_v22  ;;  %v2570_v22 = vld [vmem:[#allocation5 + $0xc8] sm:$0xff] }
 0x8e6   :  { %v3474_v6 = vsub.f32 2.0, %v3466_v35  ;;  %v12145_v35 = vpack.c.bf16 %v2572_v28, %v2571_v9  ;;  %v4223_v9 = vld [vmem:[#allocation5 + $0x360] sm:$0xff] }
 0x8e7   :  { %v12938_v2 = vpop.eup %12937 }
 0x8e8   :  { %v3482_v49 = vmul.f32 %v12936_v61, %v3474_v6  ;;  %v3468_v29 = vmul.f32 %v12938_v2, %v3450_v1  ;;  %v12141_v61 = vpack.c.bf16 %v2570_v22, %v2569_v47  ;;  %v2573_v6 = vld [vmem:[#allocation5 + $0x230] sm:$0xff]  ;;  %v2578_v1 = vld [vmem:[#allocation5 + $0x488] sm:$0xff] }
 0x8e9   :  { %v4220_v22 = vld [vmem:[#allocation5 + $0x2e8] sm:$0xff] }
 0x8ea   :  { %v3490_v38 = vmul.f32 %v14249_v42, %v3482_v49  ;;  %v3476_v4 = vsub.f32 2.0, %v3468_v29  ;;  %v2576_v49 = vld [vmem:[#allocation5 + $0x398] sm:$0xff] }
 0x8ec   :  { %11327 = vmatmul.mubr.msk.f32.vlgmr.msra.gmra.mrb[52].mxu0 %vm177_vm0, %v3490_v38  ;;  %v3484_v7 = vmul.f32 %v12938_v2, %v3476_v4  ;;  %v2580_v4 = vld [vmem:[#allocation5 + $0x578] sm:$0xff] }
 0x8ed   :  { %12131 = vmatpush3.bf16.msra.mxu0 %v12130_v36  ;;  %11348 = vmatprep.mubr.msk.f32.mxu0 %vm13278_vm4, %v15608_v31  ;;  %v2577_v36 = vld [vmem:[#allocation5 + $0x410] sm:$0xff] }
 0x8ee   :  { %12132 = vmatprep.subr.bf16.mxu0 %v15606_v52  ;;  %v3492_v19 = vmul.f32 %v14253_v15, %v3484_v7  ;;  %v12157_v29 = vpack.c.bf16 %v2578_v1, %v2577_v36  ;;  %v4228_v36 = vld [vmem:[#allocation5 + $0x448] sm:$0xff] }
 0x8f8   :  { %v3447_v54 = vpop.xlane.xlu0 %3446 }
 0x8f9   :  { %12939 = vrcp.f32 %v3447_v54 }
 0x8fc   :  { %v3453_v12 = vpop.xlane.xlu0 %3452 }
 0x8fd   :  { %12941 = vrcp.f32 %v3453_v12 }
 0x900   :  { %v12655_v56 = vpop.permute.xlu0 %12654 }
 0x901   :  { %v12657_v42 = vunpack.i.h.bf16 %v12655_v56  ;;  %v12656_v48 = vunpack.i.l.bf16 %v12655_v56 }
 0x903   :  { %v12940_v55 = vpop.eup %12939  ;;  %v12133_v58 = vpack.c.bf16 %v12657_v42, %v12656_v48  ;;  %v2581_v42 = vld [vmem:[#allocation5 + $0x5f0] sm:$0xff]  ;;  %v2582_v48 = vld [vmem:[#allocation5 + $0x668] sm:$0xff] }
 0x904   :  { %v3467_v0 = vmul.f32 %v12940_v55, %v3447_v54  ;;  %v12165_v7 = vpack.c.bf16 %v2582_v48, %v2581_v42  ;;  %v13139_v48 = vld [vmem:[#allocation2 + $0x10] sm:$0xff] }
 0x905   :  { %12134 = vmatpush3.bf16.msra.mxu0 %v12133_v58  ;;  %v2584_v58 = vld [vmem:[#allocation5 + $0x758] sm:$0xff] }
 0x906   :  { %v3475_v13 = vsub.f32 2.0, %v3467_v0  ;;  %12142 = vmatprep.subr.bf16.mxu0 %v12141_v61 }
 0x907   :  { %v12942_v43 = vpop.eup %12941 }
 0x908   :  { %v3483_v24 = vmul.f32 %v12940_v55, %v3475_v13  ;;  %v3469_v27 = vmul.f32 %v12942_v43, %v3453_v12  ;;  %11349 = vmatmul.mubr.msk.f32.vlgmr.msra.gmra.mrb[54].mxu0 %vm177_vm0, %v3492_v19  ;;  %v2579_v12 = vld [vmem:[#allocation5 + $0x500] sm:$0xff] }
 0x909   :  { %12144 = vmatpush3.bf16.msra.mxu0 %v12141_v61  ;;  %v12161_v56 = vpack.c.bf16 %v2580_v4, %v2579_v12  ;;  %v2583_v55 = vld [vmem:[#allocation5 + $0x6e0] sm:$0xff]  ;;  %v4234_v12 = vld [vmem:[#allocation5 + $0x538] sm:$0xff] }
 0x90a   :  { %v3491_v3 = vmul.f32 %v14263_v44, %v3483_v24  ;;  %v3477_v25 = vsub.f32 2.0, %v3469_v27  ;;  %12146 = vmatprep.subr.bf16.mxu0 %v12145_v35  ;;  %v4204_v27 = vld [vmem:[#allocation5 + $0x88] sm:$0xff]  ;;  %v4219_v61 = vld [vmem:[#allocation5 + $0x2e0] sm:$0xff] }
 0x90b   :  { %v12175_v21 = vpack.c.bf16 %v4204_v27, %v4201_v59  ;;  %v4212_v59 = vld [vmem:[#allocation5 + $0x188] sm:$0xff] }
 0x90c   :  { %11338 = vmatmul.mubr.msk.f32.vlgmr.msra.gmra.mrb[60].mxu1 %vm177_vm0, %v3491_v3  ;;  %v3485_v15 = vmul.f32 %v12942_v43, %v3477_v25  ;;  %v4202_v43 = vld [vmem:[#allocation5 + $0x18] sm:$0xff]  ;;  %v4203_v3 = vld [vmem:[#allocation5 + $0x20] sm:$0xff] }
 0x90d   :  { %12137 = vmatpush3.bf16.msra.mxu1 %v12136_v8  ;;  %11359 = vmatprep.mubr.msk.f32.mxu1 %vm13278_vm4, %v15608_v31  ;;  %v12173_v24 = vpack.c.bf16 %v4205_v53, %v4202_v43  ;;  %v4206_v25 = vld [vmem:[#allocation5 + $0x98] sm:$0xff]  ;;  %v4209_v53 = vld [vmem:[#allocation5 + $0x110] sm:$0xff] }
 0x90e   :  { %12138 = vmatprep.subr.bf16.mxu1 %v15606_v52  ;;  %v3493_v30 = vmul.f32 %v14267_v14, %v3485_v15  ;;  %12148 = vmatpush3.bf16.msra.mxu0 %v12145_v35  ;;  %v14327_v15 = vpack.c.bf16 %v4206_v25, %v4203_v3  ;;  %v12209_v27 = vpack.c.bf16 %v4212_v59, %v4209_v53  ;;  %v4215_v25 = vld [vmem:[#allocation5 + $0x200] sm:$0xff]  ;;  %v84_v53 = vld [vmem:[#allocation8 + $0x38] sm:$0xff] }
 0x911   :  { %12140 = vmatpush3.bf16.msra.mxu1 %v12139_v57  ;;  %v4208_v57 = vld [vmem:[#allocation5 + $0x108] sm:$0xff] }
 0x912   :  { %12174 = vmatprep.subr.bf16.mxu1 %v12173_v24 }
 0x913   :  { %v14312_v26 = vpop.f32.mrb[54].mxu1 }
 0x914   :  { %v11284_v44 = vpop.f32.mrb[55].mxu1  ;;  %11360 = vmatmul.mubr.msk.f32.vlgmr.msra.gmra.mrb[62].mxu1 %vm177_vm0, %v3493_v30  ;;  %v4211_v30 = vld [vmem:[#allocation5 + $0x180] sm:$0xff] }
 0x915   :  { %4330 = vmatprep.mubr.f32.mxu1 %v15608_v31  ;;  %v12177_v44 = vpack.c.bf16 %v4211_v30, %v4208_v57  ;;  %12176 = vmatpush1.bf16.msra.mxu1 %v12175_v21  ;;  %v4227_v57 = vld [vmem:[#allocation5 + $0x3e0] sm:$0xff]  ;;  %v4230_v30 = vld [vmem:[#allocation5 + $0x458] sm:$0xff] }
 0x917   :  { %12178 = vmatprep.subr.bf16.mxu1 %v12177_v44  ;;  %v4233_v44 = vld [vmem:[#allocation5 + $0x4d0] sm:$0xff] }
 0x961   :  { %v14316_v11 = vpop.f32.mrb[56].mxu1 }
 0x962   :  { %v11295_v18 = vpop.f32.mrb[57].mxu1  ;;  %v4079_v43 = vadd.f32 %v14316_v11, %v14092_v17  ;;  %v4221_v17 = vld [vmem:[#allocation5 + $0x2f0] sm:$0xff]  ;;  %v4224_v11 = vld [vmem:[#allocation5 + $0x368] sm:$0xff] }
 0x963   :  { %v4210_v18 = vld [vmem:[#allocation5 + $0x178] sm:$0xff]  ;;  %v12217_v21 = vpack.c.bf16 %v4224_v11, %v4221_v17 }
 0x98a   :  { %v3709_v16 = vpop.f32.mrb[50].mxu0 }
 0x98b   :  { %v4080_v63 = vadd.f32 %v3709_v16, %v14121_v39  ;;  %v11306_v50 = vpop.f32.mrb[51].mxu0  ;;  %v12149_v39 = vpack.c.bf16 %v2574_v40, %v2573_v6  ;;  %v12185_v6 = vpack.c.bf16 %v4223_v9, %v4220_v22  ;;  %v4222_v40 = vld [vmem:[#allocation5 + $0x358] sm:$0xff]  ;;  %v4244_v9 = vld [vmem:[#allocation5 + $0x6a8] sm:$0xff] }
 0x98c   :  { %v4217_v50 = vld [vmem:[#allocation5 + $0x270] sm:$0xff] }
 0x98d   :  { %4088 = vrot.lane.b32.xlu0 %v4080_v63, %s13275_s15  ;;  %12150 = vmatprep.subr.bf16.mxu0 %v12149_v39  ;;  %v4214_v63 = vld [vmem:[#allocation5 + $0x1f8] sm:$0xff] }
 0x98e   :  { %12152 = vmatpush3.bf16.msra.mxu0 %v12149_v39  ;;  %v12187_v39 = vpack.c.bf16 %v4222_v40, %v4219_v61  ;;  %v4247_v61 = vld [vmem:[#allocation5 + $0x720] sm:$0xff]  ;;  %v4245_v40 = vld [vmem:[#allocation5 + $0x6b0] sm:$0xff] }
 0x9aa   :  { %v3782_v45 = vpop.f32.mrb[58].mxu1 }
 0x9ab   :  { %v4081_v34 = vadd.f32 %v3782_v45, %v14151_v10  ;;  %v11317_v14 = vpop.f32.mrb[59].mxu1  ;;  %v12153_v10 = vpack.c.bf16 %v2576_v49, %v2575_v5  ;;  %v12181_v45 = vpack.c.bf16 %v4217_v50, %v4214_v63  ;;  %v4226_v5 = vld [vmem:[#allocation5 + $0x3d8] sm:$0xff]  ;;  %v4229_v49 = vld [vmem:[#allocation5 + $0x450] sm:$0xff] }
 0x9ac   :  { %v4241_v63 = vld [vmem:[#allocation5 + $0x630] sm:$0xff] }
 0x9ad   :  { %4090 = vrot.lane.b32.xlu1 %v4081_v34, %s13275_s15  ;;  %12154 = vmatprep.subr.bf16.mxu0 %v12153_v10  ;;  %v4216_v34 = vld [vmem:[#allocation5 + $0x268] sm:$0xff] }
 0x9ae   :  { %12156 = vmatpush3.bf16.msra.mxu0 %v12153_v10  ;;  %v4225_v10 = vld [vmem:[#allocation5 + $0x3d0] sm:$0xff] }
 0x9af   :  { %12158 = vmatprep.subr.bf16.mxu0 %v12157_v29  ;;  %v12191_v1 = vpack.c.bf16 %v4228_v36, %v4225_v10  ;;  %v81_v10 = vld [vmem:[#allocation8 + $0x20] sm:$0xff]  ;;  %v83_v36 = vld [vmem:[#allocation8 + $0x30] sm:$0xff] }
 0x9b2   :  { %12160 = vmatpush3.bf16.msra.mxu0 %v12157_v29  ;;  %v4231_v29 = vld [vmem:[#allocation5 + $0x4c0] sm:$0xff] }
 0x9b3   :  { %12162 = vmatprep.subr.bf16.mxu0 %v12161_v56  ;;  %v12195_v4 = vpack.c.bf16 %v4234_v12, %v4231_v29 }
 0x9b6   :  { %12164 = vmatpush3.bf16.msra.mxu0 %v12161_v56 }
 0x9b7   :  { %12166 = vmatprep.subr.bf16.mxu0 %v12165_v7 }
 0x9ba   :  { %12168 = vmatpush3.bf16.msra.mxu0 %v12165_v7  ;;  %v4078_v7 = vadd.f32 %v13139_v48, %v14312_v26  ;;  %v4249_v48 = vld [vmem:[#allocation7 + $0x2] sm:$0x7] }
 0x9bf   :  { %v3855_v38 = vpop.f32.mrb[52].mxu0 }
 0x9c0   :  { %v4082_v2 = vadd.f32 %v3855_v38, %v14132_v62  ;;  %v11328_v54 = vpop.f32.mrb[53].mxu0  ;;  %v12169_v62 = vpack.c.bf16 %v2584_v58, %v2583_v55  ;;  %v12189_v38 = vpack.c.bf16 %v4229_v49, %v4226_v5  ;;  %v4248_v5 = vld [vmem:[#allocation5 + $0x728] sm:$0xff] }
 0x9c1   :  { %v4235_v54 = vld [vmem:[#allocation5 + $0x540] sm:$0xff]  ;;  %v12233_v49 = vpack.c.bf16 %v4248_v5, %v4245_v40 }
 0x9c2   :  { %4096 = vrot.lane.b32.xlu0 %v4082_v2, %s13274_s3  ;;  %12170 = vmatprep.subr.bf16.mxu0 %v12169_v62  ;;  %v4232_v2 = vld [vmem:[#allocation5 + $0x4c8] sm:$0xff] }
 0x9c3   :  { %12172 = vmatpush3.bf16.msra.mxu0 %v12169_v62 }
 0x9c4   :  { %12206 = vmatprep.subr.bf16.mxu0 %v14327_v15 }
 0x9db   :  { %v4001_v0 = vpop.f32.mrb[54].mxu0 }
 0x9dc   :  { %v4084_v19 = vadd.f32 %v4001_v0, %v14153_v23  ;;  %v11350_v13 = vpop.f32.mrb[55].mxu0  ;;  %v4207_v23 = vld [vmem:[#allocation5 + $0x100] sm:$0xff] }
 0x9dd   :  { %v12179_v16 = vpack.c.bf16 %v4210_v18, %v4207_v23  ;;  %v12221_v23 = vpack.c.bf16 %v4230_v30, %v4227_v57  ;;  %v4236_v18 = vld [vmem:[#allocation5 + $0x548] sm:$0xff] }
 0x9de   :  { %4104 = vrot.lane.b32.xlu0 %v4084_v19, %s13273_s14 }
 0x9df   :  { %v3928_v20 = vpop.f32.mrb[60].mxu1  ;;  %12180 = vmatpush1.bf16.msra.mxu1 %v12179_v16  ;;  %v12225_v16 = vpack.c.bf16 %v4236_v18, %v4233_v44 }
 0x9e0   :  { %v4083_v8 = vadd.f32 %v3928_v20, %v14174_v60  ;;  %v11339_v32 = vpop.f32.mrb[61].mxu1  ;;  %v4213_v60 = vld [vmem:[#allocation5 + $0x1f0] sm:$0xff]  ;;  %12182 = vmatprep.subr.bf16.mxu1 %v12181_v45  ;;  %v4240_v45 = vld [vmem:[#allocation5 + $0x628] sm:$0xff] }
 0x9e1   :  { %v12183_v14 = vpack.c.bf16 %v4216_v34, %v4213_v60  ;;  %v4237_v60 = vld [vmem:[#allocation5 + $0x5b0] sm:$0xff]  ;;  %v4239_v34 = vld [vmem:[#allocation5 + $0x5c0] sm:$0xff] }
 0x9e2   :  { %4098 = vrot.lane.b32.xlu1 %v4083_v8, %s13274_s3  ;;  %v4218_v8 = vld [vmem:[#allocation5 + $0x278] sm:$0xff] }
 0x9e3   :  { %12184 = vmatpush1.bf16.msra.mxu1 %v12183_v14  ;;  %v12213_v32 = vpack.c.bf16 %v4218_v8, %v4215_v25  ;;  %v12199_v14 = vpack.c.bf16 %v4240_v45, %v4237_v60 }
 0x9e4   :  { %12186 = vmatprep.subr.bf16.mxu1 %v12185_v6  ;;  %v4246_v6 = vld [vmem:[#allocation5 + $0x718] sm:$0xff] }
 0x9e7   :  { %v4074_v47 = vpop.f32.mrb[62].mxu1  ;;  %12188 = vmatpush1.bf16.msra.mxu1 %v12187_v39 }
 0x9e8   :  { %v4085_v28 = vadd.f32 %v4074_v47, %v14179_v37  ;;  %v11361_v35 = vpop.f32.mrb[63].mxu1  ;;  %12190 = vmatprep.subr.bf16.mxu1 %v12189_v38  ;;  %v12193_v37 = vpack.c.bf16 %v4235_v54, %v4232_v2  ;;  %v4242_v47 = vld [vmem:[#allocation5 + $0x638] sm:$0xff] }
 0x9e9   :  { %v12229_v22 = vpack.c.bf16 %v4242_v47, %v4239_v34  ;;  %v4243_v35 = vld [vmem:[#allocation5 + $0x6a0] sm:$0xff]  ;;  %v82_v38 = vld [vmem:[#allocation8 + $0x28] sm:$0xff] }
 0x9ea   :  { %4106 = vrot.lane.b32.xlu1 %v4085_v28, %s13273_s14  ;;  %v12201_v28 = vpack.c.bf16 %v4247_v61, %v4244_v9  ;;  %v12203_v39 = vpack.c.bf16 %v4246_v6, %v4243_v35  ;;  %4441 = vrot.lane.b32.xlu0 %v82_v38, %s13273_s14 }
 0x9eb   :  { %12192 = vmatpush1.bf16.msra.mxu1 %v12191_v1  ;;  %v10377_v1 = vld [vmem:[#allocation7 + $0xa] ss:$0 sm:$0xff] }
 0x9ec   :  { %12194 = vmatprep.subr.bf16.mxu1 %v12193_v37 }
 0x9ee   :  { %4439 = vrot.lane.b32.xlu1 %v81_v10, %s13273_s14 }
 0x9ef   :  { %12196 = vmatpush1.bf16.msra.mxu1 %v12195_v4 }
 0x9f2   :  { %4443 = vrot.lane.b32.xlu1 %v83_v36, %s13273_s14 }
 0x9f6   :  { %4453 = vrot.lane.b32.xlu1 %v82_v38, %s13274_s3 }
 0x9ff   :  { %v4089_v56 = vpop.permute.xlu0 %4088 }
 0xa00   :  { %v4110_v55 = vsel %vm177_vm0, %v4078_v7, %v4089_v56  ;;  %v4254_v7 = vrot.slane %v4249_v48, %v14008_v46 }
 0xa1f   :  { %v4091_v19 = vpop.permute.xlu1 %4090 }
 0xa20   :  { %v4111_v20 = vsel %vm177_vm0, %v4079_v43, %v4091_v19 }
 0xa34   :  { %v4097_v42 = vpop.permute.xlu0 %4096 }
 0xa35   :  { %v4112_v58 = vsel %vm2267_vm2, %v4110_v55, %v4097_v42 }
 0xa50   :  { %v4105_v62 = vpop.permute.xlu0 %4104 }
 0xa51   :  { %v14337_v0 = vsel %vm2276_vm3, %v4112_v58, %v4105_v62 }
 0xa52   :  { %11394 = vmatprep.mubr.f32.mxu0 %v14337_v0 }
 0xa54   :  { %v4099_v13 = vpop.permute.xlu1 %4098 }
 0xa55   :  { %v4113_v26 = vsel %vm2267_vm2, %v4111_v20, %v4099_v13 }
 0xa5c   :  { %v4107_v24 = vpop.permute.xlu1 %4106  ;;  %v14400_v25 = vpop.permute.xlu0 %4441 }
 0xa5d   :  { %v14345_v3 = vsel %vm2276_vm3, %v4113_v26, %v4107_v24  ;;  %15668 = vst [vmem:[#allocation23_spill] sm:$0xff] %v14400_v25 }
 0xa5e   :  { %11395 = vmatmul.mubr.f32.vlgmr.msra.gmra.mrb[56].mxu0 %v14345_v3 }
 0xa5f   :  { %12208 = vmatpush3.bf16.msra.mxu0 %v14327_v15  ;;  %v4238_v15 = vld [vmem:[#allocation5 + $0x5b8] sm:$0xff] }
 0xa60   :  { %12210 = vmatprep.subr.bf16.mxu0 %v12209_v27  ;;  %v12197_v50 = vpack.c.bf16 %v4241_v63, %v4238_v15  ;;  %v14386_v24 = vpop.permute.xlu1 %4439 }
 0xa61   :  { %15666 = vst [vmem:[#allocation22_spill] sm:$0xff] %v14386_v24 }
 0xa62   :  { %12198 = vmatprep.subr.bf16.mxu1 %v12197_v50 }
 0xa63   :  { %12212 = vmatpush3.bf16.msra.mxu0 %v12209_v27  ;;  %12200 = vmatpush1.bf16.msra.mxu1 %v12199_v14 }
 0xa64   :  { %12214 = vmatprep.subr.bf16.mxu0 %v12213_v32  ;;  %12202 = vmatprep.subr.bf16.mxu1 %v12201_v28 }
 0xa67   :  { %12216 = vmatpush3.bf16.msra.mxu0 %v12213_v32  ;;  %12204 = vmatpush1.bf16.msra.mxu1 %v12203_v39 }
 0xa68   :  { %12218 = vmatprep.subr.bf16.mxu0 %v12217_v21 }
 0xa6b   :  { %12220 = vmatpush3.bf16.msra.mxu0 %v12217_v21 }
 0xa6c   :  { %12222 = vmatprep.subr.bf16.mxu0 %v12221_v23 }
 0xa6f   :  { %12224 = vmatpush3.bf16.msra.mxu0 %v12221_v23 }
 0xa70   :  { %12226 = vmatprep.subr.bf16.mxu0 %v12225_v16 }
 0xa73   :  { %12228 = vmatpush3.bf16.msra.mxu0 %v12225_v16 }
 0xa74   :  { %12230 = vmatprep.subr.bf16.mxu0 %v12229_v22 }
 0xa77   :  { %12232 = vmatpush3.bf16.msra.mxu0 %v12229_v22 }
 0xa78   :  { %12234 = vmatprep.subr.bf16.mxu0 %v12233_v49 }
 0xa7b   :  { %12236 = vmatpush3.bf16.msra.mxu0 %v12233_v49 }
 0xb31   :  { %v11396_v2 = vpop.f32.mrb[56].mxu0 }
 0xb32   :  { %v4194_v54 = vadd.f32 %v11396_v2, %v10377_v1  ;;  %v4188_v29 = vpop.f32.mrb[57].mxu0 }
 0xb33   :  { %v4189_v37 = vadd.f32 %v10377_v1, %v4188_v29 }
 0xb34   :  { %v4198_v12 = vmax.f32 %v4194_v54, 0.0 }
 0xb35   :  { %v4197_v4 = vmax.f32 %v4189_v37, 0.0 }
 0xb36   :  { %v4200_v42 = vadd.f32 %v4198_v12, %v14345_v3  ;;  %v14398_v3 = vpop.permute.xlu1 %4443 }
 0xb37   :  { %v4199_v56 = vadd.f32 %v4197_v4, %v14337_v0  ;;  %v4258_v0 = vrot.slane %v4249_v48, %v14011_v51  ;;  %15667 = vst [vmem:[#allocation21_spill] sm:$0xff] %v14398_v3 }
 0xb39   :  { %4331 = vmatmul.mubr.f32.vlgmr.msra.gmra.mrb[64].mxu1 %v4199_v56  ;;  %11429 = vmatprep.mubr.f32.mxu0 %v4199_v56 }
 0xb3a   :  { %11430 = vmatmul.mubr.f32.vlgmr.msra.gmra.mrb[58].mxu0 %v4200_v42  ;;  %4336 = vmatprep.mubr.f32.mxu1 %v15608_v31  ;;  %v14402_v8 = vpop.permute.xlu1 %4453 }
 0xb3b   :  { %15669 = vst [vmem:[#allocation24_spill] sm:$0xff] %v14402_v8 }
 0xb3d   :  { %4337 = vmatmul.mubr.f32.gmra.mrb[66].mxu1 %v4200_v42 }
 0xb3e   :  { %11434 = vmatprep.mubr.msk.f32.mxu1 %vm177_vm0, %v81_v10 }
 0xc0c   :  { %v4332_v55 = vpop.f32.mrb[64].mxu1 }
 0xc0d   :  { %v4333_v58 = vadd.f32 %v4332_v55, %v4254_v7  ;;  %v4334_v62 = vpop.f32.mrb[65].mxu1  ;;  %v14358_v19 = vpop.f32.mrb[58].mxu0 }
 0xc0e   :  { %15664 = vst [vmem:[#allocation20_spill] sm:$0xff] %v14358_v19  ;;  %v14360_v13 = vpop.f32.mrb[59].mxu0  ;;  %v14392_v27 = vadd.f32 %v4334_v62, %v4258_v0 }
 0xc0f   :  { %15665 = vst [vmem:[#allocation19_spill] sm:$0xff] %v14360_v13  ;;  %4481 = vrot.lane.b32.xlu1 %v4333_v58, %s13274_s3  ;;  %4477 = vrot.lane.b32.xlu0 %v4333_v58, %s13273_s14 }
 0xc10   :  { %11432 = vmatprep.subr.msk.mxu1 %vm177_vm0, %v4333_v58  ;;  %v4338_v43 = vpop.f32.mrb[66].mxu1 }
 0xc11   :  { %v4339_v59 = vadd.f32 %v4338_v43, %v4254_v7  ;;  %11433 = vmatpush3.xpose.msk.msra.mxu1 %vm177_vm0, %v4333_v58  ;;  %v4340_v20 = vpop.f32.mrb[67].mxu1 }
 0xc12   :  { %v14367_v26 = vadd.f32 %v4340_v20, %v4258_v0 }
 0xc13   :  { %4457 = vrot.lane.b32.xlu1 %v84_v53, %s13274_s3  ;;  %4445 = vrot.lane.b32.xlu0 %v84_v53, %s13273_s14 }
 0xc14   :  { %11435 = vmatmul.mubr.msk.f32.vlgmr.msra.gmra.mrb[68].mxu1 %vm177_vm0, %v82_v38  ;;  %11440 = vmatprep.subr.msk.mxu1 %vm177_vm0, %v4339_v59 }
 0xc15   :  { %11441 = vmatpush3.xpose.msk.msra.mxu1 %vm177_vm0, %v4339_v59  ;;  %11437 = vmatprep.mubr.msk.f32.mxu1 %vm177_vm0, %v83_v36 }
 0xc17   :  { %4485 = vrot.lane.b32.xlu1 %v4333_v58, %s13275_s15  ;;  %4451 = vrot.lane.b32.xlu0 %v81_v10, %s13274_s3 }
 0xc18   :  { %11438 = vmatmul.mubr.msk.f32.gmra.mrb[70].mxu1 %vm177_vm0, %v84_v53 }
 0xc19   :  { %11442 = vmatprep.mubr.msk.f32.mxu1 %vm177_vm0, %v81_v10 }
 0xc1b   :  { %4465 = vrot.lane.b32.xlu1 %v82_v38, %s13275_s15  ;;  %4455 = vrot.lane.b32.xlu0 %v83_v36, %s13274_s3 }
 0xc1c   :  { %11443 = vmatmul.mubr.msk.f32.vlgmr.msra.gmra.mrb[72].mxu1 %vm177_vm0, %v82_v38 }
 0xc1d   :  { %11445 = vmatprep.mubr.msk.f32.mxu1 %vm177_vm0, %v83_v36 }
 0xc1f   :  { %4467 = vrot.lane.b32.xlu1 %v83_v36, %s13275_s15  ;;  %4479 = vrot.lane.b32.xlu0 %v4339_v59, %s13273_s14 }
 0xc20   :  { %11446 = vmatmul.mubr.msk.f32.gmra.mrb[74].mxu1 %vm177_vm0, %v84_v53 }
 0xc21   :  { %11450 = vmatprep.mubr.msk.f32.mxu1 %vm177_vm0, %v14386_v24 }
 0xc23   :  { %4487 = vrot.lane.b32.xlu1 %v4339_v59, %s13275_s15  ;;  %4463 = vrot.lane.b32.xlu0 %v81_v10, %s13275_s15 }
 0xc27   :  { %4491 = vrot.lane.b32.xlu1 %v14392_v27, %s13273_s14  ;;  %4483 = vrot.lane.b32.xlu0 %v4339_v59, %s13274_s3 }
 0xc2b   :  { %4469 = vrot.lane.b32.xlu0 %v84_v53, %s13275_s15 }
 0xc81   :  { %v4482_v32 = vpop.permute.xlu1 %4481  ;;  %v4478_v17 = vpop.permute.xlu0 %4477 }
 0xc82   :  { %11448 = vmatprep.subr.msk.mxu1 %vm177_vm0, %v4478_v17  ;;  %11464 = vmatprep.subr.msk.mxu0 %vm177_vm0, %v4482_v32 }
 0xc83   :  { %11449 = vmatpush3.xpose.msk.msra.mxu1 %vm177_vm0, %v4478_v17  ;;  %11465 = vmatpush3.xpose.msk.msra.mxu0 %vm177_vm0, %v4482_v32 }
 0xc85   :  { %v14408_v11 = vpop.permute.xlu1 %4457  ;;  %v14410_v21 = vpop.permute.xlu0 %4445 }
 0xc86   :  { %15670 = vst [vmem:[#allocation25_spill] sm:$0xff] %v14408_v11  ;;  %15671 = vst [vmem:[#allocation26_spill] sm:$0xff] %v14410_v21  ;;  %11451 = vmatmul.mubr.msk.f32.vlgmr.msra.gmra.mrb[76].mxu1 %vm177_vm0, %v14400_v25 }
 0xc87   :  { %11453 = vmatprep.mubr.msk.f32.mxu1 %vm177_vm0, %v14398_v3 }
 0xc89   :  { %v4486_v57 = vpop.permute.xlu1 %4485  ;;  %v14416_v30 = vpop.permute.xlu0 %4451 }
 0xc8a   :  { %15672 = vst [vmem:[#allocation27_spill] sm:$0xff] %v14416_v30  ;;  %11454 = vmatmul.mubr.msk.f32.gmra.mrb[78].mxu1 %vm177_vm0, %v14410_v21  ;;  %11466 = vmatprep.mubr.msk.f32.mxu0 %vm177_vm0, %v14416_v30 }
 0xc8b   :  { %11480 = vmatprep.subr.msk.mxu0 %vm177_vm0, %v4486_v57  ;;  %11467 = vmatmul.mubr.msk.f32.vlgmr.msra.gmra.mrb[60].mxu0 %vm177_vm0, %v14402_v8 }
 0xc8c   :  { %11481 = vmatpush3.xpose.msk.msra.mxu0 %vm177_vm0, %v4486_v57  ;;  %11458 = vmatprep.mubr.msk.f32.mxu1 %vm177_vm0, %v14386_v24 }
 0xc8d   :  { %11496 = vmatprep.subr.mxu0 %v14392_v27  ;;  %v14429_v23 = vpop.permute.xlu1 %4465  ;;  %v14431_v44 = vpop.permute.xlu0 %4455 }
 0xc8e   :  { %15673 = vst [vmem:[#allocation28_spill] sm:$0xff] %v14429_v23  ;;  %15674 = vst [vmem:[#allocation29_spill] sm:$0xff] %v14431_v44  ;;  %11469 = vmatprep.mubr.msk.f32.mxu0 %vm177_vm0, %v14431_v44 }
 0xc8f   :  { %11470 = vmatmul.mubr.msk.f32.gmra.mrb[62].mxu0 %vm177_vm0, %v14408_v11 }
 0xc91   :  { %v14437_v18 = vpop.permute.xlu1 %4467  ;;  %v4480_v16 = vpop.permute.xlu0 %4479 }
 0xc92   :  { %15675 = vst [vmem:[#allocation30_spill] sm:$0xff] %v14437_v18  ;;  %11456 = vmatprep.subr.msk.mxu1 %vm177_vm0, %v4480_v16 }
 0xc93   :  { %11457 = vmatpush3.xpose.msk.msra.mxu1 %vm177_vm0, %v4480_v16 }
 0xc95   :  { %v4488_v15 = vpop.permute.xlu1 %4487  ;;  %v14441_v63 = vpop.permute.xlu0 %4463 }
 0xc96   :  { %15676 = vst [vmem:[#allocation31_spill] sm:$0xff] %v14441_v63  ;;  %11459 = vmatmul.mubr.msk.f32.vlgmr.msra.gmra.mrb[80].mxu1 %vm177_vm0, %v14400_v25  ;;  %11482 = vmatprep.mubr.msk.f32.mxu0 %vm177_vm0, %v14441_v63 }
 0xc97   :  { %11461 = vmatprep.mubr.msk.f32.mxu1 %vm177_vm0, %v14398_v3  ;;  %11483 = vmatmul.mubr.msk.f32.vlgmr.msra.gmra.mrb[64].mxu0 %vm177_vm0, %v14429_v23 }
 0xc98   :  { %11497 = vmatpush3.msra.mxu0 %v14392_v27  ;;  %11485 = vmatprep.mubr.msk.f32.mxu0 %vm177_vm0, %v14437_v18 }
 0xc99   :  { %v14454_v50 = vpop.permute.xlu1 %4491  ;;  %v4484_v60 = vpop.permute.xlu0 %4483 }
 0xc9a   :  { %11462 = vmatmul.mubr.msk.f32.gmra.mrb[82].mxu1 %vm177_vm0, %v14410_v21  ;;  %11472 = vmatprep.subr.msk.mxu1 %vm177_vm0, %v4484_v60 }
 0xc9b   :  { %11512 = vmatprep.subr.mxu0 %v14454_v50  ;;  %11473 = vmatpush3.xpose.msk.msra.mxu1 %vm177_vm0, %v4484_v60 }
 0xc9c   :  { %11474 = vmatprep.mubr.msk.f32.mxu1 %vm177_vm0, %v14416_v30  ;;  %11488 = vmatprep.subr.msk.mxu1 %vm177_vm0, %v4488_v15 }
 0xc9d   :  { %v14464_v45 = vpop.permute.xlu0 %4469 }
 0xc9e   :  { %15677 = vst [vmem:[#allocation32_spill] sm:$0xff] %v14464_v45  ;;  %11475 = vmatmul.mubr.msk.f32.vlgmr.msra.gmra.mrb[84].mxu1 %vm177_vm0, %v14402_v8  ;;  %11486 = vmatmul.mubr.msk.f32.gmra.mrb[66].mxu0 %vm177_vm0, %v14464_v45 }
 0xc9f   :  { %11477 = vmatprep.mubr.msk.f32.mxu1 %vm177_vm0, %v14431_v44  ;;  %11489 = vmatpush3.xpose.msk.msra.mxu1 %vm177_vm0, %v4488_v15 }
 0xca0   :  { %11504 = vmatprep.subr.mxu1 %v14367_v26 }
 0xca2   :  { %11478 = vmatmul.mubr.msk.f32.gmra.mrb[86].mxu1 %vm177_vm0, %v14408_v11 }
 0xca3   :  { %11490 = vmatprep.mubr.msk.f32.mxu1 %vm177_vm0, %v14441_v63 }
 0xca6   :  { %11491 = vmatmul.mubr.msk.f32.vlgmr.msra.gmra.mrb[88].mxu1 %vm177_vm0, %v14429_v23 }
 0xca7   :  { %11505 = vmatpush3.msra.mxu1 %v14367_v26  ;;  %11493 = vmatprep.mubr.msk.f32.mxu1 %vm177_vm0, %v14437_v18 }
 0xcaa   :  { %11494 = vmatmul.mubr.msk.f32.gmra.mrb[90].mxu1 %vm177_vm0, %v14464_v45 }
 0xce7   :  { %v14485_v34 = vpop.f32.mrb[68].mxu1 }
 0xce8   :  { %v14487_v14 = vpop.f32.mrb[69].mxu1  ;;  %v5240_v47 = vsel %vm906_vm1, %v14485_v34, -inf }
 0xce9   :  { %5241 = vmax.xlane.f32.xlu1 %v5240_v47  ;;  %v5237_v22 = vsel %vm906_vm1, %v14487_v14, -inf }
 0xcea   :  { %5238 = vmax.xlane.f32.xlu0 %v5237_v22 }
 0xceb   :  { %v14493_v9 = vpop.f32.mrb[70].mxu1 }
 0xcec   :  { %v5246_v61 = vsel %vm906_vm1, %v14493_v9, -inf  ;;  %v14497_v28 = vpop.f32.mrb[71].mxu1 }
 0xced   :  { %v5243_v6 = vsel %vm906_vm1, %v14497_v28, -inf }
 0xcee   :  { %5247 = vmax.xlane.f32.xlu0 %v5246_v61 }
 0xcef   :  { %v14499_v35 = vpop.f32.mrb[72].mxu1 }
 0xcf0   :  { %v5252_v40 = vsel %vm906_vm1, %v14499_v35, -inf  ;;  %v14505_v39 = vpop.f32.mrb[73].mxu1 }
 0xcf1   :  { %5253 = vmax.xlane.f32.xlu1 %v5252_v40  ;;  %v5249_v5 = vsel %vm906_vm1, %v14505_v39, -inf }
 0xcf2   :  { %5244 = vmax.xlane.f32.xlu0 %v5243_v6 }
 0xcf3   :  { %v14509_v49 = vpop.f32.mrb[74].mxu1 }
 0xcf4   :  { %v14511_v10 = vpop.f32.mrb[75].mxu1  ;;  %v5258_v38 = vsel %vm906_vm1, %v14509_v49, -inf }
 0xcf5   :  { %5250 = vmax.xlane.f32.xlu1 %v5249_v5  ;;  %v5255_v36 = vsel %vm906_vm1, %v14511_v10, -inf }
 0xcf9   :  { %5259 = vmax.xlane.f32.xlu1 %v5258_v38 }
 0xcfd   :  { %5256 = vmax.xlane.f32.xlu1 %v5255_v36 }
 0xd59   :  { %v14517_v1 = vpop.f32.mrb[76].mxu1 }
 0xd5a   :  { %v14519_v2 = vpop.f32.mrb[77].mxu1  ;;  %v5264_v54 = vsel %vm906_vm1, %v14517_v1, -inf }
 0xd5b   :  { %5265 = vmax.xlane.f32.xlu0 %v5264_v54  ;;  %v5261_v29 = vsel %vm906_vm1, %v14519_v2, -inf }
 0xd5c   :  { %5262 = vmax.xlane.f32.xlu1 %v5261_v29 }
 0xd5d   :  { %v14525_v37 = vpop.f32.mrb[78].mxu1 }
 0xd5e   :  { %v14527_v12 = vpop.f32.mrb[79].mxu1  ;;  %v14529_v4 = vpop.f32.mrb[60].mxu0  ;;  %v5270_v62 = vsel %vm906_vm1, %v14525_v37, -inf }
 0xd5f   :  { %v5288_v56 = vsel %vm906_vm1, %v14529_v4, -inf  ;;  %v5267_v42 = vsel %vm906_vm1, %v14527_v12, -inf  ;;  %v14535_v48 = vpop.f32.mrb[61].mxu0 }
 0xd60   :  { %5289 = vmax.xlane.f32.xlu0 %v5288_v56  ;;  %5268 = vmax.xlane.f32.xlu1 %v5267_v42  ;;  %v5285_v7 = vsel %vm906_vm1, %v14535_v48, -inf }
 0xd62   :  { %v14539_v55 = vpop.f32.mrb[62].mxu0 }
 0xd63   :  { %v14541_v58 = vpop.f32.mrb[63].mxu0  ;;  %v5294_v43 = vsel %vm906_vm1, %v14539_v55, -inf }
 0xd64   :  { %5286 = vmax.xlane.f32.xlu0 %v5285_v7  ;;  %v5291_v57 = vsel %vm906_vm1, %v14541_v58, -inf }
 0xd68   :  { %5271 = vmax.xlane.f32.xlu0 %v5270_v62 }
 0xd69   :  { %v14545_v0 = vpop.f32.mrb[80].mxu1 }
 0xd6a   :  { %v14549_v53 = vpop.f32.mrb[81].mxu1  ;;  %v5276_v59 = vsel %vm906_vm1, %v14545_v0, -inf  ;;  %v14553_v20 = vpop.f32.mrb[64].mxu0 }
 0xd6b   :  { %5277 = vmax.xlane.f32.xlu1 %v5276_v59  ;;  %v14555_v32 = vpop.f32.mrb[65].mxu0  ;;  %v5273_v15 = vsel %vm906_vm1, %v14549_v53, -inf  ;;  %v5312_v47 = vsel %vm906_vm1, %v14553_v20, -inf }
 0xd6c   :  { %5295 = vmax.xlane.f32.xlu0 %v5294_v43  ;;  %v5309_v5 = vsel %vm906_vm1, %v14555_v32, -inf }
 0xd6d   :  { %v14557_v17 = vpop.f32.mrb[82].mxu1 }
 0xd6e   :  { %v14561_v16 = vpop.f32.mrb[83].mxu1  ;;  %v5282_v56 = vsel %vm906_vm1, %v14557_v17, -inf }
 0xd6f   :  { %5274 = vmax.xlane.f32.xlu1 %v5273_v15  ;;  %v5279_v6 = vsel %vm906_vm1, %v14561_v16, -inf }
 0xd70   :  { %5292 = vmax.xlane.f32.xlu0 %v5291_v57 }
 0xd71   :  { %v14565_v60 = vpop.f32.mrb[84].mxu1  ;;  %v14569_v22 = vpop.f32.mrb[66].mxu0 }
 0xd72   :  { %v14571_v61 = vpop.f32.mrb[85].mxu1  ;;  %v14575_v40 = vpop.f32.mrb[67].mxu0  ;;  %v5318_v42 = vsel %vm906_vm1, %v14569_v22, -inf }
 0xd73   :  { %5280 = vmax.xlane.f32.xlu1 %v5279_v6  ;;  %v5315_v43 = vsel %vm906_vm1, %v14575_v40, -inf  ;;  %v5297_v31 = vsel %vm906_vm1, %v14571_v61, -inf }
 0xd74   :  { %5313 = vmax.xlane.f32.xlu0 %v5312_v47 }
 0xd75   :  { %v14579_v38 = vpop.f32.mrb[86].mxu1 }
 0xd76   :  { %v14581_v36 = vpop.f32.mrb[87].mxu1  ;;  %v5242_v57 = vpop.xlane.xlu1 %5241 }
 0xd77   :  { %v5239_v59 = vpop.xlane.xlu0 %5238  ;;  %v5334_v41 = vsub.f32 %v14485_v34, %v5242_v57 }
 0xd78   :  { %5310 = vmax.xlane.f32.xlu0 %v5309_v5  ;;  %v5333_v6 = vsub.f32 %v14487_v14, %v5239_v59  ;;  %v5303_v14 = vsel %vm906_vm1, %v14581_v36, -inf }
 0xd79   :  { %v14583_v54 = vpop.f32.mrb[88].mxu1 }
 0xd7a   :  { %v14585_v29 = vpop.f32.mrb[89].mxu1 }
 0xd7b   :  { %v5248_v15 = vpop.xlane.xlu0 %5247 }
 0xd7c   :  { %5283 = vmax.xlane.f32.xlu0 %v5282_v56  ;;  %v5300_v56 = vsel %vm906_vm1, %v14565_v60, -inf }
 0xd7d   :  { %v14591_v7 = vpop.f32.mrb[90].mxu1 }
 0xd7e   :  { %v14593_v62 = vpop.f32.mrb[91].mxu1  ;;  %v5254_v47 = vpop.xlane.xlu1 %5253 }
 0xd7f   :  { %v5245_v5 = vpop.xlane.xlu0 %5244  ;;  %v5338_v19 = vsub.f32 %v14499_v35, %v5254_v47 }
 0xd80   :  { %5319 = vmax.xlane.f32.xlu0 %v5318_v42  ;;  %v5365_v42 = vmul.f32 1.442695, %v5333_v6  ;;  %v5367_v6 = vmul.f32 1.442695, %v5334_v41 }
 0xd82   :  { %v5251_v52 = vpop.xlane.xlu1 %5250  ;;  %12943 = vpow2.f32 %v5365_v42 }
 0xd84   :  { %5316 = vmax.xlane.f32.xlu0 %v5315_v43  ;;  %4493 = vrot.lane.b32.xlu1 %v14367_v26, %s13273_s14  ;;  %v5335_v43 = vsub.f32 %v14497_v28, %v5245_v5  ;;  %v5337_v28 = vsub.f32 %v14505_v39, %v5251_v52  ;;  %v5336_v5 = vsub.f32 %v14493_v9, %v5248_v15  ;;  %v5306_v52 = vsel %vm906_vm1, %v14579_v38, -inf }
 0xd85   :  { %v5324_v15 = vsel %vm906_vm1, %v14583_v54, -inf }
 0xd86   :  { %v5369_v13 = vmul.f32 1.442695, %v5335_v43  ;;  %v5260_v59 = vpop.xlane.xlu1 %5259  ;;  %v5373_v35 = vmul.f32 1.442695, %v5337_v28  ;;  %v5371_v57 = vmul.f32 1.442695, %v5336_v5 }
 0xd87   :  { %v5340_v34 = vsub.f32 %v14509_v49, %v5260_v59 }
 0xd88   :  { %12945 = vpow2.f32 %v5369_v13 }
 0xd89   :  { %v5379_v41 = vmul.f32 1.442695, %v5340_v34 }
 0xd8a   :  { %v5257_v47 = vpop.xlane.xlu1 %5256 }
 0xd8b   :  { %v5339_v9 = vsub.f32 %v14511_v10, %v5257_v47  ;;  %v5330_v10 = vsel %vm906_vm1, %v14591_v7, -inf }
 0xd8c   :  { %v14618_v13 = vpop.eup %12943 }
 0xd8d   :  { %v5429_v39 = vsel %vm906_vm1, %v14618_v13, 0.0  ;;  %v5377_v42 = vmul.f32 1.442695, %v5339_v9 }
 0xd92   :  { %v14625_v49 = vpop.eup %12945 }
 0xd93   :  { %v5435_v43 = vsel %vm906_vm1, %v14625_v49, 0.0 }
 0xd9a   :  { %4497 = vrot.lane.b32.xlu0 %v14392_v27, %s13274_s3 }
 0xda8   :  { %5301 = vmax.xlane.f32.xlu1 %v5300_v56  ;;  %v5375_v56 = vmul.f32 1.442695, %v5338_v19  ;;  %v5327_v19 = vsel %vm906_vm1, %v14593_v62, -inf }
 0xdaa   :  { %12947 = vpow2.f32 %v5375_v56 }
 0xdab   :  { %12949 = vpow2.f32 %v5367_v6 }
 0xdac   :  { %5298 = vmax.xlane.f32.xlu1 %v5297_v31  ;;  %v5321_v31 = vsel %vm906_vm1, %v14585_v29, -inf  ;;  %12951 = vpow2.f32 %v5373_v35 }
 0xdad   :  { %12953 = vpow2.f32 %v5371_v57 }
 0xdae   :  { %12955 = vpow2.f32 %v5379_v41 }
 0xdaf   :  { %12957 = vpow2.f32 %v5377_v42 }
 0xdb0   :  { %5304 = vmax.xlane.f32.xlu1 %v5303_v14 }
 0xdb4   :  { %5322 = vmax.xlane.f32.xlu1 %v5321_v31  ;;  %v14631_v14 = vpop.eup %12947 }
 0xdb5   :  { %v14635_v59 = vpop.eup %12949  ;;  %v5444_v56 = vsel %vm906_vm1, %v14631_v14, 0.0 }
 0xdb6   :  { %v14639_v28 = vpop.eup %12951  ;;  %v5432_v6 = vsel %vm906_vm1, %v14635_v59, 0.0 }
 0xdb7   :  { %v14643_v5 = vpop.eup %12953  ;;  %v5441_v31 = vsel %vm906_vm1, %v14639_v28, 0.0 }
 0xdb8   :  { %5328 = vmax.xlane.f32.xlu1 %v5327_v19  ;;  %v14647_v35 = vpop.eup %12955  ;;  %v5438_v34 = vsel %vm906_vm1, %v14643_v5, 0.0 }
 0xdb9   :  { %5307 = vmax.xlane.f32.xlu0 %v5306_v52  ;;  %v5450_v57 = vsel %vm906_vm1, %v14647_v35, 0.0  ;;  %v14653_v47 = vpop.eup %12957 }
 0xdba   :  { %v5447_v19 = vsel %vm906_vm1, %v14653_v47, 0.0 }
 0xdbc   :  { %5430 = vadd.xlane.f32.xlu1 %v5429_v39 }
 0xdbd   :  { %5325 = vmax.xlane.f32.xlu0 %v5324_v15 }
 0xdc0   :  { %5436 = vadd.xlane.f32.xlu1 %v5435_v43 }
 0xdc1   :  { %5331 = vmax.xlane.f32.xlu0 %v5330_v10 }
 0xdc4   :  { %5445 = vadd.xlane.f32.xlu1 %v5444_v56 }
 0xdc5   :  { %5433 = vadd.xlane.f32.xlu0 %v5432_v6 }
 0xdc8   :  { %5442 = vadd.xlane.f32.xlu1 %v5441_v31 }
 0xdc9   :  { %5439 = vadd.xlane.f32.xlu0 %v5438_v34 }
 0xdcc   :  { %5451 = vadd.xlane.f32.xlu1 %v5450_v57 }
 0xdd0   :  { %5448 = vadd.xlane.f32.xlu1 %v5447_v19 }
 0xde8   :  { %v5266_v52 = vpop.xlane.xlu0 %5265 }
 0xde9   :  { %v5342_v41 = vsub.f32 %v14517_v1, %v5266_v52  ;;  %v5263_v9 = vpop.xlane.xlu1 %5262 }
 0xdea   :  { %v5341_v39 = vsub.f32 %v14519_v2, %v5263_v9 }
 0xdeb   :  { %v5383_v15 = vmul.f32 1.442695, %v5342_v41 }
 0xdec   :  { %v5381_v42 = vmul.f32 1.442695, %v5341_v39 }
 0xded   :  { %12959 = vpow2.f32 %v5383_v15  ;;  %v5290_v43 = vpop.xlane.xlu0 %5289  ;;  %v5269_v10 = vpop.xlane.xlu1 %5268 }
 0xdee   :  { %12961 = vpow2.f32 %v5381_v42  ;;  %v5350_v56 = vsub.f32 %v14529_v4, %v5290_v43  ;;  %v5343_v6 = vsub.f32 %v14527_v12, %v5269_v10 }
 0xdf0   :  { %v5399_v31 = vmul.f32 1.442695, %v5350_v56  ;;  %v5385_v34 = vmul.f32 1.442695, %v5343_v6 }
 0xdf1   :  { %v5287_v57 = vpop.xlane.xlu0 %5286 }
 0xdf2   :  { %12963 = vpow2.f32 %v5399_v31  ;;  %v5349_v19 = vsub.f32 %v14535_v48, %v5287_v57 }
 0xdf3   :  { %12965 = vpow2.f32 %v5385_v34 }
 0xdf4   :  { %v5397_v1 = vmul.f32 1.442695, %v5349_v19 }
 0xdf5   :  { %v5272_v52 = vpop.xlane.xlu0 %5271 }
 0xdf6   :  { %12967 = vpow2.f32 %v5397_v1  ;;  %v5344_v2 = vsub.f32 %v14525_v37, %v5272_v52 }
 0xdf7   :  { %v14663_v41 = vpop.eup %12959 }
 0xdf8   :  { %v14665_v9 = vpop.eup %12961  ;;  %v5387_v39 = vmul.f32 1.442695, %v5344_v2  ;;  %v5278_v4 = vpop.xlane.xlu1 %5277  ;;  %v5456_v12 = vsel %vm906_vm1, %v14663_v41, 0.0 }
 0xdf9   :  { %v5346_v15 = vsub.f32 %v14545_v0, %v5278_v4  ;;  %v5296_v42 = vpop.xlane.xlu0 %5295  ;;  %5457 = vadd.xlane.f32.xlu0 %v5456_v12  ;;  %v5453_v48 = vsel %vm906_vm1, %v14665_v9, 0.0 }
 0xdfa   :  { %12969 = vpow2.f32 %v5387_v39  ;;  %v5352_v43 = vsub.f32 %v14539_v55, %v5296_v42  ;;  %5454 = vadd.xlane.f32.xlu1 %v5453_v48 }
 0xdfb   :  { %v5391_v37 = vmul.f32 1.442695, %v5346_v15 }
 0xdfc   :  { %v14673_v10 = vpop.eup %12963  ;;  %v5403_v56 = vmul.f32 1.442695, %v5352_v43  ;;  %v5275_v6 = vpop.xlane.xlu1 %5274 }
 0xdfd   :  { %v14675_v31 = vpop.eup %12965  ;;  %12971 = vpow2.f32 %v5391_v37  ;;  %v5345_v34 = vsub.f32 %v14549_v53, %v5275_v6  ;;  %v5293_v0 = vpop.xlane.xlu0 %5292  ;;  %v5480_v57 = vsel %vm906_vm1, %v14673_v10, 0.0 }
 0xdfe   :  { %12973 = vpow2.f32 %v5403_v56  ;;  %v5351_v19 = vsub.f32 %v14541_v58, %v5293_v0  ;;  %5481 = vadd.xlane.f32.xlu0 %v5480_v57  ;;  %v5459_v55 = vsel %vm906_vm1, %v14675_v31, 0.0 }
 0xdff   :  { %v5389_v1 = vmul.f32 1.442695, %v5345_v34  ;;  %5460 = vadd.xlane.f32.xlu1 %v5459_v55 }
 0xe00   :  { %v14683_v52 = vpop.eup %12967  ;;  %v5401_v2 = vmul.f32 1.442695, %v5351_v19  ;;  %v5281_v39 = vpop.xlane.xlu1 %5280 }
 0xe01   :  { %12975 = vpow2.f32 %v5389_v1  ;;  %v5347_v53 = vsub.f32 %v14561_v16, %v5281_v39  ;;  %v5314_v4 = vpop.xlane.xlu0 %5313  ;;  %v5477_v12 = vsel %vm906_vm1, %v14683_v52, 0.0 }
 0xe02   :  { %12977 = vpow2.f32 %v5401_v2  ;;  %v5358_v58 = vsub.f32 %v14553_v20, %v5314_v4  ;;  %5478 = vadd.xlane.f32.xlu0 %v5477_v12 }
 0xe03   :  { %v5393_v15 = vmul.f32 1.442695, %v5347_v53 }
 0xe04   :  { %v14689_v42 = vpop.eup %12969  ;;  %v5415_v48 = vmul.f32 1.442695, %v5358_v58  ;;  %v14691_v43 = vpop.permute.xlu1 %4493 }
 0xe05   :  { %12979 = vpow2.f32 %v5393_v15  ;;  %v5311_v37 = vpop.xlane.xlu0 %5310  ;;  %11520 = vmatprep.subr.mxu1 %v14691_v43  ;;  %v5462_v16 = vsel %vm906_vm1, %v14689_v42, 0.0 }
 0xe06   :  { %12981 = vpow2.f32 %v5415_v48  ;;  %v5357_v56 = vsub.f32 %v14555_v32, %v5311_v37  ;;  %5463 = vadd.xlane.f32.xlu0 %v5462_v16 }
 0xe07   :  { %v14697_v6 = vpop.eup %12971 }
 0xe08   :  { %v14699_v20 = vpop.eup %12973  ;;  %v5413_v34 = vmul.f32 1.442695, %v5357_v56  ;;  %v5468_v0 = vsel %vm906_vm1, %v14697_v6, 0.0 }
 0xe09   :  { %v5284_v57 = vpop.xlane.xlu0 %5283  ;;  %5469 = vadd.xlane.f32.xlu1 %v5468_v0  ;;  %v5486_v19 = vsel %vm906_vm1, %v14699_v20, 0.0 }
 0xe0a   :  { %12983 = vpow2.f32 %v5413_v34  ;;  %v5348_v55 = vsub.f32 %v14557_v17, %v5284_v57  ;;  %5487 = vadd.xlane.f32.xlu0 %v5486_v19 }
 0xe0b   :  { %v14706_v1 = vpop.eup %12975 }
 0xe0c   :  { %v14708_v32 = vpop.eup %12977  ;;  %v5395_v2 = vmul.f32 1.442695, %v5348_v55  ;;  %v5465_v39 = vsel %vm906_vm1, %v14706_v1, 0.0 }
 0xe0d   :  { %v5320_v53 = vpop.xlane.xlu0 %5319  ;;  %5466 = vadd.xlane.f32.xlu1 %v5465_v39  ;;  %v5483_v4 = vsel %vm906_vm1, %v14708_v32, 0.0 }
 0xe0e   :  { %12985 = vpow2.f32 %v5395_v2  ;;  %v5360_v12 = vsub.f32 %v14569_v22, %v5320_v53  ;;  %5484 = vadd.xlane.f32.xlu0 %v5483_v4 }
 0xe0f   :  { %v14715_v58 = vpop.eup %12979 }
 0xe10   :  { %v14717_v17 = vpop.eup %12981  ;;  %v5419_v15 = vmul.f32 1.442695, %v5360_v12  ;;  %v5471_v48 = vsel %vm906_vm1, %v14715_v58, 0.0 }
 0xe11   :  { %v5317_v37 = vpop.xlane.xlu0 %5316  ;;  %5472 = vadd.xlane.f32.xlu1 %v5471_v48  ;;  %v5504_v16 = vsel %vm906_vm1, %v14717_v17, 0.0 }
 0xe12   :  { %12987 = vpow2.f32 %v5419_v15  ;;  %v5359_v56 = vsub.f32 %v14575_v40, %v5317_v37  ;;  %5505 = vadd.xlane.f32.xlu0 %v5504_v16 }
 0xe14   :  { %v14724_v34 = vpop.eup %12983  ;;  %v5417_v22 = vmul.f32 1.442695, %v5359_v56 }
 0xe15   :  { %v5501_v0 = vsel %vm906_vm1, %v14724_v34, 0.0 }
 0xe16   :  { %12989 = vpow2.f32 %v5417_v22  ;;  %5502 = vadd.xlane.f32.xlu0 %v5501_v0 }
 0xe18   :  { %v14728_v57 = vpop.eup %12985 }
 0xe19   :  { %v5474_v19 = vsel %vm906_vm1, %v14728_v57, 0.0 }
 0xe1a   :  { %5475 = vadd.xlane.f32.xlu0 %v5474_v19  ;;  %v14743_v19 = vpop.permute.xlu0 %4497 }
 0xe1c   :  { %v14732_v55 = vpop.eup %12987 }
 0xe1d   :  { %v5510_v40 = vsel %vm906_vm1, %v14732_v55, 0.0 }
 0xe1e   :  { %5511 = vadd.xlane.f32.xlu0 %v5510_v40 }
 0xe20   :  { %v14736_v2 = vpop.eup %12989 }
 0xe21   :  { %v5507_v39 = vsel %vm906_vm1, %v14736_v2, 0.0 }
 0xe22   :  { %5508 = vadd.xlane.f32.xlu0 %v5507_v39 }
 0xe35   :  { %v5302_v53 = vpop.xlane.xlu1 %5301 }
 0xe36   :  { %v5354_v4 = vsub.f32 %v14565_v60, %v5302_v53 }
 0xe38   :  { %v5407_v12 = vmul.f32 1.442695, %v5354_v4 }
 0xe39   :  { %v5299_v15 = vpop.xlane.xlu1 %5298 }
 0xe3a   :  { %12991 = vpow2.f32 %v5407_v12  ;;  %v5353_v48 = vsub.f32 %v14571_v61, %v5299_v15 }
 0xe3c   :  { %v5405_v37 = vmul.f32 1.442695, %v5353_v48 }
 0xe3d   :  { %v5305_v16 = vpop.xlane.xlu1 %5304 }
 0xe3e   :  { %12993 = vpow2.f32 %v5405_v37  ;;  %v5355_v56 = vsub.f32 %v14581_v36, %v5305_v16 }
 0xe40   :  { %v5409_v22 = vmul.f32 1.442695, %v5355_v56 }
 0xe41   :  { %v5323_v0 = vpop.xlane.xlu1 %5322 }
 0xe42   :  { %12995 = vpow2.f32 %v5409_v22  ;;  %v5361_v36 = vsub.f32 %v14585_v29, %v5323_v0 }
 0xe44   :  { %v14745_v40 = vpop.eup %12991  ;;  %v5421_v22 = vmul.f32 1.442695, %v5361_v36 }
 0xe45   :  { %v14747_v39 = vpop.xlane.xlu1 %5328  ;;  %v5492_v60 = vsel %vm906_vm1, %v14745_v40, 0.0 }
 0xe46   :  { %v5308_v53 = vpop.xlane.xlu0 %5307  ;;  %5493 = vadd.xlane.f32.xlu1 %v5492_v60 }
 0xe47   :  { %v5356_v61 = vsub.f32 %v14579_v38, %v5308_v53 }
 0xe48   :  { %v14752_v4 = vpop.eup %12993 }
 0xe49   :  { %v5411_v12 = vmul.f32 1.442695, %v5356_v61  ;;  %v5431_v15 = vpop.xlane.xlu1 %5430  ;;  %v5489_v48 = vsel %vm906_vm1, %v14752_v4, 0.0 }
 0xe4a   :  { %v5326_v37 = vpop.xlane.xlu0 %5325  ;;  %5490 = vadd.xlane.f32.xlu1 %v5489_v48 }
 0xe4b   :  { %12997 = vpow2.f32 %v5411_v12  ;;  %v5362_v16 = vsub.f32 %v14583_v54, %v5326_v37 }
 0xe4c   :  { %v14758_v56 = vpop.eup %12995  ;;  %12999 = vrcp.f32 %v5431_v15 }
 0xe4d   :  { %v5423_v60 = vmul.f32 1.442695, %v5362_v16  ;;  %v5437_v38 = vpop.xlane.xlu1 %5436  ;;  %v5495_v53 = vsel %vm906_vm1, %v14758_v56, 0.0 }
 0xe4e   :  { %13001 = vrcp.f32 %v5437_v38  ;;  %v5332_v29 = vpop.xlane.xlu0 %5331  ;;  %5496 = vadd.xlane.f32.xlu1 %v5495_v53 }
 0xe4f   :  { %13003 = vpow2.f32 %v5423_v60  ;;  %v5364_v0 = vsub.f32 %v14591_v7, %v5332_v29 }
 0xe50   :  { %13005 = vpow2.f32 %v5421_v22 }
 0xe51   :  { %v5427_v61 = vmul.f32 1.442695, %v5364_v0  ;;  %v5446_v12 = vpop.xlane.xlu1 %5445 }
 0xe52   :  { %13007 = vrcp.f32 %v5446_v12  ;;  %v5434_v54 = vpop.xlane.xlu0 %5433 }
 0xe53   :  { %13009 = vrcp.f32 %v5434_v54 }
 0xe54   :  { %13011 = vpow2.f32 %v5427_v61 }
 0xe55   :  { %v14763_v48 = vpop.eup %12997  ;;  %v5443_v36 = vpop.xlane.xlu1 %5442 }
 0xe56   :  { %v13000_v37 = vpop.eup %12999  ;;  %13013 = vrcp.f32 %v5443_v36  ;;  %v5440_v16 = vpop.xlane.xlu0 %5439  ;;  %v5498_v33 = vsel %vm906_vm1, %v14763_v48, 0.0 }
 0xe57   :  { %v5557_v53 = vmul.f32 %v13000_v37, %v5431_v15  ;;  %13015 = vrcp.f32 %v5440_v16  ;;  %5499 = vadd.xlane.f32.xlu0 %v5498_v33 }
 0xe58   :  { %v13002_v7 = vpop.eup %13001 }
 0xe59   :  { %v14767_v22 = vpop.eup %13003  ;;  %v5589_v60 = vsub.f32 2.0, %v5557_v53  ;;  %v5452_v29 = vpop.xlane.xlu1 %5451  ;;  %v5559_v0 = vmul.f32 %v13002_v7, %v5437_v38 }
 0xe5a   :  { %13017 = vrcp.f32 %v5452_v29  ;;  %v5516_v61 = vsel %vm906_vm1, %v14767_v22, 0.0  ;;  %v14771_v51 = vpop.eup %13005 }
 0xe5b   :  { %v5621_v46 = vmul.f32 %v13000_v37, %v5589_v60  ;;  %5517 = vadd.xlane.f32.xlu0 %v5516_v61  ;;  %v5591_v23 = vsub.f32 2.0, %v5559_v0  ;;  %v5513_v53 = vsel %vm906_vm1, %v14771_v51, 0.0 }
 0xe5c   :  { %v13008_v18 = vpop.eup %13007 }
 0xe5d   :  { %v5562_v45 = vmul.f32 %v13008_v18, %v5446_v12  ;;  %v5653_v15 = vmul.f32 %v14618_v13, %v5621_v46  ;;  %v5449_v63 = vpop.xlane.xlu1 %5448  ;;  %v13010_v33 = vpop.eup %13009  ;;  %v5623_v60 = vmul.f32 %v13002_v7, %v5591_v23 }
 0xe5e   :  { %13019 = vrcp.f32 %v5449_v63  ;;  %v14776_v38 = vpop.eup %13011  ;;  %v5558_v44 = vmul.f32 %v13010_v33, %v5434_v54 }
 0xe5f   :  { %11498 = vmatprep.mubr.msk.f32.mxu0 %vm906_vm1, %v5653_v15  ;;  %5514 = vadd.xlane.f32.xlu0 %v5513_v53  ;;  %v5594_v37 = vsub.f32 2.0, %v5562_v45  ;;  %v5522_v61 = vsel %vm906_vm1, %v14776_v38, 0.0  ;;  %v5655_v25 = vmul.f32 %v14625_v49, %v5623_v60 }
 0xe60   :  { %v13014_v11 = vpop.eup %13013  ;;  %4499 = vrot.lane.b32.xlu1 %v14367_v26, %s13274_s3  ;;  %v5590_v46 = vsub.f32 2.0, %v5558_v44 }
 0xe61   :  { %v13016_v12 = vpop.eup %13015  ;;  %v5561_v13 = vmul.f32 %v13014_v11, %v5443_v36  ;;  %v5626_v3 = vmul.f32 %v13008_v18, %v5594_v37 }
 0xe62   :  { %v5560_v0 = vmul.f32 %v13016_v12, %v5440_v16  ;;  %v5622_v30 = vmul.f32 %v13010_v33, %v5590_v46 }
 0xe63   :  { %v5593_v8 = vsub.f32 2.0, %v5561_v13  ;;  %5523 = vadd.xlane.f32.xlu0 %v5522_v61  ;;  %v5658_v36 = vmul.f32 %v14631_v14, %v5626_v3 }
 0xe64   :  { %v13018_v54 = vpop.eup %13017  ;;  %v5592_v15 = vsub.f32 2.0, %v5560_v0  ;;  %v5654_v53 = vmul.f32 %v14635_v59, %v5622_v30 }
 0xe65   :  { %v5625_v45 = vmul.f32 %v13014_v11, %v5593_v8  ;;  %v5564_v21 = vmul.f32 %v13018_v54, %v5452_v29 }
 0xe66   :  { %v5624_v24 = vmul.f32 %v13016_v12, %v5592_v15  ;;  %11499 = vmatmul.mubr.msk.f32.vlgmr.msra.gmra.mrb[68].mxu0 %vm906_vm1, %v5654_v53 }
 0xe67   :  { %v5657_v23 = vmul.f32 %v14639_v28, %v5625_v45  ;;  %v5596_v16 = vsub.f32 2.0, %v5564_v21  ;;  %11513 = vmatpush3.msra.mxu0 %v14454_v50  ;;  %11501 = vmatprep.mubr.msk.f32.mxu0 %vm906_vm1, %v5655_v25  ;;  %v5363_v21 = vsub.f32 %v14593_v62, %v14747_v39 }
 0xe68   :  { %v13020_v44 = vpop.eup %13019  ;;  %v5656_v18 = vmul.f32 %v14643_v5, %v5624_v24  ;;  %11528 = vmatprep.subr.mxu0 %v14743_v19 }
 0xe69   :  { %v5563_v30 = vmul.f32 %v13020_v44, %v5449_v63  ;;  %11506 = vmatprep.mubr.msk.f32.mxu1 %vm906_vm1, %v5657_v23  ;;  %v5628_v3 = vmul.f32 %v13018_v54, %v5596_v16  ;;  %v5425_v63 = vmul.f32 1.442695, %v5363_v21 }
 0xe6a   :  { %11507 = vmatmul.mubr.msk.f32.vlgmr.msra.gmra.mrb[92].mxu1 %vm906_vm1, %v5658_v36  ;;  %11502 = vmatmul.mubr.msk.f32.gmra.mrb[70].mxu0 %vm906_vm1, %v5656_v18 }
 0xe6b   :  { %v5595_v8 = vsub.f32 2.0, %v5563_v30  ;;  %11521 = vmatpush3.msra.mxu1 %v14691_v43  ;;  %v5660_v24 = vmul.f32 %v14647_v35, %v5628_v3  ;;  %13021 = vpow2.f32 %v5425_v63 }
 0xe6d   :  { %v5627_v11 = vmul.f32 %v13020_v44, %v5595_v8 }
 0xe6f   :  { %v5659_v25 = vmul.f32 %v14653_v47, %v5627_v11 }
 0xe71   :  { %11509 = vmatprep.mubr.msk.f32.mxu1 %vm906_vm1, %v5659_v25 }
 0xe72   :  { %11510 = vmatmul.mubr.msk.f32.gmra.mrb[94].mxu1 %vm906_vm1, %v5660_v24 }
 0xe75   :  { %v14804_v50 = vpop.eup %13021 }
 0xe76   :  { %v5519_v49 = vsel %vm906_vm1, %v14804_v50, 0.0 }
 0xe79   :  { %4503 = vrot.lane.b32.xlu0 %v14392_v27, %s13275_s15 }
 0xe84   :  { %5520 = vadd.xlane.f32.xlu1 %v5519_v49 }
 0xe86   :  { %v5458_v62 = vpop.xlane.xlu0 %5457 }
 0xe87   :  { %13023 = vrcp.f32 %v5458_v62  ;;  %v5455_v14 = vpop.xlane.xlu1 %5454 }
 0xe88   :  { %13025 = vrcp.f32 %v5455_v14 }
 0xe8b   :  { %v5482_v59 = vpop.xlane.xlu0 %5481 }
 0xe8c   :  { %v5461_v28 = vpop.xlane.xlu1 %5460 }
 0xe8d   :  { %13027 = vrcp.f32 %v5461_v28 }
 0xe8e   :  { %13029 = vrcp.f32 %v5482_v59 }
 0xe8f   :  { %v5479_v5 = vpop.xlane.xlu0 %5478 }
 0xe90   :  { %13031 = vrcp.f32 %v5479_v5 }
 0xe91   :  { %v13024_v35 = vpop.eup %13023 }
 0xe92   :  { %v13026_v47 = vpop.eup %13025  ;;  %v5566_v43 = vmul.f32 %v13024_v35, %v5458_v62 }
 0xe93   :  { %v5565_v27 = vmul.f32 %v13026_v47, %v5455_v14  ;;  %v5464_v39 = vpop.xlane.xlu0 %5463 }
 0xe94   :  { %v5598_v7 = vsub.f32 2.0, %v5566_v43  ;;  %13033 = vrcp.f32 %v5464_v39 }
 0xe95   :  { %v5597_v29 = vsub.f32 2.0, %v5565_v27  ;;  %4505 = vrot.lane.b32.xlu1 %v14367_v26, %s13275_s15 }
 0xe96   :  { %v5630_v33 = vmul.f32 %v13024_v35, %v5598_v7  ;;  %v5470_v37 = vpop.xlane.xlu1 %5469 }
 0xe97   :  { %v13028_v12 = vpop.eup %13027  ;;  %v5629_v46 = vmul.f32 %v13026_v47, %v5597_v29  ;;  %13035 = vrcp.f32 %v5470_v37  ;;  %v5488_v13 = vpop.xlane.xlu0 %5487 }
 0xe98   :  { %v5567_v60 = vmul.f32 %v13028_v12, %v5461_v28  ;;  %13037 = vrcp.f32 %v5488_v13  ;;  %v13030_v0 = vpop.eup %13029  ;;  %v5662_v15 = vmul.f32 %v14663_v41, %v5630_v33 }
 0xe99   :  { %v5661_v61 = vmul.f32 %v14665_v9, %v5629_v46  ;;  %v5574_v36 = vmul.f32 %v13030_v0, %v5482_v59 }
 0xe9a   :  { %v13032_v54 = vpop.eup %13031  ;;  %v5599_v53 = vsub.f32 2.0, %v5567_v60  ;;  %v5467_v45 = vpop.xlane.xlu1 %5466 }
 0xe9b   :  { %v5573_v23 = vmul.f32 %v13032_v54, %v5479_v5  ;;  %13039 = vrcp.f32 %v5467_v45  ;;  %v5485_v44 = vpop.xlane.xlu0 %5484  ;;  %11514 = vmatprep.mubr.msk.f32.mxu0 %vm906_vm1, %v5661_v61  ;;  %v5606_v11 = vsub.f32 2.0, %v5574_v36 }
 0xe9c   :  { %v5631_v26 = vmul.f32 %v13028_v12, %v5599_v53  ;;  %13041 = vrcp.f32 %v5485_v44  ;;  %11515 = vmatmul.mubr.msk.f32.vlgmr.msra.gmra.mrb[72].mxu0 %vm906_vm1, %v5662_v15 }
 0xe9d   :  { %11529 = vmatpush3.msra.mxu0 %v14743_v19  ;;  %v5605_v18 = vsub.f32 2.0, %v5573_v23  ;;  %v5638_v59 = vmul.f32 %v13030_v0, %v5606_v11 }
 0xe9e   :  { %v13034_v16 = vpop.eup %13033  ;;  %v5473_v9 = vpop.xlane.xlu1 %5472  ;;  %v5663_v30 = vmul.f32 %v14675_v31, %v5631_v26 }
 0xe9f   :  { %v5568_v41 = vmul.f32 %v13034_v16, %v5464_v39  ;;  %13043 = vrcp.f32 %v5473_v9  ;;  %v14816_v8 = vpop.xlane.xlu0 %5505  ;;  %v5637_v24 = vmul.f32 %v13032_v54, %v5605_v18  ;;  %v5670_v33 = vmul.f32 %v14673_v10, %v5638_v59 }
 0xea0   :  { %11517 = vmatprep.mubr.msk.f32.mxu0 %vm906_vm1, %v5663_v30 }
 0xea1   :  { %v13036_v3 = vpop.eup %13035  ;;  %v5600_v21 = vsub.f32 2.0, %v5568_v41  ;;  %v5669_v43 = vmul.f32 %v14683_v52, %v5637_v24 }
 0xea2   :  { %v13038_v25 = vpop.eup %13037  ;;  %v5570_v63 = vmul.f32 %v13036_v3, %v5470_v37 }
 0xea3   :  { %v5632_v49 = vmul.f32 %v13034_v16, %v5600_v21  ;;  %v5576_v62 = vmul.f32 %v13038_v25, %v5488_v13  ;;  %v5503_v19 = vpop.xlane.xlu0 %5502 }
 0xea4   :  { %13045 = vrcp.f32 %v5503_v19  ;;  %v5602_v28 = vsub.f32 2.0, %v5570_v63 }
 0xea5   :  { %v13040_v14 = vpop.eup %13039  ;;  %v5664_v31 = vmul.f32 %v14689_v42, %v5632_v49  ;;  %v5608_v35 = vsub.f32 2.0, %v5576_v62 }
 0xea6   :  { %v13042_v5 = vpop.eup %13041  ;;  %v5569_v47 = vmul.f32 %v13040_v14, %v5467_v45  ;;  %v5634_v37 = vmul.f32 %v13036_v3, %v5602_v28 }
 0xea7   :  { %v5575_v27 = vmul.f32 %v13042_v5, %v5485_v44  ;;  %v5476_v39 = vpop.xlane.xlu0 %5475  ;;  %11518 = vmatmul.mubr.msk.f32.gmra.mrb[74].mxu0 %vm906_vm1, %v5664_v31  ;;  %v5640_v46 = vmul.f32 %v13038_v25, %v5608_v35 }
 0xea8   :  { %v5601_v7 = vsub.f32 2.0, %v5569_v47  ;;  %13047 = vrcp.f32 %v5476_v39  ;;  %11530 = vmatprep.mubr.msk.f32.mxu0 %vm906_vm1, %v5669_v43  ;;  %v5666_v61 = vmul.f32 %v14697_v6, %v5634_v37 }
 0xea9   :  { %v13044_v29 = vpop.eup %13043  ;;  %v5607_v12 = vsub.f32 2.0, %v5575_v27  ;;  %v5672_v10 = vmul.f32 %v14699_v20, %v5640_v46 }
 0xeaa   :  { %v5633_v42 = vmul.f32 %v13040_v14, %v5601_v7  ;;  %v5571_v13 = vmul.f32 %v13044_v29, %v5473_v9 }
 0xeab   :  { %v5639_v60 = vmul.f32 %v13042_v5, %v5607_v12  ;;  %11531 = vmatmul.mubr.msk.f32.vlgmr.msra.gmra.mrb[76].mxu0 %vm906_vm1, %v5670_v33  ;;  %v5512_v9 = vpop.xlane.xlu0 %5511 }
 0xeac   :  { %v5603_v52 = vsub.f32 2.0, %v5571_v13  ;;  %v5665_v0 = vmul.f32 %v14706_v1, %v5633_v42 }
 0xead   :  { %v5671_v54 = vmul.f32 %v14708_v32, %v5639_v60 }
 0xeae   :  { %v13046_v15 = vpop.eup %13045  ;;  %v5635_v53 = vmul.f32 %v13044_v29, %v5603_v52  ;;  %11522 = vmatprep.mubr.msk.f32.mxu1 %vm906_vm1, %v5665_v0 }
 0xeaf   :  { %v5581_v45 = vmul.f32 %v13046_v15, %v5503_v19  ;;  %11523 = vmatmul.mubr.msk.f32.vlgmr.msra.gmra.mrb[96].mxu1 %vm906_vm1, %v5666_v61  ;;  %11533 = vmatprep.mubr.msk.f32.mxu0 %vm906_vm1, %v5671_v54  ;;  %v5509_v30 = vpop.xlane.xlu0 %5508 }
 0xeb0   :  { %11534 = vmatmul.mubr.msk.f32.gmra.mrb[78].mxu0 %vm906_vm1, %v5672_v10  ;;  %v5667_v23 = vmul.f32 %v14715_v58, %v5635_v53 }
 0xeb1   :  { %v5613_v1 = vsub.f32 2.0, %v5581_v45 }
 0xeb2   :  { %v13048_v44 = vpop.eup %13047  ;;  %11525 = vmatprep.mubr.msk.f32.mxu1 %vm906_vm1, %v5667_v23 }
 0xeb3   :  { %v5645_v6 = vmul.f32 %v13046_v15, %v5613_v1  ;;  %v5572_v32 = vmul.f32 %v13048_v44, %v5476_v39 }
 0xeb5   :  { %v5604_v26 = vsub.f32 2.0, %v5572_v32  ;;  %v5677_v36 = vmul.f32 %v14724_v34, %v5645_v6 }
 0xeb7   :  { %v5636_v16 = vmul.f32 %v13048_v44, %v5604_v26  ;;  %11546 = vmatprep.mubr.msk.f32.mxu0 %vm906_vm1, %v5677_v36 }
 0xeb9   :  { %v5668_v20 = vmul.f32 %v14728_v57, %v5636_v16 }
 0xebb   :  { %11526 = vmatmul.mubr.msk.f32.gmra.mrb[98].mxu1 %vm906_vm1, %v5668_v20 }
 0xed3   :  { %v5494_v18 = vpop.xlane.xlu1 %5493 }
 0xed4   :  { %13049 = vrcp.f32 %v5494_v18 }
 0xed7   :  { %v5491_v58 = vpop.xlane.xlu1 %5490 }
 0xed8   :  { %13051 = vrcp.f32 %v5491_v58 }
 0xed9   :  { %13053 = vrcp.f32 %v14816_v8 }
 0xedb   :  { %v5497_v41 = vpop.xlane.xlu1 %5496 }
 0xedc   :  { %13055 = vrcp.f32 %v5497_v41 }
 0xedd   :  { %13057 = vrcp.f32 %v5509_v30 }
 0xede   :  { %v13050_v3 = vpop.eup %13049  ;;  %13059 = vrcp.f32 %v5512_v9 }
 0xedf   :  { %v5578_v34 = vmul.f32 %v13050_v3, %v5494_v18  ;;  %v4500_v11 = vpop.permute.xlu1 %4499 }
 0xee0   :  { %11536 = vmatprep.subr.mxu1 %v4500_v11 }
 0xee1   :  { %11537 = vmatpush3.msra.mxu1 %v4500_v11  ;;  %v5610_v21 = vsub.f32 2.0, %v5578_v34 }
 0xee2   :  { %v13052_v57 = vpop.eup %13051 }
 0xee3   :  { %v5577_v25 = vmul.f32 %v13052_v57, %v5491_v58  ;;  %v13054_v63 = vpop.eup %13053  ;;  %v5642_v19 = vmul.f32 %v13050_v3, %v5610_v21 }
 0xee4   :  { %v5500_v24 = vpop.xlane.xlu0 %5499  ;;  %v5582_v5 = vmul.f32 %v13054_v63, %v14816_v8 }
 0xee5   :  { %v5609_v49 = vsub.f32 2.0, %v5577_v25  ;;  %13061 = vrcp.f32 %v5500_v24  ;;  %v5674_v39 = vmul.f32 %v14745_v40, %v5642_v19 }
 0xee6   :  { %v13056_v62 = vpop.eup %13055  ;;  %v5614_v33 = vsub.f32 2.0, %v5582_v5  ;;  %v15681_v5 = vld [vmem:[#allocation26_spill] sm:$0xff] }
 0xee7   :  { %v13058_v14 = vpop.eup %13057  ;;  %v5641_v59 = vmul.f32 %v13052_v57, %v5609_v49  ;;  %v5579_v28 = vmul.f32 %v13056_v62, %v5497_v41 }
 0xee8   :  { %v5518_v31 = vpop.xlane.xlu0 %5517  ;;  %v13060_v43 = vpop.eup %13059  ;;  %v5583_v27 = vmul.f32 %v13058_v14, %v5509_v30  ;;  %v5646_v13 = vmul.f32 %v13054_v63, %v5614_v33 }
 0xee9   :  { %v5611_v35 = vsub.f32 2.0, %v5579_v28  ;;  %v5673_v47 = vmul.f32 %v14752_v4, %v5641_v59  ;;  %v5584_v37 = vmul.f32 %v13060_v43, %v5512_v9  ;;  %v15680_v59 = vld [vmem:[#allocation22_spill] sm:$0xff] }
 0xeea   :  { %v5615_v46 = vsub.f32 2.0, %v5583_v27  ;;  %v5678_v54 = vmul.f32 %v14717_v17, %v5646_v13  ;;  %v4422_v13 = vld [vmem:[#allocation5 + $0x238] sm:$0xff] }
 0xeeb   :  { %v5643_v7 = vmul.f32 %v13056_v62, %v5611_v35  ;;  %11538 = vmatprep.mubr.msk.f32.mxu1 %vm906_vm1, %v5673_v47  ;;  %v5616_v60 = vsub.f32 2.0, %v5584_v37  ;;  %v15679_v62 = vld [vmem:[#allocation23_spill] sm:$0xff] }
 0xeec   :  { %v5515_v29 = vpop.xlane.xlu0 %5514  ;;  %11539 = vmatmul.mubr.msk.f32.vlgmr.msra.gmra.mrb[100].mxu1 %vm906_vm1, %v5674_v39  ;;  %v5647_v40 = vmul.f32 %v13058_v14, %v5615_v46  ;;  %v4418_v39 = vld [vmem:[#allocation5 + $0x58] sm:$0xff]  ;;  %v15683_v46 = vld [vmem:[#allocation24_spill] sm:$0xff] }
 0xeed   :  { %13063 = vrcp.f32 %v5515_v29  ;;  %v5675_v12 = vmul.f32 %v14758_v56, %v5643_v7  ;;  %v5648_v15 = vmul.f32 %v13060_v43, %v5616_v60  ;;  %v15682_v43 = vld [vmem:[#allocation21_spill] sm:$0xff] }
 0xeee   :  { %v5679_v56 = vmul.f32 %v14736_v2, %v5647_v40  ;;  %13065 = vrcp.f32 %v5518_v31  ;;  %v4419_v7 = vld [vmem:[#allocation5 + $0xd0] sm:$0xff]  ;;  %v15684_v40 = vld [vmem:[#allocation27_spill] sm:$0xff] }
 0xeef   :  { %v13062_v8 = vpop.eup %13061  ;;  %11541 = vmatprep.mubr.msk.f32.mxu1 %vm906_vm1, %v5675_v12  ;;  %v5680_v23 = vmul.f32 %v14732_v55, %v5648_v15  ;;  %v12237_v37 = vpack.c.bf16 %v4419_v7, %v4418_v39  ;;  %v4421_v12 = vld [vmem:[#allocation5 + $0x1c0] sm:$0xff]  ;;  %v4423_v60 = vld [vmem:[#allocation5 + $0x2b0] sm:$0xff] }
 0xef0   :  { %v5580_v4 = vmul.f32 %v13062_v8, %v5500_v24  ;;  %v5524_v42 = vpop.xlane.xlu0 %5523 }
 0xef1   :  { %13067 = vrcp.f32 %v5524_v42 }
 0xef2   :  { %v5612_v52 = vsub.f32 2.0, %v5580_v4 }
 0xef4   :  { %v5644_v0 = vmul.f32 %v13062_v8, %v5612_v52  ;;  %v4504_v61 = vpop.permute.xlu0 %4503 }
 0xef5   :  { %11544 = vmatprep.subr.mxu0 %v4504_v61 }
 0xef6   :  { %11545 = vmatpush3.msra.mxu0 %v4504_v61  ;;  %v5676_v53 = vmul.f32 %v14763_v48, %v5644_v0  ;;  %v12245_v61 = vpack.c.bf16 %v4423_v60, %v4422_v13 }
 0xef7   :  { %v13064_v10 = vpop.eup %13063  ;;  %11547 = vmatmul.mubr.msk.f32.vlgmr.msra.gmra.mrb[80].mxu0 %vm906_vm1, %v5678_v54  ;;  %12238 = vmatprep.subr.bf16.mxu0 %v12237_v37 }
 0xef8   :  { %v5585_v45 = vmul.f32 %v13064_v10, %v5515_v29  ;;  %11542 = vmatmul.mubr.msk.f32.gmra.mrb[102].mxu1 %vm906_vm1, %v5676_v53  ;;  %11549 = vmatprep.mubr.msk.f32.mxu0 %vm906_vm1, %v5679_v56  ;;  %v13066_v2 = vpop.eup %13065  ;;  %v4420_v29 = vld [vmem:[#allocation5 + $0x148] sm:$0xff] }
 0xef9   :  { %v5586_v48 = vmul.f32 %v13066_v2, %v5518_v31  ;;  %12240 = vmatpush3.bf16.msra.mxu0 %v12237_v37  ;;  %v4424_v56 = vld [vmem:[#allocation5 + $0x328] sm:$0xff] }
 0xefa   :  { %v5617_v1 = vsub.f32 2.0, %v5585_v45  ;;  %v15690_v37 = vld [vmem:[#allocation32_spill] sm:$0xff] }
 0xefb   :  { %11550 = vmatmul.mubr.msk.f32.gmra.mrb[82].mxu0 %vm906_vm1, %v5680_v23  ;;  %v5618_v6 = vsub.f32 2.0, %v5586_v48  ;;  %v13068_v36 = vpop.eup %13067  ;;  %v4427_v48 = vld [vmem:[#allocation5 + $0x490] sm:$0xff] }
 0xefc   :  { %v5649_v17 = vmul.f32 %v13064_v10, %v5617_v1  ;;  %v5588_v20 = vmul.f32 %v13068_v36, %v5524_v42  ;;  %v12241_v42 = vpack.c.bf16 %v4421_v12, %v4420_v29  ;;  %v4425_v10 = vld [vmem:[#allocation5 + $0x3a0] sm:$0xff] }
 0xefd   :  { %v5650_v26 = vmul.f32 %v13066_v2, %v5618_v6  ;;  %v12249_v1 = vpack.c.bf16 %v4425_v10, %v4424_v56  ;;  %v4426_v2 = vld [vmem:[#allocation5 + $0x418] sm:$0xff]  ;;  %v15686_v6 = vld [vmem:[#allocation29_spill] sm:$0xff]  ;;  %v6745_v56 = vld [vmem:[#allocation5 + $0x120] sm:$0xff] }
 0xefe   :  { %v5681_v44 = vmul.f32 %v14771_v51, %v5649_v17  ;;  %v5620_v51 = vsub.f32 2.0, %v5588_v20  ;;  %12242 = vmatprep.subr.bf16.mxu0 %v12241_v42  ;;  %v15685_v17 = vld [vmem:[#allocation25_spill] sm:$0xff]  ;;  %v6747_v10 = vld [vmem:[#allocation5 + $0x198] sm:$0xff] }
 0xeff   :  { %v5682_v55 = vmul.f32 %v14767_v22, %v5650_v26  ;;  %v15678_v22 = vmov 0.0   ;;  %12244 = vmatpush3.bf16.msra.mxu0 %v12241_v42  ;;  %v12253_v26 = vpack.c.bf16 %v4427_v48, %v4426_v2  ;;  %v6749_v2 = vld [vmem:[#allocation5 + $0x210] sm:$0xff] }
 0xf00   :  { %11554 = vmatprep.mubr.msk.f32.mxu1 %vm906_vm1, %v5681_v44  ;;  %v5652_v30 = vmul.f32 %v13068_v36, %v5620_v51  ;;  %12246 = vmatprep.subr.bf16.mxu0 %v12245_v61  ;;  %v4428_v36 = vld [vmem:[#allocation5 + $0x508] sm:$0xff]  ;;  %v4430_v51 = vld [vmem:[#allocation5 + $0x5f8] sm:$0xff] }
 0xf02   :  { %v5684_v34 = vmul.f32 %v14776_v38, %v5652_v30  ;;  %v4432_v30 = vld [vmem:[#allocation5 + $0x6e8] sm:$0xff] }
 0xf03   :  { %12248 = vmatpush3.bf16.msra.mxu0 %v12245_v61  ;;  %v6743_v61 = vld [vmem:[#allocation5 + $0xa8] sm:$0xff] }
 0xf04   :  { %12250 = vmatprep.subr.bf16.mxu0 %v12249_v1 }
 0xf07   :  { %12252 = vmatpush3.bf16.msra.mxu0 %v12249_v1  ;;  %v6744_v1 = vld [vmem:[#allocation5 + $0x118] sm:$0xff] }
 0xf08   :  { %12254 = vmatprep.subr.bf16.mxu0 %v12253_v26 }
 0xf0b   :  { %12256 = vmatpush3.bf16.msra.mxu0 %v12253_v26  ;;  %v6750_v26 = vld [vmem:[#allocation5 + $0x280] sm:$0xff] }
 0xf11   :  { %v5521_v32 = vpop.xlane.xlu1 %5520 }
 0xf12   :  { %13069 = vrcp.f32 %v5521_v32 }
 0xf15   :  { %v4506_v16 = vpop.permute.xlu1 %4505 }
 0xf16   :  { %11552 = vmatprep.subr.mxu1 %v4506_v16 }
 0xf17   :  { %11553 = vmatpush3.msra.mxu1 %v4506_v16  ;;  %v4429_v16 = vld [vmem:[#allocation5 + $0x580] sm:$0xff] }
 0xf18   :  { %11555 = vmatmul.mubr.msk.f32.vlgmr.msra.gmra.mrb[104].mxu1 %vm906_vm1, %v5682_v55  ;;  %v12257_v20 = vpack.c.bf16 %v4429_v16, %v4428_v36  ;;  %v6753_v36 = vld [vmem:[#allocation5 + $0x300] sm:$0xff]  ;;  %v6755_v16 = vld [vmem:[#allocation5 + $0x378] sm:$0xff] }
 0xf1a   :  { %12258 = vmatprep.subr.bf16.mxu0 %v12257_v20 }
 0xf1b   :  { %12260 = vmatpush3.bf16.msra.mxu0 %v12257_v20 }
 0xf1c   :  { %v13070_v18 = vpop.eup %13069 }
 0xf1d   :  { %v5587_v9 = vmul.f32 %v13070_v18, %v5521_v32 }
 0xf1f   :  { %v5619_v58 = vsub.f32 2.0, %v5587_v9  ;;  %v4431_v9 = vld [vmem:[#allocation5 + $0x670] sm:$0xff] }
 0xf21   :  { %v5651_v41 = vmul.f32 %v13070_v18, %v5619_v58  ;;  %v12261_v58 = vpack.c.bf16 %v4431_v9, %v4430_v51 }
 0xf23   :  { %v5683_v3 = vmul.f32 %v14804_v50, %v5651_v41  ;;  %v4433_v41 = vld [vmem:[#allocation5 + $0x760] sm:$0xff]  ;;  %12262 = vmatprep.subr.bf16.mxu0 %v12261_v58 }
 0xf24   :  { %12264 = vmatpush3.bf16.msra.mxu0 %v12261_v58  ;;  %v12281_v58 = vpack.c.bf16 %v6755_v16, %v6753_v36 }
 0xf25   :  { %11557 = vmatprep.mubr.msk.f32.mxu1 %vm906_vm1, %v5683_v3  ;;  %v12265_v3 = vpack.c.bf16 %v4433_v41, %v4432_v30  ;;  %v6752_v30 = vld [vmem:[#allocation5 + $0x2f8] sm:$0xff]  ;;  %v6754_v41 = vld [vmem:[#allocation5 + $0x370] sm:$0xff] }
 0xf26   :  { %11558 = vmatmul.mubr.msk.f32.gmra.mrb[106].mxu1 %vm906_vm1, %v5684_v34  ;;  %v15687_v34 = vmov 0.0|0.0  }
 0xf27   :  { %6848 = vmatprep.mubr.f32.mxu1 %v15678_v22  ;;  %12266 = vmatprep.subr.bf16.mxu0 %v12265_v3 }
 0xf28   :  { %12268 = vmatpush3.bf16.msra.mxu0 %v12265_v3  ;;  %v6757_v3 = vld [vmem:[#allocation5 + $0x3f0] sm:$0xff] }
 0xf29   :  { %12301 = vmatprep.subr.bf16.mxu0 %v15687_v34 }
 0xf39   :  { %v14864_v11 = vpop.f32.mrb[68].mxu0 }
 0xf3a   :  { %v14866_v57 = vpop.f32.mrb[69].mxu0 }
 0xf3d   :  { %v14868_v21 = vpop.f32.mrb[92].mxu1  ;;  %v14870_v25 = vpop.f32.mrb[70].mxu0 }
 0xf3e   :  { %v14872_v24 = vpop.f32.mrb[93].mxu1  ;;  %v14874_v63 = vpop.f32.mrb[71].mxu0 }
 0xf45   :  { %v14876_v50 = vpop.f32.mrb[94].mxu1 }
 0xf46   :  { %v14878_v38 = vpop.f32.mrb[95].mxu1 }
 0xf6f   :  { %v11516_v49 = vpop.f32.mrb[72].mxu0 }
 0xf70   :  { %v6470_v19 = vadd.f32 %v11516_v49, %v15679_v62  ;;  %v5957_v14 = vpop.f32.mrb[73].mxu0 }
 0xf71   :  { %v6469_v28 = vadd.f32 %v5957_v14, %v15680_v59  ;;  %v15688_v14 = vld [vmem:[#allocation28_spill] sm:$0xff] }
 0xf72   :  { %6503 = vrot.lane.b32.xlu1 %v6470_v19, %s13275_s15 }
 0xf76   :  { %6501 = vrot.lane.b32.xlu1 %v6469_v28, %s13275_s15 }
 0xf7a   :  { %v11519_v31 = vpop.f32.mrb[74].mxu0 }
 0xf7b   :  { %v6472_v35 = vadd.f32 %v11519_v31, %v15681_v5  ;;  %v5967_v47 = vpop.f32.mrb[75].mxu0 }
 0xf7c   :  { %v6471_v27 = vadd.f32 %v5967_v47, %v15682_v43 }
 0xf7d   :  { %6507 = vrot.lane.b32.xlu1 %v6472_v35, %s13275_s15  ;;  %v15689_v35 = vld [vmem:[#allocation31_spill] sm:$0xff] }
 0xf7e   :  { %6505 = vrot.lane.b32.xlu0 %v6471_v27, %s13275_s15  ;;  %v11532_v33 = vpop.f32.mrb[76].mxu0 }
 0xf7f   :  { %v6478_v8 = vadd.f32 %v11532_v33, %v15683_v46  ;;  %v6151_v4 = vpop.f32.mrb[77].mxu0 }
 0xf80   :  { %v6477_v52 = vadd.f32 %v6151_v4, %v15684_v40 }
 0xf81   :  { %6535 = vrot.lane.b32.xlu1 %v6478_v8, %s13274_s3  ;;  %v15691_v8 = vld [vmem:[#allocation30_spill] sm:$0xff] }
 0xf82   :  { %6533 = vrot.lane.b32.xlu0 %v6477_v52, %s13274_s3  ;;  %v11524_v0 = vpop.f32.mrb[96].mxu1 }
 0xf83   :  { %v6474_v54 = vadd.f32 %v11524_v0, %v15679_v62  ;;  %v6054_v15 = vpop.f32.mrb[97].mxu1  ;;  %v11535_v53 = vpop.f32.mrb[78].mxu0 }
 0xf84   :  { %v6473_v45 = vadd.f32 %v6054_v15, %v15680_v59  ;;  %v6161_v23 = vpop.f32.mrb[79].mxu0  ;;  %v6480_v44 = vadd.f32 %v11535_v53, %v15685_v17  ;;  %v6742_v53 = vld [vmem:[#allocation5 + $0xa0] sm:$0xff] }
 0xf85   :  { %6511 = vrot.lane.b32.xlu1 %v6474_v54, %s13275_s15  ;;  %v6479_v32 = vadd.f32 %v6161_v23, %v15686_v6  ;;  %v6740_v54 = vld [vmem:[#allocation5 + $0x28] sm:$0xff]  ;;  %v12273_v23 = vpack.c.bf16 %v6747_v10, %v6745_v56 }
 0xf86   :  { %6509 = vrot.lane.b32.xlu0 %v6473_v45, %s13275_s15  ;;  %v12271_v45 = vpack.c.bf16 %v6742_v53, %v6740_v54 }
 0xf89   :  { %6539 = vrot.lane.b32.xlu1 %v6480_v44, %s13274_s3  ;;  %v6746_v44 = vld [vmem:[#allocation5 + $0x190] sm:$0xff] }
 0xf8a   :  { %6537 = vrot.lane.b32.xlu0 %v6479_v32, %s13274_s3  ;;  %v12275_v48 = vpack.c.bf16 %v6746_v44, %v6744_v1  ;;  %v6748_v32 = vld [vmem:[#allocation5 + $0x208] sm:$0xff] }
 0xf8b   :  { %v12279_v51 = vpack.c.bf16 %v6750_v26, %v6748_v32  ;;  %v13143_v44 = vld [vmem:[#allocation8 + $0x38] sm:$0xff] }
 0xf8e   :  { %v11527_v55 = vpop.f32.mrb[98].mxu1 }
 0xf8f   :  { %v6064_v18 = vpop.f32.mrb[99].mxu1  ;;  %v6476_v42 = vadd.f32 %v11527_v55, %v15681_v5 }
 0xf90   :  { %v6475_v13 = vadd.f32 %v6064_v18, %v15682_v43  ;;  %v6741_v43 = vld [vmem:[#allocation5 + $0x30] sm:$0xff] }
 0xf91   :  { %v12269_v15 = vpack.c.bf16 %v6743_v61, %v6741_v43 }
 0xf93   :  { %12270 = vmatprep.subr.bf16.mxu1 %v12269_v15 }
 0xf94   :  { %12272 = vmatpush1.bf16.msra.mxu1 %v12271_v45 }
 0xf95   :  { %12274 = vmatprep.subr.bf16.mxu1 %v12273_v23  ;;  %v13142_v23 = vld [vmem:[#allocation8 + $0x30] sm:$0xff] }
 0xf96   :  { %v6463_v1 = vadd.f32 %v13142_v23, %v14874_v63 }
 0xf98   :  { %12276 = vmatpush1.bf16.msra.mxu1 %v12275_v48 }
 0xfbf   :  { %v11540_v49 = vpop.f32.mrb[100].mxu1 }
 0xfc0   :  { %v6248_v62 = vpop.f32.mrb[101].mxu1  ;;  %v6482_v7 = vadd.f32 %v11540_v49, %v15683_v46  ;;  %v6759_v49 = vld [vmem:[#allocation5 + $0x468] sm:$0xff] }
 0xfc1   :  { %v6481_v33 = vadd.f32 %v6248_v62, %v15684_v40  ;;  %v12283_v62 = vpack.c.bf16 %v6754_v41, %v6752_v30 }
 0xfca   :  { %v11548_v19 = vpop.f32.mrb[80].mxu0 }
 0xfcb   :  { %v6486_v59 = vadd.f32 %v11548_v19, %v15688_v14  ;;  %v11543_v28 = vpop.f32.mrb[102].mxu1  ;;  %v6345_v31 = vpop.f32.mrb[81].mxu0  ;;  %v12285_v19 = vpack.c.bf16 %v6759_v49, %v6757_v3 }
 0xfcc   :  { %v6485_v47 = vadd.f32 %v6345_v31, %v15689_v35  ;;  %v6258_v27 = vpop.f32.mrb[103].mxu1  ;;  %v6484_v0 = vadd.f32 %v11543_v28, %v15685_v17  ;;  %v6751_v17 = vld [vmem:[#allocation5 + $0x288] sm:$0xff]  ;;  %v6761_v28 = vld [vmem:[#allocation5 + $0x4e0] sm:$0xff]  ;;  %v6763_v31 = vld [vmem:[#allocation5 + $0x558] sm:$0xff] }
 0xfcd   :  { %6567 = vrot.lane.b32.xlu1 %v6486_v59, %s13273_s14  ;;  %v6483_v5 = vadd.f32 %v6258_v27, %v15686_v6  ;;  %v12277_v6 = vpack.c.bf16 %v6751_v17, %v6749_v2  ;;  %v6758_v59 = vld [vmem:[#allocation5 + $0x460] sm:$0xff]  ;;  %v6760_v27 = vld [vmem:[#allocation5 + $0x4d8] sm:$0xff]  ;;  %v6464_v2 = vadd.f32 %v13143_v44, %v14870_v25 }
 0xfce   :  { %v11551_v39 = vpop.f32.mrb[82].mxu0  ;;  %6565 = vrot.lane.b32.xlu0 %v6485_v47, %s13273_s14  ;;  %v12289_v47 = vpack.c.bf16 %v6763_v31, %v6761_v28 }
 0xfcf   :  { %v6355_v29 = vpop.f32.mrb[83].mxu0  ;;  %v6488_v12 = vadd.f32 %v11551_v39, %v15690_v37  ;;  %12278 = vmatprep.subr.bf16.mxu1 %v12277_v6  ;;  %v6762_v39 = vld [vmem:[#allocation5 + $0x550] sm:$0xff] }
 0xfd0   :  { %v6487_v4 = vadd.f32 %v6355_v29, %v15691_v8  ;;  %12280 = vmatpush1.bf16.msra.mxu1 %v12279_v51 }
 0xfd1   :  { %6543 = vrot.lane.b32.xlu1 %v6482_v7, %s13274_s3  ;;  %12282 = vmatprep.subr.bf16.mxu1 %v12281_v58  ;;  %v12291_v7 = vpack.c.bf16 %v6762_v39, %v6760_v27 }
 0xfd2   :  { %6541 = vrot.lane.b32.xlu0 %v6481_v33, %s13274_s3 }
 0xfd4   :  { %12284 = vmatpush1.bf16.msra.mxu1 %v12283_v62 }
 0xfd5   :  { %6571 = vrot.lane.b32.xlu1 %v6488_v12, %s13273_s14  ;;  %12286 = vmatprep.subr.bf16.mxu1 %v12285_v19  ;;  %v6467_v19 = vadd.f32 %v13142_v23, %v14878_v38  ;;  %v6767_v38 = vld [vmem:[#allocation5 + $0x648] sm:$0xff] }
 0xfd6   :  { %6569 = vrot.lane.b32.xlu0 %v6487_v4, %s13273_s14 }
 0xfd9   :  { %6515 = vrot.lane.b32.xlu1 %v6476_v42, %s13275_s15 }
 0xfda   :  { %6513 = vrot.lane.b32.xlu0 %v6475_v13, %s13275_s15 }
 0xfe4   :  { %v6504_v29 = vpop.permute.xlu1 %6503 }
 0xfe8   :  { %v6502_v33 = vpop.permute.xlu1 %6501 }
 0xfeb   :  { %v11556_v46 = vpop.f32.mrb[104].mxu1 }
 0xfec   :  { %v6490_v60 = vadd.f32 %v11556_v46, %v15688_v14  ;;  %v6442_v40 = vpop.f32.mrb[105].mxu1  ;;  %v6756_v14 = vld [vmem:[#allocation5 + $0x3e8] sm:$0xff] }
 0xfed   :  { %v6489_v52 = vadd.f32 %v6442_v40, %v15689_v35  ;;  %v12287_v35 = vpack.c.bf16 %v6758_v59, %v6756_v14  ;;  %v13140_v40 = vld [vmem:[#allocation8 + $0x20] sm:$0xff]  ;;  %v6468_v14 = vadd.f32 %v13143_v44, %v14876_v50 }
 0xfee   :  { %6575 = vrot.lane.b32.xlu1 %v6490_v60, %s13273_s14  ;;  %v6765_v50 = vld [vmem:[#allocation5 + $0x5d0] sm:$0xff] }
 0xfef   :  { %6573 = vrot.lane.b32.xlu0 %v6489_v52, %s13273_s14  ;;  %12288 = vmatpush1.bf16.msra.mxu1 %v12287_v35  ;;  %v6461_v52 = vadd.f32 %v13140_v40, %v14866_v57 }
 0xff0   :  { %12290 = vmatprep.subr.bf16.mxu1 %v12289_v47  ;;  %v6506_v12 = vpop.permute.xlu0 %6505 }
 0xff1   :  { %v6589_v43 = vsel %vm177_vm0, %v6461_v52, %v6502_v33  ;;  %v6591_v17 = vsel %vm177_vm0, %v6463_v1, %v6506_v12  ;;  %v6764_v33 = vld [vmem:[#allocation5 + $0x5c8] sm:$0xff] }
 0xff2   :  { %6547 = vrot.lane.b32.xlu1 %v6484_v0, %s13274_s3  ;;  %v13141_v0 = vld [vmem:[#allocation8 + $0x28] sm:$0xff] }
 0xff3   :  { %6545 = vrot.lane.b32.xlu0 %v6483_v5, %s13274_s3  ;;  %12292 = vmatpush1.bf16.msra.mxu1 %v12291_v7  ;;  %v6462_v5 = vadd.f32 %v13141_v0, %v14864_v11 }
 0xff4   :  { %v6534_v4 = vpop.permute.xlu0 %6533 }
 0xff5   :  { %v6590_v54 = vsel %vm177_vm0, %v6462_v5, %v6504_v29  ;;  %v6597_v15 = vsel %vm2267_vm2, %v6589_v43, %v6534_v4  ;;  %v12293_v29 = vpack.c.bf16 %v6767_v38, %v6765_v50  ;;  %v6771_v4 = vld [vmem:[#allocation5 + $0x738] sm:$0xff] }
 0xff7   :  { %12294 = vmatprep.subr.bf16.mxu1 %v12293_v29 }
 0xff8   :  { %v6510_v13 = vpop.permute.xlu0 %6509 }
 0xff9   :  { %v11559_v55 = vpop.f32.mrb[106].mxu1 }
 0xffa   :  { %v6492_v20 = vadd.f32 %v11559_v55, %v15690_v37  ;;  %v6452_v18 = vpop.f32.mrb[107].mxu1  ;;  %v6508_v37 = vpop.permute.xlu1 %6507 }
 0xffb   :  { %v6491_v9 = vadd.f32 %v6452_v18, %v15691_v8  ;;  %v6592_v6 = vsel %vm177_vm0, %v6464_v2, %v6508_v37  ;;  %v6466_v18 = vadd.f32 %v13141_v0, %v14868_v21  ;;  %v6766_v37 = vld [vmem:[#allocation5 + $0x640] sm:$0xff] }
 0xffc   :  { %6579 = vrot.lane.b32.xlu1 %v6492_v20, %s13273_s14  ;;  %v6538_v60 = vpop.permute.xlu0 %6537  ;;  %v6465_v20 = vadd.f32 %v13140_v40, %v14872_v24  ;;  %v12295_v12 = vpack.c.bf16 %v6766_v37, %v6764_v33  ;;  %v10450_v40 = vld [vmem:[#allocation7 + $0xb] ss:$0 sm:$0xff] }
 0xffd   :  { %6577 = vrot.lane.b32.xlu0 %v6491_v9, %s13273_s14  ;;  %v6599_v32 = vsel %vm2267_vm2, %v6591_v17, %v6538_v60 }
 0xffe   :  { %v6536_v8 = vpop.permute.xlu1 %6535  ;;  %v6593_v51 = vsel %vm177_vm0, %v6465_v20, %v6510_v13  ;;  %12296 = vmatpush1.bf16.msra.mxu1 %v12295_v12  ;;  %v6768_v13 = vld [vmem:[#allocation5 + $0x6b8] sm:$0xff] }
 0xfff   :  { %v6598_v56 = vsel %vm2267_vm2, %v6590_v54, %v6536_v8  ;;  %v6769_v8 = vld [vmem:[#allocation5 + $0x6c0] sm:$0xff] }
0x1002   :  { %v6512_v42 = vpop.permute.xlu1 %6511 }
0x1003   :  { %v6594_v58 = vsel %vm177_vm0, %v6466_v18, %v6512_v42  ;;  %v12297_v42 = vpack.c.bf16 %v6771_v4, %v6769_v8  ;;  %v15695_v4 = vld [vmem:[#allocation15_spill] sm:$0xff] }
0x1005   :  { %12298 = vmatprep.subr.bf16.mxu1 %v12297_v42  ;;  %v4261_v42 = vsub.s32 2, %v15695_v4 }
0x1006   :  { %v6540_v46 = vpop.permute.xlu1 %6539 }
0x1007   :  { %v6600_v36 = vsel %vm2267_vm2, %v6592_v6, %v6540_v46  ;;  %v6770_v46 = vld [vmem:[#allocation5 + $0x730] sm:$0xff] }
0x1008   :  { %v12299_v60 = vpack.c.bf16 %v6770_v46, %v6768_v13 }
0x100a   :  { %12300 = vmatpush1.bf16.msra.mxu1 %v12299_v60 }
0x100b   :  { %12317 = vmatprep.subr.bf16.mxu1 %v15687_v34 }
0x103f   :  { %v6568_v61 = vpop.permute.xlu1 %6567 }
0x1040   :  { %v6566_v53 = vpop.permute.xlu0 %6565  ;;  %v14939_v45 = vsel %vm2276_vm3, %v6598_v56, %v6568_v61 }
0x1041   :  { %v14936_v10 = vsel %vm2276_vm3, %v6597_v15, %v6566_v53 }
0x1042   :  { %11592 = vmatprep.mubr.f32.mxu0 %v14936_v10 }
0x1043   :  { %11593 = vmatmul.mubr.f32.vlgmr.msra.gmra.mrb[84].mxu0 %v14939_v45  ;;  %v6544_v11 = vpop.permute.xlu1 %6543 }
0x1044   :  { %v6542_v57 = vpop.permute.xlu0 %6541  ;;  %v6602_v3 = vsel %vm2267_vm2, %v6594_v58, %v6544_v11 }
0x1045   :  { %v6601_v30 = vsel %vm2267_vm2, %v6593_v51, %v6542_v57 }
0x1047   :  { %v6572_v48 = vpop.permute.xlu1 %6571 }
0x1048   :  { %v6570_v26 = vpop.permute.xlu0 %6569  ;;  %v14954_v63 = vsel %vm2276_vm3, %v6600_v36, %v6572_v48 }
0x1049   :  { %v14950_v16 = vsel %vm2276_vm3, %v6599_v32, %v6570_v26 }
0x104a   :  { %11595 = vmatprep.mubr.f32.mxu0 %v14950_v16 }
0x104b   :  { %11596 = vmatmul.mubr.f32.gmra.mrb[86].mxu0 %v14954_v63  ;;  %v6516_v25 = vpop.permute.xlu1 %6515 }
0x104c   :  { %v6514_v55 = vpop.permute.xlu0 %6513  ;;  %v6596_v31 = vsel %vm177_vm0, %v6468_v14, %v6516_v25 }
0x104d   :  { %v6595_v59 = vsel %vm177_vm0, %v6467_v19, %v6514_v55 }
0x1060   :  { %v6576_v9 = vpop.permute.xlu1 %6575 }
0x1061   :  { %v6574_v41 = vpop.permute.xlu0 %6573  ;;  %v14968_v62 = vsel %vm2276_vm3, %v6602_v3, %v6576_v9  ;;  %v15692_v3 = vld [vmem:[#allocation16_spill] sm:$0xff] }
0x1062   :  { %v14964_v49 = vsel %vm2276_vm3, %v6601_v30, %v6574_v41  ;;  %v6772_v30 = vld [vmem:[#allocation7 + $0x5] sm:$0x3] }
0x1063   :  { %11598 = vmatprep.mubr.f32.mxu0 %v14964_v49 }
0x1064   :  { %11599 = vmatmul.mubr.f32.gmra.mrb[88].mxu0 %v14968_v62  ;;  %v6548_v21 = vpop.permute.xlu1 %6547 }
0x1065   :  { %v6546_v24 = vpop.permute.xlu0 %6545  ;;  %v6604_v27 = vsel %vm2267_vm2, %v6596_v31, %v6548_v21  ;;  %v15693_v21 = vld [vmem:[#allocation18_spill] sm:$0xff] }
0x1066   :  { %v6603_v35 = vsel %vm2267_vm2, %v6595_v59, %v6546_v24  ;;  %v15009_v24 = vrot.slane %v6772_v30, %v15693_v21 }
0x106e   :  { %v6580_v28 = vpop.permute.xlu1 %6579 }
0x106f   :  { %v6578_v47 = vpop.permute.xlu0 %6577  ;;  %v14982_v7 = vsel %vm2276_vm3, %v6604_v27, %v6580_v28 }
0x1070   :  { %v14978_v39 = vsel %vm2276_vm3, %v6603_v35, %v6578_v47 }
0x1071   :  { %11601 = vmatprep.mubr.f32.mxu0 %v14978_v39 }
0x1072   :  { %11602 = vmatmul.mubr.f32.gmra.mrb[90].mxu0 %v14982_v7 }
0x1073   :  { %11612 = vmatprep.mubr.msk.f32.mxu0 %vm13278_vm4, %v15678_v22 }
0x1116   :  { %v11594_v52 = vpop.f32.mrb[84].mxu0 }
0x1117   :  { %v6685_v0 = vpop.f32.mrb[85].mxu0  ;;  %v6691_v5 = vadd.f32 %v11594_v52, %v10450_v40 }
0x1118   :  { %v6686_v43 = vadd.f32 %v10450_v40, %v6685_v0 }
0x1119   :  { %v6725_v54 = vmax.f32 %v6691_v5, 0.0  ;;  %v13144_v5 = vld [vmem:[#allocation7 + $0x2] sm:$0x7] }
0x111a   :  { %v6724_v61 = vmax.f32 %v6686_v43, 0.0  ;;  %v4262_v43 = vrot.slane %v13144_v5, %v4261_v42 }
0x111b   :  { %v6733_v11 = vadd.f32 %v6725_v54, %v14939_v45 }
0x111c   :  { %v6732_v15 = vadd.f32 %v6724_v61, %v14936_v10  ;;  %v15696_v61 = vld [vmem:[#allocation19_spill] sm:$0xff] }
0x111d   :  { %v15050_v54 = vadd.f32 %v15696_v61, %v4262_v43 }
0x111e   :  { %v11597_v53 = vpop.f32.mrb[86].mxu0  ;;  %6849 = vmatmul.mubr.f32.vlgmr.msra.gmra.mrb[108].mxu1 %v6732_v15 }
0x111f   :  { %v6695_v56 = vpop.f32.mrb[87].mxu0  ;;  %6854 = vmatprep.mubr.f32.mxu1 %v15678_v22  ;;  %v6701_v57 = vadd.f32 %v11597_v53, %v10450_v40 }
0x1120   :  { %v6696_v23 = vadd.f32 %v10450_v40, %v6695_v56 }
0x1121   :  { %v6727_v44 = vmax.f32 %v6701_v57, 0.0 }
0x1122   :  { %v6726_v1 = vmax.f32 %v6696_v23, 0.0  ;;  %6855 = vmatmul.mubr.f32.gmra.mrb[110].mxu1 %v6733_v11 }
0x1123   :  { %6860 = vmatprep.mubr.f32.mxu1 %v15678_v22  ;;  %v6735_v10 = vadd.f32 %v6727_v44, %v14954_v63 }
0x1124   :  { %v6734_v2 = vadd.f32 %v6726_v1, %v14950_v16 }
0x1126   :  { %6861 = vmatmul.mubr.f32.gmra.mrb[112].mxu1 %v6734_v2 }
0x1127   :  { %6866 = vmatprep.mubr.f32.mxu1 %v15678_v22 }
0x112a   :  { %6867 = vmatmul.mubr.f32.gmra.mrb[114].mxu1 %v6735_v10 }
0x112b   :  { %6872 = vmatprep.mubr.f32.mxu1 %v15678_v22 }
0x1137   :  { %v11600_v17 = vpop.f32.mrb[88].mxu0 }
0x1138   :  { %v6705_v48 = vpop.f32.mrb[89].mxu0  ;;  %v6711_v45 = vadd.f32 %v11600_v17, %v10450_v40 }
0x1139   :  { %v6706_v6 = vadd.f32 %v10450_v40, %v6705_v48 }
0x113a   :  { %v6729_v26 = vmax.f32 %v6711_v45, 0.0 }
0x113b   :  { %v6728_v32 = vmax.f32 %v6706_v6, 0.0 }
0x113c   :  { %v6737_v16 = vadd.f32 %v6729_v26, %v14968_v62 }
0x113d   :  { %v6736_v36 = vadd.f32 %v6728_v32, %v14964_v49  ;;  %v15006_v49 = vrot.slane %v6772_v30, %v15692_v3 }
0x113f   :  { %6873 = vmatmul.mubr.f32.gmra.mrb[116].mxu1 %v6736_v36 }
0x1140   :  { %6878 = vmatprep.mubr.f32.mxu1 %v15678_v22 }
0x1143   :  { %6879 = vmatmul.mubr.f32.gmra.mrb[118].mxu1 %v6737_v16 }
0x1144   :  { %6884 = vmatprep.mubr.f32.mxu1 %v15678_v22 }
0x1145   :  { %v11603_v63 = vpop.f32.mrb[90].mxu0 }
0x1146   :  { %v6715_v25 = vpop.f32.mrb[91].mxu0  ;;  %v6721_v55 = vadd.f32 %v11603_v63, %v10450_v40 }
0x1147   :  { %v6716_v20 = vadd.f32 %v10450_v40, %v6715_v25 }
0x1148   :  { %v6731_v51 = vmax.f32 %v6721_v55, 0.0 }
0x1149   :  { %v6730_v18 = vmax.f32 %v6716_v20, 0.0 }
0x114a   :  { %v6739_v58 = vadd.f32 %v6731_v51, %v14982_v7 }
0x114b   :  { %v6738_v9 = vadd.f32 %v6730_v18, %v14978_v39 }
0x114d   :  { %6885 = vmatmul.mubr.f32.gmra.mrb[120].mxu1 %v6738_v9  ;;  %v15697_v9 = vld [vmem:[#allocation20_spill] sm:$0xff] }
0x114e   :  { %6890 = vmatprep.mubr.f32.mxu1 %v15678_v22 }
0x1151   :  { %6891 = vmatmul.mubr.f32.gmra.mrb[122].mxu1 %v6739_v58  ;;  %v15107_v58 = vadd.f32 %v15697_v9, %v4262_v43 }
0x1152   :  { %11634 = vmatprep.mubr.msk.f32.mxu1 %vm13278_vm4, %v15678_v22 }
0x11f1   :  { %v6850_v41 = vpop.f32.mrb[108].mxu1 }
0x11f2   :  { %v6852_v62 = vpop.f32.mrb[109].mxu1  ;;  %v6851_v14 = vadd.f32 %v6850_v41, %v15006_v49 }
0x11f3   :  { %v15014_v31 = vadd.f32 %v6852_v62, %v15009_v24 }
0x11f5   :  { %v6856_v19 = vpop.f32.mrb[110].mxu1 }
0x11f6   :  { %v6857_v59 = vadd.f32 %v6856_v19, %v15006_v49  ;;  %v6858_v28 = vpop.f32.mrb[111].mxu1 }
0x11f7   :  { %v15017_v35 = vadd.f32 %v6858_v28, %v15009_v24 }
0x11f8   :  { %v12302_v47 = vpack.c.bf16 %v6857_v59, %v6851_v14  ;;  %v12663_v27 = vpack.i.bf16 %v6857_v59, %v6851_v14 }
0x11f9   :  { %v6862_v39 = vpop.f32.mrb[112].mxu1  ;;  %v15021_v7 = vpack.i.bf16 %v15017_v35, %v15014_v31  ;;  %v12366_v50 = vpack.c.bf16 %v15017_v35, %v15014_v31 }
0x11fa   :  { %12664 = vrot.lane.b32.xlu0 %v12663_v27, %s13273_s14  ;;  %v6864_v38 = vpop.f32.mrb[113].mxu1  ;;  %12304 = vmatpush3.bf16.xpose.msk.msra.mxu0 %vm14021_vm5, %v12302_v47  ;;  %v6863_v37 = vadd.f32 %v6862_v39, %v15006_v49 }
0x11fb   :  { %12305 = vmatprep.subr.bf16.mxu0 %v15687_v34  ;;  %v15033_v13 = vadd.f32 %v6864_v38, %v15009_v24 }
0x11fd   :  { %v6868_v33 = vpop.f32.mrb[114].mxu1 }
0x11fe   :  { %v6869_v12 = vadd.f32 %v6868_v33, %v15006_v49  ;;  %v6870_v8 = vpop.f32.mrb[115].mxu1 }
0x11ff   :  { %v15036_v46 = vadd.f32 %v6870_v8, %v15009_v24 }
0x1200   :  { %v12306_v60 = vpack.c.bf16 %v6869_v12, %v6863_v37  ;;  %v12673_v40 = vpack.i.bf16 %v6869_v12, %v6863_v37 }
0x1201   :  { %v15040_v52 = vpack.i.bf16 %v15036_v46, %v15033_v13  ;;  %v12369_v0 = vpack.c.bf16 %v15036_v46, %v15033_v13 }
0x1202   :  { %12674 = vrot.lane.b32.xlu0 %v12673_v40, %s13273_s14  ;;  %12308 = vmatpush3.bf16.xpose.msk.msra.mxu0 %vm14021_vm5, %v12306_v60 }
0x1203   :  { %12309 = vmatprep.subr.bf16.mxu0 %v15687_v34 }
0x1206   :  { %12684 = vrot.lane.b32.xlu0 %v12663_v27, %s13274_s3 }
0x1209   :  { %11613 = vmatmul.mubr.msk.f32.vlgmr.msra.gmra.mrb[92].mxu0 %vm177_vm0, %v15050_v54 }
0x120a   :  { %6916 = vrot.lane.b32.xlu0 %v15050_v54, %s13273_s14  ;;  %11623 = vmatprep.mubr.msk.f32.mxu0 %vm13278_vm4, %v15678_v22 }
0x120e   :  { %12694 = vrot.lane.b32.xlu0 %v12673_v40, %s13274_s3 }
0x1212   :  { %v6874_v15 = vpop.f32.mrb[116].mxu1  ;;  %12704 = vrot.lane.b32.xlu0 %v12663_v27, %s13275_s15 }
0x1213   :  { %v6876_v53 = vpop.f32.mrb[117].mxu1  ;;  %v6875_v11 = vadd.f32 %v6874_v15, %v15006_v49 }
0x1214   :  { %v15065_v1 = vadd.f32 %v6876_v53, %v15009_v24 }
0x1216   :  { %v6880_v56 = vpop.f32.mrb[118].mxu1  ;;  %6922 = vrot.lane.b32.xlu0 %v15050_v54, %s13274_s3 }
0x1217   :  { %v6881_v57 = vadd.f32 %v6880_v56, %v15006_v49  ;;  %v6882_v23 = vpop.f32.mrb[119].mxu1 }
0x1218   :  { %v15068_v44 = vadd.f32 %v6882_v23, %v15009_v24 }
0x1219   :  { %v12310_v2 = vpack.c.bf16 %v6881_v57, %v6875_v11  ;;  %v12668_v10 = vpack.i.bf16 %v6881_v57, %v6875_v11 }
0x121a   :  { %12714 = vrot.lane.b32.xlu0 %v12673_v40, %s13275_s15  ;;  %v15073_v17 = vpack.i.bf16 %v15068_v44, %v15065_v1  ;;  %v12372_v48 = vpack.c.bf16 %v15068_v44, %v15065_v1 }
0x121b   :  { %12669 = vrot.lane.b32.xlu1 %v12668_v10, %s13273_s14  ;;  %12312 = vmatpush3.bf16.xpose.msk.msra.mxu0 %vm14021_vm5, %v12310_v2 }
0x121c   :  { %12313 = vmatprep.subr.bf16.mxu0 %v15687_v34 }
0x121e   :  { %6928 = vrot.lane.b32.xlu0 %v15050_v54, %s13275_s15 }
0x1220   :  { %v6886_v45 = vpop.f32.mrb[120].mxu1 }
0x1221   :  { %v6888_v6 = vpop.f32.mrb[121].mxu1  ;;  %v6887_v26 = vadd.f32 %v6886_v45, %v15006_v49 }
0x1222   :  { %12729 = vrot.lane.b32.xlu0 %v15073_v17, %s13273_s14  ;;  %v15088_v63 = vadd.f32 %v6888_v6, %v15009_v24 }
0x1224   :  { %v6892_v32 = vpop.f32.mrb[122].mxu1 }
0x1225   :  { %v6893_v36 = vadd.f32 %v6892_v32, %v15006_v49  ;;  %v6894_v16 = vpop.f32.mrb[123].mxu1 }
0x1226   :  { %v15091_v25 = vadd.f32 %v6894_v16, %v15009_v24  ;;  %12739 = vrot.lane.b32.xlu0 %v15021_v7, %s13274_s3 }
0x1227   :  { %v12314_v55 = vpack.c.bf16 %v6893_v36, %v6887_v26  ;;  %v12678_v20 = vpack.i.bf16 %v6893_v36, %v6887_v26 }
0x1228   :  { %v15097_v18 = vpack.i.bf16 %v15091_v25, %v15088_v63  ;;  %v12375_v51 = vpack.c.bf16 %v15091_v25, %v15088_v63 }
0x1229   :  { %12679 = vrot.lane.b32.xlu1 %v12678_v20, %s13273_s14  ;;  %12316 = vmatpush3.bf16.xpose.msk.msra.mxu0 %vm14021_vm5, %v12314_v55 }
0x122a   :  { %12325 = vmatprep.subr.bf16.mxu0 %v15687_v34 }
0x122d   :  { %12689 = vrot.lane.b32.xlu1 %v12668_v10, %s13274_s3 }
0x1230   :  { %11624 = vmatmul.mubr.msk.f32.vlgmr.msra.gmra.mrb[94].mxu0 %vm177_vm0, %v15107_v58 }
0x1231   :  { %6918 = vrot.lane.b32.xlu1 %v15107_v58, %s13273_s14  ;;  %11645 = vmatprep.mubr.msk.f32.mxu0 %vm13278_vm4, %v15678_v22 }
0x1235   :  { %12699 = vrot.lane.b32.xlu1 %v12678_v20, %s13274_s3 }
0x1239   :  { %12709 = vrot.lane.b32.xlu1 %v12668_v10, %s13275_s15 }
0x123d   :  { %6924 = vrot.lane.b32.xlu1 %v15107_v58, %s13274_s3 }
0x1241   :  { %12719 = vrot.lane.b32.xlu1 %v12678_v20, %s13275_s15 }
0x1245   :  { %6930 = vrot.lane.b32.xlu1 %v15107_v58, %s13275_s15 }
0x1249   :  { %12724 = vrot.lane.b32.xlu1 %v15021_v7, %s13273_s14 }
0x124d   :  { %12734 = vrot.lane.b32.xlu1 %v15040_v52, %s13273_s14 }
0x1251   :  { %12744 = vrot.lane.b32.xlu1 %v15073_v17, %s13274_s3 }
0x1255   :  { %12749 = vrot.lane.b32.xlu1 %v15097_v18, %s13273_s14 }
0x126c   :  { %v12665_v30 = vpop.permute.xlu0 %12664 }
0x126d   :  { %v12667_v41 = vunpack.i.h.bf16 %v12665_v30  ;;  %v12666_v49 = vunpack.i.l.bf16 %v12665_v30 }
0x126f   :  { %v12318_v62 = vpack.c.bf16 %v12667_v41, %v12666_v49 }
0x1271   :  { %12320 = vmatpush3.bf16.xpose.msk.msra.mxu1 %vm14021_vm5, %v12318_v62 }
0x1272   :  { %12321 = vmatprep.subr.bf16.mxu1 %v15687_v34 }
0x1274   :  { %v12675_v24 = vpop.permute.xlu0 %12674 }
0x1275   :  { %v12677_v19 = vunpack.i.h.bf16 %v12675_v24  ;;  %v12676_v14 = vunpack.i.l.bf16 %v12675_v24 }
0x1277   :  { %v12322_v59 = vpack.c.bf16 %v12677_v19, %v12676_v14 }
0x1278   :  { %v12685_v28 = vpop.permute.xlu0 %12684 }
0x1279   :  { %12324 = vmatpush3.bf16.xpose.msk.msra.mxu1 %vm14021_vm5, %v12322_v59  ;;  %v12687_v47 = vunpack.i.h.bf16 %v12685_v28  ;;  %v12686_v27 = vunpack.i.l.bf16 %v12685_v28 }
0x127a   :  { %12333 = vmatprep.subr.bf16.mxu1 %v15687_v34 }
0x127b   :  { %v12334_v38 = vpack.c.bf16 %v12687_v47, %v12686_v27 }
0x127c   :  { %v15136_v39 = vpop.permute.xlu0 %6916 }
0x1280   :  { %v12695_v33 = vpop.permute.xlu0 %12694  ;;  %11635 = vmatmul.mubr.msk.f32.vlgmr.msra.gmra.mrb[124].mxu1 %vm177_vm0, %v15136_v39 }
0x1281   :  { %12336 = vmatpush3.bf16.xpose.msk.msra.mxu1 %vm14021_vm5, %v12334_v38  ;;  %11656 = vmatprep.mubr.msk.f32.mxu1 %vm13278_vm4, %v15678_v22  ;;  %v12697_v37 = vunpack.i.h.bf16 %v12695_v33  ;;  %v12696_v12 = vunpack.i.l.bf16 %v12695_v33 }
0x1282   :  { %12337 = vmatprep.subr.bf16.mxu1 %v15687_v34 }
0x1283   :  { %v12338_v42 = vpack.c.bf16 %v12697_v37, %v12696_v12 }
0x1284   :  { %v12705_v8 = vpop.permute.xlu0 %12704 }
0x1285   :  { %v12707_v40 = vunpack.i.h.bf16 %v12705_v8  ;;  %v12706_v5 = vunpack.i.l.bf16 %v12705_v8 }
0x1287   :  { %v12350_v53 = vpack.c.bf16 %v12707_v40, %v12706_v5 }
0x1288   :  { %v15147_v60 = vpop.permute.xlu0 %6922 }
0x1289   :  { %12340 = vmatpush3.bf16.xpose.msk.msra.mxu1 %vm14021_vm5, %v12338_v42 }
0x128a   :  { %12349 = vmatprep.subr.bf16.mxu1 %v15687_v34 }
0x128c   :  { %v12715_v56 = vpop.permute.xlu0 %12714 }
0x128d   :  { %v12670_v43 = vpop.permute.xlu1 %12669  ;;  %v12717_v57 = vunpack.i.h.bf16 %v12715_v56  ;;  %v12716_v23 = vunpack.i.l.bf16 %v12715_v56 }
0x128e   :  { %v12672_v61 = vunpack.i.h.bf16 %v12670_v43  ;;  %v12671_v15 = vunpack.i.l.bf16 %v12670_v43 }
0x128f   :  { %v12354_v2 = vpack.c.bf16 %v12717_v57, %v12716_v23 }
0x1290   :  { %v12326_v11 = vpack.c.bf16 %v12672_v61, %v12671_v15  ;;  %11657 = vmatmul.mubr.msk.f32.vlgmr.msra.gmra.mrb[126].mxu1 %vm177_vm0, %v15147_v60  ;;  %v15163_v26 = vpop.permute.xlu0 %6928 }
0x1291   :  { %12352 = vmatpush3.bf16.xpose.msk.msra.mxu1 %vm14021_vm5, %v12350_v53  ;;  %11678 = vmatprep.mubr.msk.f32.mxu1 %vm13278_vm4, %v15678_v22 }
0x1292   :  { %12328 = vmatpush3.bf16.xpose.msk.msra.mxu0 %vm14021_vm5, %v12326_v11  ;;  %12353 = vmatprep.subr.bf16.mxu1 %v15687_v34 }
0x1293   :  { %12329 = vmatprep.subr.bf16.mxu0 %v15687_v34 }
0x1294   :  { %v15215_v11 = vpop.permute.xlu0 %12729 }
0x1299   :  { %12356 = vmatpush3.bf16.xpose.msk.msra.mxu1 %vm14021_vm5, %v12354_v2 }
0x129a   :  { %12365 = vmatprep.subr.bf16.mxu1 %v15687_v34 }
0x129b   :  { %v12680_v10 = vpop.permute.xlu1 %12679 }
0x129c   :  { %v12682_v45 = vunpack.i.h.bf16 %v12680_v10  ;;  %v12681_v6 = vunpack.i.l.bf16 %v12680_v10  ;;  %v15218_v10 = vpop.permute.xlu0 %12739 }
0x129e   :  { %v12330_v32 = vpack.c.bf16 %v12682_v45, %v12681_v6 }
0x129f   :  { %v12690_v36 = vpop.permute.xlu1 %12689 }
0x12a0   :  { %12332 = vmatpush3.bf16.xpose.msk.msra.mxu0 %vm14021_vm5, %v12330_v32  ;;  %11679 = vmatmul.mubr.msk.f32.vlgmr.msra.gmra.mrb[128].mxu1 %vm177_vm0, %v15163_v26  ;;  %v12692_v16 = vunpack.i.h.bf16 %v12690_v36  ;;  %v12691_v55 = vunpack.i.l.bf16 %v12690_v36 }
0x12a1   :  { %12367 = vmatpush3.bf16.msra.mxu1 %v12366_v50  ;;  %12341 = vmatprep.subr.bf16.mxu0 %v15687_v34 }
0x12a2   :  { %12368 = vmatprep.subr.bf16.mxu1 %v15687_v34  ;;  %11700 = vmatprep.mubr.msk.f32.mxu1 %vm13278_vm4, %v15678_v22  ;;  %v12342_v9 = vpack.c.bf16 %v12692_v16, %v12691_v55 }
0x12a3   :  { %v15176_v20 = vpop.permute.xlu1 %6918 }
0x12a5   :  { %12370 = vmatpush3.bf16.msra.mxu1 %v12369_v0 }
0x12a6   :  { %12371 = vmatprep.subr.bf16.mxu1 %v15687_v34 }
0x12a7   :  { %v12700_v31 = vpop.permute.xlu1 %12699  ;;  %11646 = vmatmul.mubr.msk.f32.vlgmr.msra.gmra.mrb[96].mxu0 %vm177_vm0, %v15176_v20 }
0x12a8   :  { %12344 = vmatpush3.bf16.xpose.msk.msra.mxu0 %vm14021_vm5, %v12342_v9  ;;  %11667 = vmatprep.mubr.msk.f32.mxu0 %vm13278_vm4, %v15678_v22  ;;  %v12702_v35 = vunpack.i.h.bf16 %v12700_v31  ;;  %v12701_v50 = vunpack.i.l.bf16 %v12700_v31 }
0x12a9   :  { %12345 = vmatprep.subr.bf16.mxu0 %v15687_v34 }
0x12aa   :  { %v12346_v13 = vpack.c.bf16 %v12702_v35, %v12701_v50 }
0x12ab   :  { %v12710_v30 = vpop.permute.xlu1 %12709 }
0x12ac   :  { %v12712_v0 = vunpack.i.h.bf16 %v12710_v30  ;;  %v12711_v41 = vunpack.i.l.bf16 %v12710_v30 }
0x12ae   :  { %v12358_v62 = vpack.c.bf16 %v12712_v0, %v12711_v41 }
0x12af   :  { %v15189_v46 = vpop.permute.xlu1 %6924 }
0x12b0   :  { %12348 = vmatpush3.bf16.xpose.msk.msra.mxu0 %vm14021_vm5, %v12346_v13 }
0x12b1   :  { %12357 = vmatprep.subr.bf16.mxu0 %v15687_v34 }
0x12b3   :  { %v12720_v49 = vpop.permute.xlu1 %12719 }
0x12b4   :  { %v12722_v19 = vunpack.i.h.bf16 %v12720_v49  ;;  %v12721_v14 = vunpack.i.l.bf16 %v12720_v49 }
0x12b6   :  { %v12362_v28 = vpack.c.bf16 %v12722_v19, %v12721_v14 }
0x12b7   :  { %v15194_v24 = vpop.permute.xlu1 %6930  ;;  %11668 = vmatmul.mubr.msk.f32.vlgmr.msra.gmra.mrb[98].mxu0 %vm177_vm0, %v15189_v46 }
0x12b8   :  { %12360 = vmatpush3.bf16.xpose.msk.msra.mxu0 %vm14021_vm5, %v12358_v62  ;;  %11689 = vmatprep.mubr.msk.f32.mxu0 %vm13278_vm4, %v15678_v22 }
0x12b9   :  { %12361 = vmatprep.subr.bf16.mxu0 %v15687_v34 }
0x12bb   :  { %v12725_v59 = vpop.permute.xlu1 %12724 }
0x12bc   :  { %v12727_v47 = vunpack.i.h.bf16 %v12725_v59  ;;  %v12726_v27 = vunpack.i.l.bf16 %v12725_v59 }
0x12be   :  { %v12378_v33 = vpack.c.bf16 %v12727_v47, %v12726_v27 }
0x12bf   :  { %v12735_v38 = vpop.permute.xlu1 %12734 }
0x12c0   :  { %12364 = vmatpush3.bf16.xpose.msk.msra.mxu0 %vm14021_vm5, %v12362_v28  ;;  %v12737_v37 = vunpack.i.h.bf16 %v12735_v38  ;;  %v12736_v12 = vunpack.i.l.bf16 %v12735_v38 }
0x12c1   :  { %12377 = vmatprep.subr.bf16.mxu0 %v15687_v34 }
0x12c2   :  { %v12381_v8 = vpack.c.bf16 %v12737_v37, %v12736_v12 }
0x12c3   :  { %v15233_v14 = vpop.permute.xlu1 %12744 }
0x12c7   :  { %11690 = vmatmul.mubr.msk.f32.vlgmr.msra.gmra.mrb[100].mxu0 %vm177_vm0, %v15194_v24  ;;  %v15237_v59 = vpop.permute.xlu1 %12749 }
0x12c8   :  { %12379 = vmatpush3.bf16.msra.mxu0 %v12378_v33  ;;  %11722 = vmatprep.mubr.msk.f32.mxu0 %vm13278_vm4, %v15678_v22 }
0x12c9   :  { %12380 = vmatprep.subr.bf16.mxu0 %v15687_v34 }
0x12cc   :  { %12382 = vmatpush3.bf16.msra.mxu0 %v12381_v8 }
0x12cd   :  { %12389 = vmatprep.subr.bf16.mxu0 %v15687_v34 }
0x12dc   :  { %v7146_v29 = vpop.f32.mrb[92].mxu0 }
0x12dd   :  { %v11614_v42 = vpop.f32.mrb[93].mxu0  ;;  %v7710_v40 = vsel %vm177_vm0, %v7146_v29, -inf }
0x12de   :  { %7711 = vmax.xlane.f32.xlu0 %v7710_v40 }
0x1303   :  { %v7226_v5 = vpop.f32.mrb[94].mxu0 }
0x1304   :  { %v11625_v43 = vpop.f32.mrb[95].mxu0  ;;  %v7713_v61 = vsel %vm177_vm0, %v7226_v5, -inf }
0x1305   :  { %7714 = vmax.xlane.f32.xlu1 %v7713_v61 }
0x1353   :  { %v7306_v15 = vpop.f32.mrb[124].mxu1 }
0x1354   :  { %v11636_v53 = vpop.f32.mrb[125].mxu1  ;;  %v7716_v56 = vsel %vm177_vm0, %v7306_v15, -inf }
0x1355   :  { %7717 = vmax.xlane.f32.xlu0 %v7716_v56 }
0x1363   :  { %v7466_v57 = vpop.f32.mrb[126].mxu1 }
0x1364   :  { %v11658_v23 = vpop.f32.mrb[127].mxu1  ;;  %v7722_v2 = vsel %vm177_vm0, %v7466_v57, -inf }
0x1365   :  { %7723 = vmax.xlane.f32.xlu1 %v7722_v2 }
0x136b   :  { %v7712_v45 = vpop.xlane.xlu0 %7711 }
0x136c   :  { %v7734_v6 = vsub.f32 %v7146_v29, %v7712_v45 }
0x136e   :  { %v7742_v32 = vmul.f32 1.442695, %v7734_v6 }
0x1370   :  { %13071 = vpow2.f32 %v7742_v32 }
0x1373   :  { %v7626_v36 = vpop.f32.mrb[128].mxu1 }
0x1374   :  { %v11680_v16 = vpop.f32.mrb[129].mxu1  ;;  %v7728_v55 = vsel %vm177_vm0, %v7626_v36, -inf }
0x1375   :  { %7729 = vmax.xlane.f32.xlu1 %v7728_v55 }
0x137a   :  { %v13072_v9 = vpop.eup %13071  ;;  %v7386_v31 = vpop.f32.mrb[96].mxu0 }
0x137b   :  { %v11647_v35 = vpop.f32.mrb[97].mxu0  ;;  %v7719_v50 = vsel %vm177_vm0, %v7386_v31, -inf  ;;  %v7758_v30 = vsel %vm177_vm0, %v13072_v9, 0.0 }
0x137c   :  { %7720 = vmax.xlane.f32.xlu0 %v7719_v50  ;;  %7759 = vadd.xlane.f32.xlu1 %v7758_v30 }
0x138a   :  { %v15223_v13 = vpop.f32.mrb[98].mxu0 }
0x138b   :  { %v11669_v0 = vpop.f32.mrb[99].mxu0  ;;  %v7725_v41 = vsel %vm177_vm0, %v15223_v13, -inf }
0x138c   :  { %7726 = vmax.xlane.f32.xlu0 %v7725_v41 }
0x138d   :  { %12759 = vrot.lane.b32.xlu1 %v15097_v18, %s13274_s3 }
0x1392   :  { %v7715_v28 = vpop.xlane.xlu1 %7714 }
0x1393   :  { %v7735_v47 = vsub.f32 %v7226_v5, %v7715_v28  ;;  %v12732_v28 = vunpack.i.h.bf16 %v15215_v11 }
0x1395   :  { %v7744_v27 = vmul.f32 1.442695, %v7735_v47  ;;  %v12731_v47 = vunpack.i.l.bf16 %v15215_v11 }
0x1397   :  { %13073 = vpow2.f32 %v7744_v27 }
0x139a   :  { %v15229_v49 = vpop.f32.mrb[100].mxu0 }
0x139b   :  { %v11691_v62 = vpop.f32.mrb[101].mxu0  ;;  %v7731_v19 = vsel %vm177_vm0, %v15229_v49, -inf }
0x139c   :  { %7732 = vmax.xlane.f32.xlu0 %v7731_v19 }
0x13a1   :  { %v15239_v38 = vpop.eup %13073 }
0x13a2   :  { %v7761_v33 = vsel %vm177_vm0, %v15239_v38, 0.0 }
0x13b2   :  { %12754 = vrot.lane.b32.xlu0 %v15040_v52, %s13274_s3 }
0x13d1   :  { %7762 = vadd.xlane.f32.xlu0 %v7761_v33 }
0x13e2   :  { %v7718_v37 = vpop.xlane.xlu0 %7717 }
0x13e3   :  { %v7736_v12 = vsub.f32 %v7306_v15, %v7718_v37  ;;  %v12384_v37 = vpack.c.bf16 %v12732_v28, %v12731_v47 }
0x13e5   :  { %v7746_v8 = vmul.f32 1.442695, %v7736_v12  ;;  %v12752_v12 = vunpack.i.h.bf16 %v15237_v59 }
0x13e7   :  { %13075 = vpow2.f32 %v7746_v8  ;;  %v12751_v8 = vunpack.i.l.bf16 %v15237_v59  ;;  %v12742_v59 = vunpack.i.h.bf16 %v15218_v10 }
0x13f1   :  { %v15243_v29 = vpop.eup %13075 }
0x13f2   :  { %v7764_v42 = vsel %vm177_vm0, %v15243_v29, 0.0  ;;  %v7724_v40 = vpop.xlane.xlu1 %7723 }
0x13f3   :  { %7765 = vadd.xlane.f32.xlu1 %v7764_v42  ;;  %v7738_v15 = vsub.f32 %v7466_v57, %v7724_v40 }
0x13f5   :  { %v7750_v45 = vmul.f32 1.442695, %v7738_v15 }
0x1402   :  { %v7730_v5 = vpop.xlane.xlu1 %7729 }
0x1403   :  { %v7740_v6 = vsub.f32 %v7626_v36, %v7730_v5 }
0x1404   :  { %12769 = vrot.lane.b32.xlu1 %v15073_v17, %s13275_s15 }
0x1405   :  { %v7754_v17 = vmul.f32 1.442695, %v7740_v6 }
0x1409   :  { %v7721_v43 = vpop.xlane.xlu0 %7720  ;;  %v7760_v61 = vpop.xlane.xlu1 %7759 }
0x140a   :  { %v7737_v53 = vsub.f32 %v7386_v31, %v7721_v43  ;;  %13077 = vrcp.f32 %v7760_v61  ;;  %v12741_v43 = vunpack.i.l.bf16 %v15218_v10 }
0x140c   :  { %v7748_v56 = vmul.f32 1.442695, %v7737_v53 }
0x140d   :  { %v12760_v11 = vpop.permute.xlu1 %12759 }
0x140e   :  { %13079 = vpow2.f32 %v7748_v56  ;;  %v12390_v56 = vpack.c.bf16 %v12742_v59, %v12741_v43 }
0x140f   :  { %13081 = vpow2.f32 %v7750_v45 }
0x1410   :  { %13083 = vpow2.f32 %v7754_v17  ;;  %v12746_v17 = vunpack.i.l.bf16 %v15233_v14 }
0x1414   :  { %v13078_v23 = vpop.eup %13077 }
0x1415   :  { %v7790_v2 = vmul.f32 %v13078_v23, %v7760_v61 }
0x1417   :  { %v7798_v32 = vsub.f32 2.0, %v7790_v2 }
0x1418   :  { %v15249_v16 = vpop.eup %13079 }
0x1419   :  { %v7806_v55 = vmul.f32 %v13078_v23, %v7798_v32  ;;  %v7767_v35 = vsel %vm177_vm0, %v15249_v16, 0.0  ;;  %v15264_v57 = vpop.eup %13081  ;;  %v7727_v44 = vpop.xlane.xlu0 %7726 }
0x141a   :  { %7768 = vadd.xlane.f32.xlu0 %v7767_v35  ;;  %v7770_v36 = vsel %vm177_vm0, %v15264_v57, 0.0  ;;  %v12747_v35 = vunpack.i.h.bf16 %v15233_v14 }
0x141b   :  { %v7814_v50 = vmul.f32 %v13072_v9, %v7806_v55  ;;  %v15268_v9 = vpop.eup %13083 }
0x141c   :  { %v7776_v1 = vsel %vm177_vm0, %v15268_v9, 0.0 }
0x141d   :  { %11701 = vmatmul.mubr.msk.f32.vlgmr.msra.gmra.mrb[130].mxu1 %vm177_vm0, %v7814_v50 }
0x141e   :  { %12373 = vmatpush3.bf16.msra.mxu1 %v12372_v48  ;;  %11711 = vmatprep.mubr.msk.f32.mxu1 %vm13278_vm4, %v15678_v22  ;;  %v7739_v48 = vsub.f32 %v15223_v13, %v7727_v44  ;;  %v12762_v44 = vunpack.i.h.bf16 %v12760_v11 }
0x141f   :  { %12374 = vmatprep.subr.bf16.mxu1 %v15687_v34 }
0x1420   :  { %v7752_v25 = vmul.f32 1.442695, %v7739_v48  ;;  %v12761_v48 = vunpack.i.l.bf16 %v12760_v11 }
0x1422   :  { %12376 = vmatpush3.bf16.msra.mxu1 %v12375_v51  ;;  %13085 = vpow2.f32 %v7752_v25 }
0x1423   :  { %12383 = vmatprep.subr.bf16.mxu1 %v15687_v34 }
0x1428   :  { %7771 = vadd.xlane.f32.xlu1 %v7770_v36 }
0x1429   :  { %v7733_v63 = vpop.xlane.xlu0 %7732 }
0x142a   :  { %v7741_v51 = vsub.f32 %v15229_v49, %v7733_v63  ;;  %v12399_v63 = vpack.c.bf16 %v12762_v44, %v12761_v48  ;;  %v6898_v48 = vld [vmem:[#allocation5 + $0xd8] sm:$0xff] }
0x142c   :  { %7777 = vadd.xlane.f32.xlu1 %v7776_v1  ;;  %v7756_v31 = vmul.f32 1.442695, %v7741_v51  ;;  %v15278_v30 = vpop.eup %13085  ;;  %v12396_v1 = vpack.c.bf16 %v12747_v35, %v12746_v17 }
0x142d   :  { %v7773_v0 = vsel %vm177_vm0, %v15278_v30, 0.0  ;;  %v12755_v13 = vpop.permute.xlu0 %12754 }
0x142e   :  { %13087 = vpow2.f32 %v7756_v31  ;;  %v12757_v15 = vunpack.i.h.bf16 %v12755_v13  ;;  %v12756_v23 = vunpack.i.l.bf16 %v12755_v13 }
0x1430   :  { %12764 = vrot.lane.b32.xlu0 %v15021_v7, %s13275_s15  ;;  %v12393_v2 = vpack.c.bf16 %v12757_v15, %v12756_v23 }
0x1438   :  { %v15282_v41 = vpop.eup %13087 }
0x1439   :  { %v7779_v7 = vsel %vm177_vm0, %v15282_v41, 0.0 }
0x143d   :  { %12779 = vrot.lane.b32.xlu1 %v15097_v18, %s13275_s15 }
0x144f   :  { %7774 = vadd.xlane.f32.xlu0 %v7773_v0 }
0x1453   :  { %7780 = vadd.xlane.f32.xlu0 %v7779_v7 }
0x145e   :  { %v7763_v49 = vpop.xlane.xlu0 %7762 }
0x145f   :  { %13089 = vrcp.f32 %v7763_v49 }
0x1469   :  { %v13090_v62 = vpop.eup %13089  ;;  %12774 = vrot.lane.b32.xlu0 %v15040_v52, %s13275_s15  ;;  %v12387_v52 = vpack.c.bf16 %v12752_v12, %v12751_v8 }
0x146a   :  { %v7791_v18 = vmul.f32 %v13090_v62, %v7763_v49 }
0x146c   :  { %v7799_v19 = vsub.f32 2.0, %v7791_v18 }
0x146e   :  { %v7807_v27 = vmul.f32 %v13090_v62, %v7799_v19 }
0x1470   :  { %v7815_v33 = vmul.f32 %v15239_v38, %v7807_v27 }
0x1472   :  { %11712 = vmatmul.mubr.msk.f32.vlgmr.msra.gmra.mrb[132].mxu1 %vm177_vm0, %v7815_v33 }
0x1473   :  { %12385 = vmatpush3.bf16.msra.mxu1 %v12384_v37  ;;  %11733 = vmatprep.mubr.msk.f32.mxu1 %vm13278_vm4, %v15678_v22 }
0x1474   :  { %12386 = vmatprep.subr.bf16.mxu1 %v15687_v34 }
0x1477   :  { %12388 = vmatpush3.bf16.msra.mxu1 %v12387_v52 }
0x1478   :  { %12395 = vmatprep.subr.bf16.mxu1 %v15687_v34 }
0x1480   :  { %v7766_v42 = vpop.xlane.xlu1 %7765 }
0x1481   :  { %13091 = vrcp.f32 %v7766_v42 }
0x1484   :  { %v12770_v10 = vpop.permute.xlu1 %12769 }
0x1485   :  { %v12771_v59 = vunpack.i.l.bf16 %v12770_v10 }
0x148b   :  { %v13092_v38 = vpop.eup %13091 }
0x148c   :  { %v7792_v40 = vmul.f32 %v13092_v38, %v7766_v42 }
0x148e   :  { %v7800_v5 = vsub.f32 2.0, %v7792_v40 }
0x1490   :  { %v7808_v61 = vmul.f32 %v13092_v38, %v7800_v5  ;;  %v12772_v5 = vunpack.i.h.bf16 %v12770_v10 }
0x1492   :  { %v7816_v53 = vmul.f32 %v15243_v29, %v7808_v61  ;;  %v12408_v23 = vpack.c.bf16 %v12772_v5, %v12771_v59  ;;  %v8532_v5 = vld [vmem:[#allocation5 + $0xb8] sm:$0xff] }
0x1493   :  { %v8529_v59 = vld [vmem:[#allocation5 + $0x38] sm:$0xff] }
0x1494   :  { %11723 = vmatmul.mubr.msk.f32.vlgmr.msra.gmra.mrb[102].mxu0 %vm177_vm0, %v7816_v53 }
0x1495   :  { %12391 = vmatpush3.bf16.msra.mxu0 %v12390_v56  ;;  %11744 = vmatprep.mubr.msk.f32.mxu0 %vm13278_vm4, %v15678_v22 }
0x1496   :  { %12392 = vmatprep.subr.bf16.mxu0 %v15687_v34 }
0x1499   :  { %12394 = vmatpush3.bf16.msra.mxu0 %v12393_v2 }
0x149a   :  { %12401 = vmatprep.subr.bf16.mxu0 %v15687_v34 }
0x14a7   :  { %v7769_v45 = vpop.xlane.xlu0 %7768 }
0x14a8   :  { %13093 = vrcp.f32 %v7769_v45 }
0x14ab   :  { %v12765_v51 = vpop.permute.xlu0 %12764 }
0x14ac   :  { %v12766_v0 = vunpack.i.l.bf16 %v12765_v51 }
0x14b2   :  { %v13094_v6 = vpop.eup %13093 }
0x14b3   :  { %v7793_v29 = vmul.f32 %v13094_v6, %v7769_v45 }
0x14b5   :  { %v7801_v32 = vsub.f32 2.0, %v7793_v29  ;;  %v7772_v55 = vpop.xlane.xlu1 %7771 }
0x14b6   :  { %13095 = vrcp.f32 %v7772_v55 }
0x14b7   :  { %v7809_v50 = vmul.f32 %v13094_v6, %v7801_v32 }
0x14b9   :  { %v7817_v36 = vmul.f32 %v15249_v16, %v7809_v50  ;;  %v12767_v16 = vunpack.i.h.bf16 %v12765_v51  ;;  %v7778_v62 = vpop.xlane.xlu1 %7777  ;;  %v6900_v51 = vld [vmem:[#allocation5 + $0x1c8] sm:$0xff] }
0x14ba   :  { %13097 = vrcp.f32 %v7778_v62 }
0x14bb   :  { %11734 = vmatmul.mubr.msk.f32.vlgmr.msra.gmra.mrb[134].mxu1 %vm177_vm0, %v7817_v36  ;;  %v12402_v49 = vpack.c.bf16 %v12767_v16, %v12766_v0  ;;  %v6902_v16 = vld [vmem:[#allocation5 + $0x2b8] sm:$0xff]  ;;  %v6903_v0 = vld [vmem:[#allocation5 + $0x330] sm:$0xff] }
0x14bc   :  { %12397 = vmatpush3.bf16.msra.mxu1 %v12396_v1  ;;  %11755 = vmatprep.mubr.msk.f32.mxu1 %vm13278_vm4, %v15678_v22 }
0x14bd   :  { %12398 = vmatprep.subr.bf16.mxu1 %v15687_v34  ;;  %v12780_v43 = vpop.permute.xlu1 %12779 }
0x14be   :  { %v12782_v2 = vunpack.i.h.bf16 %v12780_v43  ;;  %v12781_v45 = vunpack.i.l.bf16 %v12780_v43 }
0x14c0   :  { %v13096_v25 = vpop.eup %13095  ;;  %12400 = vmatpush3.bf16.msra.mxu1 %v12399_v63  ;;  %v12411_v29 = vpack.c.bf16 %v12782_v2, %v12781_v45  ;;  %v6899_v63 = vld [vmem:[#allocation5 + $0x150] sm:$0xff] }
0x14c1   :  { %v7794_v14 = vmul.f32 %v13096_v25, %v7772_v55  ;;  %12407 = vmatprep.subr.bf16.mxu1 %v15687_v34 }
0x14c3   :  { %v7802_v31 = vsub.f32 2.0, %v7794_v14  ;;  %v12417_v14 = vpack.c.bf16 %v6900_v51, %v6899_v63  ;;  %v8543_v63 = vld [vmem:[#allocation5 + $0x380] sm:$0xff] }
0x14c4   :  { %v13098_v18 = vpop.eup %13097 }
0x14c5   :  { %v7810_v7 = vmul.f32 %v13096_v25, %v7802_v31  ;;  %v7796_v28 = vmul.f32 %v13098_v18, %v7778_v62  ;;  %v6901_v31 = vld [vmem:[#allocation5 + $0x240] sm:$0xff]  ;;  %v6906_v62 = vld [vmem:[#allocation5 + $0x498] sm:$0xff] }
0x14c7   :  { %v7818_v13 = vmul.f32 %v15264_v57, %v7810_v7  ;;  %v7804_v27 = vsub.f32 2.0, %v7796_v28  ;;  %v6904_v7 = vld [vmem:[#allocation5 + $0x3a8] sm:$0xff] }
0x14c9   :  { %11745 = vmatmul.mubr.msk.f32.vlgmr.msra.gmra.mrb[104].mxu0 %vm177_vm0, %v7818_v13  ;;  %v7812_v12 = vmul.f32 %v13098_v18, %v7804_v27  ;;  %v6908_v27 = vld [vmem:[#allocation5 + $0x588] sm:$0xff] }
0x14ca   :  { %12403 = vmatpush3.bf16.msra.mxu0 %v12402_v49  ;;  %11766 = vmatprep.mubr.msk.f32.mxu0 %vm13278_vm4, %v15678_v22  ;;  %v6905_v49 = vld [vmem:[#allocation5 + $0x420] sm:$0xff] }
0x14cb   :  { %12404 = vmatprep.subr.bf16.mxu0 %v15687_v34  ;;  %v7820_v42 = vmul.f32 %v15268_v9, %v7812_v12  ;;  %v12429_v28 = vpack.c.bf16 %v6906_v62, %v6905_v49 }
0x14dc   :  { %v7775_v19 = vpop.xlane.xlu0 %7774 }
0x14dd   :  { %13099 = vrcp.f32 %v7775_v19 }
0x14e0   :  { %v7781_v47 = vpop.xlane.xlu0 %7780 }
0x14e1   :  { %13101 = vrcp.f32 %v7781_v47 }
0x14e4   :  { %v12775_v33 = vpop.permute.xlu0 %12774 }
0x14e5   :  { %v12777_v57 = vunpack.i.h.bf16 %v12775_v33  ;;  %v12776_v37 = vunpack.i.l.bf16 %v12775_v33 }
0x14e7   :  { %v13100_v8 = vpop.eup %13099  ;;  %v12405_v52 = vpack.c.bf16 %v12777_v57, %v12776_v37  ;;  %v6909_v57 = vld [vmem:[#allocation5 + $0x600] sm:$0xff]  ;;  %v6910_v37 = vld [vmem:[#allocation5 + $0x678] sm:$0xff] }
0x14e8   :  { %v7795_v11 = vmul.f32 %v13100_v8, %v7775_v19  ;;  %v12437_v12 = vpack.c.bf16 %v6910_v37, %v6909_v57 }
0x14e9   :  { %12406 = vmatpush3.bf16.msra.mxu0 %v12405_v52  ;;  %v6912_v52 = vld [vmem:[#allocation5 + $0x768] sm:$0xff] }
0x14ea   :  { %v7803_v38 = vsub.f32 2.0, %v7795_v11 }
0x14eb   :  { %v13102_v40 = vpop.eup %13101 }
0x14ec   :  { %v7811_v61 = vmul.f32 %v13100_v8, %v7803_v38  ;;  %v7797_v53 = vmul.f32 %v13102_v40, %v7781_v47  ;;  %11767 = vmatmul.mubr.msk.f32.vlgmr.msra.gmra.mrb[106].mxu0 %vm177_vm0, %v7820_v42  ;;  %v6907_v47 = vld [vmem:[#allocation5 + $0x510] sm:$0xff] }
0x14ed   :  { %v12433_v33 = vpack.c.bf16 %v6908_v27, %v6907_v47  ;;  %v6911_v8 = vld [vmem:[#allocation5 + $0x6f0] sm:$0xff] }
0x14ee   :  { %v7819_v56 = vmul.f32 %v15278_v30, %v7811_v61  ;;  %v7805_v15 = vsub.f32 2.0, %v7797_v53  ;;  %v8531_v53 = vld [vmem:[#allocation5 + $0xb0] sm:$0xff] }
0x14ef   :  { %v12447_v45 = vpack.c.bf16 %v8531_v53, %v8529_v59  ;;  %v8553_v59 = vld [vmem:[#allocation5 + $0x5d8] sm:$0xff] }
0x14f0   :  { %11756 = vmatmul.mubr.msk.f32.vlgmr.msra.gmra.mrb[136].mxu1 %vm177_vm0, %v7819_v56  ;;  %v15323_v6 = vpop.f32.mrb[130].mxu1  ;;  %v7813_v10 = vmul.f32 %v13102_v40, %v7805_v15  ;;  %v8530_v40 = vld [vmem:[#allocation5 + $0x40] sm:$0xff]  ;;  %v8534_v56 = vld [vmem:[#allocation5 + $0x130] sm:$0xff]  ;;  %v8536_v15 = vld [vmem:[#allocation5 + $0x1a8] sm:$0xff] }
0x14f1   :  { %12409 = vmatpush3.bf16.msra.mxu1 %v12408_v23  ;;  %v11702_v9 = vpop.f32.mrb[131].mxu1  ;;  %11777 = vmatprep.mubr.msk.f32.mxu1 %vm13278_vm4, %v15678_v22  ;;  %v12445_v61 = vpack.c.bf16 %v8532_v5, %v8530_v40  ;;  %v8406_v27 = vadd.f32 %v15323_v6, %v15050_v54  ;;  %v8554_v6 = vld [vmem:[#allocation5 + $0x5e0] sm:$0xff]  ;;  %v8556_v40 = vld [vmem:[#allocation5 + $0x658] sm:$0xff] }
0x14f2   :  { %12410 = vmatprep.subr.bf16.mxu1 %v15687_v34  ;;  %v7821_v30 = vmul.f32 %v15282_v41, %v7813_v10  ;;  %v6897_v41 = vld [vmem:[#allocation5 + $0x60] sm:$0xff]  ;;  %v12449_v9 = vpack.c.bf16 %v8536_v15, %v8534_v56  ;;  %v8533_v10 = vld [vmem:[#allocation5 + $0x128] sm:$0xff]  ;;  %v12469_v5 = vpack.c.bf16 %v8556_v40, %v8554_v6 }
0x14f3   :  { %v12413_v25 = vpack.c.bf16 %v6898_v48, %v6897_v41  ;;  %v8541_v48 = vld [vmem:[#allocation5 + $0x308] sm:$0xff]  ;;  %v8559_v15 = vld [vmem:[#allocation5 + $0x740] sm:$0xff] }
0x14f4   :  { %v8557_v56 = vld [vmem:[#allocation5 + $0x6c8] sm:$0xff] }
0x14f5   :  { %12412 = vmatpush3.bf16.msra.mxu1 %v12411_v29  ;;  %12414 = vmatprep.subr.bf16.mxu0 %v12413_v25  ;;  %v8538_v29 = vld [vmem:[#allocation5 + $0x220] sm:$0xff] }
0x14f6   :  { %12416 = vmatpush3.bf16.msra.mxu0 %v12413_v25  ;;  %12446 = vmatprep.subr.bf16.mxu1 %v12445_v61 }
0x14f7   :  { %12418 = vmatprep.subr.bf16.mxu0 %v12417_v14 }
0x14f8   :  { %11778 = vmatmul.mubr.msk.f32.vlgmr.msra.gmra.mrb[138].mxu1 %vm177_vm0, %v7821_v30  ;;  %v8540_v30 = vld [vmem:[#allocation5 + $0x298] sm:$0xff] }
0x14f9   :  { %8637 = vmatprep.mubr.f32.mxu1 %v15678_v22  ;;  %12448 = vmatpush1.bf16.msra.mxu1 %v12447_v45 }
0x14fa   :  { %12420 = vmatpush3.bf16.msra.mxu0 %v12417_v14  ;;  %12450 = vmatprep.subr.bf16.mxu1 %v12449_v9  ;;  %v8546_v14 = vld [vmem:[#allocation5 + $0x400] sm:$0xff] }
0x1545   :  { %v15331_v32 = vpop.f32.mrb[132].mxu1 }
0x1546   :  { %v11713_v55 = vpop.f32.mrb[133].mxu1 }
0x1567   :  { %v8037_v35 = vpop.f32.mrb[102].mxu0 }
0x1568   :  { %v8408_v17 = vadd.f32 %v8037_v35, %v15136_v39  ;;  %v11724_v50 = vpop.f32.mrb[103].mxu0  ;;  %v12421_v39 = vpack.c.bf16 %v6902_v16, %v6901_v31  ;;  %v12453_v35 = vpack.c.bf16 %v8540_v30, %v8538_v29  ;;  %v8548_v31 = vld [vmem:[#allocation5 + $0x478] sm:$0xff]  ;;  %v12459_v16 = vpack.c.bf16 %v8543_v63, %v8541_v48 }
0x1569   :  { %v8539_v50 = vld [vmem:[#allocation5 + $0x290] sm:$0xff] }
0x156a   :  { %8416 = vrot.lane.b32.xlu0 %v8408_v17, %s13275_s15  ;;  %12422 = vmatprep.subr.bf16.mxu0 %v12421_v39  ;;  %v8537_v17 = vld [vmem:[#allocation5 + $0x218] sm:$0xff] }
0x156b   :  { %12424 = vmatpush3.bf16.msra.mxu0 %v12421_v39  ;;  %v12461_v39 = vpack.c.bf16 %v8548_v31, %v8546_v14 }
0x158e   :  { %v8110_v36 = vpop.f32.mrb[134].mxu1 }
0x158f   :  { %v8409_v1 = vadd.f32 %v8110_v36, %v15176_v20  ;;  %v11735_v44 = vpop.f32.mrb[135].mxu1  ;;  %v12425_v20 = vpack.c.bf16 %v6904_v7, %v6903_v0  ;;  %v8542_v36 = vld [vmem:[#allocation5 + $0x310] sm:$0xff]  ;;  %v8545_v0 = vld [vmem:[#allocation5 + $0x3f8] sm:$0xff] }
0x1590   :  { %v8547_v7 = vld [vmem:[#allocation5 + $0x470] sm:$0xff] }
0x1591   :  { %8418 = vrot.lane.b32.xlu1 %v8409_v1, %s13275_s15  ;;  %12426 = vmatprep.subr.bf16.mxu0 %v12425_v20  ;;  %v8544_v1 = vld [vmem:[#allocation5 + $0x388] sm:$0xff]  ;;  %v12463_v49 = vpack.c.bf16 %v8547_v7, %v8545_v0 }
0x1592   :  { %12428 = vmatpush3.bf16.msra.mxu0 %v12425_v20  ;;  %v12457_v41 = vpack.c.bf16 %v8544_v1, %v8542_v36  ;;  %v8550_v20 = vld [vmem:[#allocation5 + $0x4f0] sm:$0xff] }
0x1593   :  { %12430 = vmatprep.subr.bf16.mxu0 %v12429_v28 }
0x1596   :  { %12432 = vmatpush3.bf16.msra.mxu0 %v12429_v28 }
0x1597   :  { %12434 = vmatprep.subr.bf16.mxu0 %v12433_v33 }
0x159a   :  { %12436 = vmatpush3.bf16.msra.mxu0 %v12433_v33 }
0x159b   :  { %12438 = vmatprep.subr.bf16.mxu0 %v12437_v12 }
0x159c   :  { %v8183_v13 = vpop.f32.mrb[104].mxu0 }
0x159d   :  { %v8410_v18 = vadd.f32 %v8183_v13, %v15147_v60  ;;  %v11746_v19 = vpop.f32.mrb[105].mxu0  ;;  %v12441_v60 = vpack.c.bf16 %v6912_v52, %v6911_v8  ;;  %v8552_v13 = vld [vmem:[#allocation5 + $0x568] sm:$0xff] }
0x159e   :  { %12440 = vmatpush3.bf16.msra.mxu0 %v12437_v12  ;;  %v12465_v62 = vpack.c.bf16 %v8552_v13, %v8550_v20  ;;  %v8551_v19 = vld [vmem:[#allocation5 + $0x560] sm:$0xff] }
0x159f   :  { %8424 = vrot.lane.b32.xlu0 %v8410_v18, %s13274_s3  ;;  %12442 = vmatprep.subr.bf16.mxu0 %v12441_v60  ;;  %v8549_v18 = vld [vmem:[#allocation5 + $0x4e8] sm:$0xff] }
0x15a2   :  { %12444 = vmatpush3.bf16.msra.mxu0 %v12441_v60  ;;  %v8407_v60 = vadd.f32 %v15331_v32, %v15107_v58  ;;  %v8558_v58 = vld [vmem:[#allocation5 + $0x6d0] sm:$0xff]  ;;  %v8560_v32 = vld [vmem:[#allocation5 + $0x748] sm:$0xff] }
0x15a3   :  { %11815 = vmatprep.subr.mxu0 %v15678_v22  ;;  %v12473_v53 = vpack.c.bf16 %v8560_v32, %v8558_v58 }
0x15bf   :  { %v8329_v11 = vpop.f32.mrb[106].mxu0 }
0x15c0   :  { %v8412_v42 = vadd.f32 %v8329_v11, %v15163_v26  ;;  %v11768_v38 = vpop.f32.mrb[107].mxu0  ;;  %v8535_v26 = vld [vmem:[#allocation5 + $0x1a0] sm:$0xff] }
0x15c1   :  { %v12451_v55 = vpack.c.bf16 %v8535_v26, %v8533_v10 }
0x15c2   :  { %8432 = vrot.lane.b32.xlu0 %v8412_v42, %s13273_s14 }
0x15c3   :  { %v8256_v43 = vpop.f32.mrb[136].mxu1  ;;  %12452 = vmatpush1.bf16.msra.mxu1 %v12451_v55 }
0x15c4   :  { %v8411_v23 = vadd.f32 %v8256_v43, %v15189_v46  ;;  %v11757_v2 = vpop.f32.mrb[137].mxu1  ;;  %v12455_v46 = vpack.c.bf16 %v8539_v50, %v8537_v17  ;;  %12454 = vmatprep.subr.bf16.mxu1 %v12453_v35  ;;  %v8555_v43 = vld [vmem:[#allocation5 + $0x650] sm:$0xff]  ;;  %v8561_v50 = vld [vmem:[#allocation7 + $0x7] sm:$0x3] }
0x15c5   :  { %v12471_v61 = vpack.c.bf16 %v8555_v43, %v8553_v59  ;;  %v10499_v2 = vld [vmem:[#allocation7 + $0xc] ss:$0 sm:$0xff]  ;;  %v15362_v17 = vld [vmem:[#allocation8 + $0x40] sm:$0x1]  ;;  %v8566_v36 = vrot.slane %v8561_v50, %v15692_v3 }
0x15c6   :  { %8426 = vrot.lane.b32.xlu1 %v8411_v23, %s13274_s3  ;;  %v12475_v23 = vpack.c.bf16 %v8559_v15, %v8557_v56  ;;  %8668 = vrot.lane.b32.xlu0 %v15362_v17, %s13273_s14 }
0x15c7   :  { %12456 = vmatpush1.bf16.msra.mxu1 %v12455_v46 }
0x15c8   :  { %12458 = vmatprep.subr.bf16.mxu1 %v12457_v41 }
0x15cb   :  { %v8402_v44 = vpop.f32.mrb[138].mxu1  ;;  %12460 = vmatpush1.bf16.msra.mxu1 %v12459_v16 }
0x15cc   :  { %v8413_v25 = vadd.f32 %v8402_v44, %v15194_v24  ;;  %v11779_v51 = vpop.f32.mrb[139].mxu1  ;;  %12462 = vmatprep.subr.bf16.mxu1 %v12461_v39  ;;  %v12467_v24 = vpack.c.bf16 %v8551_v19, %v8549_v18  ;;  %v8570_v39 = vrot.slane %v8561_v50, %v15693_v21 }
0x15ce   :  { %8434 = vrot.lane.b32.xlu1 %v8413_v25, %s13273_s14 }
0x15cf   :  { %12464 = vmatpush1.bf16.msra.mxu1 %v12463_v49 }
0x15d0   :  { %12466 = vmatprep.subr.bf16.mxu1 %v12465_v62 }
0x15d3   :  { %12468 = vmatpush1.bf16.msra.mxu1 %v12467_v24 }
0x15d4   :  { %12470 = vmatprep.subr.bf16.mxu1 %v12469_v5 }
0x15d7   :  { %12472 = vmatpush1.bf16.msra.mxu1 %v12471_v61 }
0x15d8   :  { %12474 = vmatprep.subr.bf16.mxu1 %v12473_v53 }
0x15db   :  { %12476 = vmatpush1.bf16.msra.mxu1 %v12475_v23 }
0x15dc   :  { %v8417_v28 = vpop.permute.xlu0 %8416  ;;  %11830 = vmatprep.subr.mxu1 %v15678_v22 }
0x15dd   :  { %v8438_v33 = vsel %vm177_vm0, %v8406_v27, %v8417_v28 }
0x1603   :  { %v8419_v8 = vpop.permute.xlu1 %8418 }
0x1604   :  { %v8439_v11 = vsel %vm177_vm0, %v8407_v60, %v8419_v8 }
0x1611   :  { %v8425_v47 = vpop.permute.xlu0 %8424 }
0x1612   :  { %v8440_v57 = vsel %vm2267_vm2, %v8438_v33, %v8425_v47 }
0x1634   :  { %v8433_v37 = vpop.permute.xlu0 %8432 }
0x1635   :  { %v8442_v12 = vsel %vm2276_vm3, %v8440_v57, %v8433_v37 }
0x1636   :  { %11812 = vmatprep.mubr.f32.mxu0 %v8442_v12 }
0x1638   :  { %v8427_v52 = vpop.permute.xlu1 %8426  ;;  %v15389_v3 = vpop.permute.xlu0 %8668 }
0x1639   :  { %v8441_v42 = vsel %vm2267_vm2, %v8439_v11, %v8427_v52 }
0x1640   :  { %v8435_v38 = vpop.permute.xlu1 %8434 }
0x1641   :  { %v8443_v54 = vsel %vm2276_vm3, %v8441_v42, %v8435_v38 }
0x1642   :  { %11813 = vmatmul.mubr.f32.vlgmr.msra.gmra.mrb[108].mxu0 %v8443_v54 }
0x1643   :  { %11817 = vmatprep.mubr.msk.f32.mxu0 %vm13278_vm4, %v15678_v22 }
0x1715   :  { %v11814_v45 = vpop.f32.mrb[108].mxu0 }
0x1716   :  { %v8516_v9 = vpop.f32.mrb[109].mxu0  ;;  %v8522_v10 = vadd.f32 %v11814_v45, %v10499_v2 }
0x1717   :  { %v8517_v26 = vadd.f32 %v10499_v2, %v8516_v9 }
0x1718   :  { %v8526_v30 = vmax.f32 %v8522_v10, 0.0 }
0x1719   :  { %v8525_v29 = vmax.f32 %v8517_v26, 0.0 }
0x171a   :  { %v8528_v35 = vadd.f32 %v8526_v30, %v8443_v54 }
0x171b   :  { %v8527_v55 = vadd.f32 %v8525_v29, %v8442_v12 }
0x171d   :  { %8638 = vmatmul.mubr.f32.vlgmr.msra.gmra.mrb[140].mxu1 %v8527_v55 }
0x171e   :  { %8643 = vmatprep.mubr.f32.mxu1 %v15678_v22 }
0x1721   :  { %8644 = vmatmul.mubr.f32.gmra.mrb[142].mxu1 %v8528_v35 }
0x1722   :  { %11832 = vmatprep.mubr.msk.f32.mxu1 %vm13278_vm4, %v15678_v22 }
0x17f0   :  { %v8639_v1 = vpop.f32.mrb[140].mxu1 }
0x17f1   :  { %v8640_v46 = vadd.f32 %v8639_v1, %v8566_v36  ;;  %v8641_v44 = vpop.f32.mrb[141].mxu1 }
0x17f2   :  { %v15422_v21 = vadd.f32 %v8641_v44, %v8570_v39 }
0x17f3   :  { %8679 = vrot.lane.b32.xlu1 %v8640_v46, %s13273_s14  ;;  %11816 = vmatpush3.xpose.msk.msra.mxu0 %vm177_vm0, %v8640_v46 }
0x17f4   :  { %v8645_v41 = vpop.f32.mrb[142].mxu1  ;;  %11820 = vmatprep.subr.mxu0 %v15678_v22 }
0x17f5   :  { %v8646_v48 = vadd.f32 %v8645_v41, %v8566_v36  ;;  %v8647_v63 = vpop.f32.mrb[143].mxu1 }
0x17f6   :  { %11818 = vmatmul.mubr.msk.f32.vlgmr.msra.gmra.mrb[110].mxu0 %vm177_vm0, %v15362_v17  ;;  %v15424_v20 = vadd.f32 %v8647_v63, %v8570_v39 }
0x17f7   :  { %8681 = vrot.lane.b32.xlu0 %v8646_v48, %s13273_s14  ;;  %8685 = vrot.lane.b32.xlu1 %v8646_v48, %s13274_s3 }
0x17f8   :  { %11821 = vmatpush3.xpose.msk.msra.mxu0 %vm177_vm0, %v8646_v48  ;;  %11822 = vmatprep.mubr.msk.f32.mxu0 %vm13278_vm4, %v15678_v22 }
0x17f9   :  { %11825 = vmatprep.subr.mxu0 %v15678_v22 }
0x17fb   :  { %11823 = vmatmul.mubr.msk.f32.vlgmr.msra.gmra.mrb[112].mxu0 %vm177_vm0, %v15362_v17  ;;  %8683 = vrot.lane.b32.xlu0 %v8640_v46, %s13274_s3 }
0x17fc   :  { %8671 = vrot.lane.b32.xlu1 %v15362_v17, %s13274_s3  ;;  %11827 = vmatprep.mubr.msk.f32.mxu0 %vm13278_vm4, %v15678_v22 }
0x17ff   :  { %8689 = vrot.lane.b32.xlu0 %v8646_v48, %s13275_s15 }
0x1800   :  { %8687 = vrot.lane.b32.xlu1 %v8640_v46, %s13275_s15 }
0x1803   :  { %8674 = vrot.lane.b32.xlu0 %v15362_v17, %s13275_s15 }
0x1865   :  { %v8680_v25 = vpop.permute.xlu1 %8679 }
0x1866   :  { %11826 = vmatpush3.xpose.msk.msra.mxu0 %vm177_vm0, %v8680_v25 }
0x1867   :  { %11835 = vmatprep.subr.mxu0 %v15678_v22 }
0x1869   :  { %v8682_v51 = vpop.permute.xlu0 %8681  ;;  %v8686_v14 = vpop.permute.xlu1 %8685  ;;  %11828 = vmatmul.mubr.msk.f32.vlgmr.msra.gmra.mrb[114].mxu0 %vm177_vm0, %v15389_v3 }
0x186a   :  { %11831 = vmatpush3.xpose.msk.msra.mxu1 %vm177_vm0, %v8682_v51  ;;  %11837 = vmatprep.mubr.msk.f32.mxu0 %vm13278_vm4, %v15678_v22 }
0x186b   :  { %11840 = vmatprep.subr.mxu1 %v15678_v22 }
0x186d   :  { %11833 = vmatmul.mubr.msk.f32.vlgmr.msra.gmra.mrb[144].mxu1 %vm177_vm0, %v15389_v3  ;;  %v8684_v31 = vpop.permute.xlu0 %8683 }
0x186e   :  { %v15401_v16 = vpop.permute.xlu1 %8671  ;;  %11836 = vmatpush3.xpose.msk.msra.mxu0 %vm177_vm0, %v8684_v31  ;;  %11841 = vmatpush3.xpose.msk.msra.mxu1 %vm177_vm0, %v8686_v14 }
0x186f   :  { %11842 = vmatprep.mubr.msk.f32.mxu1 %vm13278_vm4, %v15678_v22  ;;  %11850 = vmatprep.subr.mxu1 %v15678_v22 }
0x1870   :  { %11845 = vmatprep.subr.mxu0 %v15678_v22 }
0x1871   :  { %v8690_v0 = vpop.permute.xlu0 %8689  ;;  %11843 = vmatmul.mubr.msk.f32.vlgmr.msra.gmra.mrb[146].mxu1 %vm177_vm0, %v15401_v16  ;;  %11838 = vmatmul.mubr.msk.f32.vlgmr.msra.gmra.mrb[116].mxu0 %vm177_vm0, %v15401_v16 }
0x1872   :  { %v8688_v7 = vpop.permute.xlu1 %8687  ;;  %11851 = vmatpush3.xpose.msk.msra.mxu1 %vm177_vm0, %v8690_v0  ;;  %11847 = vmatprep.mubr.msk.f32.mxu0 %vm13278_vm4, %v15678_v22 }
0x1873   :  { %11846 = vmatpush3.xpose.msk.msra.mxu0 %vm177_vm0, %v8688_v7  ;;  %11852 = vmatprep.mubr.msk.f32.mxu1 %vm13278_vm4, %v15678_v22 }
0x1874   :  { %11855 = vmatprep.subr.mxu0 %v15678_v22  ;;  %11860 = vmatprep.subr.mxu1 %v15678_v22 }
0x1875   :  { %v15426_v13 = vpop.permute.xlu0 %8674 }
0x1876   :  { %11848 = vmatmul.mubr.msk.f32.vlgmr.msra.gmra.mrb[118].mxu0 %vm177_vm0, %v15426_v13  ;;  %11853 = vmatmul.mubr.msk.f32.vlgmr.msra.gmra.mrb[148].mxu1 %vm177_vm0, %v15426_v13 }
0x1877   :  { %11856 = vmatpush3.msra.mxu0 %v15422_v21  ;;  %11861 = vmatpush3.msra.mxu1 %v15424_v20 }
0x1878   :  { %11862 = vmatprep.mubr.msk.f32.mxu1 %vm13278_vm4, %v15678_v22  ;;  %11870 = vmatprep.subr.mxu1 %v15678_v22 }
0x1879   :  { %11857 = vmatprep.mubr.msk.f32.mxu0 %vm13278_vm4, %v15678_v22  ;;  %11865 = vmatprep.subr.mxu0 %v15678_v22 }
0x18c9   :  { %v8781_v49 = vpop.f32.mrb[110].mxu0 }
0x18ca   :  { %v9296_v62 = vsel %vm9295_vm6, %v8781_v49, -inf  ;;  %v11819_v18 = vpop.f32.mrb[111].mxu0 }
0x18cb   :  { %9297 = vmax.xlane.f32.xlu0 %v9296_v62 }
0x18ce   :  { %v8853_v19 = vpop.f32.mrb[112].mxu0 }
0x18cf   :  { %v9299_v24 = vsel %vm9295_vm6, %v8853_v19, -inf  ;;  %v11824_v28 = vpop.f32.mrb[113].mxu0 }
0x18d0   :  { %9300 = vmax.xlane.f32.xlu1 %v9299_v24 }
0x193c   :  { %v8927_v47 = vpop.f32.mrb[114].mxu0 }
0x193d   :  { %v11829_v27 = vpop.f32.mrb[115].mxu0  ;;  %v9302_v33 = vsel %vm9295_vm6, %v8927_v47, -inf }
0x193e   :  { %9303 = vmax.xlane.f32.xlu1 %v9302_v33 }
0x1940   :  { %v8999_v57 = vpop.f32.mrb[144].mxu1 }
0x1941   :  { %v11834_v37 = vpop.f32.mrb[145].mxu1  ;;  %v9305_v12 = vsel %vm9295_vm6, %v8999_v57, -inf }
0x1942   :  { %9306 = vmax.xlane.f32.xlu0 %v9305_v12 }
0x1944   :  { %v9073_v8 = vpop.f32.mrb[116].mxu0  ;;  %v9145_v52 = vpop.f32.mrb[146].mxu1 }
0x1945   :  { %v9311_v60 = vsel %vm9295_vm6, %v9145_v52, -inf  ;;  %v9308_v11 = vsel %vm9295_vm6, %v9073_v8, -inf  ;;  %v11839_v42 = vpop.f32.mrb[117].mxu0  ;;  %v11844_v38 = vpop.f32.mrb[147].mxu1 }
0x1946   :  { %9312 = vmax.xlane.f32.xlu0 %v9311_v60  ;;  %9309 = vmax.xlane.f32.xlu1 %v9308_v11 }
0x1949   :  { %v9219_v54 = vpop.f32.mrb[118].mxu0  ;;  %v9291_v6 = vpop.f32.mrb[148].mxu1 }
0x194a   :  { %v9317_v40 = vsel %vm9295_vm6, %v9291_v6, -inf  ;;  %v9314_v5 = vsel %vm9295_vm6, %v9219_v54, -inf  ;;  %v11849_v59 = vpop.f32.mrb[119].mxu0  ;;  %v11854_v43 = vpop.f32.mrb[149].mxu1 }
0x194b   :  { %9318 = vmax.xlane.f32.xlu0 %v9317_v40  ;;  %9315 = vmax.xlane.f32.xlu1 %v9314_v5 }
0x1958   :  { %v9298_v32 = vpop.xlane.xlu0 %9297 }
0x1959   :  { %v9320_v53 = vsub.f32 %v8781_v49, %v9298_v32 }
0x195b   :  { %v9328_v15 = vmul.f32 1.442695, %v9320_v53 }
0x195c   :  { %8693 = vrot.lane.b32.xlu1 %v15422_v21, %s13273_s14 }
0x195d   :  { %v9301_v61 = vpop.xlane.xlu1 %9300 }
0x195e   :  { %v9321_v58 = vsub.f32 %v8853_v19, %v9301_v61 }
0x1960   :  { %8701 = vrot.lane.b32.xlu1 %v15424_v20, %s13274_s3  ;;  %v9330_v56 = vmul.f32 1.442695, %v9321_v58 }
0x1961   :  { %8695 = vrot.lane.b32.xlu0 %v15424_v20, %s13273_s14 }
0x1962   :  { %13103 = vpow2.f32 %v9330_v56 }
0x1963   :  { %13105 = vpow2.f32 %v9328_v15 }
0x196c   :  { %v15454_v23 = vpop.eup %13103 }
0x196d   :  { %v9347_v2 = vsel %vm9295_vm6, %v15454_v23, 0.0  ;;  %v15458_v45 = vpop.eup %13105 }
0x196e   :  { %v9344_v9 = vsel %vm9295_vm6, %v15458_v45, 0.0 }
0x1980   :  { %9348 = vadd.xlane.f32.xlu0 %v9347_v2 }
0x1984   :  { %9345 = vadd.xlane.f32.xlu1 %v9344_v9 }
0x19cb   :  { %v9304_v10 = vpop.xlane.xlu1 %9303 }
0x19cc   :  { %v9322_v26 = vsub.f32 %v8927_v47, %v9304_v10 }
0x19ce   :  { %v9332_v29 = vmul.f32 1.442695, %v9322_v26 }
0x19cf   :  { %v9307_v30 = vpop.xlane.xlu0 %9306 }
0x19d0   :  { %13107 = vpow2.f32 %v9332_v29  ;;  %v9323_v55 = vsub.f32 %v8999_v57, %v9307_v30 }
0x19d2   :  { %v9334_v35 = vmul.f32 1.442695, %v9323_v55 }
0x19d3   :  { %v9313_v50 = vpop.xlane.xlu0 %9312  ;;  %v9310_v36 = vpop.xlane.xlu1 %9309 }
0x19d4   :  { %13109 = vpow2.f32 %v9334_v35  ;;  %v9325_v1 = vsub.f32 %v9145_v52, %v9313_v50  ;;  %v9324_v46 = vsub.f32 %v9073_v8, %v9310_v36 }
0x19d6   :  { %v9338_v44 = vmul.f32 1.442695, %v9325_v1  ;;  %v9336_v41 = vmul.f32 1.442695, %v9324_v46 }
0x19d8   :  { %13111 = vpow2.f32 %v9338_v44  ;;  %v9319_v48 = vpop.xlane.xlu0 %9318  ;;  %v9316_v63 = vpop.xlane.xlu1 %9315 }
0x19d9   :  { %13113 = vpow2.f32 %v9336_v41  ;;  %v9327_v25 = vsub.f32 %v9291_v6, %v9319_v48  ;;  %v9326_v51 = vsub.f32 %v9219_v54, %v9316_v63 }
0x19da   :  { %v15462_v14 = vpop.eup %13107 }
0x19db   :  { %v9342_v31 = vmul.f32 1.442695, %v9327_v25  ;;  %v9340_v39 = vmul.f32 1.442695, %v9326_v51  ;;  %v9350_v0 = vsel %vm9295_vm6, %v15462_v14, 0.0 }
0x19dc   :  { %9351 = vadd.xlane.f32.xlu1 %v9350_v0  ;;  %v8694_v57 = vpop.permute.xlu1 %8693  ;;  %v8696_v37 = vpop.permute.xlu0 %8695 }
0x19dd   :  { %13115 = vpow2.f32 %v9342_v31 }
0x19de   :  { %v15466_v7 = vpop.eup %13109  ;;  %13117 = vpow2.f32 %v9340_v39 }
0x19df   :  { %v9353_v49 = vsel %vm9295_vm6, %v15466_v7, 0.0 }
0x19e0   :  { %9354 = vadd.xlane.f32.xlu0 %v9353_v49  ;;  %v8702_v12 = vpop.permute.xlu1 %8701 }
0x19e2   :  { %v15470_v62 = vpop.eup %13111 }
0x19e3   :  { %v15472_v18 = vpop.eup %13113  ;;  %v9359_v19 = vsel %vm9295_vm6, %v15470_v62, 0.0 }
0x19e4   :  { %9360 = vadd.xlane.f32.xlu0 %v9359_v19  ;;  %v9356_v24 = vsel %vm9295_vm6, %v15472_v18, 0.0 }
0x19e5   :  { %9357 = vadd.xlane.f32.xlu1 %v9356_v24 }
0x19e7   :  { %v15478_v28 = vpop.eup %13115 }
0x19e8   :  { %v15480_v47 = vpop.eup %13117  ;;  %v9365_v27 = vsel %vm9295_vm6, %v15478_v28, 0.0 }
0x19e9   :  { %9366 = vadd.xlane.f32.xlu0 %v9365_v27  ;;  %v9362_v33 = vsel %vm9295_vm6, %v15480_v47, 0.0 }
0x19ea   :  { %9363 = vadd.xlane.f32.xlu1 %v9362_v33  ;;  %v8651_v33 = vld [vmem:[#allocation5 + $0xe0] sm:$0xff] }
0x19fb   :  { %8707 = vrot.lane.b32.xlu1 %v15424_v20, %s13275_s15 }
0x19ff   :  { %8699 = vrot.lane.b32.xlu0 %v15422_v21, %s13274_s3 }
0x1a03   :  { %8705 = vrot.lane.b32.xlu0 %v15422_v21, %s13275_s15 }
0x1a0d   :  { %v9349_v8 = vpop.xlane.xlu0 %9348 }
0x1a0e   :  { %13119 = vrcp.f32 %v9349_v8 }
0x1a11   :  { %v9346_v52 = vpop.xlane.xlu1 %9345 }
0x1a12   :  { %13121 = vrcp.f32 %v9346_v52 }
0x1a18   :  { %v13120_v60 = vpop.eup %13119 }
0x1a19   :  { %v9377_v11 = vmul.f32 %v13120_v60, %v9349_v8 }
0x1a1b   :  { %v9385_v42 = vsub.f32 2.0, %v9377_v11 }
0x1a1c   :  { %v13122_v38 = vpop.eup %13121 }
0x1a1d   :  { %v9393_v54 = vmul.f32 %v13120_v60, %v9385_v42  ;;  %v9376_v6 = vmul.f32 %v13122_v38, %v9346_v52  ;;  %v8655_v52 = vld [vmem:[#allocation5 + $0x2c0] sm:$0xff] }
0x1a1f   :  { %v9401_v20 = vmul.f32 %v15454_v23, %v9393_v54  ;;  %v9384_v40 = vsub.f32 2.0, %v9376_v6  ;;  %v8656_v54 = vld [vmem:[#allocation5 + $0x338] sm:$0xff]  ;;  %v8657_v6 = vld [vmem:[#allocation5 + $0x3b0] sm:$0xff] }
0x1a21   :  { %v9392_v5 = vmul.f32 %v13122_v38, %v9384_v40  ;;  %11863 = vmatmul.mubr.msk.f32.vlgmr.msra.gmra.mrb[150].mxu1 %vm906_vm1, %v9401_v20  ;;  %v12487_v20 = vpack.c.bf16 %v8657_v6, %v8656_v54  ;;  %v8658_v40 = vld [vmem:[#allocation5 + $0x428] sm:$0xff]  ;;  %v10148_v6 = vld [vmem:[#allocation5 + $0x430] sm:$0xff] }
0x1a22   :  { %11871 = vmatpush3.msra.mxu1 %v8696_v37  ;;  %11872 = vmatprep.mubr.msk.f32.mxu1 %vm13278_vm4, %v15678_v22 }
0x1a23   :  { %v9400_v21 = vmul.f32 %v15458_v45, %v9392_v5  ;;  %11880 = vmatprep.subr.mxu1 %v15678_v22  ;;  %v8659_v5 = vld [vmem:[#allocation5 + $0x4a0] sm:$0xff] }
0x1a25   :  { %11858 = vmatmul.mubr.msk.f32.vlgmr.msra.gmra.mrb[120].mxu0 %vm906_vm1, %v9400_v21  ;;  %v12490_v21 = vpack.c.bf16 %v8659_v5, %v8658_v40 }
0x1a26   :  { %11866 = vmatpush3.msra.mxu0 %v8694_v57  ;;  %11867 = vmatprep.mubr.msk.f32.mxu0 %vm13278_vm4, %v15678_v22  ;;  %v8652_v57 = vld [vmem:[#allocation5 + $0x158] sm:$0xff] }
0x1a27   :  { %11875 = vmatprep.subr.mxu0 %v15678_v22 }
0x1a69   :  { %v9352_v59 = vpop.xlane.xlu1 %9351 }
0x1a6a   :  { %13123 = vrcp.f32 %v9352_v59 }
0x1a6d   :  { %v9355_v43 = vpop.xlane.xlu0 %9354 }
0x1a6e   :  { %13125 = vrcp.f32 %v9355_v43 }
0x1a71   :  { %v9361_v61 = vpop.xlane.xlu0 %9360 }
0x1a72   :  { %13127 = vrcp.f32 %v9361_v61  ;;  %v9358_v58 = vpop.xlane.xlu1 %9357 }
0x1a73   :  { %13129 = vrcp.f32 %v9358_v58 }
0x1a74   :  { %v13124_v32 = vpop.eup %13123 }
0x1a75   :  { %v9378_v53 = vmul.f32 %v13124_v32, %v9352_v59  ;;  %v8660_v59 = vld [vmem:[#allocation5 + $0x518] sm:$0xff] }
0x1a76   :  { %v9367_v56 = vpop.xlane.xlu0 %9366 }
0x1a77   :  { %v9386_v15 = vsub.f32 2.0, %v9378_v53  ;;  %13131 = vrcp.f32 %v9367_v56  ;;  %v9364_v23 = vpop.xlane.xlu1 %9363 }
0x1a78   :  { %v13126_v2 = vpop.eup %13125  ;;  %13133 = vrcp.f32 %v9364_v23 }
0x1a79   :  { %v9394_v45 = vmul.f32 %v13124_v32, %v9386_v15  ;;  %v9379_v9 = vmul.f32 %v13126_v2, %v9355_v43  ;;  %v8661_v43 = vld [vmem:[#allocation5 + $0x590] sm:$0xff]  ;;  %v8663_v32 = vld [vmem:[#allocation5 + $0x680] sm:$0xff] }
0x1a7a   :  { %v8700_v50 = vpop.permute.xlu0 %8699 }
0x1a7b   :  { %v9402_v10 = vmul.f32 %v15462_v14, %v9394_v45  ;;  %v9387_v26 = vsub.f32 2.0, %v9379_v9  ;;  %v8708_v49 = vpop.permute.xlu1 %8707  ;;  %v8664_v45 = vld [vmem:[#allocation5 + $0x6f8] sm:$0xff]  ;;  %v8665_v9 = vld [vmem:[#allocation5 + $0x770] sm:$0xff] }
0x1a7c   :  { %v13128_v29 = vpop.eup %13127 }
0x1a7d   :  { %v13130_v30 = vpop.eup %13129  ;;  %v9395_v55 = vmul.f32 %v13126_v2, %v9387_v26  ;;  %v9381_v35 = vmul.f32 %v13128_v29, %v9361_v61  ;;  %11868 = vmatmul.mubr.msk.f32.vlgmr.msra.gmra.mrb[122].mxu0 %vm906_vm1, %v9402_v10  ;;  %v12493_v61 = vpack.c.bf16 %v8661_v43, %v8660_v59  ;;  %v10153_v59 = vld [vmem:[#allocation5 + $0x688] sm:$0xff] }
0x1a7e   :  { %v9380_v36 = vmul.f32 %v13130_v30, %v9358_v58  ;;  %11876 = vmatpush3.msra.mxu0 %v8700_v50  ;;  %11877 = vmatprep.mubr.msk.f32.mxu0 %vm13278_vm4, %v15678_v22  ;;  %v8706_v24 = vpop.permute.xlu0 %8705  ;;  %v8662_v58 = vld [vmem:[#allocation5 + $0x608] sm:$0xff] }
0x1a7f   :  { %v9403_v1 = vmul.f32 %v15466_v7, %v9395_v55  ;;  %v9389_v46 = vsub.f32 2.0, %v9381_v35  ;;  %11885 = vmatprep.subr.mxu0 %v15678_v22 }
0x1a80   :  { %v9388_v44 = vsub.f32 2.0, %v9380_v36  ;;  %v10140_v36 = vld [vmem:[#allocation5 + $0x70] sm:$0xff] }
0x1a81   :  { %v13132_v41 = vpop.eup %13131  ;;  %v9397_v48 = vmul.f32 %v13128_v29, %v9389_v46  ;;  %11873 = vmatmul.mubr.msk.f32.vlgmr.msra.gmra.mrb[152].mxu1 %vm906_vm1, %v9403_v1  ;;  %v12499_v29 = vpack.c.bf16 %v8665_v9, %v8664_v45  ;;  %v10141_v1 = vld [vmem:[#allocation5 + $0xe8] sm:$0xff]  ;;  %v10142_v46 = vld [vmem:[#allocation5 + $0x160] sm:$0xff] }
0x1a82   :  { %v13134_v63 = vpop.eup %13133  ;;  %v9396_v25 = vmul.f32 %v13130_v30, %v9388_v44  ;;  %v9383_v51 = vmul.f32 %v13132_v41, %v9367_v56  ;;  %11881 = vmatpush3.msra.mxu1 %v8702_v12  ;;  %11882 = vmatprep.mubr.msk.f32.mxu1 %vm13278_vm4, %v15678_v22  ;;  %v8653_v12 = vld [vmem:[#allocation5 + $0x1d0] sm:$0xff]  ;;  %v12496_v56 = vpack.c.bf16 %v8663_v32, %v8662_v58  ;;  %v10155_v58 = vld [vmem:[#allocation5 + $0x778] sm:$0xff] }
0x1a83   :  { %v9405_v14 = vmul.f32 %v15470_v62, %v9397_v48  ;;  %v9382_v31 = vmul.f32 %v13134_v63, %v9364_v23  ;;  %11890 = vmatprep.subr.mxu1 %v15678_v22  ;;  %v12481_v8 = vpack.c.bf16 %v8653_v12, %v8652_v57  ;;  %v12502_v48 = vpack.c.bf16 %v10141_v1, %v10140_v36 }
0x1a84   :  { %v9404_v39 = vmul.f32 %v15472_v18, %v9396_v25  ;;  %v9391_v0 = vsub.f32 2.0, %v9383_v51  ;;  %v10144_v51 = vld [vmem:[#allocation5 + $0x250] sm:$0xff] }
0x1a85   :  { %v9390_v7 = vsub.f32 2.0, %v9382_v31  ;;  %11883 = vmatmul.mubr.msk.f32.vlgmr.msra.gmra.mrb[154].mxu1 %vm906_vm1, %v9405_v14  ;;  %v10145_v14 = vld [vmem:[#allocation5 + $0x2c8] sm:$0xff] }
0x1a86   :  { %v9399_v19 = vmul.f32 %v13132_v41, %v9391_v0  ;;  %11878 = vmatmul.mubr.msk.f32.vlgmr.msra.gmra.mrb[124].mxu0 %vm906_vm1, %v9404_v39  ;;  %11891 = vmatpush3.msra.mxu1 %v8708_v49  ;;  %v10146_v49 = vld [vmem:[#allocation5 + $0x340] sm:$0xff] }
0x1a87   :  { %v9398_v27 = vmul.f32 %v13134_v63, %v9390_v7  ;;  %11886 = vmatpush3.msra.mxu0 %v8706_v24  ;;  %11887 = vmatprep.mubr.msk.f32.mxu0 %vm13278_vm4, %v15678_v22 }
0x1a88   :  { %v9407_v62 = vmul.f32 %v15478_v28, %v9399_v19  ;;  %11892 = vmatprep.mubr.msk.f32.mxu1 %vm13278_vm4, %v15678_v22  ;;  %12477 = vmatprep.subr.bf16.mxu0 %v15687_v34  ;;  %v8650_v28 = vld [vmem:[#allocation5 + $0x68] sm:$0xff]  ;;  %v10147_v19 = vld [vmem:[#allocation5 + $0x3b8] sm:$0xff] }
0x1a89   :  { %v9406_v18 = vmul.f32 %v15480_v47, %v9398_v27  ;;  %12501 = vmatprep.subr.bf16.mxu1 %v15687_v34  ;;  %v12478_v37 = vpack.c.bf16 %v8651_v33, %v8650_v28  ;;  %v8654_v47 = vld [vmem:[#allocation5 + $0x248] sm:$0xff]  ;;  %v12511_v27 = vpack.c.bf16 %v10147_v19, %v10146_v49 }
0x1a8a   :  { %11893 = vmatmul.mubr.msk.f32.vlgmr.msra.gmra.mrb[156].mxu1 %vm906_vm1, %v9407_v62  ;;  %v12484_v60 = vpack.c.bf16 %v8655_v52, %v8654_v47 }
0x1a8b   :  { %11888 = vmatmul.mubr.msk.f32.vlgmr.msra.gmra.mrb[126].mxu0 %vm906_vm1, %v9406_v18  ;;  %11962 = vmatprep.mubr.msk.f32.mxu1 %vm13278_vm4, %v15678_v22 }
0x1a8c   :  { %11927 = vmatprep.mubr.msk.f32.mxu0 %vm13278_vm4, %v15678_v22  ;;  %12479 = vmatpush3.bf16.msra.mxu0 %v12478_v37 }
0x1a8d   :  { %12480 = vmatprep.subr.bf16.mxu0 %v15687_v34  ;;  %12503 = vmatpush3.bf16.msra.mxu1 %v12502_v48 }
0x1a8e   :  { %12504 = vmatprep.subr.bf16.mxu1 %v15687_v34 }
0x1a90   :  { %12482 = vmatpush3.bf16.msra.mxu0 %v12481_v8 }
0x1a91   :  { %12483 = vmatprep.subr.bf16.mxu0 %v15687_v34 }
0x1a94   :  { %12485 = vmatpush3.bf16.msra.mxu0 %v12484_v60 }
0x1a95   :  { %12486 = vmatprep.subr.bf16.mxu0 %v15687_v34 }
0x1a98   :  { %12488 = vmatpush3.bf16.msra.mxu0 %v12487_v20  ;;  %v10149_v20 = vld [vmem:[#allocation5 + $0x4a8] sm:$0xff] }
0x1a99   :  { %12489 = vmatprep.subr.bf16.mxu0 %v15687_v34  ;;  %v12514_v40 = vpack.c.bf16 %v10149_v20, %v10148_v6 }
0x1a9c   :  { %12491 = vmatpush3.bf16.msra.mxu0 %v12490_v21  ;;  %v10152_v21 = vld [vmem:[#allocation5 + $0x610] sm:$0xff] }
0x1a9d   :  { %12492 = vmatprep.subr.bf16.mxu0 %v15687_v34  ;;  %v12520_v43 = vpack.c.bf16 %v10153_v59, %v10152_v21 }
0x1aa0   :  { %12494 = vmatpush3.bf16.msra.mxu0 %v12493_v61  ;;  %v10154_v61 = vld [vmem:[#allocation5 + $0x700] sm:$0xff] }
0x1aa1   :  { %12495 = vmatprep.subr.bf16.mxu0 %v15687_v34  ;;  %v12523_v32 = vpack.c.bf16 %v10155_v58, %v10154_v61 }
0x1aa4   :  { %12497 = vmatpush3.bf16.msra.mxu0 %v12496_v56 }
0x1aa5   :  { %12498 = vmatprep.subr.bf16.mxu0 %v15687_v34 }
0x1aa8   :  { %12500 = vmatpush3.bf16.msra.mxu0 %v12499_v29 }
0x1af4   :  { %v15533_v11 = vpop.f32.mrb[150].mxu1 }
0x1af5   :  { %v11864_v22 = vpop.f32.mrb[151].mxu1  ;;  %v9993_v33 = vadd.f32 %v15533_v11, %v15362_v17 }
0x1af8   :  { %v15535_v42 = vpop.f32.mrb[120].mxu0 }
0x1af9   :  { %v11859_v38 = vpop.f32.mrb[121].mxu0  ;;  %v9992_v12 = vadd.f32 %v15535_v42, %v15362_v17  ;;  %v10150_v17 = vld [vmem:[#allocation5 + $0x520] sm:$0xff]  ;;  %v10151_v42 = vld [vmem:[#allocation5 + $0x598] sm:$0xff] }
0x1afa   :  { %v12517_v5 = vpack.c.bf16 %v10151_v42, %v10150_v17 }
0x1b50   :  { %v9623_v53 = vpop.f32.mrb[122].mxu0 }
0x1b51   :  { %v9994_v15 = vadd.f32 %v9623_v53, %v15389_v3  ;;  %v11869_v23 = vpop.f32.mrb[123].mxu0  ;;  %v13279_v53 = vmov 1966171168  }
0x1b52   :  { %v10115_v56 = vunpack.c.l.s4 %v13279_v53  ;;  %v10524_v23 = vld [vmem:[#allocation7 + $0xd] ss:$0 sm:$0xff] }
0x1b53   :  { %10002 = vrot.lane.b32.xlu1 %v9994_v15, %s13275_s15 }
0x1b54   :  { %v9696_v2 = vpop.f32.mrb[152].mxu1  ;;  %v10116_v15 = vunpack.c.0.s8 %v10115_v56 }
0x1b55   :  { %v9995_v10 = vadd.f32 %v9696_v2, %v15389_v3  ;;  %v11874_v26 = vpop.f32.mrb[153].mxu1  ;;  %v10143_v3 = vld [vmem:[#allocation5 + $0x1d8] sm:$0xff] }
0x1b56   :  { %v12505_v63 = vpack.c.bf16 %v10143_v3, %v10142_v46  ;;  %v10119_v9 = vsub.s32 %v10116_v15, %v15695_v4  ;;  %v10525_v46 = vld [vmem:[#allocation7 + $0xe] ss:$0 sm:$0xff] }
0x1b57   :  { %10004 = vrot.lane.b32.xlu1 %v9995_v10, %s13275_s15 }
0x1b58   :  { %v9842_v30 = vpop.f32.mrb[154].mxu1  ;;  %12506 = vmatpush3.bf16.msra.mxu1 %v12505_v63 }
0x1b59   :  { %v9769_v55 = vpop.f32.mrb[124].mxu0  ;;  %v9997_v35 = vadd.f32 %v9842_v30, %v15401_v16  ;;  %v11884_v50 = vpop.f32.mrb[155].mxu1  ;;  %12507 = vmatprep.subr.bf16.mxu1 %v15687_v34 }
0x1b5a   :  { %v9996_v44 = vadd.f32 %v9769_v55, %v15401_v16  ;;  %v11879_v41 = vpop.f32.mrb[125].mxu0  ;;  %v12508_v16 = vpack.c.bf16 %v10145_v14, %v10144_v51 }
0x1b5b   :  { %10012 = vrot.lane.b32.xlu0 %v9997_v35, %s13274_s3 }
0x1b5c   :  { %10010 = vrot.lane.b32.xlu1 %v9996_v44, %s13274_s3  ;;  %12509 = vmatpush3.bf16.msra.mxu1 %v12508_v16 }
0x1b5d   :  { %v9988_v25 = vpop.f32.mrb[156].mxu1  ;;  %12510 = vmatprep.subr.bf16.mxu1 %v15687_v34 }
0x1b5e   :  { %v9915_v31 = vpop.f32.mrb[126].mxu0  ;;  %v9999_v39 = vadd.f32 %v9988_v25, %v15426_v13  ;;  %v11894_v0 = vpop.f32.mrb[157].mxu1 }
0x1b5f   :  { %v11889_v7 = vpop.f32.mrb[127].mxu0  ;;  %v9998_v24 = vadd.f32 %v9915_v31, %v15426_v13 }
0x1b60   :  { %10020 = vrot.lane.b32.xlu0 %v9999_v39, %s13273_s14  ;;  %12512 = vmatpush3.bf16.msra.mxu1 %v12511_v27 }
0x1b61   :  { %12513 = vmatprep.subr.bf16.mxu1 %v15687_v34 }
0x1b64   :  { %10018 = vrot.lane.b32.xlu0 %v9998_v24, %s13273_s14  ;;  %12515 = vmatpush3.bf16.msra.mxu1 %v12514_v40 }
0x1b65   :  { %12516 = vmatprep.subr.bf16.mxu1 %v15687_v34 }
0x1b68   :  { %12518 = vmatpush3.bf16.msra.mxu1 %v12517_v5 }
0x1b69   :  { %12519 = vmatprep.subr.bf16.mxu1 %v15687_v34 }
0x1b6c   :  { %12521 = vmatpush3.bf16.msra.mxu1 %v12520_v43 }
0x1b6d   :  { %12522 = vmatprep.subr.bf16.mxu1 %v15687_v34 }
0x1b70   :  { %12524 = vmatpush3.bf16.msra.mxu1 %v12523_v32 }
0x1bc5   :  { %v10003_v62 = vpop.permute.xlu1 %10002 }
0x1bc6   :  { %v10024_v52 = vsel %vm177_vm0, %v9992_v12, %v10003_v62 }
0x1bc9   :  { %v10005_v18 = vpop.permute.xlu1 %10004 }
0x1bca   :  { %v10025_v57 = vsel %vm177_vm0, %v9993_v33, %v10005_v18 }
0x1bcd   :  { %v10013_v28 = vpop.permute.xlu0 %10012 }
0x1bce   :  { %v10027_v37 = vsel %vm2267_vm2, %v10025_v57, %v10013_v28  ;;  %v10011_v8 = vpop.permute.xlu1 %10010 }
0x1bcf   :  { %v10026_v60 = vsel %vm2267_vm2, %v10024_v52, %v10011_v8 }
0x1bd2   :  { %v10021_v13 = vpop.permute.xlu0 %10020 }
0x1bd3   :  { %v10029_v47 = vsel %vm2276_vm3, %v10027_v37, %v10021_v13 }
0x1bd4   :  { %v10038_v22 = vrot.slane %v10029_v47, 7 }
0x1bd6   :  { %v10019_v38 = vpop.permute.xlu0 %10018 }
0x1bd7   :  { %v10028_v11 = vsel %vm2276_vm3, %v10026_v60, %v10019_v38 }
0x1bd8   :  { %v10040_v54 = vsel %vm10039_vm7, %v10038_v22, %v10028_v11 }
0x1bd9   :  { %11928 = vmatmul.mubr.f32.vlgmr.msra.gmra.mrb[128].mxu0 %v10040_v54 }
0x1cac   :  { %v10108_v2 = vpop.f32.mrb[128].mxu0 }
0x1cad   :  { %v10109_v45 = vadd.f32 %v10524_v23, %v10108_v2  ;;  %v11929_v10 = vpop.f32.mrb[129].mxu0 }
0x1caf   :  { %v10112_v26 = vmax.f32 %v10109_v45, 0.0 }
0x1cb1   :  { %v10120_v29 = vrot.slane %v10112_v26, %v10119_v9 }
0x1cb3   :  { %v10121_v30 = vcombine.high %v10120_v29, %v10120_v29  ;;  %v10128_v55 = vrot.slane %v10120_v29, %v10119_v9 }
0x1cb5   :  { %v10135_v35 = vrot.slane %v10121_v30, %v10119_v9  ;;  %v10138_v36 = vadd.f32 %v10128_v55, %v10028_v11 }
0x1cb7   :  { %v10139_v50 = vadd.f32 %v10135_v35, %v10029_v47 }
0x1cb9   :  { %v10165_v1 = vrot.slane %v10139_v50, 7 }
0x1cbb   :  { %v10166_v34 = vsel %vm10039_vm7, %v10165_v1, %v10138_v36 }
0x1cbc   :  { %11963 = vmatmul.mubr.f32.vlgmr.msra.gmra.mrb[158].mxu1 %v10166_v34 }
0x1d8f   :  { %v10234_v44 = vpop.f32.mrb[158].mxu1 }
0x1d90   :  { %v10235_v41 = vadd.f32 %v10525_v46, %v10234_v44  ;;  %v11964_v48 = vpop.f32.mrb[159].mxu1 }
0x1d92   :  { %10238 = vst [vmem:[#allocation10] sm:$0x3] %v10235_v41 }
0x1d93   :  { %13244 = shalt.err (!%p13241_p8)
}
0x1d94   :  { %s13245_s21 = scalar_lea.hbm %s15589_s4, 32 }
0x1d95   :  { %p13246_p9 = scmp.ne.s32.totalorder %s15589_s4, %s13245_s21  ;;  %p13249_p10 = scmp.lt.u32.totalorder %s13245_s21, %s15589_s4 }
0x1d97   :  { %p13251_p11 = pnand %p13249_p10, %p13246_p9 }
0x1d99   :  { %13254 = shalt.err (!%p13251_p11)
}
0x1d9a   :  { %10248 = dma.vmem_to_hbm [thread:$0]  %s10246_s17, 32, %s15589_s4, [#allocation4]  }
0x1d9b   :  { %13261 = dma.done.wait [#allocation4], 32  }
0x1d9c   :  { %13262 = vsyncadd [#allocation4], 4294967264 }
0x1d9d   :  { %10252 = vsyncpa [#allocation3], 1 }
0x1d9e   :  { %10253 = vsyncpa [#allocation6], 1 }
0x1d9f   :  { %10254 = vsyncpa [#allocation9], 1 }
0x1da0   :  { %10255 = vsyncpa [#allocation4], 1 }

</bundles_post_ra>
